<compile_context>
chip_gen: v5e
topology: v5e:2x2
jax: 0.10.0
libtpu: 0.0.40
codegen_flags: <defaults>
</compile_context>

<pallas_src>
import numpy as np
import jax
import jax.numpy as jnp
from jax.experimental import pallas as pl
from jax.experimental.pallas import tpu as pltpu

# ----- small, module-consistent hyperparameters -----
L = 10            # backcast_length
F = 5             # forecast_length (== out_size handed to Parallel_NBeatsNet)
H = 32            # inner_size
DUP = 2           # duplicate == controler_size == heads
DEPTH = 3         # depth of every grouped-conv MLP
STACKS = 2
BLOCKS_PER_STACK = 2
NB = STACKS * BLOCKS_PER_STACK   # number of Parallel_Blocks

H2 = DUP * H          # 64  packed hidden width
L2 = DUP * L          # 20  packed backcast width
F2 = DUP * F          # 10  packed forecast width
BF2 = L2 + F2         # 30  packed state width
N_MID = (DEPTH - 1) * (1 + NB)   # 10 shared-shape (64,64) mid layers
OUT_LANES = 128       # lane-dense packed output width
TB = 256              # batch tile (rows per MXU pass; >=256 for v6e/v7x)

# ---- bf16 weight-slab row layout (all offsets multiples of 16) ----
ROW_CW0 = 0                                  # (L, H2)   controller first layer
ROW_CWD = 16                                 # (H2, L2)  controller sigmoid-diff last layer
ROW_MID = 80                                 # N_MID x (H2, H2) mid layers
ROW_BW0 = ROW_MID + N_MID * H2               # 720: NB x (L2, H2) block first layers (32-row stride)
ROW_BWH = ROW_BW0 + 32 * NB                  # 848: NB x (H2, BF2) fused +/- heads
RW = ROW_BWH + H2 * NB                       # 1104 total rows

# ---- f32 bias/M-slab row layout ----
BROW_CB0 = 0
BROW_CBD = 1
BROW_MID = 2
BROW_BB0 = BROW_MID + N_MID                  # 12
BROW_BBH = BROW_BB0 + NB                     # 16
BROW_M = 24                                  # (BF2, L+F) pair-mean matrix (exact 1/16 entries)
RB = 56

# TODO(synk): scale/locate/noise nn.Embedding lookups and layer_1..layer_4
# Linear layers exist in the torch module but their outputs are never used in
# forward(); they are intentionally omitted (no effect on returned values).


def irnet_kernel(x_ref, w_ref, b_ref, out_ref):
    f32, bf16 = jnp.float32, jnp.bfloat16
    tb = x_ref.shape[0]

    def mm(a, w):
        # bf16 x bf16 MXU matmul, f32 accumulation.
        return jnp.dot(a.astype(bf16), w, preferred_element_type=f32)

    def wmat(r0, nr, nc):
        return w_ref[r0:r0 + nr, 0:nc]          # static slice of bf16 weight slab

    def bvec(r, nc):
        return b_ref[r:r + 1, 0:nc]              # (1, nc) f32 bias row

    def mid_layers(h, base):
        for d in range(DEPTH - 1):
            i = base + d
            h = jnp.maximum(
                mm(h, wmat(ROW_MID + i * H2, H2, H2)) + bvec(BROW_MID + i, H2), 0.0)
        return h

    x = x_ref[...]                                                      # (TB, L) f32

    # ---- Parallel_Controler: block-diag grouped MLP, softmax folded to sigmoid ----
    h = jnp.maximum(mm(x, wmat(ROW_CW0, L, H2)) + bvec(BROW_CB0, H2), 0.0)
    h = mid_layers(h, 0)
    d_logit = mm(h, wmat(ROW_CWD, H2, L2)) + bvec(BROW_CBD, L2)         # flat[c]-flat[c^1]
    weights = 1.0 / (1.0 + jnp.exp(-d_logit))                           # pairwise softmax (DUP==2)

    x_rep = jnp.concatenate([x, x], axis=1)                             # (TB, 2L)
    bc0 = x_rep * weights                                               # (TB, 2L)

    # ---- Parallel_NBeatsNet: state st = [backcast(2L) | forecast(2F)] ----
    st = jnp.concatenate([bc0, jnp.zeros((tb, F2), f32)], axis=1)       # (TB, 30)
    for nb in range(NB):
        h = jnp.maximum(
            mm(st[:, :L2], wmat(ROW_BW0 + 32 * nb, L2, H2)) + bvec(BROW_BB0 + nb, H2), 0.0)
        h = mid_layers(h, (DEPTH - 1) * (1 + nb))
        # fused head: first 2L cols hold -theta_b, last 2F cols hold +theta_f
        st = st + mm(h, wmat(ROW_BWH + 64 * nb, H2, BF2)) + bvec(BROW_BBH + nb, BF2)

    # ---- epilogue: f32 pair means (1/DUP, 1/NB folded into M) + lane-dense slab ----
    M = b_ref[BROW_M:BROW_M + BF2, 0:(L + F)]                           # f32 (30, 15)
    meanout = jnp.dot(st, M, preferred_element_type=f32)                # (TB, L+F)
    tail_bc = bc0 - st[:, :L2]                                          # backcast output
    tail_fc = st[:, L2:]                                                # forecast (st0 fc == 0)
    pad = jnp.zeros((tb, OUT_LANES - 3 * (L + F)), f32)
    out_ref[...] = jnp.concatenate([meanout, tail_bc, tail_fc, pad], axis=1)


# --------------------------- host-side parameter prep ------------------------
def init_params(key):
    ks = jax.random.split(key, 14)

    def w(k, shape, scale=0.2):
        return (scale * jax.random.normal(k, shape)).astype(jnp.float32)

    cW0 = w(ks[0], (DUP, L, H));                    cb0 = w(ks[1], (DUP, 1, H), 0.05)
    cWm = w(ks[2], ((DEPTH - 1) * DUP, H, H));      cbm = w(ks[3], ((DEPTH - 1) * DUP, 1, H), 0.05)
    cWl = w(ks[4], (DUP, H, L));                    cbl = w(ks[5], (DUP, 1, L), 0.05)
    bW0 = w(ks[6], (NB * DUP, L, H));               bb0 = w(ks[7], (NB * DUP, 1, H), 0.05)
    bWm = w(ks[8], (NB * (DEPTH - 1) * DUP, H, H)); bbm = w(ks[9], (NB * (DEPTH - 1) * DUP, 1, H), 0.05)
    bWb = w(ks[10], (NB * DUP, H, L));              bbb = w(ks[11], (NB * DUP, 1, L), 0.05)
    bWf = w(ks[12], (NB * DUP, H, F));              bbf = w(ks[13], (NB * DUP, 1, F), 0.05)
    return (cW0, cb0, cWm, cbm, cWl, cbl, bW0, bb0, bWm, bbm, bWb, bbb, bWf, bbf)


def quantize_weights(params):
    """Kernel weights live in bf16 (biases f32); the f32 reference uses the
    same (bf16-valued) parameters so both see identical effective weights."""
    q = lambda w: w.astype(jnp.bfloat16).astype(jnp.float32)
    return tuple(q(p) if i % 2 == 0 else p for i, p in enumerate(params))


def pack_params(params):
    """Pack everything into one bf16 weight slab (RW,128) and one f32
    bias+M slab (RB,128): block-diag grouped convs, fused +/- b/f heads,
    softmax folded into a sigmoid-difference last layer, 1/(DUP*NB) folded
    into the pair-mean matrix M."""
    ps = [np.asarray(p, dtype=np.float32) for p in params]
    (cW0, cb0, cWm, cbm, cWl, cbl, bW0, bb0, bWm, bbm, bWb, bbb, bWf, bbf) = ps

    def blkdiag(w0, w1):
        r0, c0 = w0.shape
        r1, c1 = w1.shape
        out = np.zeros((r0 + r1, c0 + c1), np.float32)
        out[:r0, :c0] = w0
        out[r0:, c0:] = w1
        return out

    W = np.zeros((RW, 128), np.float32)
    Bb = np.zeros((RB, 128), np.float32)

    # -- controller first layer (both groups share the same x input) --
    W[ROW_CW0:ROW_CW0 + L, :H2] = np.concatenate([cW0[0], cW0[1]], axis=1)
    Bb[BROW_CB0, :H2] = np.concatenate([cb0[0], cb0[1]], axis=1)[0]

    # -- controller last layer, folded into pairwise-softmax difference --
    cWl_full = blkdiag(cWl[0], cWl[1])                       # (2H, 2L), group-major out channels
    cbl_full = np.concatenate([cbl[0], cbl[1]], axis=1)      # (1, 2L)
    perm = np.arange(L2) ^ 1                                  # window partner (2j <-> 2j+1)
    W[ROW_CWD:ROW_CWD + H2, :L2] = cWl_full - cWl_full[:, perm]
    Bb[BROW_CBD, :L2] = (cbl_full - cbl_full[:, perm])[0]

    # -- shared-shape mid layers: controller first, then blocks --
    mids_w = [blkdiag(cWm[d * DUP], cWm[d * DUP + 1]) for d in range(DEPTH - 1)]
    mids_b = [np.concatenate([cbm[d * DUP], cbm[d * DUP + 1]], axis=1) for d in range(DEPTH - 1)]
    for nb in range(NB):
        for d in range(DEPTH - 1):
            im = (nb * (DEPTH - 1) + d) * DUP
            mids_w.append(blkdiag(bWm[im], bWm[im + 1]))
            mids_b.append(np.concatenate([bbm[im], bbm[im + 1]], axis=1))
    for i, (wm, bm) in enumerate(zip(mids_w, mids_b)):
        W[ROW_MID + i * H2:ROW_MID + (i + 1) * H2, :H2] = wm
        Bb[BROW_MID + i, :H2] = bm[0]

    # -- block first layers and fused +/- theta heads --
    for nb in range(NB):
        i0 = nb * DUP
        W[ROW_BW0 + 32 * nb:ROW_BW0 + 32 * nb + L2, :H2] = blkdiag(bW0[i0], bW0[i0 + 1])
        Bb[BROW_BB0 + nb, :H2] = np.concatenate([bb0[i0], bb0[i0 + 1]], axis=1)[0]
        head_w = np.concatenate([-blkdiag(bWb[i0], bWb[i0 + 1]),
                                 blkdiag(bWf[i0], bWf[i0 + 1])], axis=1)       # (2H, 2L+2F)
        head_b = np.concatenate([-np.concatenate([bbb[i0], bbb[i0 + 1]], axis=1),
                                 np.concatenate([bbf[i0], bbf[i0 + 1]], axis=1)], axis=1)
        W[ROW_BWH + 64 * nb:ROW_BWH + 64 * nb + H2, :BF2] = head_w
        Bb[BROW_BBH + nb, :BF2] = head_b[0]

    # -- pair-mean matrix M (1/DUP and 1/NB folded; 1/16 is exact in f32) --
    scale = 1.0 / (DUP * NB)
    for j in range(L):
        Bb[BROW_M + 2 * j, j] = scale
        Bb[BROW_M + 2 * j + 1, j] = scale
    for j in range(F):
        Bb[BROW_M + L2 + 2 * j, L + j] = scale
        Bb[BROW_M + L2 + 2 * j + 1, L + j] = scale

    return jnp.asarray(W, dtype=jnp.bfloat16), jnp.asarray(Bb, dtype=jnp.float32)


# ------------------------------- pallas wrapper ------------------------------
def irnet_forward(x, wslab, bslab):
    n = x.shape[0]
    ntiles = max(1, pl.cdiv(n, TB))
    npad = ntiles * TB
    if npad != n:
        x = jnp.concatenate([x, jnp.zeros((npad - n, L), x.dtype)], axis=0)

    out = pl.pallas_call(
        irnet_kernel,
        out_shape=jax.ShapeDtypeStruct((npad, OUT_LANES), jnp.float32),
        grid=(ntiles,),
        in_specs=[
            pl.BlockSpec((TB, L), lambda b: (b, 0)),        # activation tile moves
            pl.BlockSpec((RW, 128), lambda b: (0, 0)),      # weight slab: VMEM-resident
            pl.BlockSpec((RB, 128), lambda b: (0, 0)),      # bias+M slab: VMEM-resident
        ],
        out_specs=pl.BlockSpec((TB, OUT_LANES), lambda b: (b, 0)),
        compiler_params=pltpu.CompilerParams(
            dimension_semantics=("parallel",)),              # v7x: split batch over 2 TCs
    )(x, wslab, bslab)

    out = out[:n]
    bmean = out[:, :L]
    fmean = out[:, L:L + F]
    backcast = out[:, L + F:L + F + L2].reshape(n, L, DUP)
    forecast = out[:, L + F + L2:L + F + L2 + F2].reshape(n, F, DUP)
    return bmean, fmean, backcast, forecast


# ------------------------------ pure-JAX reference ---------------------------
def reference_forward(x, params):
    """Pure-JAX f32 reference with the torch view/softmax/mean semantics."""
    n = x.shape[0]
    (cW0, cb0, cWm, cbm, cWl, cbl,
     bW0, bb0, bWm, bbm, bWb, bbb, bWf, bbf) = params
    flat_groups = []
    for g in range(DUP):
        h = jax.nn.relu(x @ cW0[g] + cb0[g])
        for d in range(DEPTH - 1):
            idx = d * DUP + g
            h = jax.nn.relu(h @ cWm[idx] + cbm[idx])
        flat_groups.append(h @ cWl[g] + cbl[g])
    flat = jnp.concatenate(flat_groups, axis=1)
    wts = jax.nn.softmax(flat.reshape(n, L, DUP), axis=2).reshape(n, L * DUP)
    bc0 = jnp.tile(x, (1, DUP)) * wts
    bc = [bc0[:, g * L:(g + 1) * L] for g in range(DUP)]
    fc = [jnp.zeros((n, F), jnp.float32) for _ in range(DUP)]
    for nb in range(NB):
        for g in range(DUP):
            i0 = nb * DUP + g
            h = jax.nn.relu(bc[g] @ bW0[i0] + bb0[i0])
            for d in range(DEPTH - 1):
                im = (nb * (DEPTH - 1) + d) * DUP + g
                h = jax.nn.relu(h @ bWm[im] + bbm[im])
            bc[g] = bc[g] - (h @ bWb[i0] + bbb[i0])
            fc[g] = fc[g] + (h @ bWf[i0] + bbf[i0])
    bc_tmp = jnp.concatenate(bc, axis=1)
    fcast = jnp.concatenate(fc, axis=1)
    bmean = bc_tmp.reshape(n, L, DUP).mean(axis=2) / NB
    fmean = fcast.reshape(n, F, DUP).mean(axis=2) / NB
    return bmean, fmean, (bc0 - bc_tmp).reshape(n, L, DUP), fcast.reshape(n, F, DUP)


if __name__ == "__main__":
    key = jax.random.PRNGKey(0)
    kx, kp = jax.random.split(key)

    # Batch = 2 tiles of TB rows: exercises the parallel batch grid while the
    # per-sample problem stays at the module's small shapes (L=10, F=5, H=32).
    BATCH = 2 * TB
    x = jax.random.normal(kx, (BATCH, L), dtype=jnp.float32)

    # Effective module parameters: weights live in bf16 (biases f32).
    params = quantize_weights(init_params(kp))
    wslab, bslab = pack_params(params)

    outs = jax.block_until_ready(irnet_forward(x, wslab, bslab))
    refs = reference_forward(x, params)

    # Tolerance covers bf16 activation rounding through ~15 matmul layers
    # (and the bf16-rounded sigmoid-difference weights) vs the f32 reference
    # evaluated with the same bf16-valued parameters, over 512 samples.
    for o, r in zip(outs, refs):
        assert o.shape == r.shape, (o.shape, r.shape)
        err = float(jnp.max(jnp.abs(o - r)))
        assert jnp.allclose(o, r, rtol=5e-2, atol=5e-2), err

    print("KERNEL_OK")
</pallas_src>

<mosaic_0001>
module attributes {stable_mosaic.version = 11 : i64} {
  func.func @irnet_kernel(%arg0: i32, %arg1: memref<256x10xf32, #tpu.memory_space<vmem>>, %arg2: memref<1104x128xbf16, #tpu.memory_space<vmem>>, %arg3: memref<56x128xf32, #tpu.memory_space<vmem>>, %arg4: memref<256x128xf32, #tpu.memory_space<vmem>>) attributes {dimension_semantics = [#tpu.dimension_semantics<parallel>], iteration_bounds = array<i64: 2>, scalar_prefetch = 0 : i64, scratch_operands = 0 : i64, tpu.core_type = #tpu.core_type<tc>, window_params = [{transform_indices = @transform_0, window_bounds = array<i64: 256, 10>}, {pipeline_mode = #tpu.pipeline_mode<synchronous>, transform_indices = @transform_1, window_bounds = array<i64: 1104, 128>}, {pipeline_mode = #tpu.pipeline_mode<synchronous>, transform_indices = @transform_2, window_bounds = array<i64: 56, 128>}, {transform_indices = @transform_3, window_bounds = array<i64: 256, 128>}]} {
    %c0 = arith.constant 0 : index
    %c0_0 = arith.constant 0 : index
    %0 = vector.load %arg1[%c0, %c0_0] : memref<256x10xf32, #tpu.memory_space<vmem>>, vector<256x10xf32>
    %c0_1 = arith.constant 0 : index
    %c0_2 = arith.constant 0 : index
    %1 = vector.load %arg2[%c0_1, %c0_2] : memref<1104x128xbf16, #tpu.memory_space<vmem>>, vector<10x64xbf16>
    %2 = arith.truncf %0 : vector<256x10xf32> to vector<256x10xbf16>
    %cst = arith.constant dense<0.000000e+00> : vector<256x64xf32>
    %3 = tpu.matmul %2, %1, %cst {dimension_numbers = #tpu.dot_dimension_numbers<[1], [0], [0], [1], [0, 0, 1, 1], [], []>} : vector<256x10xbf16>, vector<10x64xbf16>, vector<256x64xf32> -> vector<256x64xf32>
    %c0_3 = arith.constant 0 : index
    %c0_4 = arith.constant 0 : index
    %4 = vector.load %arg3[%c0_3, %c0_4] : memref<56x128xf32, #tpu.memory_space<vmem>>, vector<1x64xf32>
    %5 = vector.broadcast %4 : vector<1x64xf32> to vector<256x64xf32>
    %6 = arith.addf %3, %5 : vector<256x64xf32>
    %cst_5 = arith.constant 0.000000e+00 : f32
    %7 = vector.broadcast %cst_5 : f32 to vector<256x64xf32>
    %8 = arith.maximumf %6, %7 : vector<256x64xf32>
    %c80 = arith.constant 80 : index
    %c0_6 = arith.constant 0 : index
    %9 = vector.load %arg2[%c80, %c0_6] : memref<1104x128xbf16, #tpu.memory_space<vmem>>, vector<64x64xbf16>
    %10 = arith.truncf %8 : vector<256x64xf32> to vector<256x64xbf16>
    %cst_7 = arith.constant dense<0.000000e+00> : vector<256x64xf32>
    %11 = tpu.matmul %10, %9, %cst_7 {dimension_numbers = #tpu.dot_dimension_numbers<[1], [0], [0], [1], [0, 0, 1, 1], [], []>} : vector<256x64xbf16>, vector<64x64xbf16>, vector<256x64xf32> -> vector<256x64xf32>
    %c2 = arith.constant 2 : index
    %c0_8 = arith.constant 0 : index
    %12 = vector.load %arg3[%c2, %c0_8] : memref<56x128xf32, #tpu.memory_space<vmem>>, vector<1x64xf32>
    %13 = vector.broadcast %12 : vector<1x64xf32> to vector<256x64xf32>
    %14 = arith.addf %11, %13 : vector<256x64xf32>
    %cst_9 = arith.constant 0.000000e+00 : f32
    %15 = vector.broadcast %cst_9 : f32 to vector<256x64xf32>
    %16 = arith.maximumf %14, %15 : vector<256x64xf32>
    %c144 = arith.constant 144 : index
    %c0_10 = arith.constant 0 : index
    %17 = vector.load %arg2[%c144, %c0_10] : memref<1104x128xbf16, #tpu.memory_space<vmem>>, vector<64x64xbf16>
    %18 = arith.truncf %16 : vector<256x64xf32> to vector<256x64xbf16>
    %cst_11 = arith.constant dense<0.000000e+00> : vector<256x64xf32>
    %19 = tpu.matmul %18, %17, %cst_11 {dimension_numbers = #tpu.dot_dimension_numbers<[1], [0], [0], [1], [0, 0, 1, 1], [], []>} : vector<256x64xbf16>, vector<64x64xbf16>, vector<256x64xf32> -> vector<256x64xf32>
    %c3 = arith.constant 3 : index
    %c0_12 = arith.constant 0 : index
    %20 = vector.load %arg3[%c3, %c0_12] : memref<56x128xf32, #tpu.memory_space<vmem>>, vector<1x64xf32>
    %21 = vector.broadcast %20 : vector<1x64xf32> to vector<256x64xf32>
    %22 = arith.addf %19, %21 : vector<256x64xf32>
    %cst_13 = arith.constant 0.000000e+00 : f32
    %23 = vector.broadcast %cst_13 : f32 to vector<256x64xf32>
    %24 = arith.maximumf %22, %23 : vector<256x64xf32>
    %c16 = arith.constant 16 : index
    %c0_14 = arith.constant 0 : index
    %25 = vector.load %arg2[%c16, %c0_14] : memref<1104x128xbf16, #tpu.memory_space<vmem>>, vector<64x20xbf16>
    %26 = arith.truncf %24 : vector<256x64xf32> to vector<256x64xbf16>
    %cst_15 = arith.constant dense<0.000000e+00> : vector<256x20xf32>
    %27 = tpu.matmul %26, %25, %cst_15 {dimension_numbers = #tpu.dot_dimension_numbers<[1], [0], [0], [1], [0, 0, 1, 1], [], []>} : vector<256x64xbf16>, vector<64x20xbf16>, vector<256x20xf32> -> vector<256x20xf32>
    %c1 = arith.constant 1 : index
    %c0_16 = arith.constant 0 : index
    %28 = vector.load %arg3[%c1, %c0_16] : memref<56x128xf32, #tpu.memory_space<vmem>>, vector<1x20xf32>
    %29 = vector.broadcast %28 : vector<1x20xf32> to vector<256x20xf32>
    %30 = arith.addf %27, %29 : vector<256x20xf32>
    %cst_17 = arith.constant 0.000000e+00 : f32
    %31 = vector.broadcast %cst_17 : f32 to vector<256x20xf32>
    %32 = arith.subf %31, %30 : vector<256x20xf32>
    %33 = math.exp %32 : vector<256x20xf32>
    %cst_18 = arith.constant 1.000000e+00 : f32
    %34 = vector.broadcast %cst_18 : f32 to vector<256x20xf32>
    %35 = arith.addf %34, %33 : vector<256x20xf32>
    %cst_19 = arith.constant 1.000000e+00 : f32
    %36 = vector.broadcast %cst_19 : f32 to vector<256x20xf32>
    %37 = arith.divf %36, %35 : vector<256x20xf32>
    %38 = tpu.concatenate %0, %0 in 1 : vector<256x10xf32>, vector<256x10xf32> -> vector<256x20xf32>
    %39 = arith.mulf %38, %37 : vector<256x20xf32>
    %cst_20 = arith.constant 0.000000e+00 : f32
    %40 = vector.broadcast %cst_20 : f32 to vector<256x10xf32>
    %41 = tpu.concatenate %39, %40 in 1 : vector<256x20xf32>, vector<256x10xf32> -> vector<256x30xf32>
    %42 = vector.extract_strided_slice %41 {offsets = [0, 0], sizes = [256, 20], strides = [1, 1]} : vector<256x30xf32> to vector<256x20xf32>
    %c720 = arith.constant 720 : index
    %c0_21 = arith.constant 0 : index
    %43 = vector.load %arg2[%c720, %c0_21] : memref<1104x128xbf16, #tpu.memory_space<vmem>>, vector<20x64xbf16>
    %44 = arith.truncf %42 : vector<256x20xf32> to vector<256x20xbf16>
    %cst_22 = arith.constant dense<0.000000e+00> : vector<256x64xf32>
    %45 = tpu.matmul %44, %43, %cst_22 {dimension_numbers = #tpu.dot_dimension_numbers<[1], [0], [0], [1], [0, 0, 1, 1], [], []>} : vector<256x20xbf16>, vector<20x64xbf16>, vector<256x64xf32> -> vector<256x64xf32>
    %c12 = arith.constant 12 : index
    %c0_23 = arith.constant 0 : index
    %46 = vector.load %arg3[%c12, %c0_23] : memref<56x128xf32, #tpu.memory_space<vmem>>, vector<1x64xf32>
    %47 = vector.broadcast %46 : vector<1x64xf32> to vector<256x64xf32>
    %48 = arith.addf %45, %47 : vector<256x64xf32>
    %cst_24 = arith.constant 0.000000e+00 : f32
    %49 = vector.broadcast %cst_24 : f32 to vector<256x64xf32>
    %50 = arith.maximumf %48, %49 : vector<256x64xf32>
    %c208 = arith.constant 208 : index
    %c0_25 = arith.constant 0 : index
    %51 = vector.load %arg2[%c208, %c0_25] : memref<1104x128xbf16, #tpu.memory_space<vmem>>, vector<64x64xbf16>
    %52 = arith.truncf %50 : vector<256x64xf32> to vector<256x64xbf16>
    %cst_26 = arith.constant dense<0.000000e+00> : vector<256x64xf32>
    %53 = tpu.matmul %52, %51, %cst_26 {dimension_numbers = #tpu.dot_dimension_numbers<[1], [0], [0], [1], [0, 0, 1, 1], [], []>} : vector<256x64xbf16>, vector<64x64xbf16>, vector<256x64xf32> -> vector<256x64xf32>
    %c4 = arith.constant 4 : index
    %c0_27 = arith.constant 0 : index
    %54 = vector.load %arg3[%c4, %c0_27] : memref<56x128xf32, #tpu.memory_space<vmem>>, vector<1x64xf32>
    %55 = vector.broadcast %54 : vector<1x64xf32> to vector<256x64xf32>
    %56 = arith.addf %53, %55 : vector<256x64xf32>
    %cst_28 = arith.constant 0.000000e+00 : f32
    %57 = vector.broadcast %cst_28 : f32 to vector<256x64xf32>
    %58 = arith.maximumf %56, %57 : vector<256x64xf32>
    %c272 = arith.constant 272 : index
    %c0_29 = arith.constant 0 : index
    %59 = vector.load %arg2[%c272, %c0_29] : memref<1104x128xbf16, #tpu.memory_space<vmem>>, vector<64x64xbf16>
    %60 = arith.truncf %58 : vector<256x64xf32> to vector<256x64xbf16>
    %cst_30 = arith.constant dense<0.000000e+00> : vector<256x64xf32>
    %61 = tpu.matmul %60, %59, %cst_30 {dimension_numbers = #tpu.dot_dimension_numbers<[1], [0], [0], [1], [0, 0, 1, 1], [], []>} : vector<256x64xbf16>, vector<64x64xbf16>, vector<256x64xf32> -> vector<256x64xf32>
    %c5 = arith.constant 5 : index
    %c0_31 = arith.constant 0 : index
    %62 = vector.load %arg3[%c5, %c0_31] : memref<56x128xf32, #tpu.memory_space<vmem>>, vector<1x64xf32>
    %63 = vector.broadcast %62 : vector<1x64xf32> to vector<256x64xf32>
    %64 = arith.addf %61, %63 : vector<256x64xf32>
    %cst_32 = arith.constant 0.000000e+00 : f32
    %65 = vector.broadcast %cst_32 : f32 to vector<256x64xf32>
    %66 = arith.maximumf %64, %65 : vector<256x64xf32>
    %c848 = arith.constant 848 : index
    %c0_33 = arith.constant 0 : index
    %67 = vector.load %arg2[%c848, %c0_33] : memref<1104x128xbf16, #tpu.memory_space<vmem>>, vector<64x30xbf16>
    %68 = arith.truncf %66 : vector<256x64xf32> to vector<256x64xbf16>
    %cst_34 = arith.constant dense<0.000000e+00> : vector<256x30xf32>
    %69 = tpu.matmul %68, %67, %cst_34 {dimension_numbers = #tpu.dot_dimension_numbers<[1], [0], [0], [1], [0, 0, 1, 1], [], []>} : vector<256x64xbf16>, vector<64x30xbf16>, vector<256x30xf32> -> vector<256x30xf32>
    %70 = arith.addf %41, %69 : vector<256x30xf32>
    %c16_35 = arith.constant 16 : index
    %c0_36 = arith.constant 0 : index
    %71 = vector.load %arg3[%c16_35, %c0_36] : memref<56x128xf32, #tpu.memory_space<vmem>>, vector<1x30xf32>
    %72 = vector.broadcast %71 : vector<1x30xf32> to vector<256x30xf32>
    %73 = arith.addf %70, %72 : vector<256x30xf32>
    %74 = vector.extract_strided_slice %73 {offsets = [0, 0], sizes = [256, 20], strides = [1, 1]} : vector<256x30xf32> to vector<256x20xf32>
    %c752 = arith.constant 752 : index
    %c0_37 = arith.constant 0 : index
    %75 = vector.load %arg2[%c752, %c0_37] : memref<1104x128xbf16, #tpu.memory_space<vmem>>, vector<20x64xbf16>
    %76 = arith.truncf %74 : vector<256x20xf32> to vector<256x20xbf16>
    %cst_38 = arith.constant dense<0.000000e+00> : vector<256x64xf32>
    %77 = tpu.matmul %76, %75, %cst_38 {dimension_numbers = #tpu.dot_dimension_numbers<[1], [0], [0], [1], [0, 0, 1, 1], [], []>} : vector<256x20xbf16>, vector<20x64xbf16>, vector<256x64xf32> -> vector<256x64xf32>
    %c13 = arith.constant 13 : index
    %c0_39 = arith.constant 0 : index
    %78 = vector.load %arg3[%c13, %c0_39] : memref<56x128xf32, #tpu.memory_space<vmem>>, vector<1x64xf32>
    %79 = vector.broadcast %78 : vector<1x64xf32> to vector<256x64xf32>
    %80 = arith.addf %77, %79 : vector<256x64xf32>
    %cst_40 = arith.constant 0.000000e+00 : f32
    %81 = vector.broadcast %cst_40 : f32 to vector<256x64xf32>
    %82 = arith.maximumf %80, %81 : vector<256x64xf32>
    %c336 = arith.constant 336 : index
    %c0_41 = arith.constant 0 : index
    %83 = vector.load %arg2[%c336, %c0_41] : memref<1104x128xbf16, #tpu.memory_space<vmem>>, vector<64x64xbf16>
    %84 = arith.truncf %82 : vector<256x64xf32> to vector<256x64xbf16>
    %cst_42 = arith.constant dense<0.000000e+00> : vector<256x64xf32>
    %85 = tpu.matmul %84, %83, %cst_42 {dimension_numbers = #tpu.dot_dimension_numbers<[1], [0], [0], [1], [0, 0, 1, 1], [], []>} : vector<256x64xbf16>, vector<64x64xbf16>, vector<256x64xf32> -> vector<256x64xf32>
    %c6 = arith.constant 6 : index
    %c0_43 = arith.constant 0 : index
    %86 = vector.load %arg3[%c6, %c0_43] : memref<56x128xf32, #tpu.memory_space<vmem>>, vector<1x64xf32>
    %87 = vector.broadcast %86 : vector<1x64xf32> to vector<256x64xf32>
    %88 = arith.addf %85, %87 : vector<256x64xf32>
    %cst_44 = arith.constant 0.000000e+00 : f32
    %89 = vector.broadcast %cst_44 : f32 to vector<256x64xf32>
    %90 = arith.maximumf %88, %89 : vector<256x64xf32>
    %c400 = arith.constant 400 : index
    %c0_45 = arith.constant 0 : index
    %91 = vector.load %arg2[%c400, %c0_45] : memref<1104x128xbf16, #tpu.memory_space<vmem>>, vector<64x64xbf16>
    %92 = arith.truncf %90 : vector<256x64xf32> to vector<256x64xbf16>
    %cst_46 = arith.constant dense<0.000000e+00> : vector<256x64xf32>
    %93 = tpu.matmul %92, %91, %cst_46 {dimension_numbers = #tpu.dot_dimension_numbers<[1], [0], [0], [1], [0, 0, 1, 1], [], []>} : vector<256x64xbf16>, vector<64x64xbf16>, vector<256x64xf32> -> vector<256x64xf32>
    %c7 = arith.constant 7 : index
    %c0_47 = arith.constant 0 : index
    %94 = vector.load %arg3[%c7, %c0_47] : memref<56x128xf32, #tpu.memory_space<vmem>>, vector<1x64xf32>
    %95 = vector.broadcast %94 : vector<1x64xf32> to vector<256x64xf32>
    %96 = arith.addf %93, %95 : vector<256x64xf32>
    %cst_48 = arith.constant 0.000000e+00 : f32
    %97 = vector.broadcast %cst_48 : f32 to vector<256x64xf32>
    %98 = arith.maximumf %96, %97 : vector<256x64xf32>
    %c912 = arith.constant 912 : index
    %c0_49 = arith.constant 0 : index
    %99 = vector.load %arg2[%c912, %c0_49] : memref<1104x128xbf16, #tpu.memory_space<vmem>>, vector<64x30xbf16>
    %100 = arith.truncf %98 : vector<256x64xf32> to vector<256x64xbf16>
    %cst_50 = arith.constant dense<0.000000e+00> : vector<256x30xf32>
    %101 = tpu.matmul %100, %99, %cst_50 {dimension_numbers = #tpu.dot_dimension_numbers<[1], [0], [0], [1], [0, 0, 1, 1], [], []>} : vector<256x64xbf16>, vector<64x30xbf16>, vector<256x30xf32> -> vector<256x30xf32>
    %102 = arith.addf %73, %101 : vector<256x30xf32>
    %c17 = arith.constant 17 : index
    %c0_51 = arith.constant 0 : index
    %103 = vector.load %arg3[%c17, %c0_51] : memref<56x128xf32, #tpu.memory_space<vmem>>, vector<1x30xf32>
    %104 = vector.broadcast %103 : vector<1x30xf32> to vector<256x30xf32>
    %105 = arith.addf %102, %104 : vector<256x30xf32>
    %106 = vector.extract_strided_slice %105 {offsets = [0, 0], sizes = [256, 20], strides = [1, 1]} : vector<256x30xf32> to vector<256x20xf32>
    %c784 = arith.constant 784 : index
    %c0_52 = arith.constant 0 : index
    %107 = vector.load %arg2[%c784, %c0_52] : memref<1104x128xbf16, #tpu.memory_space<vmem>>, vector<20x64xbf16>
    %108 = arith.truncf %106 : vector<256x20xf32> to vector<256x20xbf16>
    %cst_53 = arith.constant dense<0.000000e+00> : vector<256x64xf32>
    %109 = tpu.matmul %108, %107, %cst_53 {dimension_numbers = #tpu.dot_dimension_numbers<[1], [0], [0], [1], [0, 0, 1, 1], [], []>} : vector<256x20xbf16>, vector<20x64xbf16>, vector<256x64xf32> -> vector<256x64xf32>
    %c14 = arith.constant 14 : index
    %c0_54 = arith.constant 0 : index
    %110 = vector.load %arg3[%c14, %c0_54] : memref<56x128xf32, #tpu.memory_space<vmem>>, vector<1x64xf32>
    %111 = vector.broadcast %110 : vector<1x64xf32> to vector<256x64xf32>
    %112 = arith.addf %109, %111 : vector<256x64xf32>
    %cst_55 = arith.constant 0.000000e+00 : f32
    %113 = vector.broadcast %cst_55 : f32 to vector<256x64xf32>
    %114 = arith.maximumf %112, %113 : vector<256x64xf32>
    %c464 = arith.constant 464 : index
    %c0_56 = arith.constant 0 : index
    %115 = vector.load %arg2[%c464, %c0_56] : memref<1104x128xbf16, #tpu.memory_space<vmem>>, vector<64x64xbf16>
    %116 = arith.truncf %114 : vector<256x64xf32> to vector<256x64xbf16>
    %cst_57 = arith.constant dense<0.000000e+00> : vector<256x64xf32>
    %117 = tpu.matmul %116, %115, %cst_57 {dimension_numbers = #tpu.dot_dimension_numbers<[1], [0], [0], [1], [0, 0, 1, 1], [], []>} : vector<256x64xbf16>, vector<64x64xbf16>, vector<256x64xf32> -> vector<256x64xf32>
    %c8 = arith.constant 8 : index
    %c0_58 = arith.constant 0 : index
    %118 = vector.load %arg3[%c8, %c0_58] : memref<56x128xf32, #tpu.memory_space<vmem>>, vector<1x64xf32>
    %119 = vector.broadcast %118 : vector<1x64xf32> to vector<256x64xf32>
    %120 = arith.addf %117, %119 : vector<256x64xf32>
    %cst_59 = arith.constant 0.000000e+00 : f32
    %121 = vector.broadcast %cst_59 : f32 to vector<256x64xf32>
    %122 = arith.maximumf %120, %121 : vector<256x64xf32>
    %c528 = arith.constant 528 : index
    %c0_60 = arith.constant 0 : index
    %123 = vector.load %arg2[%c528, %c0_60] : memref<1104x128xbf16, #tpu.memory_space<vmem>>, vector<64x64xbf16>
    %124 = arith.truncf %122 : vector<256x64xf32> to vector<256x64xbf16>
    %cst_61 = arith.constant dense<0.000000e+00> : vector<256x64xf32>
    %125 = tpu.matmul %124, %123, %cst_61 {dimension_numbers = #tpu.dot_dimension_numbers<[1], [0], [0], [1], [0, 0, 1, 1], [], []>} : vector<256x64xbf16>, vector<64x64xbf16>, vector<256x64xf32> -> vector<256x64xf32>
    %c9 = arith.constant 9 : index
    %c0_62 = arith.constant 0 : index
    %126 = vector.load %arg3[%c9, %c0_62] : memref<56x128xf32, #tpu.memory_space<vmem>>, vector<1x64xf32>
    %127 = vector.broadcast %126 : vector<1x64xf32> to vector<256x64xf32>
    %128 = arith.addf %125, %127 : vector<256x64xf32>
    %cst_63 = arith.constant 0.000000e+00 : f32
    %129 = vector.broadcast %cst_63 : f32 to vector<256x64xf32>
    %130 = arith.maximumf %128, %129 : vector<256x64xf32>
    %c976 = arith.constant 976 : index
    %c0_64 = arith.constant 0 : index
    %131 = vector.load %arg2[%c976, %c0_64] : memref<1104x128xbf16, #tpu.memory_space<vmem>>, vector<64x30xbf16>
    %132 = arith.truncf %130 : vector<256x64xf32> to vector<256x64xbf16>
    %cst_65 = arith.constant dense<0.000000e+00> : vector<256x30xf32>
    %133 = tpu.matmul %132, %131, %cst_65 {dimension_numbers = #tpu.dot_dimension_numbers<[1], [0], [0], [1], [0, 0, 1, 1], [], []>} : vector<256x64xbf16>, vector<64x30xbf16>, vector<256x30xf32> -> vector<256x30xf32>
    %134 = arith.addf %105, %133 : vector<256x30xf32>
    %c18 = arith.constant 18 : index
    %c0_66 = arith.constant 0 : index
    %135 = vector.load %arg3[%c18, %c0_66] : memref<56x128xf32, #tpu.memory_space<vmem>>, vector<1x30xf32>
    %136 = vector.broadcast %135 : vector<1x30xf32> to vector<256x30xf32>
    %137 = arith.addf %134, %136 : vector<256x30xf32>
    %138 = vector.extract_strided_slice %137 {offsets = [0, 0], sizes = [256, 20], strides = [1, 1]} : vector<256x30xf32> to vector<256x20xf32>
    %c816 = arith.constant 816 : index
    %c0_67 = arith.constant 0 : index
    %139 = vector.load %arg2[%c816, %c0_67] : memref<1104x128xbf16, #tpu.memory_space<vmem>>, vector<20x64xbf16>
    %140 = arith.truncf %138 : vector<256x20xf32> to vector<256x20xbf16>
    %cst_68 = arith.constant dense<0.000000e+00> : vector<256x64xf32>
    %141 = tpu.matmul %140, %139, %cst_68 {dimension_numbers = #tpu.dot_dimension_numbers<[1], [0], [0], [1], [0, 0, 1, 1], [], []>} : vector<256x20xbf16>, vector<20x64xbf16>, vector<256x64xf32> -> vector<256x64xf32>
    %c15 = arith.constant 15 : index
    %c0_69 = arith.constant 0 : index
    %142 = vector.load %arg3[%c15, %c0_69] : memref<56x128xf32, #tpu.memory_space<vmem>>, vector<1x64xf32>
    %143 = vector.broadcast %142 : vector<1x64xf32> to vector<256x64xf32>
    %144 = arith.addf %141, %143 : vector<256x64xf32>
    %cst_70 = arith.constant 0.000000e+00 : f32
    %145 = vector.broadcast %cst_70 : f32 to vector<256x64xf32>
    %146 = arith.maximumf %144, %145 : vector<256x64xf32>
    %c592 = arith.constant 592 : index
    %c0_71 = arith.constant 0 : index
    %147 = vector.load %arg2[%c592, %c0_71] : memref<1104x128xbf16, #tpu.memory_space<vmem>>, vector<64x64xbf16>
    %148 = arith.truncf %146 : vector<256x64xf32> to vector<256x64xbf16>
    %cst_72 = arith.constant dense<0.000000e+00> : vector<256x64xf32>
    %149 = tpu.matmul %148, %147, %cst_72 {dimension_numbers = #tpu.dot_dimension_numbers<[1], [0], [0], [1], [0, 0, 1, 1], [], []>} : vector<256x64xbf16>, vector<64x64xbf16>, vector<256x64xf32> -> vector<256x64xf32>
    %c10 = arith.constant 10 : index
    %c0_73 = arith.constant 0 : index
    %150 = vector.load %arg3[%c10, %c0_73] : memref<56x128xf32, #tpu.memory_space<vmem>>, vector<1x64xf32>
    %151 = vector.broadcast %150 : vector<1x64xf32> to vector<256x64xf32>
    %152 = arith.addf %149, %151 : vector<256x64xf32>
    %cst_74 = arith.constant 0.000000e+00 : f32
    %153 = vector.broadcast %cst_74 : f32 to vector<256x64xf32>
    %154 = arith.maximumf %152, %153 : vector<256x64xf32>
    %c656 = arith.constant 656 : index
    %c0_75 = arith.constant 0 : index
    %155 = vector.load %arg2[%c656, %c0_75] : memref<1104x128xbf16, #tpu.memory_space<vmem>>, vector<64x64xbf16>
    %156 = arith.truncf %154 : vector<256x64xf32> to vector<256x64xbf16>
    %cst_76 = arith.constant dense<0.000000e+00> : vector<256x64xf32>
    %157 = tpu.matmul %156, %155, %cst_76 {dimension_numbers = #tpu.dot_dimension_numbers<[1], [0], [0], [1], [0, 0, 1, 1], [], []>} : vector<256x64xbf16>, vector<64x64xbf16>, vector<256x64xf32> -> vector<256x64xf32>
    %c11 = arith.constant 11 : index
    %c0_77 = arith.constant 0 : index
    %158 = vector.load %arg3[%c11, %c0_77] : memref<56x128xf32, #tpu.memory_space<vmem>>, vector<1x64xf32>
    %159 = vector.broadcast %158 : vector<1x64xf32> to vector<256x64xf32>
    %160 = arith.addf %157, %159 : vector<256x64xf32>
    %cst_78 = arith.constant 0.000000e+00 : f32
    %161 = vector.broadcast %cst_78 : f32 to vector<256x64xf32>
    %162 = arith.maximumf %160, %161 : vector<256x64xf32>
    %c1040 = arith.constant 1040 : index
    %c0_79 = arith.constant 0 : index
    %163 = vector.load %arg2[%c1040, %c0_79] : memref<1104x128xbf16, #tpu.memory_space<vmem>>, vector<64x30xbf16>
    %164 = arith.truncf %162 : vector<256x64xf32> to vector<256x64xbf16>
    %cst_80 = arith.constant dense<0.000000e+00> : vector<256x30xf32>
    %165 = tpu.matmul %164, %163, %cst_80 {dimension_numbers = #tpu.dot_dimension_numbers<[1], [0], [0], [1], [0, 0, 1, 1], [], []>} : vector<256x64xbf16>, vector<64x30xbf16>, vector<256x30xf32> -> vector<256x30xf32>
    %166 = arith.addf %137, %165 : vector<256x30xf32>
    %c19 = arith.constant 19 : index
    %c0_81 = arith.constant 0 : index
    %167 = vector.load %arg3[%c19, %c0_81] : memref<56x128xf32, #tpu.memory_space<vmem>>, vector<1x30xf32>
    %168 = vector.broadcast %167 : vector<1x30xf32> to vector<256x30xf32>
    %169 = arith.addf %166, %168 : vector<256x30xf32>
    %c24 = arith.constant 24 : index
    %c0_82 = arith.constant 0 : index
    %170 = vector.load %arg3[%c24, %c0_82] : memref<56x128xf32, #tpu.memory_space<vmem>>, vector<30x15xf32>
    %cst_83 = arith.constant dense<0.000000e+00> : vector<256x15xf32>
    %171 = tpu.matmul %169, %170, %cst_83 {dimension_numbers = #tpu.dot_dimension_numbers<[1], [0], [0], [1], [0, 0, 1, 1], [], []>} : vector<256x30xf32>, vector<30x15xf32>, vector<256x15xf32> -> vector<256x15xf32>
    %172 = vector.extract_strided_slice %169 {offsets = [0, 0], sizes = [256, 20], strides = [1, 1]} : vector<256x30xf32> to vector<256x20xf32>
    %173 = arith.subf %39, %172 : vector<256x20xf32>
    %174 = vector.extract_strided_slice %169 {offsets = [0, 20], sizes = [256, 10], strides = [1, 1]} : vector<256x30xf32> to vector<256x10xf32>
    %cst_84 = arith.constant 0.000000e+00 : f32
    %175 = vector.broadcast %cst_84 : f32 to vector<256x83xf32>
    %176 = tpu.concatenate %171, %173, %174, %175 in 1 : vector<256x15xf32>, vector<256x20xf32>, vector<256x10xf32>, vector<256x83xf32> -> vector<256x128xf32>
    %c0_85 = arith.constant 0 : index
    %c0_86 = arith.constant 0 : index
    %177 = vector.load %arg4[%c0_85, %c0_86] : memref<256x128xf32, #tpu.memory_space<vmem>>, vector<256x128xf32>
    tpu.vector_store %arg4[%c0_85, %c0_86], %176 {strides = array<i32>} : memref<256x128xf32, #tpu.memory_space<vmem>>, vector<256x128xf32>,
    return
  }
  func.func @transform_0(%arg0: i32) -> (i32, i32) {
    %c0_i32 = arith.constant 0 : i32
    %c0_i32_0 = arith.constant 0 : i32
    return %arg0, %c0_i32 : i32, i32
  }
  func.func @transform_1(%arg0: i32) -> (i32, i32) {
    %c0_i32 = arith.constant 0 : i32
    %c0_i32_0 = arith.constant 0 : i32
    %c0_i32_1 = arith.constant 0 : i32
    return %c0_i32, %c0_i32_0 : i32, i32
  }
  func.func @transform_2(%arg0: i32) -> (i32, i32) {
    %c0_i32 = arith.constant 0 : i32
    %c0_i32_0 = arith.constant 0 : i32
    %c0_i32_1 = arith.constant 0 : i32
    return %c0_i32, %c0_i32_0 : i32, i32
  }
  func.func @transform_3(%arg0: i32) -> (i32, i32) {
    %c0_i32 = arith.constant 0 : i32
    %c0_i32_0 = arith.constant 0 : i32
    return %arg0, %c0_i32 : i32, i32
  }
}

</mosaic_0001>

<bundles_post_ra>
// kernel: tpu_custom_call.1
= control target key start
LH: loop header
LB: loop body
LE: loop exit
PB: predicated region body
PF: predicated region fallthrough
CT: control target
= control target key end

     0   :  { %8 = vsyncpa [#allocation3], 0  ;;  %s9896_s0 = inlined_call_operand.vmem [shape: f32[512,10], index: 0, kind: input, shape index: {}]   ;;  %s9897_s1 = inlined_call_operand.vmem [shape: bf16[1104,128], index: 1, kind: input, shape index: {}]   ;;  %s9898_s2 = inlined_call_operand.hbm [shape: f32[56,128], index: 2, kind: input, shape index: {}]   ;;  %s9899_s3 = inlined_call_operand.hbm [shape: f32[512,128], index: 3, kind: output, shape index: {}]  }
   0x1   :  { %9 = vsyncpa [#allocation4], 0 }
   0x2   :  { %11 = vsyncpa [#allocation4 + $0x1], 0  ;;  %s7199_s12 = smov 0   ;;  %s7201_s13 = smov 0  }
   0x3   :  { %s7203_s14 = smov 0   ;;  %s7205_s15 = smov 0  }
   0x4 LB: > { %s7220_s16 = sadd.s32 4294967295, %s7170_s15   ;;  %s6140_s17 = sadd.s32 4294967294, %s7170_s15   ;;  %s7170_s15 = sphi %s7205_s15, %s9982_s15   ;;  %s7166_s14 = sphi %s7203_s14, %s9981_s14   ;;  %s7162_s13 = sphi %s7201_s13, %s9980_s13   ;;  %s7158_s12 = sphi %s7199_s12, %s9979_s12  }
   0x5   : > { %s7224_s18 = sadd.s32 1, %s7170_s15   ;;  %s92_s19 = sadd.s32 1, %s7166_s14 }
   0x6   : > { %s89_s20 = ssub.s32 %s7170_s15, %s7224_s18  ;;  %p102_p0 = scmp.ne.s32.totalorder %s7166_s14, %s7162_s13 }
   0x7   : > { %p90_p1 = scmp.eq.s32.totalorder %s89_s20, 0  ;;  %p103_p2 = scmp.eq.s32.totalorder %s7220_s16, 1 }
   0x8   : > { %p108_p3 = scmp.ne.s32.totalorder %s7162_s13, %s7158_s12  ;;  %p109_p4 = scmp.eq.s32.totalorder %s6140_s17, 1 }
   0x9   : > { %s7235_s21 = scalar_select %p90_p1, %s7166_s14, %s92_s19  }
   0xa   : > { %p7237_p5 = por %p103_p2, %p102_p0  ;;  %p7241_p6 = por %p109_p4, %p108_p3 }
   0xb   : > { %p6141_p7 = scmp.ge.s32.totalorder %s7170_s15, 1  ;;  %p116_p8 = scmp.lt.s32.totalorder %s7170_s15, 3 }
   0xc   : > { %p6850_p9 = scmp.eq.s32.totalorder %s7220_s16, 0  ;;  %s130_s26 = sshll.u32 %s9898_s2, 4  ;;  %s131_s26 = int_to_ptr.hbm [resolvable:$true] %s130_s26 }
   0xd   : > { %p117_p10 = pnand %p6141_p7, %p116_p8  ;;  %s7172_s27 = smov [#allocation2]  }
   0xe   : > { %s132_s28 = sshll.u32 %s7172_s27, 4  ;;  %s7173_s29 = smov 128   ;;  %s133_s28 = int_to_ptr.vmem [resolvable:$true] %s132_s28 }
   0xf   : > { %p6842_p11 = pneg %p117_p10  ;;  %s7174_s30 = smov 8  }
  0x10   : > { %157 = sbr.rel (%p117_p10) target bundleno = 3293 (0xcdd), region = 32 }
  0x11   : > { %p6843_p12 = pnand %p6850_p9, %p6842_p11 }
  0x13   : > { %6845 = dma.hbm_to_vmem [thread:$0]  (!%p6843_p12), %s131_s26, 896, %s133_s28, [#allocation3], %s7173_s29, %s7173_s29, %s7174_s30  }
  0x15   : > { %7149 = dma.done.wait (%p6850_p9), [#allocation3], 896  }
  0x16   : > { %7151 = vsyncadd (%p6850_p9), [#allocation3], 4294966400  ;;  %s6147_s4 = sshll.u32 %s7220_s16, 5  ;;  %v6151_v0 = vld [vmem:[%s9897_s1] sm:$0xf]  ;;  %vm296_vm0 = vcmask 1044480  }
  0x17   : > { %p183_p13 = scmp.lt.s32.totalorder %s6147_s4, 63  ;;  %v6767_v1 = vld [vmem:[%s9897_s1] sm:$0x10]  ;;  %vm247_vm1 = vcmask 80896   ;;  %v6770_v14 = vld [vmem:[%s9897_s1 + $0x38] sm:$0xff]  ;;  %v6769_v21 = vld [vmem:[%s9897_s1 + $0x30] sm:$0xff] }
  0x18   : > { %v6152_v3 = vor.u32 %v6767_v1, %v6151_v0  ;;  %v6771_v13 = vld [vmem:[%s9897_s1 + $0x40] sm:$0xff]  ;;  %v6768_v25 = vld [vmem:[%s9897_s1 + $0x28] sm:$0xff]  ;;  %vm471_vm2 = vcmask 523264   ;;  %s7175_s20 = smov 10   ;;  %vm1958_vm3 = vcmask 1041408   ;;  %vm1847_vm9 = vcmask 162816  }
  0x19   : > { %s9984_s4 = smov (!%p183_p13, %s6147_s4), 63  ;;  %v7386_v44 = vld [vmem:[#allocation2] ss:$0 sm:$0xff]  ;;  %s7176_s9 = smov 15  }
  0x1a   : > { %s6148_s5 = sshll.u32 %s9984_s4, 3  ;;  %v298_v5 = vsel %vm296_vm0, %v6152_v3, 0  ;;  %s179_s10 = sand.u32 1, %s7162_s13  }
  0x1b   : > { %s7261_s8 = scalar_lea.vmem %s9896_s0, %s6148_s5  ;;  %307 = vmatpush.bf16.msra.mxu0 %v298_v5  ;;  %6833 = vmatpush.bf16.msra.mxu1 %v298_v5  ;;  %s6832_s17 = sshll.u32 %s7220_s16, 8 }
  0x1c   : > { %v7270_v2 = vld [vmem:[%s7261_s8] sm:$0xff]  ;;  %v7273_v4 = vld [vmem:[%s7261_s8 + $0x8] sm:$0xff]  ;;  %6834 = vmatpush.bf16.msra.mxu2 %v298_v5  ;;  %6835 = vmatpush.bf16.msra.mxu3 %v298_v5  ;;  %v7279_v7 = vld [vmem:[%s7261_s8 + $0x10] sm:$0xff]  ;;  %s6062_s24 = scalar_lea.hbm %s9899_s3, %s6832_s17  ;;  %s6051_s16 = scalar_lea.sflag [#allocation4], %s179_s10 }
  0x1d   : > { %v224_v6 = vpack.c.bf16 %v7273_v4, %v7270_v2  ;;  %v7282_v8 = vld [vmem:[%s7261_s8 + $0x18] sm:$0xff]  ;;  %v7288_v10 = vld [vmem:[%s7261_s8 + $0x40] sm:$0xff]  ;;  %v7291_v11 = vld [vmem:[%s7261_s8 + $0x48] sm:$0xff]  ;;  %1687 = vrot.lane.b32.xlu0 %v7270_v2, %s7175_s20  ;;  %s6065_s26 = sshll.u32 %s6062_s24, 4  ;;  %s7124_s4 = scalar_lea.hbm %s9899_s3, 512  ;;  %s6066_s26 = int_to_ptr.hbm [resolvable:$true] %s6065_s26 }
  0x1e   : > { %v225_v9 = vpack.c.bf16 %v7282_v8, %v7279_v7  ;;  %v228_v12 = vpack.c.bf16 %v7291_v11, %v7288_v10  ;;  %v7303_v15 = vld [vmem:[%s7261_s8 + $0x20] sm:$0xff]  ;;  %v7306_v16 = vld [vmem:[%s7261_s8 + $0x28] sm:$0xff]  ;;  %v7311_v18 = vld [vmem:[%s7261_s8 + $0x50] sm:$0xff]  ;;  %1691 = vrot.lane.b32.xlu1 %v7279_v7, %s7175_s20  ;;  %s7118_s27 = sshra.s32 %s6066_s26, 4  ;;  %s7119_s27 = int_to_ptr.hbm [resolvable:$true] %s7118_s27 }
  0x1f   : > { %6153 = vmatmul.msk.bf16.vlgmr.msra.gmra.mxu0 %vm247_vm1, %v224_v6  ;;  %524 = vmatpush.bf16.msrb.mxu1 %v6771_v13  ;;  %v226_v17 = vpack.c.bf16 %v7306_v16, %v7303_v15  ;;  %v7314_v19 = vld [vmem:[%s7261_s8 + $0x58] sm:$0xff]  ;;  %v7324_v22 = vld [vmem:[%s7261_s8 + $0x80] sm:$0xff]  ;;  %v7327_v23 = vld [vmem:[%s7261_s8 + $0x88] sm:$0xff]  ;;  %s7120_s28 = scalar_lea.hbm %s7119_s27, 256  ;;  %p7125_p3 = scmp.lt.s32.totalorder %s7119_s27, %s9899_s3 }
  0x20   : > { %6157 = vmatmul.msk.bf16.vlgmr.msra.gmra.mxu1 %vm247_vm1, %v228_v12  ;;  %v229_v20 = vpack.c.bf16 %v7314_v19, %v7311_v18  ;;  %v232_v24 = vpack.c.bf16 %v7327_v23, %v7324_v22  ;;  %v7336_v26 = vld [vmem:[%s7261_s8 + $0x30] sm:$0xff]  ;;  %v7339_v27 = vld [vmem:[%s7261_s8 + $0x38] sm:$0xff]  ;;  %v7344_v29 = vld [vmem:[%s7261_s8 + $0x60] sm:$0xff]  ;;  %1695 = vrot.lane.b32.xlu2 %v7303_v15, %s7175_s20  ;;  %p7121_p0 = scmp.ne.s32.totalorder %s7119_s27, %s7120_s28  ;;  %p7126_p4 = scmp.lt.s32.totalorder %s7124_s4, %s7120_s28 }
  0x21   : > { %v227_v28 = vpack.c.bf16 %v7339_v27, %v7336_v26  ;;  %v7347_v30 = vld [vmem:[%s7261_s8 + $0x68] sm:$0xff]  ;;  %v7354_v32 = vld [vmem:[%s7261_s8 + $0x70] sm:$0xff]  ;;  %v7357_v33 = vld [vmem:[%s7261_s8 + $0x78] sm:$0xff] }
  0x22   : > { %6161 = vmatmul.msk.bf16.vlgmr.msra.gmra.mxu2 %vm247_vm1, %v232_v24  ;;  %v230_v31 = vpack.c.bf16 %v7347_v30, %v7344_v29  ;;  %v231_v34 = vpack.c.bf16 %v7357_v33, %v7354_v32  ;;  %v7363_v35 = vld [vmem:[%s7261_s8 + $0x90] sm:$0xff]  ;;  %v7366_v36 = vld [vmem:[%s7261_s8 + $0x98] sm:$0xff]  ;;  %v7372_v38 = vld [vmem:[%s7261_s8 + $0xa0] sm:$0xff]  ;;  %p7122_p1 = pnand %p7121_p0, %p7237_p5  ;;  %p7127_p7 = por %p7126_p4, %p7125_p3 }
  0x23   : > { %525 = vmatpush.bf16.msrb.mxu1 %v6770_v14  ;;  %v233_v37 = vpack.c.bf16 %v7366_v36, %v7363_v35  ;;  %v7375_v39 = vld [vmem:[%s7261_s8 + $0xa8] sm:$0xff]  ;;  %v7381_v42 = vld [vmem:[%s7261_s8 + $0xb0] sm:$0xff]  ;;  %v7384_v43 = vld [vmem:[%s7261_s8 + $0xb8] sm:$0xff] }
  0x24   : > { %v234_v40 = vpack.c.bf16 %v7375_v39, %v7372_v38  ;;  %v235_v45 = vpack.c.bf16 %v7384_v43, %v7381_v42  ;;  %v7395_v53 = vld [vmem:[%s7261_s8 + $0xc0] sm:$0xff]  ;;  %v7398_v54 = vld [vmem:[%s7261_s8 + $0xc8] sm:$0xff]  ;;  %v7407_v62 = vld [vmem:[%s7261_s8 + $0xd0] sm:$0xff]  ;;  %p7123_p2 = pneg %p7122_p1 }
  0x25   : > { %v236_v55 = vpack.c.bf16 %v7398_v54, %v7395_v53  ;;  %v7410_v63 = vld [vmem:[%s7261_s8 + $0xd8] sm:$0xff]  ;;  %1689 = vrot.lane.b32.xlu0 %v7273_v4, %s7175_s20  ;;  %v6777_v4 = vld [vmem:[%s9897_s1 + $0x10] sm:$0xff] }
  0x26   : > { %v237_v1 = vpack.c.bf16 %v7410_v63, %v7407_v62  ;;  %1693 = vrot.lane.b32.xlu1 %v7282_v8, %s7175_s20  ;;  %p7128_p8 = pnand %p7127_p7, %p7123_p2 }
  0x27   : > { %526 = vmatpush.bf16.msrb.mxu1 %v6769_v21  ;;  %6165 = vmatmul.msk.bf16.vlgmr.msra.gmra.mxu3 %vm247_vm1, %v236_v55  ;;  %v6775_v21 = vld [vmem:[%s9897_s1 + $0x60] sm:$0xff] }
  0x28   : > { %743 = vmatpush.bf16.msrb.mxu2 %v6775_v21  ;;  %1697 = vrot.lane.b32.xlu2 %v7306_v16, %s7175_s20 }
  0x2b   : > { %527 = vmatpush.bf16.msrb.mxu1 %v6768_v25 }
  0x2d   : > { %1699 = vrot.lane.b32.xlu0 %v7336_v26, %s7175_s20 }
  0x2e   : > { %1701 = vrot.lane.b32.xlu1 %v7339_v27, %s7175_s20 }
  0x2f   : > { %6154 = vmatmul.msk.bf16.gmra.mxu0 %vm247_vm1, %v225_v9 }
  0x30   : > { %6158 = vmatmul.msk.bf16.gmra.mxu1 %vm247_vm1, %v229_v20  ;;  %v7422_v20 = vld [vmem:[%s7261_s8 + $0xe8] sm:$0xff]  ;;  %1703 = vrot.lane.b32.xlu2 %v7288_v10, %s7175_s20 }
  0x32   : > { %6162 = vmatmul.msk.bf16.gmra.mxu2 %vm247_vm1, %v233_v37 }
  0x35   : > { %1705 = vrot.lane.b32.xlu0 %v7291_v11, %s7175_s20  ;;  %v6776_v11 = vld [vmem:[%s9897_s1 + $0x8] sm:$0xff] }
  0x36   : > { %1707 = vrot.lane.b32.xlu1 %v7311_v18, %s7175_s20 }
  0x37   : > { %6166 = vmatmul.msk.bf16.gmra.mxu3 %vm247_vm1, %v237_v1 }
  0x38   : > { %1709 = vrot.lane.b32.xlu2 %v7314_v19, %s7175_s20 }
  0x3d   : > { %1711 = vrot.lane.b32.xlu0 %v7344_v29, %s7175_s20 }
  0x3e   : > { %1713 = vrot.lane.b32.xlu1 %v7347_v30, %s7175_s20 }
  0x3f   : > { %6155 = vmatmul.msk.bf16.gmra.mxu0 %vm247_vm1, %v226_v17  ;;  %v7419_v17 = vld [vmem:[%s7261_s8 + $0xe0] sm:$0xff] }
  0x40   : > { %6159 = vmatmul.msk.bf16.gmra.mxu1 %vm247_vm1, %v230_v31  ;;  %v238_v25 = vpack.c.bf16 %v7422_v20, %v7419_v17  ;;  %1715 = vrot.lane.b32.xlu2 %v7354_v32, %s7175_s20 }
  0x42   : > { %6163 = vmatmul.msk.bf16.gmra.mxu2 %vm247_vm1, %v234_v40 }
  0x45   : > { %1717 = vrot.lane.b32.xlu0 %v7357_v33, %s7175_s20 }
  0x46   : > { %1719 = vrot.lane.b32.xlu1 %v7324_v22, %s7175_s20 }
  0x47   : > { %6167 = vmatmul.msk.bf16.gmra.mxu3 %vm247_vm1, %v238_v25 }
  0x48   : > { %1721 = vrot.lane.b32.xlu2 %v7327_v23, %s7175_s20 }
  0x4d   : > { %1723 = vrot.lane.b32.xlu0 %v7363_v35, %s7175_s20 }
  0x4e   : > { %1725 = vrot.lane.b32.xlu1 %v7366_v36, %s7175_s20 }
  0x4f   : > { %6156 = vmatmul.msk.bf16.gmra.mxu0 %vm247_vm1, %v227_v28 }
  0x50   : > { %6160 = vmatmul.msk.bf16.gmra.mxu1 %vm247_vm1, %v231_v34  ;;  %1727 = vrot.lane.b32.xlu2 %v7372_v38, %s7175_s20 }
  0x52   : > { %6164 = vmatmul.msk.bf16.gmra.mxu2 %vm247_vm1, %v235_v45 }
  0x55   : > { %1729 = vrot.lane.b32.xlu0 %v7375_v39, %s7175_s20  ;;  %v7582_v39 = vld [vmem:[#allocation2 + $0x3] ss:$0 sm:$0xff] }
  0x56   : > { %1731 = vrot.lane.b32.xlu1 %v7381_v42, %s7175_s20 }
  0x58   : > { %1733 = vrot.lane.b32.xlu2 %v7384_v43, %s7175_s20 }
  0x5d   : > { %1735 = vrot.lane.b32.xlu0 %v7395_v53, %s7175_s20 }
  0x5e   : > { %1737 = vrot.lane.b32.xlu1 %v7398_v54, %s7175_s20 }
  0x60   : > { %1739 = vrot.lane.b32.xlu2 %v7407_v62, %s7175_s20 }
  0x65   : > { %1741 = vrot.lane.b32.xlu0 %v7410_v63, %s7175_s20 }
  0x66   : > { %1743 = vrot.lane.b32.xlu1 %v7419_v17, %s7175_s20 }
  0x68   : > { %1745 = vrot.lane.b32.xlu2 %v7422_v20, %s7175_s20 }
  0x9c   : > { %v309_v41 = vpop.f32.mrf.mxu0 }
  0x9d   : > { %v310_v46 = vadd.f32 %v7386_v44, %v309_v41  ;;  %v329_v13 = vpop.f32.mrf.mxu1 }
  0x9f   : > { %v389_v49 = vmax.f32 %v310_v46, 0.0  ;;  %v7434_v46 = vld [vmem:[%s7261_s8 + $0xf0] sm:$0xff] }
  0xa0   : > { %1747 = vrot.lane.b32.xlu0 %v7434_v46, %s7175_s20 }
  0xa4   : > { %v311_v47 = vpop.f32.mrf.mxu0 }
  0xa5   : > { %v312_v48 = vadd.f32 %v7386_v44, %v311_v47  ;;  %v331_v28 = vpop.f32.mrf.mxu1  ;;  %v7437_v47 = vld [vmem:[%s7261_s8 + $0xf8] sm:$0xff]  ;;  %v349_v25 = vpop.f32.mrf.mxu2 }
  0xa6   : > { %1749 = vrot.lane.b32.xlu1 %v7437_v47, %s7175_s20 }
  0xa7   : > { %v390_v50 = vmax.f32 %v312_v48, 0.0  ;;  %v6774_v48 = vld [vmem:[%s9897_s1 + $0x58] sm:$0xff] }
  0xa8   : > { %744 = vmatpush.bf16.msrb.mxu2 %v6774_v48 }
  0xa9   : > { %v429_v51 = vpack.c.bf16 %v390_v50, %v389_v49  ;;  %v239_v50 = vpack.c.bf16 %v7437_v47, %v7434_v46 }
  0xab   : > { %6185 = vmatmul.msk.bf16.vlgmr.msrb.gmra.mxu1 %vm471_vm2, %v429_v51  ;;  %v330_v51 = vadd.f32 %v7386_v44, %v329_v13  ;;  %6168 = vmatmul.msk.bf16.gmra.mxu3 %vm247_vm1, %v239_v50  ;;  %v350_v50 = vadd.f32 %v7386_v44, %v349_v25 }
  0xac   : > { %v314_v52 = vpop.f32.mrf.mxu0 }
  0xad   : > { %v315_v56 = vadd.f32 %v7386_v44, %v314_v52  ;;  %v334_v49 = vpop.f32.mrf.mxu1  ;;  %v332_v52 = vadd.f32 %v7386_v44, %v331_v28  ;;  %v397_v55 = vmax.f32 %v330_v51, 0.0 }
  0xaf   : > { %v391_v59 = vmax.f32 %v315_v56, 0.0  ;;  %v398_v56 = vmax.f32 %v332_v52, 0.0  ;;  %v405_v52 = vmax.f32 %v350_v50, 0.0 }
  0xb4   : > { %v316_v57 = vpop.f32.mrf.mxu0 }
  0xb5   : > { %v317_v58 = vadd.f32 %v7386_v44, %v316_v57  ;;  %v336_v57 = vpop.f32.mrf.mxu1 }
  0xb7   : > { %v392_v60 = vmax.f32 %v317_v58, 0.0  ;;  %v433_v58 = vpack.c.bf16 %v398_v56, %v397_v55 }
  0xb9   : > { %v430_v61 = vpack.c.bf16 %v392_v60, %v391_v59  ;;  %v6773_v59 = vld [vmem:[%s9897_s1 + $0x50] sm:$0xff] }
  0xba   : > { %745 = vmatpush.bf16.msrb.mxu2 %v6773_v59  ;;  %v7465_v59 = vld [vmem:[#allocation2 + $0x2] ss:$0 sm:$0xff] }
  0xbb   : > { %6186 = vmatmul.msk.bf16.gmra.mxu1 %vm471_vm2, %v430_v61  ;;  %v335_v61 = vadd.f32 %v7386_v44, %v334_v49 }
  0xbc   : > { %v319_v0 = vpop.f32.mrf.mxu0 }
  0xbd   : > { %v320_v3 = vadd.f32 %v7386_v44, %v319_v0  ;;  %v339_v60 = vpop.f32.mrf.mxu1  ;;  %v337_v0 = vadd.f32 %v7386_v44, %v336_v57  ;;  %v399_v1 = vmax.f32 %v335_v61, 0.0 }
  0xbf   : > { %v393_v9 = vmax.f32 %v320_v3, 0.0  ;;  %v400_v3 = vmax.f32 %v337_v0, 0.0 }
  0xc4   : > { %v321_v5 = vpop.f32.mrf.mxu0 }
  0xc5   : > { %v322_v6 = vadd.f32 %v7386_v44, %v321_v5  ;;  %v434_v5 = vpack.c.bf16 %v400_v3, %v399_v1 }
  0xc7   : > { %v394_v12 = vmax.f32 %v322_v6, 0.0  ;;  %v341_v6 = vpop.f32.mrf.mxu1 }
  0xc8   : > { %v342_v13 = vadd.f32 %v7386_v44, %v341_v6 }
  0xc9   : > { %v431_v14 = vpack.c.bf16 %v394_v12, %v393_v9  ;;  %v6772_v9 = vld [vmem:[%s9897_s1 + $0x48] sm:$0xff]  ;;  %v340_v12 = vadd.f32 %v7386_v44, %v339_v60 }
  0xca   : > { %746 = vmatpush.bf16.msrb.mxu2 %v6772_v9 }
  0xcb   : > { %6187 = vmatmul.msk.bf16.gmra.mxu1 %vm471_vm2, %v431_v14  ;;  %v401_v21 = vmax.f32 %v340_v12, 0.0 }
  0xcc   : > { %v324_v24 = vpop.f32.mrf.mxu0 }
  0xcd   : > { %v325_v31 = vadd.f32 %v7386_v44, %v324_v24  ;;  %v402_v24 = vmax.f32 %v342_v13, 0.0 }
  0xcf   : > { %v395_v40 = vmax.f32 %v325_v31, 0.0  ;;  %v344_v14 = vpop.f32.mrf.mxu1  ;;  %v435_v28 = vpack.c.bf16 %v402_v24, %v401_v21 }
  0xd4   : > { %v326_v34 = vpop.f32.mrf.mxu0 }
  0xd5   : > { %v327_v37 = vadd.f32 %v7386_v44, %v326_v34  ;;  %v345_v34 = vadd.f32 %v7386_v44, %v344_v14 }
  0xd7   : > { %v396_v41 = vmax.f32 %v327_v37, 0.0  ;;  %v346_v31 = vpop.f32.mrf.mxu1 }
  0xd8   : > { %v347_v37 = vadd.f32 %v7386_v44, %v346_v31 }
  0xd9   : > { %v432_v45 = vpack.c.bf16 %v396_v41, %v395_v40  ;;  %v351_v40 = vpop.f32.mrf.mxu2  ;;  %v403_v41 = vmax.f32 %v345_v34, 0.0 }
  0xda   : > { %v352_v51 = vadd.f32 %v7386_v44, %v351_v40 }
  0xdb   : > { %6188 = vmatmul.msk.bf16.gmra.mxu1 %vm471_vm2, %v432_v45  ;;  %v404_v45 = vmax.f32 %v347_v37, 0.0 }
  0xdc   : > { %v406_v55 = vmax.f32 %v352_v51, 0.0 }
  0xdd   : > { %v436_v48 = vpack.c.bf16 %v404_v45, %v403_v41 }
  0xe1   : > { %v354_v49 = vpop.f32.mrf.mxu2 }
  0xe2   : > { %v355_v1 = vadd.f32 %v7386_v44, %v354_v49 }
  0xe4   : > { %v407_v12 = vmax.f32 %v355_v1, 0.0 }
  0xe9   : > { %v356_v56 = vpop.f32.mrf.mxu2 }
  0xea   : > { %v357_v3 = vadd.f32 %v7386_v44, %v356_v56 }
  0xeb   : > { %6189 = vmatmul.msk.bf16.gmra.mxu1 %vm471_vm2, %v433_v58  ;;  %v437_v58 = vpack.c.bf16 %v406_v55, %v405_v52  ;;  %v369_v55 = vpop.f32.mrf.mxu3 }
  0xec   : > { %v408_v13 = vmax.f32 %v357_v3, 0.0 }
  0xee   : > { %v438_v24 = vpack.c.bf16 %v408_v13, %v407_v12 }
  0xf1   : > { %v359_v0 = vpop.f32.mrf.mxu2 }
  0xf2   : > { %v360_v34 = vadd.f32 %v7386_v44, %v359_v0 }
  0xf3   : > { %v371_v3 = vpop.f32.mrf.mxu3 }
  0xf4   : > { %v409_v49 = vmax.f32 %v360_v34, 0.0  ;;  %v372_v34 = vadd.f32 %v7386_v44, %v371_v3 }
  0xf9   : > { %v361_v25 = vpop.f32.mrf.mxu2 }
  0xfa   : > { %v362_v37 = vadd.f32 %v7386_v44, %v361_v25 }
  0xfb   : > { %6190 = vmatmul.msk.bf16.gmra.mxu1 %vm471_vm2, %v434_v5 }
  0xfc   : > { %v410_v50 = vmax.f32 %v362_v37, 0.0 }
  0xfe   : > { %v439_v56 = vpack.c.bf16 %v410_v50, %v409_v49 }
 0x10b   : > { %6191 = vmatmul.msk.bf16.gmra.mxu1 %vm471_vm2, %v435_v28 }
 0x11b   : > { %6192 = vmatmul.msk.bf16.gmra.mxu1 %vm471_vm2, %v436_v48  ;;  %v364_v48 = vpop.f32.mrf.mxu2 }
 0x128   : > { %v529_v57 = vpop.f32.mrf.mxu1 }
 0x129   : > { %v530_v60 = vadd.f32 %v7465_v59, %v529_v57  ;;  %v366_v57 = vpop.f32.mrf.mxu2 }
 0x12a   : > { %v367_v0 = vadd.f32 %v7386_v44, %v366_v57 }
 0x12b   : > { %6193 = vmatmul.msk.bf16.gmra.mxu1 %vm471_vm2, %v437_v58  ;;  %v609_v6 = vmax.f32 %v530_v60, 0.0 }
 0x12c   : > { %v412_v12 = vmax.f32 %v367_v0, 0.0 }
 0x130   : > { %v531_v61 = vpop.f32.mrf.mxu1 }
 0x131   : > { %v532_v5 = vadd.f32 %v7465_v59, %v531_v61  ;;  %v365_v61 = vadd.f32 %v7386_v44, %v364_v48  ;;  %v414_v48 = vmax.f32 %v372_v34, 0.0 }
 0x133   : > { %v610_v9 = vmax.f32 %v532_v5, 0.0 }
 0x135   : > { %v649_v14 = vpack.c.bf16 %v610_v9, %v609_v6  ;;  %v411_v9 = vmax.f32 %v365_v61, 0.0 }
 0x137   : > { %6217 = vmatmul.msk.bf16.vlgmr.msrb.gmra.mxu2 %vm471_vm2, %v649_v14 }
 0x138   : > { %v534_v21 = vpop.f32.mrf.mxu1 }
 0x139   : > { %v535_v28 = vadd.f32 %v7465_v59, %v534_v21  ;;  %v440_v21 = vpack.c.bf16 %v412_v12, %v411_v9 }
 0x13b   : > { %6194 = vmatmul.msk.bf16.gmra.mxu1 %vm471_vm2, %v438_v24  ;;  %v611_v41 = vmax.f32 %v535_v28, 0.0  ;;  %v374_v24 = vpop.f32.mrf.mxu3 }
 0x140   : > { %v536_v31 = vpop.f32.mrf.mxu1 }
 0x141   : > { %v537_v40 = vadd.f32 %v7465_v59, %v536_v31  ;;  %v370_v31 = vadd.f32 %v7386_v44, %v369_v55  ;;  %v6779_v55 = vld [vmem:[%s9897_s1 + $0x20] sm:$0xff] }
 0x142   : > { %962 = vmatpush.bf16.msrb.mxu3 %v6779_v55 }
 0x143   : > { %v612_v45 = vmax.f32 %v537_v40, 0.0  ;;  %v376_v50 = vpop.f32.mrf.mxu3 }
 0x144   : > { %v377_v61 = vadd.f32 %v7386_v44, %v376_v50 }
 0x145   : > { %v650_v51 = vpack.c.bf16 %v612_v45, %v611_v41  ;;  %v413_v45 = vmax.f32 %v370_v31, 0.0 }
 0x147   : > { %6218 = vmatmul.msk.bf16.gmra.mxu2 %vm471_vm2, %v650_v51 }
 0x148   : > { %v539_v52 = vpop.f32.mrf.mxu1 }
 0x149   : > { %v540_v58 = vadd.f32 %v7465_v59, %v539_v52  ;;  %v441_v52 = vpack.c.bf16 %v414_v48, %v413_v45 }
 0x14b   : > { %6195 = vmatmul.msk.bf16.gmra.mxu1 %vm471_vm2, %v439_v56  ;;  %v613_v5 = vmax.f32 %v540_v58, 0.0  ;;  %v379_v58 = vpop.f32.mrf.mxu3 }
 0x150   : > { %v541_v60 = vpop.f32.mrf.mxu1 }
 0x151   : > { %v542_v1 = vadd.f32 %v7465_v59, %v541_v60  ;;  %v375_v60 = vadd.f32 %v7386_v44, %v374_v24 }
 0x153   : > { %v614_v6 = vmax.f32 %v542_v1, 0.0 }
 0x155   : > { %v651_v13 = vpack.c.bf16 %v614_v6, %v613_v5  ;;  %v415_v5 = vmax.f32 %v375_v60, 0.0  ;;  %v416_v6 = vmax.f32 %v377_v61, 0.0 }
 0x157   : > { %6219 = vmatmul.msk.bf16.gmra.mxu2 %vm471_vm2, %v651_v13  ;;  %v442_v13 = vpack.c.bf16 %v416_v6, %v415_v5 }
 0x158   : > { %v544_v14 = vpop.f32.mrf.mxu1 }
 0x159   : > { %v545_v25 = vadd.f32 %v7465_v59, %v544_v14  ;;  %v381_v14 = vpop.f32.mrf.mxu3 }
 0x15a   : > { %v382_v2 = vadd.f32 %v7386_v44, %v381_v14 }
 0x15b   : > { %6196 = vmatmul.msk.bf16.gmra.mxu1 %vm471_vm2, %v440_v21  ;;  %v615_v40 = vmax.f32 %v545_v25, 0.0  ;;  %v6778_v21 = vld [vmem:[%s9897_s1 + $0x18] sm:$0xff] }
 0x15c   : > { %963 = vmatpush.bf16.msrb.mxu3 %v6778_v21 }
 0x160   : > { %v546_v28 = vpop.f32.mrf.mxu1  ;;  %964 = vmatpush.bf16.msrb.mxu3 %v6777_v4 }
 0x161   : > { %v547_v37 = vadd.f32 %v7465_v59, %v546_v28  ;;  %v380_v28 = vadd.f32 %v7386_v44, %v379_v58  ;;  %v384_v34 = vpop.f32.mrf.mxu3 }
 0x162   : > { %v385_v50 = vadd.f32 %v7386_v44, %v384_v34 }
 0x163   : > { %v616_v41 = vmax.f32 %v547_v37, 0.0  ;;  %v417_v37 = vmax.f32 %v380_v28, 0.0 }
 0x164   : > { %965 = vmatpush.bf16.msrb.mxu3 %v6776_v11 }
 0x165   : > { %v652_v49 = vpack.c.bf16 %v616_v41, %v615_v40  ;;  %v418_v40 = vmax.f32 %v382_v2, 0.0 }
 0x167   : > { %6220 = vmatmul.msk.bf16.gmra.mxu2 %vm471_vm2, %v652_v49  ;;  %v443_v48 = vpack.c.bf16 %v418_v40, %v417_v37 }
 0x168   : > { %v549_v51 = vpop.f32.mrf.mxu1 }
 0x169   : > { %v550_v56 = vadd.f32 %v7465_v59, %v549_v51  ;;  %v386_v8 = vpop.f32.mrf.mxu3 }
 0x16a   : > { %v387_v26 = vadd.f32 %v7386_v44, %v386_v8 }
 0x16b   : > { %6197 = vmatmul.msk.bf16.gmra.mxu1 %vm471_vm2, %v441_v52  ;;  %v617_v1 = vmax.f32 %v550_v56, 0.0  ;;  %v419_v52 = vmax.f32 %v385_v50, 0.0 }
 0x16c   : > { %v420_v55 = vmax.f32 %v387_v26, 0.0 }
 0x16e   : > { %v444_v44 = vpack.c.bf16 %v420_v55, %v419_v52 }
 0x170   : > { %v551_v57 = vpop.f32.mrf.mxu1 }
 0x171   : > { %v552_v0 = vadd.f32 %v7465_v59, %v551_v57 }
 0x173   : > { %v618_v3 = vmax.f32 %v552_v0, 0.0 }
 0x175   : > { %v653_v9 = vpack.c.bf16 %v618_v3, %v617_v1 }
 0x177   : > { %6221 = vmatmul.msk.bf16.gmra.mxu2 %vm471_vm2, %v653_v9 }
 0x178   : > { %v554_v12 = vpop.f32.mrf.mxu1 }
 0x179   : > { %v555_v24 = vadd.f32 %v7465_v59, %v554_v12 }
 0x17b   : > { %6198 = vmatmul.msk.bf16.gmra.mxu1 %vm471_vm2, %v442_v13  ;;  %v619_v15 = vmax.f32 %v555_v24, 0.0 }
 0x180   : > { %v556_v25 = vpop.f32.mrf.mxu1 }
 0x181   : > { %v557_v7 = vadd.f32 %v7465_v59, %v556_v25 }
 0x183   : > { %v620_v31 = vmax.f32 %v557_v7, 0.0 }
 0x185   : > { %v654_v41 = vpack.c.bf16 %v620_v31, %v619_v15 }
 0x187   : > { %6222 = vmatmul.msk.bf16.gmra.mxu2 %vm471_vm2, %v654_v41 }
 0x188   : > { %v559_v45 = vpop.f32.mrf.mxu1 }
 0x189   : > { %v560_v16 = vadd.f32 %v7465_v59, %v559_v45 }
 0x18b   : > { %6199 = vmatmul.msk.bf16.gmra.mxu1 %vm471_vm2, %v443_v48  ;;  %v621_v10 = vmax.f32 %v560_v16, 0.0 }
 0x190   : > { %v561_v49 = vpop.f32.mrf.mxu1 }
 0x191   : > { %v562_v27 = vadd.f32 %v7465_v59, %v561_v49 }
 0x193   : > { %v622_v51 = vmax.f32 %v562_v27, 0.0 }
 0x195   : > { %v655_v56 = vpack.c.bf16 %v622_v51, %v621_v10  ;;  %v6784_v10 = vld [vmem:[%s9897_s1 + $0x80] sm:$0xff] }
 0x196   : > { %2185 = vmatpush.bf16.msra.mxu1 %v6784_v10  ;;  %v6783_v10 = vld [vmem:[%s9897_s1 + $0x78] sm:$0xff] }
 0x197   : > { %6223 = vmatmul.msk.bf16.gmra.mxu2 %vm471_vm2, %v655_v56 }
 0x198   : > { %v564_v57 = vpop.f32.mrf.mxu1 }
 0x199   : > { %v565_v18 = vadd.f32 %v7465_v59, %v564_v57 }
 0x19a   : > { %2186 = vmatpush.bf16.msra.mxu1 %v6783_v10 }
 0x19b   : > { %6200 = vmatmul.msk.bf16.gmra.mxu1 %vm471_vm2, %v444_v44  ;;  %v623_v29 = vmax.f32 %v565_v18, 0.0 }
 0x1a0   : > { %v566_v19 = vpop.f32.mrf.mxu1 }
 0x1a1   : > { %v567_v58 = vadd.f32 %v7465_v59, %v566_v19 }
 0x1a3   : > { %v624_v30 = vmax.f32 %v567_v58, 0.0 }
 0x1a5   : > { %v656_v32 = vpack.c.bf16 %v624_v30, %v623_v29 }
 0x1a7   : > { %6224 = vmatmul.msk.bf16.gmra.mxu2 %vm471_vm2, %v656_v32 }
 0x1a8   : > { %v569_v60 = vpop.f32.mrf.mxu1 }
 0x1a9   : > { %v570_v22 = vadd.f32 %v7465_v59, %v569_v60 }
 0x1ab   : > { %v625_v35 = vmax.f32 %v570_v22, 0.0 }
 0x1b0   : > { %v571_v33 = vpop.f32.mrf.mxu1 }
 0x1b1   : > { %v572_v23 = vadd.f32 %v7465_v59, %v571_v33 }
 0x1b3   : > { %v626_v61 = vmax.f32 %v572_v23, 0.0 }
 0x1b5   : > { %v657_v36 = vpack.c.bf16 %v626_v61, %v625_v35 }
 0x1b7   : > { %6225 = vmatmul.msk.bf16.gmra.mxu2 %vm471_vm2, %v657_v36 }
 0x1b8   : > { %v574_v38 = vpop.f32.mrf.mxu1 }
 0x1b9   : > { %v575_v42 = vadd.f32 %v7465_v59, %v574_v38 }
 0x1ba   : > { %v748_v0 = vpop.f32.mrf.mxu2 }
 0x1bb   : > { %v749_v1 = vadd.f32 %v7582_v39, %v748_v0  ;;  %v627_v54 = vmax.f32 %v575_v42, 0.0 }
 0x1bd   : > { %v828_v6 = vmax.f32 %v749_v1, 0.0 }
 0x1c0   : > { %v576_v43 = vpop.f32.mrf.mxu1 }
 0x1c1   : > { %v577_v3 = vadd.f32 %v7465_v59, %v576_v43 }
 0x1c2   : > { %v750_v53 = vpop.f32.mrf.mxu2 }
 0x1c3   : > { %v628_v62 = vmax.f32 %v577_v3, 0.0  ;;  %v751_v5 = vadd.f32 %v7582_v39, %v750_v53 }
 0x1c5   : > { %v658_v9 = vpack.c.bf16 %v628_v62, %v627_v54  ;;  %v829_v12 = vmax.f32 %v751_v5, 0.0 }
 0x1c7   : > { %v868_v13 = vpack.c.bf16 %v829_v12, %v828_v6  ;;  %6226 = vmatmul.msk.bf16.gmra.mxu2 %vm471_vm2, %v658_v9 }
 0x1c8   : > { %v579_v14 = vpop.f32.mrf.mxu1 }
 0x1c9   : > { %6249 = vmatmul.msk.bf16.vlgmr.msrb.gmra.mxu3 %vm471_vm2, %v868_v13  ;;  %v580_v17 = vadd.f32 %v7465_v59, %v579_v14 }
 0x1ca   : > { %v753_v63 = vpop.f32.mrf.mxu2 }
 0x1cb   : > { %v754_v21 = vadd.f32 %v7582_v39, %v753_v63  ;;  %v629_v28 = vmax.f32 %v580_v17, 0.0 }
 0x1cd   : > { %v830_v15 = vmax.f32 %v754_v21, 0.0 }
 0x1d0   : > { %v581_v20 = vpop.f32.mrf.mxu1 }
 0x1d1   : > { %v582_v24 = vadd.f32 %v7465_v59, %v581_v20 }
 0x1d2   : > { %v755_v25 = vpop.f32.mrf.mxu2 }
 0x1d3   : > { %v630_v2 = vmax.f32 %v582_v24, 0.0  ;;  %v756_v7 = vadd.f32 %v7582_v39, %v755_v25 }
 0x1d5   : > { %v659_v31 = vpack.c.bf16 %v630_v2, %v629_v28  ;;  %v831_v34 = vmax.f32 %v756_v7, 0.0 }
 0x1d7   : > { %6227 = vmatmul.msk.bf16.gmra.mxu2 %vm471_vm2, %v659_v31  ;;  %v869_v46 = vpack.c.bf16 %v831_v34, %v830_v15  ;;  %v1882_v31 = vld [vmem:[%s9897_s1 + $0x170] sm:$0x3] }
 0x1d8   : > { %v584_v37 = vpop.f32.mrf.mxu1  ;;  %v1906_v34 = vunpack.c.l.b16 %v1882_v31  ;;  %v1688_v31 = vpop.permute.xlu0 %1687 }
 0x1d9   : > { %6250 = vmatmul.msk.bf16.gmra.mxu3 %vm471_vm2, %v869_v46  ;;  %v585_v40 = vadd.f32 %v7465_v59, %v584_v37 }
 0x1da   : > { %v758_v47 = vpop.f32.mrf.mxu2 }
 0x1db   : > { %v759_v45 = vadd.f32 %v7582_v39, %v758_v47  ;;  %v631_v8 = vmax.f32 %v585_v40, 0.0  ;;  %v1908_v47 = vpack.c.b16 %v1906_v34, %v1906_v34 }
 0x1dd   : > { %v832_v50 = vmax.f32 %v759_v45, 0.0 }
 0x1e0   : > { %v586_v41 = vpop.f32.mrf.mxu1 }
 0x1e1   : > { %v587_v48 = vadd.f32 %v7465_v59, %v586_v41 }
 0x1e2   : > { %v760_v4 = vpop.f32.mrf.mxu2 }
 0x1e3   : > { %v632_v16 = vmax.f32 %v587_v48, 0.0  ;;  %v761_v49 = vadd.f32 %v7582_v39, %v760_v4  ;;  %v1960_v48 = vsel %vm1958_vm3, %v1908_v47, 0 }
 0x1e4   : > { %1968 = vmatpush.bf16.msrb.mxu0 %v1960_v48 }
 0x1e5   : > { %v660_v26 = vpack.c.bf16 %v632_v16, %v631_v8  ;;  %v833_v27 = vmax.f32 %v761_v49, 0.0 }
 0x1e7   : > { %6228 = vmatmul.msk.bf16.gmra.mxu2 %vm471_vm2, %v660_v26  ;;  %v870_v51 = vpack.c.bf16 %v833_v27, %v832_v50 }
 0x1e8   : > { %v589_v52 = vpop.f32.mrf.mxu1 }
 0x1e9   : > { %6251 = vmatmul.msk.bf16.gmra.mxu3 %vm471_vm2, %v870_v51  ;;  %v590_v56 = vadd.f32 %v7465_v59, %v589_v52 }
 0x1ea   : > { %v763_v55 = vpop.f32.mrf.mxu2 }
 0x1eb   : > { %v764_v44 = vadd.f32 %v7582_v39, %v763_v55  ;;  %v633_v19 = vmax.f32 %v590_v56, 0.0 }
 0x1ed   : > { %v834_v30 = vmax.f32 %v764_v44, 0.0 }
 0x1f0   : > { %v591_v57 = vpop.f32.mrf.mxu1 }
 0x1f1   : > { %v592_v11 = vadd.f32 %v7465_v59, %v591_v57 }
 0x1f2   : > { %v765_v18 = vpop.f32.mrf.mxu2 }
 0x1f3   : > { %v634_v58 = vmax.f32 %v592_v11, 0.0  ;;  %v766_v29 = vadd.f32 %v7582_v39, %v765_v18 }
 0x1f5   : > { %v661_v32 = vpack.c.bf16 %v634_v58, %v633_v19  ;;  %v835_v60 = vmax.f32 %v766_v29, 0.0  ;;  %v6780_v29 = vld [vmem:[%s9897_s1 + $0x168] sm:$0xff] }
 0x1f6   : > { %1969 = vmatpush.bf16.msrb.mxu0 %v6780_v29 }
 0x1f7   : > { %6229 = vmatmul.msk.bf16.gmra.mxu2 %vm471_vm2, %v661_v32  ;;  %v871_v22 = vpack.c.bf16 %v835_v60, %v834_v30 }
 0x1f8   : > { %v594_v33 = vpop.f32.mrf.mxu1 }
 0x1f9   : > { %6252 = vmatmul.msk.bf16.gmra.mxu3 %vm471_vm2, %v871_v22  ;;  %v595_v35 = vadd.f32 %v7465_v59, %v594_v33  ;;  %v7655_v22 = vld [vmem:[#allocation2 + $0x1] ss:$0 sm:$0xff] }
 0x1fa   : > { %v768_v23 = vpop.f32.mrf.mxu2 }
 0x1fb   : > { %v769_v36 = vadd.f32 %v7582_v39, %v768_v23  ;;  %v635_v42 = vmax.f32 %v595_v35, 0.0 }
 0x1fd   : > { %v836_v3 = vmax.f32 %v769_v36, 0.0 }
 0x200   : > { %v596_v61 = vpop.f32.mrf.mxu1 }
 0x201   : > { %v597_v38 = vadd.f32 %v7465_v59, %v596_v61 }
 0x202   : > { %v770_v0 = vpop.f32.mrf.mxu2 }
 0x203   : > { %v636_v43 = vmax.f32 %v597_v38, 0.0  ;;  %v771_v1 = vadd.f32 %v7582_v39, %v770_v0 }
 0x205   : > { %v662_v53 = vpack.c.bf16 %v636_v43, %v635_v42  ;;  %v837_v54 = vmax.f32 %v771_v1, 0.0 }
 0x207   : > { %6230 = vmatmul.msk.bf16.gmra.mxu2 %vm471_vm2, %v662_v53  ;;  %v872_v62 = vpack.c.bf16 %v837_v54, %v836_v3 }
 0x208   : > { %v599_v5 = vpop.f32.mrf.mxu1 }
 0x209   : > { %6253 = vmatmul.msk.bf16.gmra.mxu3 %vm471_vm2, %v872_v62  ;;  %v600_v9 = vadd.f32 %v7465_v59, %v599_v5 }
 0x20a   : > { %v773_v6 = vpop.f32.mrf.mxu2 }
 0x20b   : > { %v774_v13 = vadd.f32 %v7582_v39, %v773_v6  ;;  %v637_v17 = vmax.f32 %v600_v9, 0.0 }
 0x20d   : > { %v838_v24 = vmax.f32 %v774_v13, 0.0 }
 0x210   : > { %v601_v12 = vpop.f32.mrf.mxu1 }
 0x211   : > { %v602_v14 = vadd.f32 %v7465_v59, %v601_v12 }
 0x212   : > { %v775_v63 = vpop.f32.mrf.mxu2 }
 0x213   : > { %v638_v20 = vmax.f32 %v602_v14, 0.0  ;;  %v776_v21 = vadd.f32 %v7582_v39, %v775_v63 }
 0x215   : > { %v663_v25 = vpack.c.bf16 %v638_v20, %v637_v17  ;;  %v839_v28 = vmax.f32 %v776_v21, 0.0 }
 0x217   : > { %6231 = vmatmul.msk.bf16.gmra.mxu2 %vm471_vm2, %v663_v25  ;;  %v873_v2 = vpack.c.bf16 %v839_v28, %v838_v24 }
 0x218   : > { %v604_v7 = vpop.f32.mrf.mxu1 }
 0x219   : > { %6254 = vmatmul.msk.bf16.gmra.mxu3 %vm471_vm2, %v873_v2  ;;  %v605_v46 = vadd.f32 %v7465_v59, %v604_v7 }
 0x21a   : > { %v778_v15 = vpop.f32.mrf.mxu2 }
 0x21b   : > { %v779_v40 = vadd.f32 %v7582_v39, %v778_v15  ;;  %v639_v4 = vmax.f32 %v605_v46, 0.0 }
 0x21d   : > { %v840_v49 = vmax.f32 %v779_v40, 0.0 }
 0x220   : > { %v606_v37 = vpop.f32.mrf.mxu1 }
 0x221   : > { %v607_v41 = vadd.f32 %v7465_v59, %v606_v37 }
 0x222   : > { %v780_v45 = vpop.f32.mrf.mxu2 }
 0x223   : > { %v640_v8 = vmax.f32 %v607_v41, 0.0  ;;  %v781_v16 = vadd.f32 %v7582_v39, %v780_v45 }
 0x225   : > { %v664_v50 = vpack.c.bf16 %v640_v8, %v639_v4  ;;  %v841_v26 = vmax.f32 %v781_v16, 0.0 }
 0x227   : > { %6232 = vmatmul.msk.bf16.gmra.mxu2 %vm471_vm2, %v664_v50  ;;  %v874_v27 = vpack.c.bf16 %v841_v26, %v840_v49 }
 0x229   : > { %6255 = vmatmul.msk.bf16.gmra.mxu3 %vm471_vm2, %v874_v27 }
 0x22a   : > { %v783_v59 = vpop.f32.mrf.mxu2 }
 0x22b   : > { %v784_v51 = vadd.f32 %v7582_v39, %v783_v59 }
 0x22d   : > { %v842_v56 = vmax.f32 %v784_v51, 0.0 }
 0x232   : > { %v785_v52 = vpop.f32.mrf.mxu2 }
 0x233   : > { %v786_v55 = vadd.f32 %v7582_v39, %v785_v52 }
 0x235   : > { %v843_v57 = vmax.f32 %v786_v55, 0.0 }
 0x237   : > { %v875_v44 = vpack.c.bf16 %v843_v57, %v842_v56  ;;  %v7040_v57 = vld [vmem:[%s7261_s8] sm:$0xff] }
 0x239   : > { %6256 = vmatmul.msk.bf16.gmra.mxu3 %vm471_vm2, %v875_v44  ;;  %v1783_v44 = vsel %vm247_vm1, %v7040_v57, %v1688_v31 }
 0x23a   : > { %v788_v11 = vpop.f32.mrf.mxu2 }
 0x23b   : > { %v789_v18 = vadd.f32 %v7582_v39, %v788_v11  ;;  %v1690_v11 = vpop.permute.xlu0 %1689 }
 0x23d   : > { %v844_v30 = vmax.f32 %v789_v18, 0.0 }
 0x242   : > { %v790_v19 = vpop.f32.mrf.mxu2 }
 0x243   : > { %v791_v58 = vadd.f32 %v7582_v39, %v790_v19 }
 0x245   : > { %v845_v32 = vmax.f32 %v791_v58, 0.0 }
 0x247   : > { %v876_v60 = vpack.c.bf16 %v845_v32, %v844_v30 }
 0x249   : > { %6257 = vmatmul.msk.bf16.gmra.mxu3 %vm471_vm2, %v876_v60 }
 0x24a   : > { %v793_v33 = vpop.f32.mrf.mxu2 }
 0x24b   : > { %v794_v36 = vadd.f32 %v7582_v39, %v793_v33 }
 0x24c   : > { %v967_v23 = vpop.f32.mrf.mxu3 }
 0x24d   : > { %v968_v35 = vadd.f32 %v7655_v22, %v967_v23  ;;  %v846_v1 = vmax.f32 %v794_v36, 0.0 }
 0x24f   : > { %v1047_v61 = vsub.f32 0.0, %v968_v35  ;;  %v7041_v35 = vld [vmem:[%s7261_s8 + $0x8] sm:$0xff] }
 0x251   : > { %v1079_v38 = vmul.f32 1.442695, %v1047_v61  ;;  %v1784_v61 = vsel %vm247_vm1, %v7041_v35, %v1690_v11 }
 0x252   : > { %v795_v0 = vpop.f32.mrf.mxu2 }
 0x253   : > { %6912 = vpow2.f32 %v1079_v38  ;;  %v796_v42 = vadd.f32 %v7582_v39, %v795_v0 }
 0x254   : > { %v969_v43 = vpop.f32.mrf.mxu3 }
 0x255   : > { %v847_v3 = vmax.f32 %v796_v42, 0.0  ;;  %v970_v53 = vadd.f32 %v7655_v22, %v969_v43 }
 0x257   : > { %v877_v54 = vpack.c.bf16 %v847_v3, %v846_v1  ;;  %v1048_v62 = vsub.f32 0.0, %v970_v53 }
 0x259   : > { %v6913_v5 = vpop.eup %6912  ;;  %v1081_v6 = vmul.f32 1.442695, %v1048_v62  ;;  %6258 = vmatmul.msk.bf16.gmra.mxu3 %vm471_vm2, %v877_v54 }
 0x25a   : > { %v1143_v9 = vadd.f32 1.0, %v6913_v5  ;;  %v798_v12 = vpop.f32.mrf.mxu2 }
 0x25b   : > { %6914 = vpow2.f32 %v1081_v6  ;;  %v799_v20 = vadd.f32 %v7582_v39, %v798_v12  ;;  %v1692_v6 = vpop.permute.xlu1 %1691 }
 0x25c   : > { %6916 = vrcp.f32 %v1143_v9  ;;  %v972_v13 = vpop.f32.mrf.mxu3  ;;  %v1186_v16 = vand.u32 2147483648, %v1143_v9  ;;  %vm1180_vm5 = vweird.f32 %v1143_v9  ;;  %v1184_v27 = vand.u32 2147483647, %v1143_v9 }
 0x25d   : > { %v973_v14 = vadd.f32 %v7655_v22, %v972_v13  ;;  %v848_v34 = vmax.f32 %v799_v20, 0.0 }
 0x25e   : > { %v1187_v52 = vor.u32 1.1754944e-38, %v1186_v16  ;;  %vm1185_vm7 = vcmp.eq.f32.partialorder %v1184_v27, 8.507059e+37 }
 0x25f   : > { %v1049_v63 = vsub.f32 0.0, %v973_v14 }
 0x261   : > { %v6915_v17 = vpop.eup %6914  ;;  %v1083_v21 = vmul.f32 1.442695, %v1049_v63 }
 0x262   : > { %v6917_v24 = vpop.eup %6916  ;;  %v1144_v25 = vadd.f32 1.0, %v6915_v17  ;;  %v800_v28 = vpop.f32.mrf.mxu2 }
 0x263   : > { %6918 = vpow2.f32 %v1083_v21  ;;  %v801_v2 = vadd.f32 %v7582_v39, %v800_v28  ;;  %v1176_v7 = vmul.f32 %v6917_v24, %v1143_v9  ;;  %vm1181_vm4 = vweird.f32 %v6917_v24  ;;  %v6782_v9 = vld [vmem:[%s9897_s1 + $0x70] sm:$0xff]  ;;  %v1694_v27 = vpop.permute.xlu1 %1693 }
 0x264   : > { %6920 = vrcp.f32 %v1144_v25  ;;  %v974_v15 = vpop.f32.mrf.mxu3  ;;  %vm1182_vm6 = vmor %vm1180_vm5, %vm1181_vm4  ;;  %v1199_v18 = vand.u32 2147483647, %v1144_v25  ;;  %v1201_v19 = vand.u32 2147483648, %v1144_v25  ;;  %vm1195_vm10 = vweird.f32 %v1144_v25  ;;  %2187 = vmatpush.bf16.msra.mxu1 %v6782_v9 }
 0x265   : > { %v849_v46 = vmax.f32 %v801_v2, 0.0  ;;  %v975_v37 = vadd.f32 %v7655_v22, %v974_v15  ;;  %v1177_v47 = vsub.f32 1.0, %v1176_v7 }
 0x266   : > { %vm1200_vm12 = vcmp.eq.f32.partialorder %v1199_v18, 8.507059e+37  ;;  %v1202_v43 = vor.u32 1.1754944e-38, %v1201_v19  ;;  %v7043_v18 = vld [vmem:[%s7261_s8 + $0x18] sm:$0xff] }
 0x267   : > { %v878_v40 = vpack.c.bf16 %v849_v46, %v848_v34  ;;  %v1050_v41 = vsub.f32 0.0, %v975_v37  ;;  %v1178_v45 = vmul.f32 %v6917_v24, %v1177_v47  ;;  %v1786_v19 = vsel %vm247_vm1, %v7043_v18, %v1694_v27 }
 0x269   : > { %v6919_v48 = vpop.eup %6918  ;;  %v1085_v4 = vmul.f32 1.442695, %v1050_v41  ;;  %6259 = vmatmul.msk.bf16.gmra.mxu3 %vm471_vm2, %v878_v40  ;;  %v1179_v8 = vadd.f32 %v6917_v24, %v1178_v45 }
 0x26a   : > { %v6921_v49 = vpop.eup %6920  ;;  %v7667_v50 = vadd.f32 1.0, %v6919_v48  ;;  %v803_v26 = vpop.f32.mrf.mxu2 }
 0x26b   : > { %6922 = vpow2.f32 %v1085_v4  ;;  %v1191_v10 = vmul.f32 %v6921_v49, %v1144_v25  ;;  %v1183_v59 = vsel %vm1182_vm6, %v6917_v24, %v1179_v8  ;;  %vm1196_vm8 = vweird.f32 %v6921_v49  ;;  %v6788_v4 = vld [vmem:[%s9897_s1 + $0xa0] sm:$0xff] }
 0x26c   : > { %6924 = vrcp.f32 %v7667_v50  ;;  %v977_v51 = vpop.f32.mrf.mxu3  ;;  %v1188_v58 = vsel %vm1185_vm7, %v1187_v52, %v1183_v59  ;;  %v804_v32 = vadd.f32 %v7582_v39, %v803_v26  ;;  %vm1197_vm11 = vmor %vm1195_vm10, %vm1196_vm8  ;;  %v1216_v31 = vand.u32 2147483648, %v7667_v50  ;;  %2404 = vmatpush.bf16.msra.mxu2 %v6788_v4 }
 0x26d   : > { %v978_v55 = vadd.f32 %v7655_v22, %v977_v51  ;;  %v1192_v56 = vsub.f32 1.0, %v1191_v10  ;;  %v7678_v0 = vmul.f32 %v1783_v44, %v1188_v58  ;;  %vm1210_vm14 = vweird.f32 %v7667_v50 }
 0x26e   : > { %v850_v54 = vmax.f32 %v804_v32, 0.0  ;;  %v1214_v47 = vand.u32 2147483647, %v7667_v50  ;;  %v1217_v8 = vor.u32 1.1754944e-38, %v1216_v31 }
 0x26f   : > { %v1051_v29 = vsub.f32 0.0, %v978_v55  ;;  %v1193_v30 = vmul.f32 %v6921_v49, %v1192_v56  ;;  %v7691_v17 = vsel %vm1847_vm9, %v7678_v0, 0.0 }
 0x270   : > { %vm1215_vm0 = vcmp.eq.f32.partialorder %v1214_v47, 8.507059e+37 }
 0x271   : > { %v6923_v60 = vpop.eup %6922  ;;  %v1087_v33 = vmul.f32 1.442695, %v1051_v29  ;;  %v1194_v23 = vadd.f32 %v6921_v49, %v1193_v30 }
 0x272   : > { %v6925_v36 = vpop.eup %6924  ;;  %v7676_v38 = vadd.f32 1.0, %v6923_v60  ;;  %v805_v42 = vpop.f32.mrf.mxu2 }
 0x273   : > { %6926 = vpow2.f32 %v1087_v33  ;;  %v806_v1 = vadd.f32 %v7582_v39, %v805_v42  ;;  %v1198_v3 = vsel %vm1197_vm11, %v6921_v49, %v1194_v23  ;;  %v1206_v53 = vmul.f32 %v6925_v36, %v7667_v50  ;;  %v7042_v50 = vld [vmem:[%s7261_s8 + $0x10] sm:$0xff]  ;;  %v1696_v42 = vpop.permute.xlu2 %1695 }
 0x274   : > { %6928 = vrcp.f32 %v7676_v38  ;;  %v1203_v62 = vsel %vm1200_vm12, %v1202_v43, %v1198_v3  ;;  %v979_v5 = vpop.f32.mrf.mxu3  ;;  %vm1211_vm13 = vweird.f32 %v6925_v36  ;;  %v1785_v26 = vsel %vm247_vm1, %v7042_v50, %v1692_v6 }
 0x275   : > { %v851_v12 = vmax.f32 %v806_v1, 0.0  ;;  %v7686_v13 = vmul.f32 %v1784_v61, %v1203_v62  ;;  %v980_v14 = vadd.f32 %v7655_v22, %v979_v5  ;;  %v1207_v63 = vsub.f32 1.0, %v1206_v53  ;;  %vm7706_vm15 = vmor %vm1210_vm14, %vm1211_vm13 }
 0x276   : > { %v1229_v10 = vand.u32 2147483647, %v7676_v38  ;;  %v1231_v59 = vand.u32 2147483648, %v7676_v38  ;;  %vm1225_vm5 = vweird.f32 %v7676_v38 }
 0x277   : > { %v879_v20 = vpack.c.bf16 %v851_v12, %v850_v54  ;;  %v7695_v21 = vsel %vm1847_vm9, %v7686_v13, 0.0  ;;  %v1052_v24 = vsub.f32 0.0, %v980_v14  ;;  %v1208_v25 = vmul.f32 %v6925_v36, %v1207_v63 }
 0x278   : > { %v1883_v28 = vpack.c.bf16 %v7695_v21, %v7691_v17  ;;  %vm1230_vm7 = vcmp.eq.f32.partialorder %v1229_v10, 8.507059e+37  ;;  %v1232_v60 = vor.u32 1.1754944e-38, %v1231_v59  ;;  %v7045_v59 = vld [vmem:[%s7261_s8 + $0x28] sm:$0xff] }
 0x279   : > { %v6927_v2 = vpop.eup %6926  ;;  %v1089_v7 = vmul.f32 1.442695, %v1052_v24  ;;  %6260 = vmatmul.msk.bf16.gmra.mxu3 %vm471_vm2, %v879_v20  ;;  %v1209_v15 = vadd.f32 %v6925_v36, %v1208_v25 }
 0x27a   : > { %v6929_v34 = vpop.eup %6928  ;;  %v7701_v46 = vadd.f32 1.0, %v6927_v2  ;;  %v808_v37 = vpop.f32.mrf.mxu2  ;;  %6269 = vmatmul.msk.bf16.vlgmr.msrb.gmra.mxu0 %vm1847_vm9, %v1883_v28 }
 0x27b   : > { %6930 = vpow2.f32 %v1089_v7  ;;  %v1221_v41 = vmul.f32 %v6929_v34, %v7676_v38  ;;  %v1213_v45 = vsel %vm7706_vm15, %v6925_v36, %v1209_v15  ;;  %vm1226_vm4 = vweird.f32 %v6929_v34 }
 0x27c   : > { %6932 = vrcp.f32 %v7701_v46  ;;  %v982_v48 = vpop.f32.mrf.mxu3  ;;  %v1218_v51 = vsel %vm1215_vm0, %v1217_v8, %v1213_v45  ;;  %v809_v56 = vadd.f32 %v7582_v39, %v808_v37  ;;  %vm1227_vm6 = vmor %vm1225_vm5, %vm1226_vm4  ;;  %v1246_v24 = vand.u32 2147483648, %v7701_v46 }
 0x27d   : > { %v983_v16 = vadd.f32 %v7655_v22, %v982_v48  ;;  %v1222_v49 = vsub.f32 1.0, %v1221_v41  ;;  %v7728_v30 = vmul.f32 %v1785_v26, %v1218_v51  ;;  %vm1240_vm10 = vweird.f32 %v7701_v46  ;;  %v7044_v41 = vld [vmem:[%s7261_s8 + $0x20] sm:$0xff]  ;;  %v1698_v48 = vpop.permute.xlu2 %1697 }
 0x27e   : > { %v852_v61 = vmax.f32 %v809_v56, 0.0  ;;  %v1244_v7 = vand.u32 2147483647, %v7701_v46  ;;  %v1247_v37 = vor.u32 1.1754944e-38, %v1246_v24  ;;  %v1787_v45 = vsel %vm247_vm1, %v7044_v41, %v1696_v42  ;;  %v1700_v24 = vpop.permute.xlu0 %1699 }
 0x27f   : > { %v1053_v52 = vsub.f32 0.0, %v983_v16  ;;  %v1223_v55 = vmul.f32 %v6929_v34, %v1222_v49  ;;  %v7738_v54 = vsel %vm1847_vm9, %v7728_v30, 0.0  ;;  %v1788_v51 = vsel %vm247_vm1, %v7045_v59, %v1698_v48 }
 0x280   : > { %vm1245_vm12 = vcmp.eq.f32.partialorder %v1244_v7, 8.507059e+37 }
 0x281   : > { %v6931_v57 = vpop.eup %6930  ;;  %v1091_v44 = vmul.f32 1.442695, %v1053_v52  ;;  %v1224_v11 = vadd.f32 %v6929_v34, %v1223_v55 }
 0x282   : > { %v6933_v58 = vpop.eup %6932  ;;  %v7726_v29 = vadd.f32 1.0, %v6931_v57  ;;  %v810_v32 = vpop.f32.mrf.mxu2 }
 0x283   : > { %6934 = vpow2.f32 %v1091_v44  ;;  %v811_v33 = vadd.f32 %v7582_v39, %v810_v32  ;;  %v1228_v23 = vsel %vm1227_vm6, %v6929_v34, %v1224_v11  ;;  %v1236_v35 = vmul.f32 %v6933_v58, %v7701_v46 }
 0x284   : > { %6936 = vrcp.f32 %v7726_v29  ;;  %v1233_v36 = vsel %vm1230_vm7, %v1232_v60, %v1228_v23  ;;  %v984_v38 = vpop.f32.mrf.mxu3  ;;  %vm1241_vm8 = vweird.f32 %v6933_v58  ;;  %v1259_v46 = vand.u32 2147483647, %v7726_v29 }
 0x285   : > { %v853_v43 = vmax.f32 %v811_v33, 0.0  ;;  %v7733_v1 = vmul.f32 %v1786_v19, %v1233_v36  ;;  %v985_v3 = vadd.f32 %v7655_v22, %v984_v38  ;;  %v1237_v53 = vsub.f32 1.0, %v1236_v35  ;;  %vm1242_vm11 = vmor %vm1240_vm10, %vm1241_vm8 }
 0x286   : > { %v1261_v4 = vand.u32 2147483648, %v7726_v29  ;;  %vm1255_vm14 = vweird.f32 %v7726_v29  ;;  %vm1260_vm0 = vcmp.eq.f32.partialorder %v1259_v46, 8.507059e+37 }
 0x287   : > { %v880_v62 = vpack.c.bf16 %v853_v43, %v852_v61  ;;  %v7742_v5 = vsel %vm1847_vm9, %v7733_v1, 0.0  ;;  %v1054_v6 = vsub.f32 0.0, %v985_v3  ;;  %v1238_v9 = vmul.f32 %v6933_v58, %v1237_v53 }
 0x288   : > { %v1884_v12 = vpack.c.bf16 %v7742_v5, %v7738_v54  ;;  %v1262_v44 = vor.u32 1.1754944e-38, %v1261_v4 }
 0x289   : > { %v6935_v14 = vpop.eup %6934  ;;  %v1093_v63 = vmul.f32 1.442695, %v1054_v6  ;;  %6261 = vmatmul.msk.bf16.gmra.mxu3 %vm471_vm2, %v880_v62  ;;  %v1239_v20 = vadd.f32 %v6933_v58, %v1238_v9 }
 0x28a   : > { %v6937_v25 = vpop.eup %6936  ;;  %v7748_v28 = vadd.f32 1.0, %v6935_v14  ;;  %v813_v2 = vpop.f32.mrf.mxu2  ;;  %6270 = vmatmul.msk.bf16.gmra.mxu0 %vm1847_vm9, %v1884_v12 }
 0x28b   : > { %6938 = vpow2.f32 %v1093_v63  ;;  %v1251_v15 = vmul.f32 %v6937_v25, %v7726_v29  ;;  %v1243_v31 = vsel %vm1242_vm11, %v6933_v58, %v1239_v20  ;;  %vm1256_vm13 = vweird.f32 %v6937_v25 }
 0x28c   : > { %6940 = vrcp.f32 %v7748_v28  ;;  %v987_v34 = vpop.f32.mrf.mxu3  ;;  %v1248_v8 = vsel %vm1245_vm12, %v1247_v37, %v1243_v31  ;;  %v814_v50 = vadd.f32 %v7582_v39, %v813_v2  ;;  %vm1257_vm15 = vmor %vm1255_vm14, %vm1256_vm13  ;;  %v1276_v9 = vand.u32 2147483648, %v7748_v28  ;;  %v7046_v37 = vld [vmem:[%s7261_s8 + $0x30] sm:$0xff] }
 0x28d   : > { %v988_v47 = vadd.f32 %v7655_v22, %v987_v34  ;;  %v1252_v40 = vsub.f32 1.0, %v1251_v15  ;;  %v7766_v56 = vmul.f32 %v1787_v45, %v1248_v8  ;;  %vm1270_vm5 = vweird.f32 %v7748_v28 }
 0x28e   : > { %v854_v58 = vmax.f32 %v814_v50, 0.0  ;;  %v1274_v20 = vand.u32 2147483647, %v7748_v28  ;;  %v1277_v15 = vor.u32 1.1754944e-38, %v1276_v9  ;;  %v7047_v50 = vld [vmem:[%s7261_s8 + $0x38] sm:$0xff] }
 0x28f   : > { %v1055_v16 = vsub.f32 0.0, %v988_v47  ;;  %v1253_v49 = vmul.f32 %v6937_v25, %v1252_v40  ;;  %v7776_v61 = vsel %vm1847_vm9, %v7766_v56, 0.0  ;;  %v1789_v47 = vsel %vm247_vm1, %v7046_v37, %v1700_v24  ;;  %v1702_v40 = vpop.permute.xlu1 %1701 }
 0x290   : > { %vm1275_vm7 = vcmp.eq.f32.partialorder %v1274_v20, 8.507059e+37 }
 0x291   : > { %v6939_v26 = vpop.eup %6938  ;;  %v1095_v27 = vmul.f32 1.442695, %v1055_v16  ;;  %v1254_v10 = vadd.f32 %v6937_v25, %v1253_v49 }
 0x292   : > { %v6941_v52 = vpop.eup %6940  ;;  %v7764_v55 = vadd.f32 1.0, %v6939_v26  ;;  %v815_v57 = vpop.f32.mrf.mxu2  ;;  %v1790_v26 = vsel %vm247_vm1, %v7047_v50, %v1702_v40  ;;  %v7049_v50 = vld [vmem:[%s7261_s8 + $0x48] sm:$0xff] }
 0x293   : > { %6942 = vpow2.f32 %v1095_v27  ;;  %v816_v11 = vadd.f32 %v7582_v39, %v815_v57  ;;  %v1258_v18 = vsel %vm1257_vm15, %v6937_v25, %v1254_v10  ;;  %v1266_v19 = vmul.f32 %v6941_v52, %v7748_v28 }
 0x294   : > { %6944 = vrcp.f32 %v7764_v55  ;;  %v1263_v29 = vsel %vm1260_vm0, %v1262_v44, %v1258_v18  ;;  %v989_v32 = vpop.f32.mrf.mxu3  ;;  %vm1271_vm4 = vweird.f32 %v6941_v52  ;;  %v1289_v28 = vand.u32 2147483647, %v7764_v55 }
 0x295   : > { %v855_v60 = vmax.f32 %v816_v11, 0.0  ;;  %v7771_v33 = vmul.f32 %v1788_v51, %v1263_v29  ;;  %v990_v23 = vadd.f32 %v7655_v22, %v989_v32  ;;  %v1267_v35 = vsub.f32 1.0, %v1266_v19  ;;  %vm1272_vm6 = vmor %vm1270_vm5, %vm1271_vm4 }
 0x296   : > { %v1291_v41 = vand.u32 2147483648, %v7764_v55  ;;  %vm1285_vm10 = vweird.f32 %v7764_v55  ;;  %vm1290_vm12 = vcmp.eq.f32.partialorder %v1289_v28, 8.507059e+37  ;;  %v1706_v28 = vpop.permute.xlu0 %1705 }
 0x297   : > { %v881_v36 = vpack.c.bf16 %v855_v60, %v854_v58  ;;  %v7780_v38 = vsel %vm1847_vm9, %v7771_v33, 0.0  ;;  %v1056_v42 = vsub.f32 0.0, %v990_v23  ;;  %v1268_v43 = vmul.f32 %v6941_v52, %v1267_v35 }
 0x298   : > { %v1885_v3 = vpack.c.bf16 %v7780_v38, %v7776_v61 }
 0x299   : > { %v6943_v53 = vpop.eup %6942  ;;  %v1097_v62 = vmul.f32 1.442695, %v1056_v42  ;;  %6262 = vmatmul.msk.bf16.gmra.mxu3 %vm471_vm2, %v881_v36  ;;  %v1269_v6 = vadd.f32 %v6941_v52, %v1268_v43 }
 0x29a   : > { %v6945_v12 = vpop.eup %6944  ;;  %v7786_v14 = vadd.f32 1.0, %v6943_v53  ;;  %v818_v63 = vpop.f32.mrf.mxu2  ;;  %6271 = vmatmul.msk.bf16.gmra.mxu0 %vm1847_vm9, %v1885_v3 }
 0x29b   : > { %6946 = vpow2.f32 %v1097_v62  ;;  %v1281_v25 = vmul.f32 %v6945_v12, %v7764_v55  ;;  %v1273_v2 = vsel %vm1272_vm6, %v6941_v52, %v1269_v6  ;;  %vm1286_vm8 = vweird.f32 %v6945_v12 }
 0x29c   : > { %6948 = vrcp.f32 %v7786_v14  ;;  %v992_v7 = vpop.f32.mrf.mxu3  ;;  %v1278_v45 = vsel %vm1275_vm7, %v1277_v15, %v1273_v2  ;;  %v819_v4 = vadd.f32 %v7582_v39, %v818_v63  ;;  %vm1287_vm11 = vmor %vm1285_vm10, %vm1286_vm8  ;;  %v1292_v52 = vor.u32 1.1754944e-38, %v1291_v41 }
 0x29d   : > { %v993_v31 = vadd.f32 %v7655_v22, %v992_v7  ;;  %v1282_v34 = vsub.f32 1.0, %v1281_v25  ;;  %v7804_v59 = vmul.f32 %v1789_v47, %v1278_v45  ;;  %v1306_v9 = vand.u32 2147483648, %v7786_v14  ;;  %v1704_v25 = vpop.permute.xlu2 %1703  ;;  %v7048_v47 = vld [vmem:[%s7261_s8 + $0x40] sm:$0xff] }
 0x29e   : > { %v856_v55 = vmax.f32 %v819_v4, 0.0  ;;  %vm1300_vm14 = vweird.f32 %v7786_v14  ;;  %v1304_v24 = vand.u32 2147483647, %v7786_v14  ;;  %v1791_v40 = vsel %vm247_vm1, %v7048_v47, %v1704_v25  ;;  %v6787_v47 = vld [vmem:[%s9897_s1 + $0x98] sm:$0xff] }
 0x29f   : > { %v1057_v48 = vsub.f32 0.0, %v993_v31  ;;  %v1283_v46 = vmul.f32 %v6945_v12, %v1282_v34  ;;  %v7814_v23 = vsel %vm1847_vm9, %v7804_v59, 0.0  ;;  %v1307_v31 = vor.u32 1.1754944e-38, %v1306_v9  ;;  %2405 = vmatpush.bf16.msra.mxu2 %v6787_v47 }
 0x2a0   : > { %vm1305_vm0 = vcmp.eq.f32.partialorder %v1304_v24, 8.507059e+37 }
 0x2a1   : > { %v6947_v8 = vpop.eup %6946  ;;  %v1099_v16 = vmul.f32 1.442695, %v1057_v48  ;;  %v1284_v49 = vadd.f32 %v6945_v12, %v1283_v46 }
 0x2a2   : > { %v6949_v27 = vpop.eup %6948  ;;  %v7802_v10 = vadd.f32 1.0, %v6947_v8  ;;  %v820_v51 = vpop.f32.mrf.mxu2 }
 0x2a3   : > { %6950 = vpow2.f32 %v1099_v16  ;;  %v821_v57 = vadd.f32 %v7582_v39, %v820_v51  ;;  %v1288_v44 = vsel %vm1287_vm11, %v6945_v12, %v1284_v49  ;;  %v1296_v11 = vmul.f32 %v6949_v27, %v7786_v14 }
 0x2a4   : > { %6952 = vrcp.f32 %v7802_v10  ;;  %v1293_v18 = vsel %vm1290_vm12, %v1292_v52, %v1288_v44  ;;  %v994_v19 = vpop.f32.mrf.mxu3  ;;  %vm1301_vm13 = vweird.f32 %v6949_v27  ;;  %v1319_v14 = vand.u32 2147483647, %v7802_v10 }
 0x2a5   : > { %v857_v58 = vmax.f32 %v821_v57, 0.0  ;;  %v7809_v29 = vmul.f32 %v1790_v26, %v1293_v18  ;;  %v995_v32 = vadd.f32 %v7655_v22, %v994_v19  ;;  %v1297_v60 = vsub.f32 1.0, %v1296_v11  ;;  %vm1302_vm15 = vmor %vm1300_vm14, %vm1301_vm13 }
 0x2a6   : > { %v1321_v41 = vand.u32 2147483648, %v7802_v10  ;;  %vm1315_vm5 = vweird.f32 %v7802_v10  ;;  %v1792_v26 = vsel %vm247_vm1, %v7049_v50, %v1706_v28  ;;  %vm1320_vm7 = vcmp.eq.f32.partialorder %v1319_v14, 8.507059e+37 }
 0x2a7   : > { %v882_v35 = vpack.c.bf16 %v857_v58, %v856_v55  ;;  %v7818_v36 = vsel %vm1847_vm9, %v7809_v29, 0.0  ;;  %v1058_v42 = vsub.f32 0.0, %v995_v32  ;;  %v1298_v43 = vmul.f32 %v6949_v27, %v1297_v60  ;;  %v6781_v32 = vld [vmem:[%s9897_s1 + $0x68] sm:$0xff] }
 0x2a8   : > { %v1886_v3 = vpack.c.bf16 %v7818_v36, %v7814_v23  ;;  %v1322_v44 = vor.u32 1.1754944e-38, %v1321_v41  ;;  %2188 = vmatpush.bf16.msra.mxu1 %v6781_v32 }
 0x2a9   : > { %v6951_v53 = vpop.eup %6950  ;;  %v1101_v62 = vmul.f32 1.442695, %v1058_v42  ;;  %6263 = vmatmul.msk.bf16.gmra.mxu3 %vm471_vm2, %v882_v35  ;;  %v1299_v6 = vadd.f32 %v6949_v27, %v1298_v43 }
 0x2aa   : > { %v6953_v12 = vpop.eup %6952  ;;  %v7824_v63 = vadd.f32 1.0, %v6951_v53  ;;  %v823_v20 = vpop.f32.mrf.mxu2  ;;  %6272 = vmatmul.msk.bf16.gmra.mxu0 %vm1847_vm9, %v1886_v3 }
 0x2ab   : > { %6954 = vpow2.f32 %v1101_v62  ;;  %v1311_v2 = vmul.f32 %v6953_v12, %v7802_v10  ;;  %v1303_v7 = vsel %vm1302_vm15, %v6949_v27, %v1299_v6  ;;  %vm1316_vm4 = vweird.f32 %v6953_v12 }
 0x2ac   : > { %6956 = vrcp.f32 %v7824_v63  ;;  %v997_v15 = vpop.f32.mrf.mxu3  ;;  %v1308_v45 = vsel %vm1305_vm0, %v1307_v31, %v1303_v7  ;;  %v824_v4 = vadd.f32 %v7582_v39, %v823_v20  ;;  %vm1317_vm6 = vmor %vm1315_vm5, %vm1316_vm4  ;;  %v1336_v7 = vand.u32 2147483648, %v7824_v63 }
 0x2ad   : > { %v998_v34 = vadd.f32 %v7655_v22, %v997_v15  ;;  %v1312_v37 = vsub.f32 1.0, %v1311_v2  ;;  %v7842_v52 = vmul.f32 %v1791_v40, %v1308_v45  ;;  %vm1330_vm10 = vweird.f32 %v7824_v63  ;;  %v1708_v40 = vpop.permute.xlu1 %1707 }
 0x2ae   : > { %v858_v10 = vmax.f32 %v824_v4, 0.0  ;;  %v1334_v15 = vand.u32 2147483647, %v7824_v63  ;;  %v1337_v41 = vor.u32 1.1754944e-38, %v1336_v7  ;;  %v1710_v4 = vpop.permute.xlu2 %1709 }
 0x2af   : > { %v1059_v48 = vsub.f32 0.0, %v998_v34  ;;  %v1313_v46 = vmul.f32 %v6953_v12, %v1312_v37 }
 0x2b0   : > { %vm1335_vm12 = vcmp.eq.f32.partialorder %v1334_v15, 8.507059e+37 }
 0x2b1   : > { %v6955_v8 = vpop.eup %6954  ;;  %v1103_v16 = vmul.f32 1.442695, %v1059_v48  ;;  %v1314_v49 = vadd.f32 %v6953_v12, %v1313_v46 }
 0x2b2   : > { %v6957_v27 = vpop.eup %6956  ;;  %v7840_v51 = vadd.f32 1.0, %v6955_v8  ;;  %v825_v57 = vpop.f32.mrf.mxu2 }
 0x2b3   : > { %6958 = vpow2.f32 %v1103_v16  ;;  %v826_v11 = vadd.f32 %v7582_v39, %v825_v57  ;;  %v1318_v55 = vsel %vm1317_vm6, %v6953_v12, %v1314_v49  ;;  %v1326_v18 = vmul.f32 %v6957_v27, %v7824_v63  ;;  %v7050_v49 = vld [vmem:[%s7261_s8 + $0x50] sm:$0xff] }
 0x2b4   : > { %6960 = vrcp.f32 %v7840_v51  ;;  %v1323_v19 = vsel %vm1320_vm7, %v1322_v44, %v1318_v55  ;;  %v999_v58 = vpop.f32.mrf.mxu3  ;;  %v7855_v39 = vsel %vm1847_vm9, %v7842_v52, 0.0  ;;  %vm1331_vm8 = vweird.f32 %v6957_v27 }
 0x2b5   : > { %v859_v60 = vmax.f32 %v826_v11, 0.0  ;;  %v7850_v35 = vmul.f32 %v1792_v26, %v1323_v19  ;;  %v1000_v42 = vadd.f32 %v7655_v22, %v999_v58  ;;  %v1327_v43 = vsub.f32 1.0, %v1326_v18  ;;  %vm7872_vm11 = vmor %vm1330_vm10, %vm1331_vm8  ;;  %v7051_v18 = vld [vmem:[%s7261_s8 + $0x58] sm:$0xff] }
 0x2b6   : > { %v1349_v45 = vand.u32 2147483647, %v7840_v51  ;;  %v1351_v48 = vand.u32 2147483648, %v7840_v51  ;;  %v1793_v50 = vsel %vm247_vm1, %v7050_v49, %v1708_v40  ;;  %vm1345_vm14 = vweird.f32 %v7840_v51  ;;  %v7052_v49 = vld [vmem:[%s7261_s8 + $0x60] sm:$0xff] }
 0x2b7   : > { %9925 = vst [vmem:[#allocation8_spill] sm:$0xff] %v7850_v35  ;;  %v883_v3 = vpack.c.bf16 %v859_v60, %v858_v10  ;;  %v7859_v53 = vsel %vm1847_vm9, %v7850_v35, 0.0  ;;  %v1060_v62 = vsub.f32 0.0, %v1000_v42  ;;  %v1328_v6 = vmul.f32 %v6957_v27, %v1327_v43 }
 0x2b8   : > { %v1887_v9 = vpack.c.bf16 %v7859_v53, %v7855_v39  ;;  %vm1350_vm0 = vcmp.eq.f32.partialorder %v1349_v45, 8.507059e+37  ;;  %v1352_v55 = vor.u32 1.1754944e-38, %v1351_v48  ;;  %v1794_v10 = vsel %vm247_vm1, %v7051_v18, %v1710_v4 }
 0x2b9   : > { %v6959_v12 = vpop.eup %6958  ;;  %v1105_v20 = vmul.f32 1.442695, %v1060_v62  ;;  %6264 = vmatmul.msk.bf16.gmra.mxu3 %vm471_vm2, %v883_v3  ;;  %v1329_v24 = vadd.f32 %v6957_v27, %v1328_v6 }
 0x2ba   : > { %v6961_v25 = vpop.eup %6960  ;;  %v7864_v2 = vadd.f32 1.0, %v6959_v12  ;;  %6273 = vmatmul.msk.bf16.gmra.mxu0 %vm1847_vm9, %v1887_v9 }
 0x2bb   : > { %6962 = vpow2.f32 %v1105_v20  ;;  %v1341_v31 = vmul.f32 %v6961_v25, %v7840_v51  ;;  %v1333_v28 = vsel %vm7872_vm11, %v6957_v27, %v1329_v24  ;;  %vm1346_vm13 = vweird.f32 %v6961_v25 }
 0x2bc   : > { %6964 = vrcp.f32 %v7864_v2  ;;  %v1002_v37 = vpop.f32.mrf.mxu3  ;;  %v1338_v16 = vsel %vm1335_vm12, %v1337_v41, %v1333_v28  ;;  %vm1347_vm15 = vmor %vm1345_vm14, %vm1346_vm13  ;;  %v1366_v34 = vand.u32 2147483648, %v7864_v2  ;;  %vm1360_vm5 = vweird.f32 %v7864_v2  ;;  %v1712_v28 = vpop.permute.xlu0 %1711 }
 0x2bd   : > { %v1003_v63 = vadd.f32 %v7655_v22, %v1002_v37  ;;  %v1342_v14 = vsub.f32 1.0, %v1341_v31  ;;  %v7889_v19 = vmul.f32 %v1793_v50, %v1338_v16  ;;  %v1364_v37 = vand.u32 2147483647, %v7864_v2 }
 0x2be   : > { %v1367_v45 = vor.u32 1.1754944e-38, %v1366_v34  ;;  %v1795_v50 = vsel %vm247_vm1, %v7052_v49, %v1712_v28 }
 0x2bf   : > { %v1061_v46 = vsub.f32 0.0, %v1003_v63  ;;  %v1343_v8 = vmul.f32 %v6961_v25, %v1342_v14  ;;  %9928 = vst [vmem:[#allocation9_spill] sm:$0xff] %v7889_v19  ;;  %v7897_v62 = vsel %vm1847_vm9, %v7889_v19, 0.0  ;;  %vm1365_vm7 = vcmp.eq.f32.partialorder %v1364_v37, 8.507059e+37 }
 0x2c1   : > { %v6963_v26 = vpop.eup %6962  ;;  %v1107_v27 = vmul.f32 1.442695, %v1061_v46  ;;  %v1344_v57 = vadd.f32 %v6961_v25, %v1343_v8  ;;  %v1714_v8 = vpop.permute.xlu1 %1713 }
 0x2c2   : > { %v6965_v44 = vpop.eup %6964  ;;  %v1156_v11 = vadd.f32 1.0, %v6963_v26 }
 0x2c3   : > { %6966 = vpow2.f32 %v1107_v27  ;;  %v1348_v58 = vsel %vm1347_vm15, %v6961_v25, %v1344_v57  ;;  %v1356_v32 = vmul.f32 %v6965_v44, %v7864_v2  ;;  %vm1361_vm4 = vweird.f32 %v6965_v44 }
 0x2c4   : > { %6968 = vrcp.f32 %v1156_v11  ;;  %v1353_v60 = vsel %vm1350_vm0, %v1352_v55, %v1348_v58  ;;  %v1004_v42 = vpop.f32.mrf.mxu3  ;;  %vm1362_vm6 = vmor %vm1360_vm5, %vm1361_vm4  ;;  %v1379_v48 = vand.u32 2147483647, %v1156_v11  ;;  %v1381_v46 = vand.u32 2147483648, %v1156_v11 }
 0x2c5   : > { %v7892_v43 = vmul.f32 %v1794_v10, %v1353_v60  ;;  %v1005_v51 = vadd.f32 %v7655_v22, %v1004_v42  ;;  %v1357_v3 = vsub.f32 1.0, %v1356_v32  ;;  %vm1375_vm10 = vweird.f32 %v1156_v11  ;;  %v7053_v10 = vld [vmem:[%s7261_s8 + $0x68] sm:$0xff] }
 0x2c6   : > { %vm1380_vm12 = vcmp.eq.f32.partialorder %v1379_v48, 8.507059e+37  ;;  %v1382_v18 = vor.u32 1.1754944e-38, %v1381_v46  ;;  %v1796_v58 = vsel %vm247_vm1, %v7053_v10, %v1714_v8  ;;  %v1716_v48 = vpop.permute.xlu2 %1715 }
 0x2c7   : > { %9929 = vst [vmem:[#allocation10_spill] sm:$0xff] %v7892_v43  ;;  %v7901_v6 = vsel %vm1847_vm9, %v7892_v43, 0.0  ;;  %v1062_v9 = vsub.f32 0.0, %v1005_v51  ;;  %v1358_v12 = vmul.f32 %v6965_v44, %v1357_v3 }
 0x2c8   : > { %v1888_v20 = vpack.c.bf16 %v7901_v6, %v7897_v62 }
 0x2c9   : > { %v6967_v24 = vpop.eup %6966  ;;  %v1109_v25 = vmul.f32 1.442695, %v1062_v9  ;;  %v1359_v7 = vadd.f32 %v6965_v44, %v1358_v12 }
 0x2ca   : > { %v6969_v15 = vpop.eup %6968  ;;  %v7905_v31 = vadd.f32 1.0, %v6967_v24  ;;  %6274 = vmatmul.msk.bf16.gmra.mxu0 %vm1847_vm9, %v1888_v20 }
 0x2cb   : > { %6970 = vpow2.f32 %v1109_v25  ;;  %v1371_v47 = vmul.f32 %v6969_v15, %v1156_v11  ;;  %v1363_v63 = vsel %vm1362_vm6, %v6965_v44, %v1359_v7  ;;  %vm1376_vm8 = vweird.f32 %v6969_v15 }
 0x2cc   : > { %6972 = vrcp.f32 %v7905_v31  ;;  %v1007_v40 = vpop.f32.mrf.mxu3  ;;  %v1368_v2 = vsel %vm1365_vm7, %v1367_v45, %v1363_v63  ;;  %vm1377_vm11 = vmor %vm1375_vm10, %vm1376_vm8  ;;  %v1396_v63 = vand.u32 2147483648, %v7905_v31  ;;  %vm1390_vm14 = vweird.f32 %v7905_v31 }
 0x2cd   : > { %v1008_v14 = vadd.f32 %v7655_v22, %v1007_v40  ;;  %v1372_v41 = vsub.f32 1.0, %v1371_v47  ;;  %v7917_v32 = vmul.f32 %v1795_v50, %v1368_v2 }
 0x2cf   : > { %v1063_v4 = vsub.f32 0.0, %v1008_v14  ;;  %v1373_v16 = vmul.f32 %v6969_v15, %v1372_v41  ;;  %9930 = vst [vmem:[#allocation11_spill] sm:$0xff] %v7917_v32  ;;  %v7925_v20 = vsel %vm1847_vm9, %v7917_v32, 0.0  ;;  %v1394_v14 = vand.u32 2147483647, %v7905_v31 }
 0x2d1   : > { %v6971_v26 = vpop.eup %6970  ;;  %v1111_v27 = vmul.f32 1.442695, %v1063_v4  ;;  %v1374_v57 = vadd.f32 %v6969_v15, %v1373_v16  ;;  %v1397_v16 = vor.u32 1.1754944e-38, %v1396_v63  ;;  %vm1395_vm0 = vcmp.eq.f32.partialorder %v1394_v14, 8.507059e+37 }
 0x2d2   : > { %v6973_v44 = vpop.eup %6972  ;;  %v1158_v55 = vadd.f32 1.0, %v6971_v26  ;;  %v1718_v26 = vpop.permute.xlu0 %1717 }
 0x2d3   : > { %6974 = vpow2.f32 %v1111_v27  ;;  %v1378_v60 = vsel %vm1377_vm11, %v6969_v15, %v1374_v57  ;;  %v1386_v42 = vmul.f32 %v6973_v44, %v7905_v31  ;;  %vm1391_vm13 = vweird.f32 %v6973_v44  ;;  %v7054_v57 = vld [vmem:[%s7261_s8 + $0x70] sm:$0xff] }
 0x2d4   : > { %6976 = vrcp.f32 %v1158_v55  ;;  %v1383_v51 = vsel %vm1380_vm12, %v1382_v18, %v1378_v60  ;;  %v1009_v3 = vpop.f32.mrf.mxu3  ;;  %vm1392_vm15 = vmor %vm1390_vm14, %vm1391_vm13  ;;  %v1409_v2 = vand.u32 2147483647, %v1158_v55  ;;  %v1411_v49 = vand.u32 2147483648, %v1158_v55 }
 0x2d5   : > { %v7920_v9 = vmul.f32 %v1796_v58, %v1383_v51  ;;  %v1010_v11 = vadd.f32 %v7655_v22, %v1009_v3  ;;  %v1387_v12 = vsub.f32 1.0, %v1386_v42  ;;  %v1797_v18 = vsel %vm247_vm1, %v7054_v57, %v1716_v48  ;;  %v7055_v51 = vld [vmem:[%s7261_s8 + $0x78] sm:$0xff] }
 0x2d6   : > { %vm1405_vm5 = vweird.f32 %v1158_v55  ;;  %vm1410_vm7 = vcmp.eq.f32.partialorder %v1409_v2, 8.507059e+37  ;;  %v1412_v42 = vor.u32 1.1754944e-38, %v1411_v49  ;;  %v1798_v3 = vsel %vm247_vm1, %v7055_v51, %v1718_v26  ;;  %v1722_v51 = vpop.permute.xlu2 %1721 }
 0x2d7   : > { %9931 = vst [vmem:[#allocation12_spill] sm:$0xff] %v7920_v9  ;;  %v7929_v24 = vsel %vm1847_vm9, %v7920_v9, 0.0  ;;  %v1064_v25 = vsub.f32 0.0, %v1010_v11  ;;  %v1388_v7 = vmul.f32 %v6973_v44, %v1387_v12 }
 0x2d8   : > { %v1889_v15 = vpack.c.bf16 %v7929_v24, %v7925_v20 }
 0x2d9   : > { %v6975_v34 = vpop.eup %6974  ;;  %v1113_v37 = vmul.f32 1.442695, %v1064_v25  ;;  %v1389_v47 = vadd.f32 %v6973_v44, %v1388_v7 }
 0x2da   : > { %v6977_v40 = vpop.eup %6976  ;;  %v7933_v28 = vadd.f32 1.0, %v6975_v34  ;;  %6275 = vmatmul.msk.bf16.gmra.mxu0 %vm1847_vm9, %v1889_v15 }
 0x2db   : > { %6978 = vpow2.f32 %v1113_v37  ;;  %v1401_v41 = vmul.f32 %v6977_v40, %v1158_v55  ;;  %v1393_v46 = vsel %vm1392_vm15, %v6973_v44, %v1389_v47  ;;  %vm1406_vm4 = vweird.f32 %v6977_v40  ;;  %v7950_v55 = vld [vmem:[#allocation2 + $0x1] ss:$0 sm:$0xff] }
 0x2dc   : > { %6980 = vrcp.f32 %v7933_v28  ;;  %v1012_v45 = vpop.f32.mrf.mxu3  ;;  %v1398_v31 = vsel %vm1395_vm0, %v1397_v16, %v1393_v46  ;;  %vm1407_vm6 = vmor %vm1405_vm5, %vm1406_vm4  ;;  %v1426_v2 = vand.u32 2147483648, %v7933_v28  ;;  %vm1420_vm10 = vweird.f32 %v7933_v28 }
 0x2dd   : > { %v1013_v4 = vadd.f32 %v7655_v22, %v1012_v45  ;;  %v1402_v8 = vsub.f32 1.0, %v1401_v41  ;;  %v7945_v11 = vmul.f32 %v1797_v18, %v1398_v31  ;;  %v1424_v49 = vand.u32 2147483647, %v7933_v28 }
 0x2df   : > { %v1065_v50 = vsub.f32 0.0, %v1013_v4  ;;  %v1403_v27 = vmul.f32 %v6977_v40, %v1402_v8  ;;  %9932 = vst [vmem:[#allocation13_spill] sm:$0xff] %v7945_v11  ;;  %v7955_v63 = vsel %vm1847_vm9, %v7945_v11, 0.0  ;;  %vm1425_vm12 = vcmp.eq.f32.partialorder %v1424_v49, 8.507059e+37 }
 0x2e1   : > { %v6979_v10 = vpop.eup %6978  ;;  %v1115_v58 = vmul.f32 1.442695, %v1065_v50  ;;  %v1404_v60 = vadd.f32 %v6977_v40, %v1403_v27  ;;  %v1720_v27 = vpop.permute.xlu1 %1719 }
 0x2e2   : > { %v6981_v44 = vpop.eup %6980  ;;  %v1160_v22 = vadd.f32 1.0, %v6979_v10  ;;  %v1427_v10 = vor.u32 1.1754944e-38, %v1426_v2 }
 0x2e3   : > { %6982 = vpow2.f32 %v1115_v58  ;;  %v1408_v12 = vsel %vm1407_vm6, %v6977_v40, %v1404_v60  ;;  %v1416_v25 = vmul.f32 %v6981_v44, %v7933_v28  ;;  %vm1421_vm8 = vweird.f32 %v6981_v44 }
 0x2e4   : > { %6984 = vrcp.f32 %v1160_v22  ;;  %v1413_v7 = vsel %vm1410_vm7, %v1412_v42, %v1408_v12  ;;  %v1014_v15 = vpop.f32.mrf.mxu3  ;;  %vm1422_vm11 = vmor %vm1420_vm10, %vm1421_vm8  ;;  %v1439_v58 = vand.u32 2147483647, %v1160_v22  ;;  %v1441_v60 = vand.u32 2147483648, %v1160_v22  ;;  %v7057_v12 = vld [vmem:[%s7261_s8 + $0x80] sm:$0xff] }
 0x2e5   : > { %v7948_v34 = vmul.f32 %v1798_v3, %v1413_v7  ;;  %v1015_v37 = vadd.f32 %v7950_v55, %v1014_v15  ;;  %v1417_v47 = vsub.f32 1.0, %v1416_v25  ;;  %v1799_v25 = vsel %vm247_vm1, %v7057_v12, %v1720_v27 }
 0x2e6   : > { %vm1435_vm14 = vweird.f32 %v1160_v22  ;;  %vm1440_vm0 = vcmp.eq.f32.partialorder %v1439_v58, 8.507059e+37 }
 0x2e7   : > { %9933 = vst [vmem:[#allocation14_spill] sm:$0xff] %v7948_v34  ;;  %v7959_v14 = vsel %vm1847_vm9, %v7948_v34, 0.0  ;;  %v1066_v40 = vsub.f32 0.0, %v1015_v37  ;;  %v1418_v41 = vmul.f32 %v6981_v44, %v1417_v47 }
 0x2e8   : > { %v1890_v45 = vpack.c.bf16 %v7959_v14, %v7955_v63 }
 0x2e9   : > { %v6983_v48 = vpop.eup %6982  ;;  %v1117_v46 = vmul.f32 1.442695, %v1066_v40  ;;  %v1419_v4 = vadd.f32 %v6981_v44, %v1418_v41  ;;  %v1442_v40 = vor.u32 1.1754944e-38, %v1441_v60  ;;  %v7058_v41 = vld [vmem:[%s7261_s8 + $0x88] sm:$0xff] }
 0x2ea   : > { %v6985_v8 = vpop.eup %6984  ;;  %v7963_v16 = vadd.f32 1.0, %v6983_v48  ;;  %6276 = vmatmul.msk.bf16.gmra.mxu0 %vm1847_vm9, %v1890_v45  ;;  %v1800_v45 = vsel %vm247_vm1, %v7058_v41, %v1722_v51  ;;  %v1724_v41 = vpop.permute.xlu0 %1723 }
 0x2eb   : > { %6986 = vpow2.f32 %v1117_v46  ;;  %v1431_v50 = vmul.f32 %v6985_v8, %v1160_v22  ;;  %v1423_v31 = vsel %vm1422_vm11, %v6981_v44, %v1419_v4  ;;  %vm1436_vm13 = vweird.f32 %v6985_v8 }
 0x2ec   : > { %6988 = vrcp.f32 %v7963_v16  ;;  %v1017_v26 = vpop.f32.mrf.mxu3  ;;  %v1428_v28 = vsel %vm1425_vm12, %v1427_v10, %v1423_v31  ;;  %vm1437_vm15 = vmor %vm1435_vm14, %vm1436_vm13  ;;  %v1456_v12 = vand.u32 2147483648, %v7963_v16  ;;  %vm1450_vm5 = vweird.f32 %v7963_v16 }
 0x2ed   : > { %v1018_v57 = vadd.f32 %v7950_v55, %v1017_v26  ;;  %v1432_v18 = vsub.f32 1.0, %v1431_v50  ;;  %v7977_v48 = vmul.f32 %v1799_v25, %v1428_v28  ;;  %v7996_v28 = vld [vmem:[#allocation2 + $0xc] ss:$0 sm:$0xff]  ;;  %v1454_v25 = vand.u32 2147483647, %v7963_v16 }
 0x2ef   : > { %v1067_v42 = vsub.f32 0.0, %v1018_v57  ;;  %v1433_v3 = vmul.f32 %v6985_v8, %v1432_v18  ;;  %9934 = vst [vmem:[#allocation15_spill] sm:$0xff] %v7977_v48  ;;  %v7986_v27 = vsel %vm1847_vm9, %v7977_v48, 0.0  ;;  %vm1455_vm7 = vcmp.eq.f32.partialorder %v1454_v25, 8.507059e+37 }
 0x2f1   : > { %v6987_v7 = vpop.eup %6986  ;;  %v1119_v15 = vmul.f32 1.442695, %v1067_v42  ;;  %v1434_v37 = vadd.f32 %v6985_v8, %v1433_v3 }
 0x2f2   : > { %v6989_v44 = vpop.eup %6988  ;;  %v7973_v47 = vadd.f32 1.0, %v6987_v7 }
 0x2f3   : > { %6990 = vpow2.f32 %v1119_v15  ;;  %v1438_v46 = vsel %vm1437_vm15, %v6985_v8, %v1434_v37  ;;  %v1446_v4 = vmul.f32 %v6989_v44, %v7963_v16  ;;  %vm1451_vm4 = vweird.f32 %v6989_v44 }
 0x2f4   : > { %6992 = vrcp.f32 %v7973_v47  ;;  %v1443_v2 = vsel %vm1440_vm0, %v1442_v40, %v1438_v46  ;;  %v1019_v49 = vpop.f32.mrf.mxu3  ;;  %vm8004_vm6 = vmor %vm1450_vm5, %vm1451_vm4  ;;  %v6786_v40 = vld [vmem:[%s9897_s1 + $0x90] sm:$0xff]  ;;  %v1726_v46 = vpop.permute.xlu1 %1725  ;;  %vm1465_vm10 = vweird.f32 %v7973_v47 }
 0x2f5   : > { %v7981_v22 = vmul.f32 %v1800_v45, %v1443_v2  ;;  %v1020_v50 = vadd.f32 %v7950_v55, %v1019_v49  ;;  %v1447_v26 = vsub.f32 1.0, %v1446_v4  ;;  %v1469_v2 = vand.u32 2147483647, %v7973_v47  ;;  %2406 = vmatpush.bf16.msra.mxu2 %v6786_v40 }
 0x2f7   : > { %9935 = vst [vmem:[#allocation16_spill] sm:$0xff] %v7981_v22  ;;  %v7990_v31 = vsel %vm1847_vm9, %v7981_v22, 0.0  ;;  %v1068_v8 = vsub.f32 0.0, %v1020_v50  ;;  %v1971_v57 = vpop.f32.mrf.mxu0  ;;  %v1448_v18 = vmul.f32 %v6989_v44, %v1447_v26  ;;  %v1457_v50 = vor.u32 1.1754944e-38, %v1456_v12 }
 0x2f8   : > { %v1891_v10 = vpack.c.bf16 %v7990_v31, %v7986_v27  ;;  %v1972_v49 = vadd.f32 %v7996_v28, %v1971_v57  ;;  %v1471_v26 = vand.u32 2147483648, %v7973_v47  ;;  %vm1470_vm11 = vcmp.eq.f32.partialorder %v1469_v2, 8.507059e+37 }
 0x2f9   : > { %v6991_v58 = vpop.eup %6990  ;;  %v1121_v60 = vmul.f32 1.442695, %v1068_v8  ;;  %v1449_v42 = vadd.f32 %v6989_v44, %v1448_v18 }
 0x2fa   : > { %v6993_v51 = vpop.eup %6992  ;;  %v7994_v3 = vadd.f32 1.0, %v6991_v58  ;;  %6277 = vmatmul.msk.bf16.gmra.mxu0 %vm1847_vm9, %v1891_v10 }
 0x2fb   : > { %6994 = vpow2.f32 %v1121_v60  ;;  %v1461_v7 = vmul.f32 %v6993_v51, %v7973_v47  ;;  %v1453_v45 = vsel %vm8004_vm6, %v6989_v44, %v1449_v42  ;;  %vm1466_vm8 = vweird.f32 %v6993_v51  ;;  %v7059_v44 = vld [vmem:[%s7261_s8 + $0x90] sm:$0xff] }
 0x2fc   : > { %6996 = vrcp.f32 %v7994_v3  ;;  %v1022_v37 = vpop.f32.mrf.mxu3  ;;  %v1458_v58 = vsel %vm1455_vm7, %v1457_v50, %v1453_v45  ;;  %v1801_v60 = vsel %vm247_vm1, %v7059_v44, %v1724_v41  ;;  %vm1467_vm12 = vmor %vm1465_vm10, %vm1466_vm8  ;;  %v1472_v45 = vor.u32 1.1754944e-38, %v1471_v26 }
 0x2fd   : > { %v1023_v16 = vadd.f32 %v7950_v55, %v1022_v37  ;;  %v1462_v4 = vsub.f32 1.0, %v1461_v7  ;;  %v7060_v7 = vld [vmem:[%s7261_s8 + $0x98] sm:$0xff]  ;;  %v8026_v41 = vmul.f32 %v1801_v60, %v1458_v58  ;;  %vm1480_vm14 = vweird.f32 %v7994_v3 }
 0x2fe   : > { %v1802_v15 = vsel %vm247_vm1, %v7060_v7, %v1726_v46 }
 0x2ff   : > { %v1069_v8 = vsub.f32 0.0, %v1023_v16  ;;  %v1973_v18 = vpop.f32.mrf.mxu0  ;;  %v1463_v10 = vmul.f32 %v6993_v51, %v1462_v4  ;;  %v2051_v16 = vmax.f32 %v1972_v49, 0.0  ;;  %9938 = vst [vmem:[#allocation17_spill] sm:$0xff] %v8026_v41  ;;  %v8036_v26 = vsel %vm1847_vm9, %v8026_v41, 0.0 }
 0x300   : > { %v1974_v42 = vadd.f32 %v7996_v28, %v1973_v18 }
 0x301   : > { %v6995_v37 = vpop.eup %6994  ;;  %v1123_v57 = vmul.f32 1.442695, %v1069_v8  ;;  %v1464_v12 = vadd.f32 %v6993_v51, %v1463_v10 }
 0x302   : > { %v6997_v25 = vpop.eup %6996  ;;  %v8023_v40 = vadd.f32 1.0, %v6995_v37  ;;  %v2052_v4 = vmax.f32 %v1974_v42, 0.0 }
 0x303   : > { %6998 = vpow2.f32 %v1123_v57  ;;  %v1468_v50 = vsel %vm1467_vm12, %v6993_v51, %v1464_v12  ;;  %v1476_v46 = vmul.f32 %v6997_v25, %v7994_v3  ;;  %vm1481_vm13 = vweird.f32 %v6997_v25 }
 0x304   : > { %7000 = vrcp.f32 %v8023_v40  ;;  %v2091_v8 = vpack.c.bf16 %v2052_v4, %v2051_v16  ;;  %v1473_v18 = vsel %vm1470_vm11, %v1472_v45, %v1468_v50  ;;  %v1024_v47 = vpop.f32.mrf.mxu3  ;;  %v1486_v16 = vand.u32 2147483648, %v7994_v3  ;;  %vm8052_vm15 = vmor %vm1480_vm14, %vm1481_vm13  ;;  %v7061_v50 = vld [vmem:[%s7261_s8 + $0xa0] sm:$0xff] }
 0x305   : > { %v8030_v2 = vmul.f32 %v1802_v15, %v1473_v18  ;;  %v1025_v10 = vadd.f32 %v7950_v55, %v1024_v47  ;;  %v1477_v49 = vsub.f32 1.0, %v1476_v46  ;;  %v1484_v4 = vand.u32 2147483647, %v7994_v3 }
 0x306   : > { %6301 = vmatmul.msk.bf16.vlgmr.msra.gmra.mxu1 %vm471_vm2, %v2091_v8  ;;  %v1728_v8 = vpop.permute.xlu2 %1727  ;;  %v1499_v3 = vand.u32 2147483647, %v8023_v40  ;;  %vm1495_vm5 = vweird.f32 %v8023_v40 }
 0x307   : > { %9939 = vst [vmem:[#allocation18_spill] sm:$0xff] %v8030_v2  ;;  %v8040_v51 = vsel %vm1847_vm9, %v8030_v2, 0.0  ;;  %v1070_v58 = vsub.f32 0.0, %v1025_v10  ;;  %v1976_v44 = vpop.f32.mrf.mxu0  ;;  %v1478_v60 = vmul.f32 %v6997_v25, %v1477_v49  ;;  %v1730_v10 = vpop.permute.xlu0 %1729  ;;  %vm1485_vm0 = vcmp.eq.f32.partialorder %v1484_v4, 8.507059e+37 }
 0x308   : > { %v1892_v42 = vpack.c.bf16 %v8040_v51, %v8036_v26  ;;  %vm1500_vm6 = vcmp.eq.f32.partialorder %v1499_v3, 8.507059e+37 }
 0x309   : > { %v6999_v7 = vpop.eup %6998  ;;  %v1125_v15 = vmul.f32 1.442695, %v1070_v58  ;;  %v1479_v37 = vadd.f32 %v6997_v25, %v1478_v60  ;;  %v1977_v58 = vadd.f32 %v7996_v28, %v1976_v44  ;;  %v1487_v60 = vor.u32 1.1754944e-38, %v1486_v16 }
 0x30a   : > { %v7001_v57 = vpop.eup %7000  ;;  %v8044_v12 = vadd.f32 1.0, %v6999_v7  ;;  %6278 = vmatmul.msk.bf16.gmra.mxu0 %vm1847_vm9, %v1892_v42  ;;  %v1501_v42 = vand.u32 2147483648, %v8023_v40 }
 0x30b   : > { %7002 = vpow2.f32 %v1125_v15  ;;  %v1491_v45 = vmul.f32 %v7001_v57, %v8023_v40  ;;  %v1483_v18 = vsel %vm8052_vm15, %v6997_v25, %v1479_v37  ;;  %vm1496_vm4 = vweird.f32 %v7001_v57 }
 0x30c   : > { %7004 = vrcp.f32 %v8044_v12  ;;  %v1027_v46 = vpop.f32.mrf.mxu3  ;;  %v1488_v41 = vsel %vm1485_vm0, %v1487_v60, %v1483_v18  ;;  %v1803_v25 = vsel %vm247_vm1, %v7061_v50, %v1728_v8  ;;  %vm1497_vm7 = vmor %vm1495_vm5, %vm1496_vm4  ;;  %v1502_v18 = vor.u32 1.1754944e-38, %v1501_v42 }
 0x30d   : > { %v1028_v47 = vadd.f32 %v7950_v55, %v1027_v46  ;;  %v1492_v49 = vsub.f32 1.0, %v1491_v45  ;;  %v7062_v46 = vld [vmem:[%s7261_s8 + $0xa8] sm:$0xff]  ;;  %v8071_v8 = vmul.f32 %v1803_v25, %v1488_v41  ;;  %vm1510_vm10 = vweird.f32 %v8044_v12 }
 0x30e   : > { %v1804_v45 = vsel %vm247_vm1, %v7062_v46, %v1730_v10 }
 0x30f   : > { %v1071_v7 = vsub.f32 0.0, %v1028_v47  ;;  %v1978_v15 = vpop.f32.mrf.mxu0  ;;  %v1493_v2 = vmul.f32 %v7001_v57, %v1492_v49  ;;  %v2053_v47 = vmax.f32 %v1977_v58, 0.0  ;;  %9942 = vst [vmem:[#allocation19_spill] sm:$0xff] %v8071_v8 }
 0x310   : > { %v1979_v37 = vadd.f32 %v7996_v28, %v1978_v15 }
 0x311   : > { %v7003_v22 = vpop.eup %7002  ;;  %v1127_v48 = vmul.f32 1.442695, %v1071_v7  ;;  %v1494_v44 = vadd.f32 %v7001_v57, %v1493_v2 }
 0x312   : > { %v7005_v16 = vpop.eup %7004  ;;  %v8068_v4 = vadd.f32 1.0, %v7003_v22  ;;  %v2054_v49 = vmax.f32 %v1979_v37, 0.0  ;;  %v6792_v22 = vld [vmem:[%s9897_s1 + $0x1c0] sm:$0xff] }
 0x313   : > { %7006 = vpow2.f32 %v1127_v48  ;;  %v1498_v60 = vsel %vm1497_vm7, %v7001_v57, %v1494_v44  ;;  %v1506_v10 = vmul.f32 %v7005_v16, %v8044_v12  ;;  %2621 = vmatpush.bf16.msra.mxu3 %v6792_v22  ;;  %v8084_v48 = vsel %vm1847_vm9, %v8071_v8, 0.0 }
 0x314   : > { %7008 = vrcp.f32 %v8068_v4  ;;  %v2092_v2 = vpack.c.bf16 %v2054_v49, %v2053_v47  ;;  %v1503_v7 = vsel %vm1500_vm6, %v1502_v18, %v1498_v60  ;;  %v1029_v40 = vpop.f32.mrf.mxu3  ;;  %vm1511_vm8 = vweird.f32 %v7005_v16 }
 0x315   : > { %v8078_v3 = vmul.f32 %v1804_v45, %v1503_v7  ;;  %v1030_v58 = vadd.f32 %v7950_v55, %v1029_v40  ;;  %v1507_v42 = vsub.f32 1.0, %v1506_v10  ;;  %v1516_v49 = vand.u32 2147483648, %v8044_v12  ;;  %vm8100_vm11 = vmor %vm1510_vm10, %vm1511_vm8  ;;  %v1732_v7 = vpop.permute.xlu1 %1731  ;;  %v7063_v10 = vld [vmem:[%s7261_s8 + $0xb0] sm:$0xff] }
 0x316   : > { %6302 = vmatmul.msk.bf16.gmra.mxu1 %vm471_vm2, %v2092_v2  ;;  %v1514_v18 = vand.u32 2147483647, %v8044_v12  ;;  %v1529_v12 = vand.u32 2147483647, %v8068_v4  ;;  %vm1525_vm14 = vweird.f32 %v8068_v4 }
 0x317   : > { %9943 = vst [vmem:[#allocation20_spill] sm:$0xff] %v8078_v3  ;;  %v8088_v41 = vsel %vm1847_vm9, %v8078_v3, 0.0  ;;  %v1072_v57 = vsub.f32 0.0, %v1030_v58  ;;  %v1981_v15 = vpop.f32.mrf.mxu0  ;;  %v1508_v50 = vmul.f32 %v7005_v16, %v1507_v42  ;;  %v1734_v58 = vpop.permute.xlu2 %1733 }
 0x318   : > { %v1893_v25 = vpack.c.bf16 %v8088_v41, %v8084_v48  ;;  %vm1515_vm12 = vcmp.eq.f32.partialorder %v1514_v18, 8.507059e+37  ;;  %vm1530_vm15 = vcmp.eq.f32.partialorder %v1529_v12, 8.507059e+37 }
 0x319   : > { %v7007_v37 = vpop.eup %7006  ;;  %v1129_v46 = vmul.f32 1.442695, %v1072_v57  ;;  %v1509_v45 = vadd.f32 %v7005_v16, %v1508_v50  ;;  %v1982_v57 = vadd.f32 %v7996_v28, %v1981_v15  ;;  %v1517_v50 = vor.u32 1.1754944e-38, %v1516_v49 }
 0x31a   : > { %v7009_v44 = vpop.eup %7008  ;;  %v8092_v47 = vadd.f32 1.0, %v7007_v37  ;;  %6279 = vmatmul.msk.bf16.gmra.mxu0 %vm1847_vm9, %v1893_v25  ;;  %v1531_v25 = vand.u32 2147483648, %v8068_v4 }
 0x31b   : > { %7010 = vpow2.f32 %v1129_v46  ;;  %v1521_v60 = vmul.f32 %v7009_v44, %v8068_v4  ;;  %v1513_v40 = vsel %vm8100_vm11, %v7005_v16, %v1509_v45  ;;  %vm1526_vm13 = vweird.f32 %v7009_v44 }
 0x31c   : > { %7012 = vrcp.f32 %v8092_v47  ;;  %v1032_v2 = vpop.f32.mrf.mxu3  ;;  %v1518_v8 = vsel %vm1515_vm12, %v1517_v50, %v1513_v40  ;;  %v1805_v16 = vsel %vm247_vm1, %v7063_v10, %v1732_v7  ;;  %vm1527_vm0 = vmor %vm1525_vm14, %vm1526_vm13  ;;  %v1532_v40 = vor.u32 1.1754944e-38, %v1531_v25 }
 0x31d   : > { %v1033_v22 = vadd.f32 %v7950_v55, %v1032_v2  ;;  %v1522_v42 = vsub.f32 1.0, %v1521_v60  ;;  %v7064_v2 = vld [vmem:[%s7261_s8 + $0xb8] sm:$0xff]  ;;  %v8119_v7 = vmul.f32 %v1805_v16, %v1518_v8  ;;  %vm1540_vm5 = vweird.f32 %v8092_v47 }
 0x31e   : > { %v1806_v60 = vsel %vm247_vm1, %v7064_v2, %v1734_v58 }
 0x31f   : > { %v1073_v37 = vsub.f32 0.0, %v1033_v22  ;;  %v1983_v46 = vpop.f32.mrf.mxu0  ;;  %v1523_v3 = vmul.f32 %v7009_v44, %v1522_v42  ;;  %v2055_v22 = vmax.f32 %v1982_v57, 0.0  ;;  %9946 = vst [vmem:[#allocation21_spill] sm:$0xff] %v8119_v7  ;;  %v8129_v8 = vsel %vm1847_vm9, %v8119_v7, 0.0 }
 0x320   : > { %v1984_v45 = vadd.f32 %v7996_v28, %v1983_v46 }
 0x321   : > { %v7011_v34 = vpop.eup %7010  ;;  %v1131_v11 = vmul.f32 1.442695, %v1073_v37  ;;  %v1524_v15 = vadd.f32 %v7009_v44, %v1523_v3 }
 0x322   : > { %v7013_v49 = vpop.eup %7012  ;;  %v8116_v18 = vadd.f32 1.0, %v7011_v34  ;;  %v2056_v42 = vmax.f32 %v1984_v45, 0.0 }
 0x323   : > { %7014 = vpow2.f32 %v1131_v11  ;;  %v1528_v50 = vsel %vm1527_vm0, %v7009_v44, %v1524_v15  ;;  %v1536_v58 = vmul.f32 %v7013_v49, %v8092_v47  ;;  %vm1541_vm4 = vweird.f32 %v7013_v49 }
 0x324   : > { %7016 = vrcp.f32 %v8116_v18  ;;  %v2093_v3 = vpack.c.bf16 %v2056_v42, %v2055_v22  ;;  %v1533_v37 = vsel %vm1530_vm15, %v1532_v40, %v1528_v50  ;;  %v1034_v4 = vpop.f32.mrf.mxu3  ;;  %v1546_v22 = vand.u32 2147483648, %v8092_v47  ;;  %vm8145_vm6 = vmor %vm1540_vm5, %vm1541_vm4  ;;  %v7065_v50 = vld [vmem:[%s7261_s8 + $0xc0] sm:$0xff] }
 0x325   : > { %v8123_v12 = vmul.f32 %v1806_v60, %v1533_v37  ;;  %v1035_v34 = vadd.f32 %v7950_v55, %v1034_v4  ;;  %v1537_v57 = vsub.f32 1.0, %v1536_v58  ;;  %v1544_v42 = vand.u32 2147483647, %v8092_v47 }
 0x326   : > { %6303 = vmatmul.msk.bf16.gmra.mxu1 %vm471_vm2, %v2093_v3  ;;  %v1736_v3 = vpop.permute.xlu0 %1735  ;;  %v1559_v47 = vand.u32 2147483647, %v8116_v18  ;;  %vm1555_vm10 = vweird.f32 %v8116_v18 }
 0x327   : > { %9947 = vst [vmem:[#allocation22_spill] sm:$0xff] %v8123_v12  ;;  %v8133_v11 = vsel %vm1847_vm9, %v8123_v12, 0.0  ;;  %v1074_v44 = vsub.f32 0.0, %v1035_v34  ;;  %v1986_v25 = vpop.f32.mrf.mxu0  ;;  %v1538_v46 = vmul.f32 %v7013_v49, %v1537_v57  ;;  %v1738_v34 = vpop.permute.xlu1 %1737  ;;  %vm1545_vm7 = vcmp.eq.f32.partialorder %v1544_v42, 8.507059e+37 }
 0x328   : > { %v1894_v10 = vpack.c.bf16 %v8133_v11, %v8129_v8  ;;  %vm1560_vm11 = vcmp.eq.f32.partialorder %v1559_v47, 8.507059e+37 }
 0x329   : > { %v7015_v16 = vpop.eup %7014  ;;  %v1133_v45 = vmul.f32 1.442695, %v1074_v44  ;;  %v1539_v2 = vadd.f32 %v7013_v49, %v1538_v46  ;;  %v1987_v44 = vadd.f32 %v7996_v28, %v1986_v25  ;;  %v1547_v46 = vor.u32 1.1754944e-38, %v1546_v22 }
 0x32a   : > { %v7017_v60 = vpop.eup %7016  ;;  %v8137_v15 = vadd.f32 1.0, %v7015_v16  ;;  %6280 = vmatmul.msk.bf16.gmra.mxu0 %vm1847_vm9, %v1894_v10  ;;  %v1561_v10 = vand.u32 2147483648, %v8116_v18 }
 0x32b   : > { %7018 = vpow2.f32 %v1133_v45  ;;  %v1551_v40 = vmul.f32 %v7017_v60, %v8116_v18  ;;  %v1543_v37 = vsel %vm8145_vm6, %v7013_v49, %v1539_v2  ;;  %vm1556_vm8 = vweird.f32 %v7017_v60 }
 0x32c   : > { %7020 = vrcp.f32 %v8137_v15  ;;  %v1037_v58 = vpop.f32.mrf.mxu3  ;;  %v1548_v7 = vsel %vm1545_vm7, %v1547_v46, %v1543_v37  ;;  %v1807_v49 = vsel %vm247_vm1, %v7065_v50, %v1736_v3  ;;  %vm1557_vm12 = vmor %vm1555_vm10, %vm1556_vm8  ;;  %v1562_v37 = vor.u32 1.1754944e-38, %v1561_v10 }
 0x32d   : > { %v1038_v4 = vadd.f32 %v7950_v55, %v1037_v58  ;;  %v1552_v57 = vsub.f32 1.0, %v1551_v40  ;;  %v7066_v58 = vld [vmem:[%s7261_s8 + $0xc8] sm:$0xff]  ;;  %v8164_v3 = vmul.f32 %v1807_v49, %v1548_v7  ;;  %vm1570_vm14 = vweird.f32 %v8137_v15 }
 0x32e   : > { %v1808_v40 = vsel %vm247_vm1, %v7066_v58, %v1738_v34 }
 0x32f   : > { %v1075_v16 = vsub.f32 0.0, %v1038_v4  ;;  %v1988_v45 = vpop.f32.mrf.mxu0  ;;  %v1553_v12 = vmul.f32 %v7017_v60, %v1552_v57  ;;  %v2057_v4 = vmax.f32 %v1987_v44, 0.0  ;;  %9950 = vst [vmem:[#allocation23_spill] sm:$0xff] %v8164_v3 }
 0x330   : > { %v1989_v2 = vadd.f32 %v7996_v28, %v1988_v45 }
 0x331   : > { %v7019_v9 = vpop.eup %7018  ;;  %v1135_v32 = vmul.f32 1.442695, %v1075_v16  ;;  %v1554_v25 = vadd.f32 %v7017_v60, %v1553_v12 }
 0x332   : > { %v7021_v22 = vpop.eup %7020  ;;  %v8161_v42 = vadd.f32 1.0, %v7019_v9  ;;  %v2058_v57 = vmax.f32 %v1989_v2, 0.0  ;;  %v6785_v9 = vld [vmem:[%s9897_s1 + $0x88] sm:$0xff] }
 0x333   : > { %7022 = vpow2.f32 %v1135_v32  ;;  %v1558_v46 = vsel %vm1557_vm12, %v7017_v60, %v1554_v25  ;;  %v1566_v34 = vmul.f32 %v7021_v22, %v8137_v15  ;;  %2407 = vmatpush.bf16.msra.mxu2 %v6785_v9  ;;  %v8177_v32 = vsel %vm1847_vm9, %v8164_v3, 0.0 }
 0x334   : > { %7024 = vrcp.f32 %v8161_v42  ;;  %v2094_v12 = vpack.c.bf16 %v2058_v57, %v2057_v4  ;;  %v1563_v16 = vsel %vm1560_vm11, %v1562_v37, %v1558_v46  ;;  %v1039_v18 = vpop.f32.mrf.mxu3  ;;  %vm1571_vm13 = vweird.f32 %v7021_v22 }
 0x335   : > { %v8171_v47 = vmul.f32 %v1808_v40, %v1563_v16  ;;  %v1040_v44 = vadd.f32 %v7950_v55, %v1039_v18  ;;  %v1567_v10 = vsub.f32 1.0, %v1566_v34  ;;  %v1576_v57 = vand.u32 2147483648, %v8137_v15  ;;  %vm8193_vm15 = vmor %vm1570_vm14, %vm1571_vm13  ;;  %v1740_v16 = vpop.permute.xlu2 %1739  ;;  %v7067_v34 = vld [vmem:[%s7261_s8 + $0xd0] sm:$0xff] }
 0x336   : > { %6304 = vmatmul.msk.bf16.gmra.mxu1 %vm471_vm2, %v2094_v12  ;;  %v1574_v37 = vand.u32 2147483647, %v8137_v15  ;;  %v1589_v15 = vand.u32 2147483647, %v8161_v42  ;;  %vm1585_vm5 = vweird.f32 %v8161_v42 }
 0x337   : > { %9951 = vst [vmem:[#allocation24_spill] sm:$0xff] %v8171_v47  ;;  %v8181_v7 = vsel %vm1847_vm9, %v8171_v47, 0.0  ;;  %v1076_v60 = vsub.f32 0.0, %v1040_v44  ;;  %v1991_v45 = vpop.f32.mrf.mxu0  ;;  %v1568_v50 = vmul.f32 %v7021_v22, %v1567_v10  ;;  %v1742_v44 = vpop.permute.xlu0 %1741 }
 0x338   : > { %v1895_v49 = vpack.c.bf16 %v8181_v7, %v8177_v32  ;;  %vm1575_vm0 = vcmp.eq.f32.partialorder %v1574_v37, 8.507059e+37  ;;  %vm1590_vm6 = vcmp.eq.f32.partialorder %v1589_v15, 8.507059e+37 }
 0x339   : > { %v7023_v2 = vpop.eup %7022  ;;  %v1137_v58 = vmul.f32 1.442695, %v1076_v60  ;;  %v1569_v40 = vadd.f32 %v7021_v22, %v1568_v50  ;;  %v1992_v60 = vadd.f32 %v7996_v28, %v1991_v45  ;;  %v1577_v50 = vor.u32 1.1754944e-38, %v1576_v57 }
 0x33a   : > { %v7025_v25 = vpop.eup %7024  ;;  %v8185_v4 = vadd.f32 1.0, %v7023_v2  ;;  %6281 = vmatmul.msk.bf16.gmra.mxu0 %vm1847_vm9, %v1895_v49  ;;  %v1591_v49 = vand.u32 2147483648, %v8161_v42 }
 0x33b   : > { %7026 = vpow2.f32 %v1137_v58  ;;  %v1581_v46 = vmul.f32 %v7025_v25, %v8161_v42  ;;  %v1573_v18 = vsel %vm8193_vm15, %v7021_v22, %v1569_v40  ;;  %vm1586_vm4 = vweird.f32 %v7025_v25 }
 0x33c   : > { %7028 = vrcp.f32 %v8185_v4  ;;  %v1042_v12 = vpop.f32.mrf.mxu3  ;;  %v1578_v3 = vsel %vm1575_vm0, %v1577_v50, %v1573_v18  ;;  %v1809_v22 = vsel %vm247_vm1, %v7067_v34, %v1740_v16  ;;  %vm1587_vm7 = vmor %vm1585_vm5, %vm1586_vm4  ;;  %v1592_v18 = vor.u32 1.1754944e-38, %v1591_v49 }
 0x33d   : > { %v1043_v9 = vadd.f32 %v7950_v55, %v1042_v12  ;;  %v1582_v10 = vsub.f32 1.0, %v1581_v46  ;;  %v7068_v12 = vld [vmem:[%s7261_s8 + $0xd8] sm:$0xff]  ;;  %v8212_v16 = vmul.f32 %v1809_v22, %v1578_v3  ;;  %vm1600_vm10 = vweird.f32 %v8185_v4 }
 0x33e   : > { %v1810_v46 = vsel %vm247_vm1, %v7068_v12, %v1742_v44 }
 0x33f   : > { %v1077_v2 = vsub.f32 0.0, %v1043_v9  ;;  %v1993_v58 = vpop.f32.mrf.mxu0  ;;  %v1583_v47 = vmul.f32 %v7025_v25, %v1582_v10  ;;  %v2059_v9 = vmax.f32 %v1992_v60, 0.0  ;;  %9954 = vst [vmem:[#allocation25_spill] sm:$0xff] %v8212_v16  ;;  %v8222_v3 = vsel %vm1847_vm9, %v8212_v16, 0.0 }
 0x340   : > { %v1994_v40 = vadd.f32 %v7996_v28, %v1993_v58 }
 0x341   : > { %v7027_v43 = vpop.eup %7026  ;;  %v1139_v19 = vmul.f32 1.442695, %v1077_v2  ;;  %v1584_v45 = vadd.f32 %v7025_v25, %v1583_v47 }
 0x342   : > { %v7029_v57 = vpop.eup %7028  ;;  %v8209_v37 = vadd.f32 1.0, %v7027_v43  ;;  %v2060_v10 = vmax.f32 %v1994_v40, 0.0 }
 0x343   : > { %7030 = vpow2.f32 %v1139_v19  ;;  %v1588_v50 = vsel %vm1587_vm7, %v7025_v25, %v1584_v45  ;;  %v1596_v44 = vmul.f32 %v7029_v57, %v8185_v4  ;;  %vm1601_vm8 = vweird.f32 %v7029_v57 }
 0x344   : > { %7032 = vrcp.f32 %v8209_v37  ;;  %v2095_v47 = vpack.c.bf16 %v2060_v10, %v2059_v9  ;;  %v1593_v2 = vsel %vm1590_vm6, %v1592_v18, %v1588_v50  ;;  %v1044_v42 = vpop.f32.mrf.mxu3  ;;  %v1606_v9 = vand.u32 2147483648, %v8185_v4  ;;  %vm1602_vm11 = vmor %vm1600_vm10, %vm1601_vm8  ;;  %v1744_v50 = vpop.permute.xlu1 %1743 }
 0x345   : > { %v8216_v15 = vmul.f32 %v1810_v46, %v1593_v2  ;;  %v1045_v43 = vadd.f32 %v7950_v55, %v1044_v42  ;;  %v1597_v60 = vsub.f32 1.0, %v1596_v44  ;;  %v6791_v55 = vld [vmem:[%s9897_s1 + $0x1b8] sm:$0xff]  ;;  %v1604_v10 = vand.u32 2147483647, %v8185_v4 }
 0x346   : > { %6305 = vmatmul.msk.bf16.gmra.mxu1 %vm471_vm2, %v2095_v47  ;;  %2622 = vmatpush.bf16.msra.mxu3 %v6791_v55  ;;  %v1607_v42 = vor.u32 1.1754944e-38, %v1606_v9  ;;  %v1619_v4 = vand.u32 2147483647, %v8209_v37  ;;  %v7069_v55 = vld [vmem:[%s7261_s8 + $0xe0] sm:$0xff]  ;;  %vm1615_vm14 = vweird.f32 %v8209_v37 }
 0x347   : > { %9955 = vst [vmem:[#allocation26_spill] sm:$0xff] %v8216_v15  ;;  %v8226_v19 = vsel %vm1847_vm9, %v8216_v15, 0.0  ;;  %v1078_v25 = vsub.f32 0.0, %v1045_v43  ;;  %v1996_v49 = vpop.f32.mrf.mxu0  ;;  %v1598_v58 = vmul.f32 %v7029_v57, %v1597_v60  ;;  %v1746_v43 = vpop.permute.xlu2 %1745  ;;  %v1621_v60 = vand.u32 2147483648, %v8209_v37 }
 0x348   : > { %v1896_v34 = vpack.c.bf16 %v8226_v19, %v8222_v3  ;;  %v1997_v2 = vadd.f32 %v7996_v28, %v1996_v49  ;;  %vm1605_vm12 = vcmp.eq.f32.partialorder %v1604_v10, 8.507059e+37  ;;  %v7070_v49 = vld [vmem:[%s7261_s8 + $0xe8] sm:$0xff]  ;;  %vm1620_vm0 = vcmp.eq.f32.partialorder %v1619_v4, 8.507059e+37 }
 0x349   : > { %v7031_v22 = vpop.eup %7030  ;;  %v1141_v40 = vmul.f32 1.442695, %v1078_v25  ;;  %v1599_v12 = vadd.f32 %v7029_v57, %v1598_v58  ;;  %v1812_v9 = vsel %vm247_vm1, %v7070_v49, %v1746_v43  ;;  %v1622_v16 = vor.u32 1.1754944e-38, %v1621_v60 }
 0x34a   : > { %v7033_v46 = vpop.eup %7032  ;;  %v8233_v45 = vadd.f32 1.0, %v7031_v22  ;;  %6282 = vmatmul.msk.bf16.gmra.mxu0 %vm1847_vm9, %v1896_v34  ;;  %v1811_v22 = vsel %vm247_vm1, %v7069_v55, %v1744_v50  ;;  %v2061_v15 = vmax.f32 %v1997_v2, 0.0 }
 0x34b   : > { %7034 = vpow2.f32 %v1141_v40  ;;  %v1611_v18 = vmul.f32 %v7033_v46, %v8209_v37  ;;  %v1603_v44 = vsel %vm1602_vm11, %v7029_v57, %v1599_v12  ;;  %vm1616_vm13 = vweird.f32 %v7033_v46 }
 0x34c   : > { %7036 = vrcp.f32 %v8233_v45  ;;  %v1608_v34 = vsel %vm1605_vm12, %v1607_v42, %v1603_v44  ;;  %vm1617_vm15 = vmor %vm1615_vm14, %vm1616_vm13  ;;  %vm1630_vm5 = vweird.f32 %v8233_v45  ;;  %vm5985_vm13 = vcmask 367616  }
 0x34d   : > { %v1612_v47 = vsub.f32 1.0, %v1611_v18  ;;  %v8251_v44 = vmul.f32 %v1811_v22, %v1608_v34  ;;  %v1636_v34 = vand.u32 2147483648, %v8233_v45  ;;  %v1634_v22 = vand.u32 2147483647, %v8233_v45 }
 0x34f   : > { %v1998_v25 = vpop.f32.mrf.mxu0  ;;  %v1613_v58 = vmul.f32 %v7033_v46, %v1612_v47  ;;  %9956 = vst [vmem:[#allocation27_spill] sm:$0xff] %v8251_v44  ;;  %v8259_v2 = vsel %vm1847_vm9, %v8251_v44, 0.0  ;;  %vm1635_vm7 = vcmp.eq.f32.partialorder %v1634_v22, 8.507059e+37 }
 0x350   : > { %v1999_v57 = vadd.f32 %v7996_v28, %v1998_v25 }
 0x351   : > { %v7035_v40 = vpop.eup %7034  ;;  %v1614_v12 = vadd.f32 %v7033_v46, %v1613_v58 }
 0x352   : > { %v7037_v18 = vpop.eup %7036  ;;  %v1174_v10 = vadd.f32 1.0, %v7035_v40  ;;  %v2062_v47 = vmax.f32 %v1999_v57, 0.0  ;;  %v1748_v40 = vpop.permute.xlu0 %1747 }
 0x353   : > { %v1618_v42 = vsel %vm1617_vm15, %v7033_v46, %v1614_v12  ;;  %v1626_v50 = vmul.f32 %v7037_v18, %v8233_v45  ;;  %vm1631_vm4 = vweird.f32 %v7037_v18 }
 0x354   : > { %7038 = vrcp.f32 %v1174_v10  ;;  %v2096_v25 = vpack.c.bf16 %v2062_v47, %v2061_v15  ;;  %v1623_v58 = vsel %vm1620_vm0, %v1622_v16, %v1618_v42  ;;  %vm1632_vm6 = vmor %vm1630_vm5, %vm1631_vm4  ;;  %v1637_v47 = vor.u32 1.1754944e-38, %v1636_v34  ;;  %v7072_v34 = vld [vmem:[%s7261_s8 + $0xf8] sm:$0xff] }
 0x355   : > { %v8254_v37 = vmul.f32 %v1812_v9, %v1623_v58  ;;  %v1627_v55 = vsub.f32 1.0, %v1626_v50  ;;  %v1651_v42 = vand.u32 2147483648, %v1174_v10  ;;  %vm1645_vm10 = vweird.f32 %v1174_v10 }
 0x356   : > { %6306 = vmatmul.msk.bf16.gmra.mxu1 %vm471_vm2, %v2096_v25  ;;  %v1750_v25 = vpop.permute.xlu1 %1749 }
 0x357   : > { %9957 = vst [vmem:[#allocation28_spill] sm:$0xff] %v8254_v37  ;;  %v8263_v43 = vsel %vm1847_vm9, %v8254_v37, 0.0  ;;  %v2001_v46 = vpop.f32.mrf.mxu0  ;;  %v1628_v60 = vmul.f32 %v7037_v18, %v1627_v55  ;;  %v1649_v55 = vand.u32 2147483647, %v1174_v10  ;;  %v1814_v22 = vsel %vm247_vm1, %v7072_v34, %v1750_v25  ;;  %v8298_v34 = vld [vmem:[#allocation2 + $0x4] ss:$0 sm:$0xff] }
 0x358   : > { %v1897_v4 = vpack.c.bf16 %v8263_v43, %v8259_v2  ;;  %v2002_v9 = vadd.f32 %v7996_v28, %v2001_v46  ;;  %v1652_v46 = vor.u32 1.1754944e-38, %v1651_v42 }
 0x359   : > { %v1629_v15 = vadd.f32 %v7037_v18, %v1628_v60  ;;  %vm1650_vm12 = vcmp.eq.f32.partialorder %v1649_v55, 8.507059e+37 }
 0x35a   : > { %v7039_v16 = vpop.eup %7038  ;;  %6283 = vmatmul.msk.bf16.gmra.mxu0 %vm1847_vm9, %v1897_v4  ;;  %v7071_v4 = vld [vmem:[%s7261_s8 + $0xf0] sm:$0xff]  ;;  %s6146_s8 = sshll.u32 %s179_s10, 8 }
 0x35b   : > { %v1641_v57 = vmul.f32 %v7039_v16, %v1174_v10  ;;  %v1633_v12 = vsel %vm1632_vm6, %v7037_v18, %v1629_v15  ;;  %vm1646_vm8 = vweird.f32 %v7039_v16  ;;  %v1813_v45 = vsel %vm247_vm1, %v7071_v4, %v1748_v40  ;;  %s9643_s11 = scalar_lea.vmem [#allocation5], %s6146_s8 }
 0x35c   : > { %v1638_v60 = vsel %vm1635_vm7, %v1637_v47, %v1633_v12  ;;  %v2063_v18 = vmax.f32 %v2002_v9, 0.0  ;;  %vm1647_vm11 = vmor %vm1645_vm10, %vm1646_vm8  ;;  %vm5546_vm1 = vcmask 1045504   ;;  %s6063_s25 = sshll.u32 %s9643_s11, 4  ;;  %s6064_s25 = int_to_ptr.vmem [resolvable:$true] %s6063_s25 }
 0x35d   : > { %v1642_v49 = vsub.f32 1.0, %v1641_v57  ;;  %v8277_v57 = vmul.f32 %v1813_v45, %v1638_v60 }
 0x35f   : > { %v2003_v50 = vpop.f32.mrf.mxu0  ;;  %v1643_v58 = vmul.f32 %v7039_v16, %v1642_v49  ;;  %v8284_v10 = vsel %vm1847_vm9, %v8277_v57, 0.0 }
 0x360   : > { %v2004_v37 = vadd.f32 %v7996_v28, %v2003_v50 }
 0x361   : > { %v1644_v44 = vadd.f32 %v7039_v16, %v1643_v58 }
 0x362   : > { %v2064_v15 = vmax.f32 %v2004_v37, 0.0 }
 0x363   : > { %v1648_v49 = vsel %vm1647_vm11, %v7039_v16, %v1644_v44 }
 0x364   : > { %v2097_v35 = vpack.c.bf16 %v2064_v15, %v2063_v18  ;;  %v1653_v12 = vsel %vm1650_vm12, %v1652_v46, %v1648_v49 }
 0x365   : > { %v8279_v47 = vmul.f32 %v1814_v22, %v1653_v12  ;;  %v6790_v22 = vld [vmem:[%s9897_s1 + $0x1b0] sm:$0xff] }
 0x366   : > { %6307 = vmatmul.msk.bf16.gmra.mxu1 %vm471_vm2, %v2097_v35  ;;  %2623 = vmatpush.bf16.msra.mxu3 %v6790_v22 }
 0x367   : > { %v8288_v37 = vsel %vm1847_vm9, %v8279_v47, 0.0  ;;  %v2006_v40 = vpop.f32.mrf.mxu0 }
 0x368   : > { %v1898_v9 = vpack.c.bf16 %v8288_v37, %v8284_v10  ;;  %v2007_v44 = vadd.f32 %v7996_v28, %v2006_v40 }
 0x36a   : > { %6284 = vmatmul.msk.bf16.gmra.mxu0 %vm1847_vm9, %v1898_v9  ;;  %v2065_v35 = vmax.f32 %v2007_v44, 0.0 }
 0x36f   : > { %v2008_v16 = vpop.f32.mrf.mxu0 }
 0x370   : > { %v2009_v42 = vadd.f32 %v7996_v28, %v2008_v16 }
 0x372   : > { %v2066_v50 = vmax.f32 %v2009_v42, 0.0 }
 0x374   : > { %v2098_v25 = vpack.c.bf16 %v2066_v50, %v2065_v35 }
 0x376   : > { %6308 = vmatmul.msk.bf16.gmra.mxu1 %vm471_vm2, %v2098_v25 }
 0x377   : > { %v2011_v58 = vpop.f32.mrf.mxu0 }
 0x378   : > { %v2012_v55 = vadd.f32 %v7996_v28, %v2011_v58 }
 0x37a   : > { %v2067_v45 = vmax.f32 %v2012_v55, 0.0 }
 0x37f   : > { %v2013_v60 = vpop.f32.mrf.mxu0 }
 0x380   : > { %v2014_v4 = vadd.f32 %v7996_v28, %v2013_v60 }
 0x382   : > { %v2068_v18 = vmax.f32 %v2014_v4, 0.0 }
 0x383   : > { %v2190_v15 = vpop.f32.mrf.mxu1 }
 0x384   : > { %v2099_v46 = vpack.c.bf16 %v2068_v18, %v2067_v45  ;;  %v2191_v12 = vadd.f32 %v8298_v34, %v2190_v15  ;;  %v2774_v45 = vld [vmem:[%s9897_s1 + $0x180] sm:$0x3] }
 0x385   : > { %v2798_v15 = vunpack.c.l.b16 %v2774_v45 }
 0x386   : > { %6309 = vmatmul.msk.bf16.gmra.mxu1 %vm471_vm2, %v2099_v46  ;;  %v2270_v44 = vmax.f32 %v2191_v12, 0.0 }
 0x387   : > { %v2016_v49 = vpop.f32.mrf.mxu0  ;;  %v2800_v46 = vpack.c.b16 %v2798_v15, %v2798_v15 }
 0x388   : > { %v2017_v16 = vadd.f32 %v7996_v28, %v2016_v49 }
 0x389   : > { %v2851_v12 = vsel %vm1958_vm3, %v2800_v46, 0 }
 0x38a   : > { %v2069_v58 = vmax.f32 %v2017_v16, 0.0  ;;  %2859 = vmatpush.bf16.msra.mxu0 %v2851_v12 }
 0x38b   : > { %v2192_v40 = vpop.f32.mrf.mxu1 }
 0x38c   : > { %v2193_v9 = vadd.f32 %v8298_v34, %v2192_v40 }
 0x38e   : > { %v2271_v42 = vmax.f32 %v2193_v9, 0.0 }
 0x38f   : > { %v2018_v35 = vpop.f32.mrf.mxu0 }
 0x390   : > { %v2310_v50 = vpack.c.bf16 %v2271_v42, %v2270_v44  ;;  %v2019_v25 = vadd.f32 %v7996_v28, %v2018_v35 }
 0x392   : > { %v2070_v55 = vmax.f32 %v2019_v25, 0.0  ;;  %6333 = vmatmul.msk.bf16.vlgmr.msra.gmra.mxu2 %vm471_vm2, %v2310_v50 }
 0x393   : > { %v2195_v60 = vpop.f32.mrf.mxu1 }
 0x394   : > { %v2100_v4 = vpack.c.bf16 %v2070_v55, %v2069_v58  ;;  %v2196_v22 = vadd.f32 %v8298_v34, %v2195_v60 }
 0x396   : > { %6310 = vmatmul.msk.bf16.gmra.mxu1 %vm471_vm2, %v2100_v4  ;;  %v2272_v9 = vmax.f32 %v2196_v22, 0.0 }
 0x397   : > { %v2021_v18 = vpop.f32.mrf.mxu0 }
 0x398   : > { %v2022_v44 = vadd.f32 %v7996_v28, %v2021_v18 }
 0x39a   : > { %v2071_v25 = vmax.f32 %v2022_v44, 0.0 }
 0x39b   : > { %v2197_v49 = vpop.f32.mrf.mxu1 }
 0x39c   : > { %v2198_v40 = vadd.f32 %v8298_v34, %v2197_v49 }
 0x39e   : > { %v2273_v16 = vmax.f32 %v2198_v40, 0.0 }
 0x39f   : > { %v2023_v42 = vpop.f32.mrf.mxu0 }
 0x3a0   : > { %v2311_v35 = vpack.c.bf16 %v2273_v16, %v2272_v9  ;;  %v2024_v50 = vadd.f32 %v7996_v28, %v2023_v42 }
 0x3a2   : > { %v2072_v58 = vmax.f32 %v2024_v50, 0.0  ;;  %6334 = vmatmul.msk.bf16.gmra.mxu2 %vm471_vm2, %v2311_v35 }
 0x3a3   : > { %v2200_v55 = vpop.f32.mrf.mxu1 }
 0x3a4   : > { %v2101_v60 = vpack.c.bf16 %v2072_v58, %v2071_v25  ;;  %v2201_v45 = vadd.f32 %v8298_v34, %v2200_v55 }
 0x3a6   : > { %6311 = vmatmul.msk.bf16.gmra.mxu1 %vm471_vm2, %v2101_v60  ;;  %v2274_v18 = vmax.f32 %v2201_v45, 0.0 }
 0x3a7   : > { %v2026_v4 = vpop.f32.mrf.mxu0 }
 0x3a8   : > { %v2027_v22 = vadd.f32 %v7996_v28, %v2026_v4 }
 0x3aa   : > { %v2073_v44 = vmax.f32 %v2027_v22, 0.0 }
 0x3ab   : > { %v2202_v15 = vpop.f32.mrf.mxu1 }
 0x3ac   : > { %v2203_v46 = vadd.f32 %v8298_v34, %v2202_v15 }
 0x3ae   : > { %v2275_v49 = vmax.f32 %v2203_v46, 0.0 }
 0x3af   : > { %v2028_v12 = vpop.f32.mrf.mxu0 }
 0x3b0   : > { %v2312_v40 = vpack.c.bf16 %v2275_v49, %v2274_v18  ;;  %v2029_v9 = vadd.f32 %v7996_v28, %v2028_v12 }
 0x3b2   : > { %v2074_v16 = vmax.f32 %v2029_v9, 0.0  ;;  %6335 = vmatmul.msk.bf16.gmra.mxu2 %vm471_vm2, %v2312_v40  ;;  %v6789_v9 = vld [vmem:[%s9897_s1 + $0x1a8] sm:$0xff] }
 0x3b3   : > { %v2205_v42 = vpop.f32.mrf.mxu1  ;;  %2624 = vmatpush.bf16.msra.mxu3 %v6789_v9 }
 0x3b4   : > { %v2102_v35 = vpack.c.bf16 %v2074_v16, %v2073_v44  ;;  %v2206_v25 = vadd.f32 %v8298_v34, %v2205_v42 }
 0x3b6   : > { %6312 = vmatmul.msk.bf16.gmra.mxu1 %vm471_vm2, %v2102_v35  ;;  %v2276_v60 = vmax.f32 %v2206_v25, 0.0 }
 0x3b7   : > { %v2031_v50 = vpop.f32.mrf.mxu0 }
 0x3b8   : > { %v2032_v4 = vadd.f32 %v7996_v28, %v2031_v50 }
 0x3ba   : > { %v2075_v22 = vmax.f32 %v2032_v4, 0.0 }
 0x3bb   : > { %v2207_v58 = vpop.f32.mrf.mxu1 }
 0x3bc   : > { %v2208_v55 = vadd.f32 %v8298_v34, %v2207_v58 }
 0x3be   : > { %v2277_v45 = vmax.f32 %v2208_v55, 0.0 }
 0x3bf   : > { %v2033_v15 = vpop.f32.mrf.mxu0 }
 0x3c0   : > { %v2313_v46 = vpack.c.bf16 %v2277_v45, %v2276_v60  ;;  %v2034_v18 = vadd.f32 %v7996_v28, %v2033_v15 }
 0x3c2   : > { %v2076_v49 = vmax.f32 %v2034_v18, 0.0  ;;  %6336 = vmatmul.msk.bf16.gmra.mxu2 %vm471_vm2, %v2313_v46 }
 0x3c3   : > { %v2210_v12 = vpop.f32.mrf.mxu1 }
 0x3c4   : > { %v2103_v40 = vpack.c.bf16 %v2076_v49, %v2075_v22  ;;  %v2211_v16 = vadd.f32 %v8298_v34, %v2210_v12 }
 0x3c6   : > { %6313 = vmatmul.msk.bf16.gmra.mxu1 %vm471_vm2, %v2103_v40  ;;  %v2278_v50 = vmax.f32 %v2211_v16, 0.0 }
 0x3c7   : > { %v2036_v44 = vpop.f32.mrf.mxu0 }
 0x3c8   : > { %v2037_v25 = vadd.f32 %v7996_v28, %v2036_v44  ;;  %v7073_v44 = vld [vmem:[#allocation2 + $0xc] ss:$0 sm:$0xff] }
 0x3ca   : > { %v2077_v45 = vmax.f32 %v2037_v25, 0.0 }
 0x3cb   : > { %v2212_v42 = vpop.f32.mrf.mxu1 }
 0x3cc   : > { %v2213_v35 = vadd.f32 %v8298_v34, %v2212_v42 }
 0x3ce   : > { %v2279_v58 = vmax.f32 %v2213_v35, 0.0 }
 0x3cf   : > { %v2038_v55 = vpop.f32.mrf.mxu0 }
 0x3d0   : > { %v2314_v60 = vpack.c.bf16 %v2279_v58, %v2278_v50  ;;  %v2039_v4 = vadd.f32 %v7996_v28, %v2038_v55 }
 0x3d2   : > { %v2078_v15 = vmax.f32 %v2039_v4, 0.0  ;;  %6337 = vmatmul.msk.bf16.gmra.mxu2 %vm471_vm2, %v2314_v60 }
 0x3d3   : > { %v2215_v46 = vpop.f32.mrf.mxu1 }
 0x3d4   : > { %v2104_v18 = vpack.c.bf16 %v2078_v15, %v2077_v45  ;;  %v2216_v49 = vadd.f32 %v8298_v34, %v2215_v46 }
 0x3d6   : > { %6314 = vmatmul.msk.bf16.gmra.mxu1 %vm471_vm2, %v2104_v18  ;;  %v2280_v9 = vmax.f32 %v2216_v49, 0.0 }
 0x3d7   : > { %v2041_v22 = vpop.f32.mrf.mxu0 }
 0x3d8   : > { %v2042_v16 = vadd.f32 %v7073_v44, %v2041_v22 }
 0x3da   : > { %v2079_v25 = vmax.f32 %v2042_v16, 0.0 }
 0x3db   : > { %v2217_v12 = vpop.f32.mrf.mxu1 }
 0x3dc   : > { %v2218_v40 = vadd.f32 %v8298_v34, %v2217_v12 }
 0x3de   : > { %v2281_v42 = vmax.f32 %v2218_v40, 0.0 }
 0x3df   : > { %v2043_v35 = vpop.f32.mrf.mxu0 }
 0x3e0   : > { %v2315_v28 = vpack.c.bf16 %v2281_v42, %v2280_v9  ;;  %v2044_v50 = vadd.f32 %v7073_v44, %v2043_v35 }
 0x3e2   : > { %v2080_v58 = vmax.f32 %v2044_v50, 0.0  ;;  %6338 = vmatmul.msk.bf16.gmra.mxu2 %vm471_vm2, %v2315_v28 }
 0x3e3   : > { %v2220_v55 = vpop.f32.mrf.mxu1 }
 0x3e4   : > { %v2105_v60 = vpack.c.bf16 %v2080_v58, %v2079_v25  ;;  %v2221_v45 = vadd.f32 %v8298_v34, %v2220_v55 }
 0x3e6   : > { %6315 = vmatmul.msk.bf16.gmra.mxu1 %vm471_vm2, %v2105_v60  ;;  %v2282_v18 = vmax.f32 %v2221_v45, 0.0 }
 0x3e7   : > { %v2046_v4 = vpop.f32.mrf.mxu0 }
 0x3e8   : > { %v2047_v22 = vadd.f32 %v7073_v44, %v2046_v4 }
 0x3ea   : > { %v2081_v16 = vmax.f32 %v2047_v22, 0.0 }
 0x3eb   : > { %v2222_v15 = vpop.f32.mrf.mxu1 }
 0x3ec   : > { %v2223_v46 = vadd.f32 %v8298_v34, %v2222_v15 }
 0x3ee   : > { %v2283_v49 = vmax.f32 %v2223_v46, 0.0 }
 0x3ef   : > { %v2048_v12 = vpop.f32.mrf.mxu0 }
 0x3f0   : > { %v2316_v40 = vpack.c.bf16 %v2283_v49, %v2282_v18  ;;  %v2049_v9 = vadd.f32 %v7073_v44, %v2048_v12 }
 0x3f2   : > { %v2082_v42 = vmax.f32 %v2049_v9, 0.0  ;;  %6339 = vmatmul.msk.bf16.gmra.mxu2 %vm471_vm2, %v2316_v40  ;;  %v8355_v9 = vld [vmem:[#allocation2 + $0x5] ss:$0 sm:$0xff] }
 0x3f3   : > { %v2225_v35 = vpop.f32.mrf.mxu1 }
 0x3f4   : > { %v2106_v28 = vpack.c.bf16 %v2082_v42, %v2081_v16  ;;  %v2226_v50 = vadd.f32 %v8298_v34, %v2225_v35  ;;  %v6793_v16 = vld [vmem:[%s9897_s1 + $0x178] sm:$0xff] }
 0x3f5   : > { %2860 = vmatpush.bf16.msra.mxu0 %v6793_v16 }
 0x3f6   : > { %6316 = vmatmul.msk.bf16.gmra.mxu1 %vm471_vm2, %v2106_v28  ;;  %v2284_v55 = vmax.f32 %v2226_v50, 0.0 }
 0x3fb   : > { %v2227_v25 = vpop.f32.mrf.mxu1 }
 0x3fc   : > { %v2228_v58 = vadd.f32 %v8298_v34, %v2227_v25 }
 0x3fe   : > { %v2285_v60 = vmax.f32 %v2228_v58, 0.0 }
 0x400   : > { %v2317_v4 = vpack.c.bf16 %v2285_v60, %v2284_v55 }
 0x402   : > { %6340 = vmatmul.msk.bf16.gmra.mxu2 %vm471_vm2, %v2317_v4 }
 0x403   : > { %v2230_v45 = vpop.f32.mrf.mxu1 }
 0x404   : > { %v2231_v44 = vadd.f32 %v8298_v34, %v2230_v45 }
 0x406   : > { %v2286_v18 = vmax.f32 %v2231_v44, 0.0 }
 0x40b   : > { %v2232_v15 = vpop.f32.mrf.mxu1 }
 0x40c   : > { %v2233_v46 = vadd.f32 %v8298_v34, %v2232_v15 }
 0x40e   : > { %v2287_v22 = vmax.f32 %v2233_v46, 0.0  ;;  %v6797_v46 = vld [vmem:[%s9897_s1 + $0xc0] sm:$0xff] }
 0x40f   : > { %3076 = vmatpush.bf16.msrb.mxu1 %v6797_v46 }
 0x410   : > { %v2318_v49 = vpack.c.bf16 %v2287_v22, %v2286_v18 }
 0x412   : > { %6341 = vmatmul.msk.bf16.gmra.mxu2 %vm471_vm2, %v2318_v49 }
 0x413   : > { %v2235_v12 = vpop.f32.mrf.mxu1 }
 0x414   : > { %v2236_v42 = vadd.f32 %v8298_v34, %v2235_v12 }
 0x415   : > { %v2409_v40 = vpop.f32.mrf.mxu2 }
 0x416   : > { %v2410_v28 = vadd.f32 %v8355_v9, %v2409_v40  ;;  %v2288_v58 = vmax.f32 %v2236_v42, 0.0 }
 0x418   : > { %v2489_v4 = vmax.f32 %v2410_v28, 0.0 }
 0x41b   : > { %v2237_v35 = vpop.f32.mrf.mxu1 }
 0x41c   : > { %v2238_v50 = vadd.f32 %v8298_v34, %v2237_v35 }
 0x41d   : > { %v2411_v25 = vpop.f32.mrf.mxu2 }
 0x41e   : > { %v2289_v55 = vmax.f32 %v2238_v50, 0.0  ;;  %v2412_v60 = vadd.f32 %v8355_v9, %v2411_v25 }
 0x420   : > { %v2319_v45 = vpack.c.bf16 %v2289_v55, %v2288_v58  ;;  %v2490_v44 = vmax.f32 %v2412_v60, 0.0 }
 0x422   : > { %v2529_v15 = vpack.c.bf16 %v2490_v44, %v2489_v4  ;;  %6342 = vmatmul.msk.bf16.gmra.mxu2 %vm471_vm2, %v2319_v45 }
 0x423   : > { %v2240_v18 = vpop.f32.mrf.mxu1 }
 0x424   : > { %6365 = vmatmul.msk.bf16.vlgmr.msra.gmra.mxu3 %vm471_vm2, %v2529_v15  ;;  %v2241_v49 = vadd.f32 %v8298_v34, %v2240_v18 }
 0x425   : > { %v2414_v22 = vpop.f32.mrf.mxu2 }
 0x426   : > { %v2415_v40 = vadd.f32 %v8355_v9, %v2414_v22  ;;  %v2290_v35 = vmax.f32 %v2241_v49, 0.0 }
 0x428   : > { %v2491_v25 = vmax.f32 %v2415_v40, 0.0 }
 0x42b   : > { %v2242_v12 = vpop.f32.mrf.mxu1 }
 0x42c   : > { %v2243_v16 = vadd.f32 %v8298_v34, %v2242_v12 }
 0x42d   : > { %v2416_v42 = vpop.f32.mrf.mxu2 }
 0x42e   : > { %v2291_v28 = vmax.f32 %v2243_v16, 0.0  ;;  %v2417_v50 = vadd.f32 %v8355_v9, %v2416_v42 }
 0x430   : > { %v2320_v58 = vpack.c.bf16 %v2291_v28, %v2290_v35  ;;  %v2492_v55 = vmax.f32 %v2417_v50, 0.0 }
 0x432   : > { %v2530_v60 = vpack.c.bf16 %v2492_v55, %v2491_v25  ;;  %6343 = vmatmul.msk.bf16.gmra.mxu2 %vm471_vm2, %v2320_v58 }
 0x433   : > { %v2245_v4 = vpop.f32.mrf.mxu1 }
 0x434   : > { %6366 = vmatmul.msk.bf16.gmra.mxu3 %vm471_vm2, %v2530_v60  ;;  %v2246_v44 = vadd.f32 %v8298_v34, %v2245_v4 }
 0x435   : > { %v2419_v45 = vpop.f32.mrf.mxu2 }
 0x436   : > { %v2420_v46 = vadd.f32 %v8355_v9, %v2419_v45  ;;  %v2292_v49 = vmax.f32 %v2246_v44, 0.0 }
 0x438   : > { %v2493_v16 = vmax.f32 %v2420_v46, 0.0 }
 0x43b   : > { %v2247_v15 = vpop.f32.mrf.mxu1 }
 0x43c   : > { %v2248_v18 = vadd.f32 %v8298_v34, %v2247_v15 }
 0x43d   : > { %v2421_v22 = vpop.f32.mrf.mxu2 }
 0x43e   : > { %v2293_v12 = vmax.f32 %v2248_v18, 0.0  ;;  %v2422_v40 = vadd.f32 %v8355_v9, %v2421_v22 }
 0x440   : > { %v2321_v42 = vpack.c.bf16 %v2293_v12, %v2292_v49  ;;  %v2494_v35 = vmax.f32 %v2422_v40, 0.0 }
 0x442   : > { %v2531_v28 = vpack.c.bf16 %v2494_v35, %v2493_v16  ;;  %6344 = vmatmul.msk.bf16.gmra.mxu2 %vm471_vm2, %v2321_v42 }
 0x443   : > { %v2250_v50 = vpop.f32.mrf.mxu1 }
 0x444   : > { %6367 = vmatmul.msk.bf16.gmra.mxu3 %vm471_vm2, %v2531_v28  ;;  %v2251_v58 = vadd.f32 %v8298_v34, %v2250_v50 }
 0x445   : > { %v2424_v25 = vpop.f32.mrf.mxu2 }
 0x446   : > { %v2425_v60 = vadd.f32 %v8355_v9, %v2424_v25  ;;  %v2294_v44 = vmax.f32 %v2251_v58, 0.0 }
 0x448   : > { %v2495_v18 = vmax.f32 %v2425_v60, 0.0 }
 0x44b   : > { %v2252_v55 = vpop.f32.mrf.mxu1 }
 0x44c   : > { %v2253_v4 = vadd.f32 %v8298_v34, %v2252_v55 }
 0x44d   : > { %v2426_v45 = vpop.f32.mrf.mxu2 }
 0x44e   : > { %v2295_v15 = vmax.f32 %v2253_v4, 0.0  ;;  %v2427_v46 = vadd.f32 %v8355_v9, %v2426_v45 }
 0x450   : > { %v2322_v22 = vpack.c.bf16 %v2295_v15, %v2294_v44  ;;  %v2496_v49 = vmax.f32 %v2427_v46, 0.0  ;;  %v6796_v46 = vld [vmem:[%s9897_s1 + $0xb8] sm:$0xff] }
 0x451   : > { %3077 = vmatpush.bf16.msrb.mxu1 %v6796_v46 }
 0x452   : > { %v2532_v12 = vpack.c.bf16 %v2496_v49, %v2495_v18  ;;  %6345 = vmatmul.msk.bf16.gmra.mxu2 %vm471_vm2, %v2322_v22 }
 0x453   : > { %v2255_v40 = vpop.f32.mrf.mxu1 }
 0x454   : > { %6368 = vmatmul.msk.bf16.gmra.mxu3 %vm471_vm2, %v2532_v12  ;;  %v2256_v42 = vadd.f32 %v8298_v34, %v2255_v40 }
 0x455   : > { %v2429_v16 = vpop.f32.mrf.mxu2 }
 0x456   : > { %v2430_v28 = vadd.f32 %v8355_v9, %v2429_v16  ;;  %v2296_v58 = vmax.f32 %v2256_v42, 0.0 }
 0x458   : > { %v2497_v4 = vmax.f32 %v2430_v28, 0.0 }
 0x45b   : > { %v2257_v35 = vpop.f32.mrf.mxu1 }
 0x45c   : > { %v2258_v50 = vadd.f32 %v8298_v34, %v2257_v35 }
 0x45d   : > { %v2431_v25 = vpop.f32.mrf.mxu2 }
 0x45e   : > { %v2297_v55 = vmax.f32 %v2258_v50, 0.0  ;;  %v2432_v60 = vadd.f32 %v8355_v9, %v2431_v25 }
 0x460   : > { %v2323_v45 = vpack.c.bf16 %v2297_v55, %v2296_v58  ;;  %v2498_v44 = vmax.f32 %v2432_v60, 0.0 }
 0x462   : > { %v2533_v15 = vpack.c.bf16 %v2498_v44, %v2497_v4  ;;  %6346 = vmatmul.msk.bf16.gmra.mxu2 %vm471_vm2, %v2323_v45 }
 0x463   : > { %v2260_v18 = vpop.f32.mrf.mxu1 }
 0x464   : > { %6369 = vmatmul.msk.bf16.gmra.mxu3 %vm471_vm2, %v2533_v15  ;;  %v2261_v49 = vadd.f32 %v8298_v34, %v2260_v18 }
 0x465   : > { %v2434_v22 = vpop.f32.mrf.mxu2 }
 0x466   : > { %v2435_v40 = vadd.f32 %v8355_v9, %v2434_v22  ;;  %v2298_v35 = vmax.f32 %v2261_v49, 0.0 }
 0x468   : > { %v2499_v25 = vmax.f32 %v2435_v40, 0.0 }
 0x46b   : > { %v2262_v12 = vpop.f32.mrf.mxu1 }
 0x46c   : > { %v2263_v16 = vadd.f32 %v8298_v34, %v2262_v12 }
 0x46d   : > { %v2436_v42 = vpop.f32.mrf.mxu2 }
 0x46e   : > { %v2299_v28 = vmax.f32 %v2263_v16, 0.0  ;;  %v2437_v50 = vadd.f32 %v8355_v9, %v2436_v42 }
 0x470   : > { %v2324_v58 = vpack.c.bf16 %v2299_v28, %v2298_v35  ;;  %v2500_v55 = vmax.f32 %v2437_v50, 0.0 }
 0x472   : > { %v2534_v60 = vpack.c.bf16 %v2500_v55, %v2499_v25  ;;  %6347 = vmatmul.msk.bf16.gmra.mxu2 %vm471_vm2, %v2324_v58 }
 0x473   : > { %v2265_v4 = vpop.f32.mrf.mxu1 }
 0x474   : > { %6370 = vmatmul.msk.bf16.gmra.mxu3 %vm471_vm2, %v2534_v60  ;;  %v2266_v44 = vadd.f32 %v8298_v34, %v2265_v4 }
 0x475   : > { %v2439_v45 = vpop.f32.mrf.mxu2 }
 0x476   : > { %v2440_v46 = vadd.f32 %v8355_v9, %v2439_v45  ;;  %v2300_v49 = vmax.f32 %v2266_v44, 0.0 }
 0x478   : > { %v2501_v16 = vmax.f32 %v2440_v46, 0.0 }
 0x47b   : > { %v2267_v15 = vpop.f32.mrf.mxu1 }
 0x47c   : > { %v2268_v18 = vadd.f32 %v8298_v34, %v2267_v15 }
 0x47d   : > { %v2441_v22 = vpop.f32.mrf.mxu2 }
 0x47e   : > { %v2301_v12 = vmax.f32 %v2268_v18, 0.0  ;;  %v2442_v40 = vadd.f32 %v8355_v9, %v2441_v22 }
 0x480   : > { %v2325_v42 = vpack.c.bf16 %v2301_v12, %v2300_v49  ;;  %v2502_v35 = vmax.f32 %v2442_v40, 0.0  ;;  %v6795_v12 = vld [vmem:[%s9897_s1 + $0xb0] sm:$0xff] }
 0x481   : > { %3078 = vmatpush.bf16.msrb.mxu1 %v6795_v12 }
 0x482   : > { %v2535_v28 = vpack.c.bf16 %v2502_v35, %v2501_v16  ;;  %6348 = vmatmul.msk.bf16.gmra.mxu2 %vm471_vm2, %v2325_v42 }
 0x484   : > { %6371 = vmatmul.msk.bf16.gmra.mxu3 %vm471_vm2, %v2535_v28 }
 0x485   : > { %v2444_v50 = vpop.f32.mrf.mxu2 }
 0x486   : > { %v2445_v25 = vadd.f32 %v8355_v9, %v2444_v50  ;;  %v8419_v50 = vld [vmem:[#allocation2 + $0x10] ss:$0 sm:$0xff] }
 0x488   : > { %v2503_v34 = vmax.f32 %v2445_v25, 0.0 }
 0x48d   : > { %v2446_v58 = vpop.f32.mrf.mxu2 }
 0x48e   : > { %v2447_v55 = vadd.f32 %v8355_v9, %v2446_v58 }
 0x490   : > { %v2504_v60 = vmax.f32 %v2447_v55, 0.0 }
 0x492   : > { %v2536_v4 = vpack.c.bf16 %v2504_v60, %v2503_v34 }
 0x494   : > { %6372 = vmatmul.msk.bf16.gmra.mxu3 %vm471_vm2, %v2536_v4 }
 0x495   : > { %v2449_v45 = vpop.f32.mrf.mxu2 }
 0x496   : > { %v2450_v44 = vadd.f32 %v8355_v9, %v2449_v45 }
 0x498   : > { %v2505_v18 = vmax.f32 %v2450_v44, 0.0 }
 0x49d   : > { %v2451_v15 = vpop.f32.mrf.mxu2 }
 0x49e   : > { %v2452_v46 = vadd.f32 %v8355_v9, %v2451_v15 }
 0x4a0   : > { %v2506_v22 = vmax.f32 %v2452_v46, 0.0 }
 0x4a2   : > { %v2537_v49 = vpack.c.bf16 %v2506_v22, %v2505_v18 }
 0x4a4   : > { %6373 = vmatmul.msk.bf16.gmra.mxu3 %vm471_vm2, %v2537_v49 }
 0x4a5   : > { %v2454_v40 = vpop.f32.mrf.mxu2 }
 0x4a6   : > { %v2455_v42 = vadd.f32 %v8355_v9, %v2454_v40 }
 0x4a7   : > { %v2626_v16 = vpop.f32.mrf.mxu3 }
 0x4a8   : > { %v2706_v28 = vadd.f32 %v2626_v16, %v7691_v17  ;;  %v2507_v55 = vmax.f32 %v2455_v42, 0.0  ;;  %v6801_v17 = vld [vmem:[%s9897_s1 + $0xe0] sm:$0xff] }
 0x4a9   : > { %3295 = vmatpush.bf16.msrb.mxu2 %v6801_v17 }
 0x4aa   : > { %v8424_v4 = vadd.f32 %v8419_v50, %v2706_v28 }
 0x4ad   : > { %v2456_v35 = vpop.f32.mrf.mxu2 }
 0x4ae   : > { %v2457_v25 = vadd.f32 %v8355_v9, %v2456_v35 }
 0x4af   : > { %v2628_v58 = vpop.f32.mrf.mxu3 }
 0x4b0   : > { %v2508_v34 = vmax.f32 %v2457_v25, 0.0  ;;  %v2707_v60 = vadd.f32 %v2628_v58, %v7695_v21 }
 0x4b2   : > { %v2538_v45 = vpack.c.bf16 %v2508_v34, %v2507_v55  ;;  %v8427_v44 = vadd.f32 %v8419_v50, %v2707_v60 }
 0x4b4   : > { %v2775_v15 = vpack.c.bf16 %v8427_v44, %v8424_v4  ;;  %6374 = vmatmul.msk.bf16.gmra.mxu3 %vm471_vm2, %v2538_v45 }
 0x4b5   : > { %v2459_v46 = vpop.f32.mrf.mxu2 }
 0x4b6   : > { %6385 = vmatmul.msk.bf16.vlgmr.msra.gmra.mxu0 %vm1847_vm9, %v2775_v15  ;;  %v2460_v18 = vadd.f32 %v8355_v9, %v2459_v46 }
 0x4b7   : > { %v2631_v21 = vpop.f32.mrf.mxu3 }
 0x4b8   : > { %v2708_v49 = vadd.f32 %v2631_v21, %v7738_v54  ;;  %v2509_v16 = vmax.f32 %v2460_v18, 0.0 }
 0x4ba   : > { %v8441_v28 = vadd.f32 %v8419_v50, %v2708_v49 }
 0x4bd   : > { %v2461_v22 = vpop.f32.mrf.mxu2 }
 0x4be   : > { %v2462_v12 = vadd.f32 %v8355_v9, %v2461_v22 }
 0x4bf   : > { %v2633_v40 = vpop.f32.mrf.mxu3 }
 0x4c0   : > { %v2510_v42 = vmax.f32 %v2462_v12, 0.0  ;;  %v2709_v35 = vadd.f32 %v2633_v40, %v7742_v5 }
 0x4c2   : > { %v2539_v25 = vpack.c.bf16 %v2510_v42, %v2509_v16  ;;  %v8444_v58 = vadd.f32 %v8419_v50, %v2709_v35 }
 0x4c4   : > { %v2776_v55 = vpack.c.bf16 %v8444_v58, %v8441_v28  ;;  %6375 = vmatmul.msk.bf16.gmra.mxu3 %vm471_vm2, %v2539_v25 }
 0x4c5   : > { %v2464_v54 = vpop.f32.mrf.mxu2 }
 0x4c6   : > { %6386 = vmatmul.msk.bf16.gmra.mxu0 %vm1847_vm9, %v2776_v55  ;;  %v2465_v60 = vadd.f32 %v8355_v9, %v2464_v54 }
 0x4c7   : > { %v2636_v34 = vpop.f32.mrf.mxu3 }
 0x4c8   : > { %v2710_v5 = vadd.f32 %v2636_v34, %v7776_v61  ;;  %v2511_v46 = vmax.f32 %v2465_v60, 0.0 }
 0x4ca   : > { %v8455_v22 = vadd.f32 %v8419_v50, %v2710_v5 }
 0x4cd   : > { %v2466_v45 = vpop.f32.mrf.mxu2 }
 0x4ce   : > { %v2467_v17 = vadd.f32 %v8355_v9, %v2466_v45 }
 0x4cf   : > { %v2638_v15 = vpop.f32.mrf.mxu3 }
 0x4d0   : > { %v2512_v21 = vmax.f32 %v2467_v17, 0.0  ;;  %v2711_v18 = vadd.f32 %v2638_v15, %v7780_v38 }
 0x4d2   : > { %v2540_v49 = vpack.c.bf16 %v2512_v21, %v2511_v46  ;;  %v8458_v12 = vadd.f32 %v8419_v50, %v2711_v18 }
 0x4d4   : > { %v2777_v40 = vpack.c.bf16 %v8458_v12, %v8455_v22  ;;  %6376 = vmatmul.msk.bf16.gmra.mxu3 %vm471_vm2, %v2540_v49 }
 0x4d5   : > { %v2469_v61 = vpop.f32.mrf.mxu2 }
 0x4d6   : > { %6387 = vmatmul.msk.bf16.gmra.mxu0 %vm1847_vm9, %v2777_v40  ;;  %v2470_v42 = vadd.f32 %v8355_v9, %v2469_v61 }
 0x4d7   : > { %v2641_v16 = vpop.f32.mrf.mxu3 }
 0x4d8   : > { %v2712_v38 = vadd.f32 %v2641_v16, %v7814_v23  ;;  %v2513_v54 = vmax.f32 %v2470_v42, 0.0  ;;  %v6794_v23 = vld [vmem:[%s9897_s1 + $0xa8] sm:$0xff] }
 0x4d9   : > { %3079 = vmatpush.bf16.msrb.mxu1 %v6794_v23 }
 0x4da   : > { %v8469_v45 = vadd.f32 %v8419_v50, %v2712_v38 }
 0x4dd   : > { %v2471_v35 = vpop.f32.mrf.mxu2 }
 0x4de   : > { %v2472_v25 = vadd.f32 %v8355_v9, %v2471_v35 }
 0x4df   : > { %v2643_v55 = vpop.f32.mrf.mxu3 }
 0x4e0   : > { %v2514_v34 = vmax.f32 %v2472_v25, 0.0  ;;  %v2713_v60 = vadd.f32 %v2643_v55, %v7818_v36 }
 0x4e2   : > { %v2541_v5 = vpack.c.bf16 %v2514_v34, %v2513_v54  ;;  %v8472_v17 = vadd.f32 %v8419_v50, %v2713_v60  ;;  %v6800_v54 = vld [vmem:[%s9897_s1 + $0xd8] sm:$0xff] }
 0x4e3   : > { %3296 = vmatpush.bf16.msrb.mxu2 %v6800_v54 }
 0x4e4   : > { %v2778_v15 = vpack.c.bf16 %v8472_v17, %v8469_v45  ;;  %6377 = vmatmul.msk.bf16.gmra.mxu3 %vm471_vm2, %v2541_v5 }
 0x4e5   : > { %v2474_v46 = vpop.f32.mrf.mxu2 }
 0x4e6   : > { %6388 = vmatmul.msk.bf16.gmra.mxu0 %vm1847_vm9, %v2778_v15  ;;  %v2475_v21 = vadd.f32 %v8355_v9, %v2474_v46 }
 0x4e7   : > { %v2646_v36 = vpop.f32.mrf.mxu3 }
 0x4e8   : > { %v2714_v49 = vadd.f32 %v2646_v36, %v7855_v39  ;;  %v2515_v16 = vmax.f32 %v2475_v21, 0.0 }
 0x4ea   : > { %v8486_v38 = vadd.f32 %v8419_v50, %v2714_v49 }
 0x4ed   : > { %v2476_v18 = vpop.f32.mrf.mxu2 }
 0x4ee   : > { %v2477_v40 = vadd.f32 %v8355_v9, %v2476_v18 }
 0x4ef   : > { %v2648_v61 = vpop.f32.mrf.mxu3 }
 0x4f0   : > { %v2516_v42 = vmax.f32 %v2477_v40, 0.0  ;;  %v2715_v35 = vadd.f32 %v2648_v61, %v7859_v53 }
 0x4f2   : > { %v2542_v25 = vpack.c.bf16 %v2516_v42, %v2515_v16  ;;  %v8489_v55 = vadd.f32 %v8419_v50, %v2715_v35 }
 0x4f4   : > { %v2779_v39 = vpack.c.bf16 %v8489_v55, %v8486_v38  ;;  %6378 = vmatmul.msk.bf16.gmra.mxu3 %vm471_vm2, %v2542_v25 }
 0x4f5   : > { %v2479_v34 = vpop.f32.mrf.mxu2 }
 0x4f6   : > { %6389 = vmatmul.msk.bf16.gmra.mxu0 %vm1847_vm9, %v2779_v39  ;;  %v2480_v60 = vadd.f32 %v8355_v9, %v2479_v34 }
 0x4f7   : > { %v2651_v53 = vpop.f32.mrf.mxu3 }
 0x4f8   : > { %v2716_v15 = vadd.f32 %v2651_v53, %v7897_v62  ;;  %v2517_v36 = vmax.f32 %v2480_v60, 0.0 }
 0x4fa   : > { %v8503_v49 = vadd.f32 %v8419_v50, %v2716_v15 }
 0x4fd   : > { %v2481_v5 = vpop.f32.mrf.mxu2 }
 0x4fe   : > { %v2482_v23 = vadd.f32 %v8355_v9, %v2481_v5 }
 0x4ff   : > { %v2653_v46 = vpop.f32.mrf.mxu3 }
 0x500   : > { %v2518_v21 = vmax.f32 %v2482_v23, 0.0  ;;  %v2717_v18 = vadd.f32 %v2653_v46, %v7901_v6 }
 0x502   : > { %v2543_v40 = vpack.c.bf16 %v2518_v21, %v2517_v36  ;;  %v8506_v61 = vadd.f32 %v8419_v50, %v2717_v18 }
 0x504   : > { %v2780_v16 = vpack.c.bf16 %v8506_v61, %v8503_v49  ;;  %6379 = vmatmul.msk.bf16.gmra.mxu3 %vm471_vm2, %v2543_v40 }
 0x505   : > { %v2484_v62 = vpop.f32.mrf.mxu2 }
 0x506   : > { %6390 = vmatmul.msk.bf16.gmra.mxu0 %vm1847_vm9, %v2780_v16  ;;  %v2485_v35 = vadd.f32 %v8355_v9, %v2484_v62 }
 0x507   : > { %v2656_v42 = vpop.f32.mrf.mxu3 }
 0x508   : > { %v2718_v6 = vadd.f32 %v2656_v42, %v7925_v20  ;;  %v2519_v34 = vmax.f32 %v2485_v35, 0.0 }
 0x50a   : > { %v8517_v5 = vadd.f32 %v8419_v50, %v2718_v6 }
 0x50d   : > { %v2486_v25 = vpop.f32.mrf.mxu2 }
 0x50e   : > { %v2487_v54 = vadd.f32 %v8355_v9, %v2486_v25 }
 0x50f   : > { %v2658_v39 = vpop.f32.mrf.mxu3 }
 0x510   : > { %v2520_v53 = vmax.f32 %v2487_v54, 0.0  ;;  %v2719_v60 = vadd.f32 %v2658_v39, %v7929_v24  ;;  %v8550_v39 = vld [vmem:[#allocation2 + $0xd] ss:$0 sm:$0xff] }
 0x512   : > { %v2544_v15 = vpack.c.bf16 %v2520_v53, %v2519_v34  ;;  %v8520_v23 = vadd.f32 %v8419_v50, %v2719_v60 }
 0x514   : > { %v2781_v46 = vpack.c.bf16 %v8520_v23, %v8517_v5  ;;  %6380 = vmatmul.msk.bf16.gmra.mxu3 %vm471_vm2, %v2544_v15 }
 0x516   : > { %6391 = vmatmul.msk.bf16.gmra.mxu0 %vm1847_vm9, %v2781_v46 }
 0x517   : > { %v2661_v20 = vpop.f32.mrf.mxu3 }
 0x518   : > { %v2720_v9 = vadd.f32 %v2661_v20, %v7955_v63 }
 0x51a   : > { %v8529_v21 = vadd.f32 %v8419_v50, %v2720_v9 }
 0x51f   : > { %v2663_v36 = vpop.f32.mrf.mxu3 }
 0x520   : > { %v2721_v24 = vadd.f32 %v2663_v36, %v7959_v14  ;;  %v6799_v14 = vld [vmem:[%s9897_s1 + $0xd0] sm:$0xff] }
 0x521   : > { %3297 = vmatpush.bf16.msrb.mxu2 %v6799_v14 }
 0x522   : > { %v8532_v18 = vadd.f32 %v8419_v50, %v2721_v24 }
 0x524   : > { %v2782_v40 = vpack.c.bf16 %v8532_v18, %v8529_v21 }
 0x526   : > { %6392 = vmatmul.msk.bf16.gmra.mxu0 %vm1847_vm9, %v2782_v40 }
 0x527   : > { %v2666_v16 = vpop.f32.mrf.mxu3 }
 0x528   : > { %v2722_v62 = vadd.f32 %v2666_v16, %v7986_v27 }
 0x52a   : > { %v8543_v35 = vadd.f32 %v8419_v50, %v2722_v62 }
 0x52f   : > { %v2668_v42 = vpop.f32.mrf.mxu3 }
 0x530   : > { %v2723_v63 = vadd.f32 %v2668_v42, %v7990_v31 }
 0x532   : > { %v8546_v25 = vadd.f32 %v8419_v50, %v2723_v63 }
 0x533   : > { %v2862_v6 = vpop.f32.mrf.mxu0 }
 0x534   : > { %v2783_v54 = vpack.c.bf16 %v8546_v25, %v8543_v35  ;;  %v2863_v31 = vadd.f32 %v8550_v39, %v2862_v6 }
 0x536   : > { %6393 = vmatmul.msk.bf16.gmra.mxu0 %vm1847_vm9, %v2783_v54  ;;  %v2942_v60 = vmax.f32 %v2863_v31, 0.0 }
 0x537   : > { %v2671_v27 = vpop.f32.mrf.mxu3 }
 0x538   : > { %v2724_v15 = vadd.f32 %v2671_v27, %v8036_v26  ;;  %v6805_v26 = vld [vmem:[%s9897_s1 + $0x1e0] sm:$0xff] }
 0x539   : > { %3512 = vmatpush.bf16.msrb.mxu3 %v6805_v26 }
 0x53a   : > { %v8558_v24 = vadd.f32 %v8419_v50, %v2724_v15 }
 0x53b   : > { %v2864_v34 = vpop.f32.mrf.mxu0 }
 0x53c   : > { %v2865_v53 = vadd.f32 %v8550_v39, %v2864_v34 }
 0x53e   : > { %v2943_v46 = vmax.f32 %v2865_v53, 0.0 }
 0x53f   : > { %v2673_v20 = vpop.f32.mrf.mxu3 }
 0x540   : > { %v2982_v9 = vpack.c.bf16 %v2943_v46, %v2942_v60  ;;  %v2725_v36 = vadd.f32 %v2673_v20, %v8040_v51 }
 0x542   : > { %v8561_v40 = vadd.f32 %v8419_v50, %v2725_v36  ;;  %6417 = vmatmul.msk.bf16.vlgmr.msrb.gmra.mxu1 %vm471_vm2, %v2982_v9 }
 0x543   : > { %v2867_v16 = vpop.f32.mrf.mxu0 }
 0x544   : > { %v2784_v62 = vpack.c.bf16 %v8561_v40, %v8558_v24  ;;  %v2868_v42 = vadd.f32 %v8550_v39, %v2867_v16 }
 0x546   : > { %6394 = vmatmul.msk.bf16.gmra.mxu0 %vm1847_vm9, %v2784_v62  ;;  %v2944_v6 = vmax.f32 %v2868_v42, 0.0 }
 0x547   : > { %v2676_v51 = vpop.f32.mrf.mxu3 }
 0x548   : > { %v2726_v54 = vadd.f32 %v2676_v51, %v8084_v48 }
 0x54a   : > { %v8575_v60 = vadd.f32 %v8419_v50, %v2726_v54 }
 0x54b   : > { %v2869_v63 = vpop.f32.mrf.mxu0 }
 0x54c   : > { %v2870_v14 = vadd.f32 %v8550_v39, %v2869_v63 }
 0x54e   : > { %v2945_v27 = vmax.f32 %v2870_v14, 0.0 }
 0x54f   : > { %v2678_v31 = vpop.f32.mrf.mxu3 }
 0x550   : > { %v2983_v34 = vpack.c.bf16 %v2945_v27, %v2944_v6  ;;  %v2727_v53 = vadd.f32 %v2678_v31, %v8088_v41 }
 0x552   : > { %v8578_v15 = vadd.f32 %v8419_v50, %v2727_v53  ;;  %6418 = vmatmul.msk.bf16.gmra.mxu1 %vm471_vm2, %v2983_v34 }
 0x553   : > { %v2872_v46 = vpop.f32.mrf.mxu0 }
 0x554   : > { %v2785_v20 = vpack.c.bf16 %v8578_v15, %v8575_v60  ;;  %v2873_v9 = vadd.f32 %v8550_v39, %v2872_v46 }
 0x556   : > { %6395 = vmatmul.msk.bf16.gmra.mxu0 %vm1847_vm9, %v2785_v20  ;;  %v2946_v16 = vmax.f32 %v2873_v9, 0.0 }
 0x557   : > { %v2681_v48 = vpop.f32.mrf.mxu3 }
 0x558   : > { %v2728_v62 = vadd.f32 %v2681_v48, %v8129_v8 }
 0x55a   : > { %v8589_v14 = vadd.f32 %v8419_v50, %v2728_v62 }
 0x55b   : > { %v2874_v36 = vpop.f32.mrf.mxu0 }
 0x55c   : > { %v2875_v41 = vadd.f32 %v8550_v39, %v2874_v36 }
 0x55e   : > { %v2947_v26 = vmax.f32 %v2875_v41, 0.0  ;;  %v6798_v41 = vld [vmem:[%s9897_s1 + $0xc8] sm:$0xff] }
 0x55f   : > { %v2683_v51 = vpop.f32.mrf.mxu3  ;;  %3298 = vmatpush.bf16.msrb.mxu2 %v6798_v41 }
 0x560   : > { %v2984_v42 = vpack.c.bf16 %v2947_v26, %v2946_v16  ;;  %v2729_v63 = vadd.f32 %v2683_v51, %v8133_v11 }
 0x562   : > { %v8592_v6 = vadd.f32 %v8419_v50, %v2729_v63  ;;  %6419 = vmatmul.msk.bf16.gmra.mxu1 %vm471_vm2, %v2984_v42 }
 0x563   : > { %v2877_v54 = vpop.f32.mrf.mxu0 }
 0x564   : > { %v2786_v27 = vpack.c.bf16 %v8592_v6, %v8589_v14  ;;  %v2878_v31 = vadd.f32 %v8550_v39, %v2877_v54 }
 0x566   : > { %6396 = vmatmul.msk.bf16.gmra.mxu0 %vm1847_vm9, %v2786_v27  ;;  %v2948_v53 = vmax.f32 %v2878_v31, 0.0 }
 0x567   : > { %v2686_v8 = vpop.f32.mrf.mxu3 }
 0x568   : > { %v2730_v46 = vadd.f32 %v2686_v8, %v8177_v32 }
 0x56a   : > { %v8606_v16 = vadd.f32 %v8419_v50, %v2730_v46 }
 0x56b   : > { %v2879_v34 = vpop.f32.mrf.mxu0 }
 0x56c   : > { %v2880_v11 = vadd.f32 %v8550_v39, %v2879_v34 }
 0x56e   : > { %v2949_v20 = vmax.f32 %v2880_v11, 0.0 }
 0x56f   : > { %v2688_v48 = vpop.f32.mrf.mxu3 }
 0x570   : > { %v2985_v9 = vpack.c.bf16 %v2949_v20, %v2948_v53  ;;  %v2731_v36 = vadd.f32 %v2688_v48, %v8181_v7 }
 0x572   : > { %v8609_v62 = vadd.f32 %v8419_v50, %v2731_v36  ;;  %6420 = vmatmul.msk.bf16.gmra.mxu1 %vm471_vm2, %v2985_v9 }
 0x573   : > { %v2882_v26 = vpop.f32.mrf.mxu0 }
 0x574   : > { %v2787_v32 = vpack.c.bf16 %v8609_v62, %v8606_v16  ;;  %v2883_v51 = vadd.f32 %v8550_v39, %v2882_v26 }
 0x576   : > { %6397 = vmatmul.msk.bf16.gmra.mxu0 %vm1847_vm9, %v2787_v32  ;;  %v2950_v54 = vmax.f32 %v2883_v51, 0.0 }
 0x577   : > { %v2691_v7 = vpop.f32.mrf.mxu3 }
 0x578   : > { %v2732_v27 = vadd.f32 %v2691_v7, %v8222_v3  ;;  %v6804_v3 = vld [vmem:[%s9897_s1 + $0x1d8] sm:$0xff] }
 0x579   : > { %3513 = vmatpush.bf16.msrb.mxu3 %v6804_v3 }
 0x57a   : > { %v8620_v53 = vadd.f32 %v8419_v50, %v2732_v27 }
 0x57b   : > { %v2884_v42 = vpop.f32.mrf.mxu0 }
 0x57c   : > { %v2885_v63 = vadd.f32 %v8550_v39, %v2884_v42 }
 0x57e   : > { %v2951_v8 = vmax.f32 %v2885_v63, 0.0 }
 0x57f   : > { %v2693_v31 = vpop.f32.mrf.mxu3 }
 0x580   : > { %v2986_v34 = vpack.c.bf16 %v2951_v8, %v2950_v54  ;;  %v2733_v11 = vadd.f32 %v2693_v31, %v8226_v19 }
 0x582   : > { %v8623_v46 = vadd.f32 %v8419_v50, %v2733_v11  ;;  %6421 = vmatmul.msk.bf16.gmra.mxu1 %vm471_vm2, %v2986_v34 }
 0x583   : > { %v2887_v20 = vpop.f32.mrf.mxu0 }
 0x584   : > { %v2788_v48 = vpack.c.bf16 %v8623_v46, %v8620_v53  ;;  %v2888_v9 = vadd.f32 %v8550_v39, %v2887_v20 }
 0x586   : > { %6398 = vmatmul.msk.bf16.gmra.mxu0 %vm1847_vm9, %v2788_v48  ;;  %v2952_v26 = vmax.f32 %v2888_v9, 0.0 }
 0x587   : > { %v2696_v19 = vpop.f32.mrf.mxu3 }
 0x588   : > { %v2734_v32 = vadd.f32 %v2696_v19, %v8259_v2 }
 0x58a   : > { %v8637_v54 = vadd.f32 %v8419_v50, %v2734_v32 }
 0x58b   : > { %v2889_v36 = vpop.f32.mrf.mxu0 }
 0x58c   : > { %v2890_v41 = vadd.f32 %v8550_v39, %v2889_v36 }
 0x58e   : > { %v2953_v7 = vmax.f32 %v2890_v41, 0.0 }
 0x58f   : > { %v2698_v51 = vpop.f32.mrf.mxu3 }
 0x590   : > { %v2987_v42 = vpack.c.bf16 %v2953_v7, %v2952_v26  ;;  %v2735_v63 = vadd.f32 %v2698_v51, %v8263_v43 }
 0x592   : > { %v8640_v27 = vadd.f32 %v8419_v50, %v2735_v63  ;;  %6422 = vmatmul.msk.bf16.gmra.mxu1 %vm471_vm2, %v2987_v42 }
 0x593   : > { %v2892_v8 = vpop.f32.mrf.mxu0 }
 0x594   : > { %v2789_v31 = vpack.c.bf16 %v8640_v27, %v8637_v54  ;;  %v2893_v34 = vadd.f32 %v8550_v39, %v2892_v8 }
 0x596   : > { %6399 = vmatmul.msk.bf16.gmra.mxu0 %vm1847_vm9, %v2789_v31  ;;  %v2954_v20 = vmax.f32 %v2893_v34, 0.0 }
 0x597   : > { %v2701_v2 = vpop.f32.mrf.mxu3 }
 0x598   : > { %v2736_v48 = vadd.f32 %v2701_v2, %v8284_v10 }
 0x59a   : > { %v8651_v41 = vadd.f32 %v8419_v50, %v2736_v48 }
 0x59b   : > { %v2894_v11 = vpop.f32.mrf.mxu0 }
 0x59c   : > { %v2895_v43 = vadd.f32 %v8550_v39, %v2894_v11 }
 0x59e   : > { %v2955_v3 = vmax.f32 %v2895_v43, 0.0 }
 0x59f   : > { %v2703_v19 = vpop.f32.mrf.mxu3 }
 0x5a0   : > { %v2988_v9 = vpack.c.bf16 %v2955_v3, %v2954_v20  ;;  %v2737_v36 = vadd.f32 %v2703_v19, %v8288_v37  ;;  %v8665_v3 = vld [vmem:[#allocation2 + $0x6] ss:$0 sm:$0xff]  ;;  %v6803_v19 = vld [vmem:[%s9897_s1 + $0x1d0] sm:$0xff] }
 0x5a1   : > { %3514 = vmatpush.bf16.msrb.mxu3 %v6803_v19 }
 0x5a2   : > { %v8654_v26 = vadd.f32 %v8419_v50, %v2737_v36  ;;  %6423 = vmatmul.msk.bf16.gmra.mxu1 %vm471_vm2, %v2988_v9 }
 0x5a3   : > { %v2897_v32 = vpop.f32.mrf.mxu0 }
 0x5a4   : > { %v2790_v7 = vpack.c.bf16 %v8654_v26, %v8651_v41  ;;  %v2898_v10 = vadd.f32 %v8550_v39, %v2897_v32 }
 0x5a6   : > { %6400 = vmatmul.msk.bf16.gmra.mxu0 %vm1847_vm9, %v2790_v7  ;;  %v2956_v37 = vmax.f32 %v2898_v10, 0.0 }
 0x5ab   : > { %v2899_v51 = vpop.f32.mrf.mxu0 }
 0x5ac   : > { %v2900_v42 = vadd.f32 %v8550_v39, %v2899_v51 }
 0x5ae   : > { %v2957_v63 = vmax.f32 %v2900_v42, 0.0 }
 0x5b0   : > { %v2989_v8 = vpack.c.bf16 %v2957_v63, %v2956_v37 }
 0x5b2   : > { %6424 = vmatmul.msk.bf16.gmra.mxu1 %vm471_vm2, %v2989_v8 }
 0x5b3   : > { %v2902_v50 = vpop.f32.mrf.mxu0 }
 0x5b4   : > { %v2903_v31 = vadd.f32 %v8550_v39, %v2902_v50 }
 0x5b6   : > { %v2958_v11 = vmax.f32 %v2903_v31, 0.0 }
 0x5bb   : > { %v2904_v2 = vpop.f32.mrf.mxu0 }
 0x5bc   : > { %v2905_v34 = vadd.f32 %v8550_v39, %v2904_v2 }
 0x5be   : > { %v2959_v43 = vmax.f32 %v2905_v34, 0.0 }
 0x5bf   : > { %v3081_v20 = vpop.f32.mrf.mxu1 }
 0x5c0   : > { %v2990_v48 = vpack.c.bf16 %v2959_v43, %v2958_v11  ;;  %v3082_v36 = vadd.f32 %v8665_v3, %v3081_v20  ;;  %v3665_v11 = vld [vmem:[%s9897_s1 + $0x190] sm:$0x3] }
 0x5c1   : > { %v3689_v20 = vunpack.c.l.b16 %v3665_v11 }
 0x5c2   : > { %6425 = vmatmul.msk.bf16.gmra.mxu1 %vm471_vm2, %v2990_v48  ;;  %v3161_v10 = vmax.f32 %v3082_v36, 0.0 }
 0x5c3   : > { %v2907_v9 = vpop.f32.mrf.mxu0  ;;  %v3691_v48 = vpack.c.b16 %v3689_v20, %v3689_v20 }
 0x5c4   : > { %v2908_v51 = vadd.f32 %v8550_v39, %v2907_v9 }
 0x5c5   : > { %v3742_v36 = vsel %vm1958_vm3, %v3691_v48, 0 }
 0x5c6   : > { %v2960_v50 = vmax.f32 %v2908_v51, 0.0  ;;  %3750 = vmatpush.bf16.msrb.mxu0 %v3742_v36 }
 0x5c7   : > { %v3083_v32 = vpop.f32.mrf.mxu1 }
 0x5c8   : > { %v3084_v7 = vadd.f32 %v8665_v3, %v3083_v32 }
 0x5ca   : > { %v3162_v42 = vmax.f32 %v3084_v7, 0.0 }
 0x5cb   : > { %v2909_v37 = vpop.f32.mrf.mxu0 }
 0x5cc   : > { %v3201_v63 = vpack.c.bf16 %v3162_v42, %v3161_v10  ;;  %v2910_v8 = vadd.f32 %v8550_v39, %v2909_v37 }
 0x5ce   : > { %v2961_v31 = vmax.f32 %v2910_v8, 0.0  ;;  %6449 = vmatmul.msk.bf16.vlgmr.msrb.gmra.mxu2 %vm471_vm2, %v3201_v63 }
 0x5cf   : > { %v3086_v2 = vpop.f32.mrf.mxu1 }
 0x5d0   : > { %v2991_v34 = vpack.c.bf16 %v2961_v31, %v2960_v50  ;;  %v3087_v19 = vadd.f32 %v8665_v3, %v3086_v2 }
 0x5d2   : > { %6426 = vmatmul.msk.bf16.gmra.mxu1 %vm471_vm2, %v2991_v34  ;;  %v3163_v7 = vmax.f32 %v3087_v19, 0.0 }
 0x5d3   : > { %v2912_v43 = vpop.f32.mrf.mxu0 }
 0x5d4   : > { %v2913_v10 = vadd.f32 %v8550_v39, %v2912_v43 }
 0x5d6   : > { %v2962_v8 = vmax.f32 %v2913_v10, 0.0 }
 0x5d7   : > { %v3088_v9 = vpop.f32.mrf.mxu1 }
 0x5d8   : > { %v3089_v32 = vadd.f32 %v8665_v3, %v3088_v9 }
 0x5da   : > { %v3164_v51 = vmax.f32 %v3089_v32, 0.0 }
 0x5db   : > { %v2914_v42 = vpop.f32.mrf.mxu0 }
 0x5dc   : > { %v3202_v37 = vpack.c.bf16 %v3164_v51, %v3163_v7  ;;  %v2915_v63 = vadd.f32 %v8550_v39, %v2914_v42 }
 0x5de   : > { %v2963_v50 = vmax.f32 %v2915_v63, 0.0  ;;  %6450 = vmatmul.msk.bf16.gmra.mxu2 %vm471_vm2, %v3202_v37 }
 0x5df   : > { %v3091_v31 = vpop.f32.mrf.mxu1 }
 0x5e0   : > { %v2992_v2 = vpack.c.bf16 %v2963_v50, %v2962_v8  ;;  %v3092_v11 = vadd.f32 %v8665_v3, %v3091_v31 }
 0x5e2   : > { %6427 = vmatmul.msk.bf16.gmra.mxu1 %vm471_vm2, %v2992_v2  ;;  %v3165_v43 = vmax.f32 %v3092_v11, 0.0 }
 0x5e3   : > { %v2917_v34 = vpop.f32.mrf.mxu0 }
 0x5e4   : > { %v2918_v19 = vadd.f32 %v8550_v39, %v2917_v34 }
 0x5e6   : > { %v2964_v10 = vmax.f32 %v2918_v19, 0.0 }
 0x5e7   : > { %v3093_v20 = vpop.f32.mrf.mxu1 }
 0x5e8   : > { %v3094_v48 = vadd.f32 %v8665_v3, %v3093_v20 }
 0x5ea   : > { %v3166_v9 = vmax.f32 %v3094_v48, 0.0 }
 0x5eb   : > { %v2919_v36 = vpop.f32.mrf.mxu0 }
 0x5ec   : > { %v3203_v32 = vpack.c.bf16 %v3166_v9, %v3165_v43  ;;  %v2920_v7 = vadd.f32 %v8550_v39, %v2919_v36 }
 0x5ee   : > { %v2965_v51 = vmax.f32 %v2920_v7, 0.0  ;;  %6451 = vmatmul.msk.bf16.gmra.mxu2 %vm471_vm2, %v3203_v32  ;;  %v6802_v7 = vld [vmem:[%s9897_s1 + $0x1c8] sm:$0xff] }
 0x5ef   : > { %v3096_v42 = vpop.f32.mrf.mxu1  ;;  %3515 = vmatpush.bf16.msrb.mxu3 %v6802_v7 }
 0x5f0   : > { %v2993_v37 = vpack.c.bf16 %v2965_v51, %v2964_v10  ;;  %v3097_v8 = vadd.f32 %v8665_v3, %v3096_v42 }
 0x5f2   : > { %6428 = vmatmul.msk.bf16.gmra.mxu1 %vm471_vm2, %v2993_v37  ;;  %v3167_v2 = vmax.f32 %v3097_v8, 0.0 }
 0x5f3   : > { %v2922_v63 = vpop.f32.mrf.mxu0 }
 0x5f4   : > { %v2923_v34 = vadd.f32 %v8550_v39, %v2922_v63 }
 0x5f6   : > { %v2966_v19 = vmax.f32 %v2923_v34, 0.0 }
 0x5f7   : > { %v3098_v50 = vpop.f32.mrf.mxu1 }
 0x5f8   : > { %v3099_v31 = vadd.f32 %v8665_v3, %v3098_v50 }
 0x5fa   : > { %v3168_v11 = vmax.f32 %v3099_v31, 0.0 }
 0x5fb   : > { %v2924_v20 = vpop.f32.mrf.mxu0 }
 0x5fc   : > { %v3204_v48 = vpack.c.bf16 %v3168_v11, %v3167_v2  ;;  %v2925_v43 = vadd.f32 %v8550_v39, %v2924_v20 }
 0x5fe   : > { %v2967_v9 = vmax.f32 %v2925_v43, 0.0  ;;  %6452 = vmatmul.msk.bf16.gmra.mxu2 %vm471_vm2, %v3204_v48 }
 0x5ff   : > { %v3101_v36 = vpop.f32.mrf.mxu1 }
 0x600   : > { %v2994_v32 = vpack.c.bf16 %v2967_v9, %v2966_v19  ;;  %v3102_v51 = vadd.f32 %v8665_v3, %v3101_v36 }
 0x602   : > { %6429 = vmatmul.msk.bf16.gmra.mxu1 %vm471_vm2, %v2994_v32  ;;  %v3169_v63 = vmax.f32 %v3102_v51, 0.0 }
 0x603   : > { %v2927_v10 = vpop.f32.mrf.mxu0 }
 0x604   : > { %v2928_v8 = vadd.f32 %v8550_v39, %v2927_v10 }
 0x606   : > { %v2968_v11 = vmax.f32 %v2928_v8, 0.0 }
 0x607   : > { %v3103_v42 = vpop.f32.mrf.mxu1 }
 0x608   : > { %v3104_v37 = vadd.f32 %v8665_v3, %v3103_v42 }
 0x60a   : > { %v3170_v50 = vmax.f32 %v3104_v37, 0.0 }
 0x60b   : > { %v2929_v31 = vpop.f32.mrf.mxu0 }
 0x60c   : > { %v3205_v2 = vpack.c.bf16 %v3170_v50, %v3169_v63  ;;  %v2930_v34 = vadd.f32 %v8550_v39, %v2929_v31 }
 0x60e   : > { %v2969_v20 = vmax.f32 %v2930_v34, 0.0  ;;  %6453 = vmatmul.msk.bf16.gmra.mxu2 %vm471_vm2, %v3205_v2 }
 0x60f   : > { %v3106_v48 = vpop.f32.mrf.mxu1 }
 0x610   : > { %v2995_v43 = vpack.c.bf16 %v2969_v20, %v2968_v11  ;;  %v3107_v9 = vadd.f32 %v8665_v3, %v3106_v48 }
 0x612   : > { %6430 = vmatmul.msk.bf16.gmra.mxu1 %vm471_vm2, %v2995_v43  ;;  %v3171_v7 = vmax.f32 %v3107_v9, 0.0 }
 0x613   : > { %v2932_v19 = vpop.f32.mrf.mxu0 }
 0x614   : > { %v2933_v10 = vadd.f32 %v8550_v39, %v2932_v19 }
 0x616   : > { %v2970_v8 = vmax.f32 %v2933_v10, 0.0 }
 0x617   : > { %v3108_v36 = vpop.f32.mrf.mxu1 }
 0x618   : > { %v3109_v32 = vadd.f32 %v8665_v3, %v3108_v36 }
 0x61a   : > { %v3172_v51 = vmax.f32 %v3109_v32, 0.0 }
 0x61b   : > { %v2934_v42 = vpop.f32.mrf.mxu0 }
 0x61c   : > { %v3206_v37 = vpack.c.bf16 %v3172_v51, %v3171_v7  ;;  %v2935_v63 = vadd.f32 %v8550_v39, %v2934_v42 }
 0x61e   : > { %v2971_v50 = vmax.f32 %v2935_v63, 0.0  ;;  %6454 = vmatmul.msk.bf16.gmra.mxu2 %vm471_vm2, %v3206_v37 }
 0x61f   : > { %v3111_v31 = vpop.f32.mrf.mxu1 }
 0x620   : > { %v2996_v2 = vpack.c.bf16 %v2971_v50, %v2970_v8  ;;  %v3112_v11 = vadd.f32 %v8665_v3, %v3111_v31 }
 0x622   : > { %6431 = vmatmul.msk.bf16.gmra.mxu1 %vm471_vm2, %v2996_v2  ;;  %v3173_v43 = vmax.f32 %v3112_v11, 0.0 }
 0x623   : > { %v2937_v34 = vpop.f32.mrf.mxu0 }
 0x624   : > { %v2938_v19 = vadd.f32 %v8550_v39, %v2937_v34 }
 0x626   : > { %v2972_v10 = vmax.f32 %v2938_v19, 0.0 }
 0x627   : > { %v3113_v20 = vpop.f32.mrf.mxu1 }
 0x628   : > { %v3114_v48 = vadd.f32 %v8665_v3, %v3113_v20 }
 0x62a   : > { %v3174_v9 = vmax.f32 %v3114_v48, 0.0 }
 0x62b   : > { %v2939_v36 = vpop.f32.mrf.mxu0 }
 0x62c   : > { %v3207_v32 = vpack.c.bf16 %v3174_v9, %v3173_v43  ;;  %v2940_v7 = vadd.f32 %v8550_v39, %v2939_v36 }
 0x62e   : > { %v2973_v51 = vmax.f32 %v2940_v7, 0.0  ;;  %6455 = vmatmul.msk.bf16.gmra.mxu2 %vm471_vm2, %v3207_v32  ;;  %v8726_v7 = vld [vmem:[#allocation2 + $0x7] ss:$0 sm:$0xff] }
 0x62f   : > { %v3116_v42 = vpop.f32.mrf.mxu1 }
 0x630   : > { %v2997_v37 = vpack.c.bf16 %v2973_v51, %v2972_v10  ;;  %v3117_v63 = vadd.f32 %v8665_v3, %v3116_v42  ;;  %v6806_v10 = vld [vmem:[%s9897_s1 + $0x188] sm:$0xff] }
 0x631   : > { %3751 = vmatpush.bf16.msrb.mxu0 %v6806_v10 }
 0x632   : > { %6432 = vmatmul.msk.bf16.gmra.mxu1 %vm471_vm2, %v2997_v37  ;;  %v3175_v31 = vmax.f32 %v3117_v63, 0.0 }
 0x637   : > { %v3118_v8 = vpop.f32.mrf.mxu1 }
 0x638   : > { %v3119_v50 = vadd.f32 %v8665_v3, %v3118_v8 }
 0x63a   : > { %v3176_v2 = vmax.f32 %v3119_v50, 0.0 }
 0x63c   : > { %v3208_v34 = vpack.c.bf16 %v3176_v2, %v3175_v31 }
 0x63e   : > { %6456 = vmatmul.msk.bf16.gmra.mxu2 %vm471_vm2, %v3208_v34 }
 0x63f   : > { %v3121_v11 = vpop.f32.mrf.mxu1 }
 0x640   : > { %v3122_v39 = vadd.f32 %v8665_v3, %v3121_v11 }
 0x642   : > { %v3177_v43 = vmax.f32 %v3122_v39, 0.0 }
 0x647   : > { %v3123_v20 = vpop.f32.mrf.mxu1 }
 0x648   : > { %v3124_v48 = vadd.f32 %v8665_v3, %v3123_v20 }
 0x64a   : > { %v3178_v19 = vmax.f32 %v3124_v48, 0.0  ;;  %v6810_v48 = vld [vmem:[%s9897_s1 + $0x100] sm:$0xff] }
 0x64b   : > { %3967 = vmatpush.bf16.msra.mxu1 %v6810_v48 }
 0x64c   : > { %v3209_v9 = vpack.c.bf16 %v3178_v19, %v3177_v43 }
 0x64e   : > { %6457 = vmatmul.msk.bf16.gmra.mxu2 %vm471_vm2, %v3209_v9 }
 0x64f   : > { %v3126_v36 = vpop.f32.mrf.mxu1 }
 0x650   : > { %v3127_v51 = vadd.f32 %v8665_v3, %v3126_v36 }
 0x651   : > { %v3300_v32 = vpop.f32.mrf.mxu2 }
 0x652   : > { %v3301_v37 = vadd.f32 %v8726_v7, %v3300_v32  ;;  %v3179_v50 = vmax.f32 %v3127_v51, 0.0 }
 0x654   : > { %v3380_v34 = vmax.f32 %v3301_v37, 0.0 }
 0x657   : > { %v3128_v42 = vpop.f32.mrf.mxu1 }
 0x658   : > { %v3129_v63 = vadd.f32 %v8665_v3, %v3128_v42 }
 0x659   : > { %v3302_v8 = vpop.f32.mrf.mxu2 }
 0x65a   : > { %v3180_v31 = vmax.f32 %v3129_v63, 0.0  ;;  %v3303_v2 = vadd.f32 %v8726_v7, %v3302_v8 }
 0x65c   : > { %v3210_v11 = vpack.c.bf16 %v3180_v31, %v3179_v50  ;;  %v3381_v39 = vmax.f32 %v3303_v2, 0.0 }
 0x65e   : > { %v3420_v20 = vpack.c.bf16 %v3381_v39, %v3380_v34  ;;  %6458 = vmatmul.msk.bf16.gmra.mxu2 %vm471_vm2, %v3210_v11 }
 0x65f   : > { %v3131_v43 = vpop.f32.mrf.mxu1 }
 0x660   : > { %6481 = vmatmul.msk.bf16.vlgmr.msrb.gmra.mxu3 %vm471_vm2, %v3420_v20  ;;  %v3132_v9 = vadd.f32 %v8665_v3, %v3131_v43 }
 0x661   : > { %v3305_v19 = vpop.f32.mrf.mxu2 }
 0x662   : > { %v3306_v32 = vadd.f32 %v8726_v7, %v3305_v19  ;;  %v3181_v42 = vmax.f32 %v3132_v9, 0.0 }
 0x664   : > { %v3382_v8 = vmax.f32 %v3306_v32, 0.0 }
 0x667   : > { %v3133_v36 = vpop.f32.mrf.mxu1 }
 0x668   : > { %v3134_v10 = vadd.f32 %v8665_v3, %v3133_v36 }
 0x669   : > { %v3307_v51 = vpop.f32.mrf.mxu2 }
 0x66a   : > { %v3182_v37 = vmax.f32 %v3134_v10, 0.0  ;;  %v3308_v63 = vadd.f32 %v8726_v7, %v3307_v51 }
 0x66c   : > { %v3211_v50 = vpack.c.bf16 %v3182_v37, %v3181_v42  ;;  %v3383_v31 = vmax.f32 %v3308_v63, 0.0 }
 0x66e   : > { %v3421_v2 = vpack.c.bf16 %v3383_v31, %v3382_v8  ;;  %6459 = vmatmul.msk.bf16.gmra.mxu2 %vm471_vm2, %v3211_v50 }
 0x66f   : > { %v3136_v34 = vpop.f32.mrf.mxu1 }
 0x670   : > { %6482 = vmatmul.msk.bf16.gmra.mxu3 %vm471_vm2, %v3421_v2  ;;  %v3137_v39 = vadd.f32 %v8665_v3, %v3136_v34 }
 0x671   : > { %v3310_v11 = vpop.f32.mrf.mxu2 }
 0x672   : > { %v3311_v48 = vadd.f32 %v8726_v7, %v3310_v11  ;;  %v3183_v9 = vmax.f32 %v3137_v39, 0.0 }
 0x674   : > { %v3384_v10 = vmax.f32 %v3311_v48, 0.0 }
 0x677   : > { %v3138_v20 = vpop.f32.mrf.mxu1 }
 0x678   : > { %v3139_v43 = vadd.f32 %v8665_v3, %v3138_v20 }
 0x679   : > { %v3312_v19 = vpop.f32.mrf.mxu2 }
 0x67a   : > { %v3184_v36 = vmax.f32 %v3139_v43, 0.0  ;;  %v3313_v32 = vadd.f32 %v8726_v7, %v3312_v19 }
 0x67c   : > { %v3212_v51 = vpack.c.bf16 %v3184_v36, %v3183_v9  ;;  %v3385_v42 = vmax.f32 %v3313_v32, 0.0 }
 0x67e   : > { %v3422_v37 = vpack.c.bf16 %v3385_v42, %v3384_v10  ;;  %6460 = vmatmul.msk.bf16.gmra.mxu2 %vm471_vm2, %v3212_v51 }
 0x67f   : > { %v3141_v63 = vpop.f32.mrf.mxu1 }
 0x680   : > { %6483 = vmatmul.msk.bf16.gmra.mxu3 %vm471_vm2, %v3422_v37  ;;  %v3142_v50 = vadd.f32 %v8665_v3, %v3141_v63 }
 0x681   : > { %v3315_v8 = vpop.f32.mrf.mxu2 }
 0x682   : > { %v3316_v2 = vadd.f32 %v8726_v7, %v3315_v8  ;;  %v3185_v39 = vmax.f32 %v3142_v50, 0.0 }
 0x684   : > { %v3386_v43 = vmax.f32 %v3316_v2, 0.0 }
 0x687   : > { %v3143_v31 = vpop.f32.mrf.mxu1 }
 0x688   : > { %v3144_v34 = vadd.f32 %v8665_v3, %v3143_v31 }
 0x689   : > { %v3317_v11 = vpop.f32.mrf.mxu2 }
 0x68a   : > { %v3186_v20 = vmax.f32 %v3144_v34, 0.0  ;;  %v3318_v48 = vadd.f32 %v8726_v7, %v3317_v11 }
 0x68c   : > { %v3213_v19 = vpack.c.bf16 %v3186_v20, %v3185_v39  ;;  %v3387_v9 = vmax.f32 %v3318_v48, 0.0  ;;  %v6809_v48 = vld [vmem:[%s9897_s1 + $0xf8] sm:$0xff] }
 0x68d   : > { %3968 = vmatpush.bf16.msra.mxu1 %v6809_v48 }
 0x68e   : > { %v3423_v36 = vpack.c.bf16 %v3387_v9, %v3386_v43  ;;  %6461 = vmatmul.msk.bf16.gmra.mxu2 %vm471_vm2, %v3213_v19 }
 0x68f   : > { %v3146_v32 = vpop.f32.mrf.mxu1 }
 0x690   : > { %6484 = vmatmul.msk.bf16.gmra.mxu3 %vm471_vm2, %v3423_v36  ;;  %v3147_v51 = vadd.f32 %v8665_v3, %v3146_v32 }
 0x691   : > { %v3320_v10 = vpop.f32.mrf.mxu2 }
 0x692   : > { %v3321_v37 = vadd.f32 %v8726_v7, %v3320_v10  ;;  %v3187_v50 = vmax.f32 %v3147_v51, 0.0 }
 0x694   : > { %v3388_v34 = vmax.f32 %v3321_v37, 0.0 }
 0x697   : > { %v3148_v42 = vpop.f32.mrf.mxu1 }
 0x698   : > { %v3149_v63 = vadd.f32 %v8665_v3, %v3148_v42 }
 0x699   : > { %v3322_v8 = vpop.f32.mrf.mxu2 }
 0x69a   : > { %v3188_v31 = vmax.f32 %v3149_v63, 0.0  ;;  %v3323_v2 = vadd.f32 %v8726_v7, %v3322_v8 }
 0x69c   : > { %v3214_v11 = vpack.c.bf16 %v3188_v31, %v3187_v50  ;;  %v3389_v39 = vmax.f32 %v3323_v2, 0.0 }
 0x69e   : > { %v3424_v20 = vpack.c.bf16 %v3389_v39, %v3388_v34  ;;  %6462 = vmatmul.msk.bf16.gmra.mxu2 %vm471_vm2, %v3214_v11 }
 0x69f   : > { %v3151_v43 = vpop.f32.mrf.mxu1 }
 0x6a0   : > { %6485 = vmatmul.msk.bf16.gmra.mxu3 %vm471_vm2, %v3424_v20  ;;  %v3152_v9 = vadd.f32 %v8665_v3, %v3151_v43 }
 0x6a1   : > { %v3325_v19 = vpop.f32.mrf.mxu2 }
 0x6a2   : > { %v3326_v32 = vadd.f32 %v8726_v7, %v3325_v19  ;;  %v3189_v42 = vmax.f32 %v3152_v9, 0.0 }
 0x6a4   : > { %v3390_v8 = vmax.f32 %v3326_v32, 0.0 }
 0x6a7   : > { %v3153_v36 = vpop.f32.mrf.mxu1 }
 0x6a8   : > { %v3154_v10 = vadd.f32 %v8665_v3, %v3153_v36 }
 0x6a9   : > { %v3327_v51 = vpop.f32.mrf.mxu2 }
 0x6aa   : > { %v3190_v37 = vmax.f32 %v3154_v10, 0.0  ;;  %v3328_v63 = vadd.f32 %v8726_v7, %v3327_v51 }
 0x6ac   : > { %v3215_v50 = vpack.c.bf16 %v3190_v37, %v3189_v42  ;;  %v3391_v31 = vmax.f32 %v3328_v63, 0.0 }
 0x6ae   : > { %v3425_v2 = vpack.c.bf16 %v3391_v31, %v3390_v8  ;;  %6463 = vmatmul.msk.bf16.gmra.mxu2 %vm471_vm2, %v3215_v50 }
 0x6af   : > { %v3156_v34 = vpop.f32.mrf.mxu1 }
 0x6b0   : > { %6486 = vmatmul.msk.bf16.gmra.mxu3 %vm471_vm2, %v3425_v2  ;;  %v3157_v39 = vadd.f32 %v8665_v3, %v3156_v34 }
 0x6b1   : > { %v3330_v11 = vpop.f32.mrf.mxu2 }
 0x6b2   : > { %v3331_v48 = vadd.f32 %v8726_v7, %v3330_v11  ;;  %v3191_v9 = vmax.f32 %v3157_v39, 0.0 }
 0x6b4   : > { %v3392_v10 = vmax.f32 %v3331_v48, 0.0 }
 0x6b7   : > { %v3158_v20 = vpop.f32.mrf.mxu1 }
 0x6b8   : > { %v3159_v43 = vadd.f32 %v8665_v3, %v3158_v20 }
 0x6b9   : > { %v3332_v19 = vpop.f32.mrf.mxu2 }
 0x6ba   : > { %v3192_v36 = vmax.f32 %v3159_v43, 0.0  ;;  %v3333_v32 = vadd.f32 %v8726_v7, %v3332_v19 }
 0x6bc   : > { %v3216_v51 = vpack.c.bf16 %v3192_v36, %v3191_v9  ;;  %v3393_v42 = vmax.f32 %v3333_v32, 0.0  ;;  %v6808_v36 = vld [vmem:[%s9897_s1 + $0xf0] sm:$0xff] }
 0x6bd   : > { %3969 = vmatpush.bf16.msra.mxu1 %v6808_v36 }
 0x6be   : > { %v3426_v37 = vpack.c.bf16 %v3393_v42, %v3392_v10  ;;  %6464 = vmatmul.msk.bf16.gmra.mxu2 %vm471_vm2, %v3216_v51 }
 0x6c0   : > { %6487 = vmatmul.msk.bf16.gmra.mxu3 %vm471_vm2, %v3426_v37 }
 0x6c1   : > { %v3335_v63 = vpop.f32.mrf.mxu2 }
 0x6c2   : > { %v3336_v8 = vadd.f32 %v8726_v7, %v3335_v63  ;;  %v8790_v63 = vld [vmem:[#allocation2 + $0x11] ss:$0 sm:$0xff] }
 0x6c4   : > { %v3394_v3 = vmax.f32 %v3336_v8, 0.0 }
 0x6c9   : > { %v3337_v50 = vpop.f32.mrf.mxu2 }
 0x6ca   : > { %v3338_v31 = vadd.f32 %v8726_v7, %v3337_v50 }
 0x6cc   : > { %v3395_v2 = vmax.f32 %v3338_v31, 0.0 }
 0x6ce   : > { %v3427_v34 = vpack.c.bf16 %v3395_v2, %v3394_v3 }
 0x6d0   : > { %6488 = vmatmul.msk.bf16.gmra.mxu3 %vm471_vm2, %v3427_v34 }
 0x6d1   : > { %v3340_v11 = vpop.f32.mrf.mxu2 }
 0x6d2   : > { %v3341_v39 = vadd.f32 %v8726_v7, %v3340_v11 }
 0x6d4   : > { %v3396_v43 = vmax.f32 %v3341_v39, 0.0 }
 0x6d9   : > { %v3342_v20 = vpop.f32.mrf.mxu2 }
 0x6da   : > { %v3343_v48 = vadd.f32 %v8726_v7, %v3342_v20 }
 0x6dc   : > { %v3397_v19 = vmax.f32 %v3343_v48, 0.0 }
 0x6de   : > { %v3428_v9 = vpack.c.bf16 %v3397_v19, %v3396_v43 }
 0x6e0   : > { %6489 = vmatmul.msk.bf16.gmra.mxu3 %vm471_vm2, %v3428_v9 }
 0x6e1   : > { %v3345_v32 = vpop.f32.mrf.mxu2 }
 0x6e2   : > { %v3346_v51 = vadd.f32 %v8726_v7, %v3345_v32 }
 0x6e3   : > { %v3517_v10 = vpop.f32.mrf.mxu3 }
 0x6e4   : > { %v3597_v37 = vadd.f32 %v3517_v10, %v8424_v4  ;;  %v3398_v31 = vmax.f32 %v3346_v51, 0.0  ;;  %v6814_v4 = vld [vmem:[%s9897_s1 + $0x120] sm:$0xff] }
 0x6e5   : > { %4186 = vmatpush.bf16.msra.mxu2 %v6814_v4 }
 0x6e6   : > { %v8795_v34 = vadd.f32 %v8790_v63, %v3597_v37 }
 0x6e9   : > { %v3347_v42 = vpop.f32.mrf.mxu2 }
 0x6ea   : > { %v3348_v8 = vadd.f32 %v8726_v7, %v3347_v42 }
 0x6eb   : > { %v3519_v50 = vpop.f32.mrf.mxu3 }
 0x6ec   : > { %v3399_v3 = vmax.f32 %v3348_v8, 0.0  ;;  %v3598_v2 = vadd.f32 %v3519_v50, %v8427_v44 }
 0x6ee   : > { %v3429_v11 = vpack.c.bf16 %v3399_v3, %v3398_v31  ;;  %v8798_v39 = vadd.f32 %v8790_v63, %v3598_v2 }
 0x6f0   : > { %v3666_v20 = vpack.c.bf16 %v8798_v39, %v8795_v34  ;;  %6490 = vmatmul.msk.bf16.gmra.mxu3 %vm471_vm2, %v3429_v11 }
 0x6f1   : > { %v3350_v48 = vpop.f32.mrf.mxu2 }
 0x6f2   : > { %6501 = vmatmul.msk.bf16.vlgmr.msrb.gmra.mxu0 %vm1847_vm9, %v3666_v20  ;;  %v3351_v43 = vadd.f32 %v8726_v7, %v3350_v48 }
 0x6f3   : > { %v3522_v44 = vpop.f32.mrf.mxu3 }
 0x6f4   : > { %v3599_v9 = vadd.f32 %v3522_v44, %v8441_v28  ;;  %v3400_v10 = vmax.f32 %v3351_v43, 0.0 }
 0x6f6   : > { %v8812_v37 = vadd.f32 %v8790_v63, %v3599_v9 }
 0x6f9   : > { %v3352_v19 = vpop.f32.mrf.mxu2 }
 0x6fa   : > { %v3353_v36 = vadd.f32 %v8726_v7, %v3352_v19 }
 0x6fb   : > { %v3524_v32 = vpop.f32.mrf.mxu3 }
 0x6fc   : > { %v3401_v51 = vmax.f32 %v3353_v36, 0.0  ;;  %v3600_v42 = vadd.f32 %v3524_v32, %v8444_v58 }
 0x6fe   : > { %v3430_v8 = vpack.c.bf16 %v3401_v51, %v3400_v10  ;;  %v8815_v50 = vadd.f32 %v8790_v63, %v3600_v42 }
 0x700   : > { %v3667_v31 = vpack.c.bf16 %v8815_v50, %v8812_v37  ;;  %6491 = vmatmul.msk.bf16.gmra.mxu3 %vm471_vm2, %v3430_v8 }
 0x701   : > { %v3355_v28 = vpop.f32.mrf.mxu2 }
 0x702   : > { %6502 = vmatmul.msk.bf16.gmra.mxu0 %vm1847_vm9, %v3667_v31  ;;  %v3356_v2 = vadd.f32 %v8726_v7, %v3355_v28 }
 0x703   : > { %v3527_v3 = vpop.f32.mrf.mxu3 }
 0x704   : > { %v3601_v58 = vadd.f32 %v3527_v3, %v8455_v22  ;;  %v3402_v48 = vmax.f32 %v3356_v2, 0.0 }
 0x706   : > { %v8826_v19 = vadd.f32 %v8790_v63, %v3601_v58 }
 0x709   : > { %v3357_v11 = vpop.f32.mrf.mxu2 }
 0x70a   : > { %v3358_v4 = vadd.f32 %v8726_v7, %v3357_v11 }
 0x70b   : > { %v3529_v20 = vpop.f32.mrf.mxu3 }
 0x70c   : > { %v3403_v44 = vmax.f32 %v3358_v4, 0.0  ;;  %v3602_v43 = vadd.f32 %v3529_v20, %v8458_v12 }
 0x70e   : > { %v3431_v9 = vpack.c.bf16 %v3403_v44, %v3402_v48  ;;  %v8829_v36 = vadd.f32 %v8790_v63, %v3602_v43 }
 0x710   : > { %v3668_v32 = vpack.c.bf16 %v8829_v36, %v8826_v19  ;;  %6492 = vmatmul.msk.bf16.gmra.mxu3 %vm471_vm2, %v3431_v9 }
 0x711   : > { %v3360_v22 = vpop.f32.mrf.mxu2 }
 0x712   : > { %6503 = vmatmul.msk.bf16.gmra.mxu0 %vm1847_vm9, %v3668_v32  ;;  %v3361_v51 = vadd.f32 %v8726_v7, %v3360_v22 }
 0x713   : > { %v3532_v10 = vpop.f32.mrf.mxu3 }
 0x714   : > { %v3603_v12 = vadd.f32 %v3532_v10, %v8469_v45  ;;  %v3404_v28 = vmax.f32 %v3361_v51, 0.0  ;;  %v6807_v45 = vld [vmem:[%s9897_s1 + $0xe8] sm:$0xff] }
 0x715   : > { %3970 = vmatpush.bf16.msra.mxu1 %v6807_v45 }
 0x716   : > { %v8840_v11 = vadd.f32 %v8790_v63, %v3603_v12 }
 0x719   : > { %v3362_v42 = vpop.f32.mrf.mxu2 }
 0x71a   : > { %v3363_v8 = vadd.f32 %v8726_v7, %v3362_v42 }
 0x71b   : > { %v3534_v31 = vpop.f32.mrf.mxu3 }
 0x71c   : > { %v3405_v3 = vmax.f32 %v3363_v8, 0.0  ;;  %v3604_v2 = vadd.f32 %v3534_v31, %v8472_v17 }
 0x71e   : > { %v3432_v58 = vpack.c.bf16 %v3405_v3, %v3404_v28  ;;  %v8843_v4 = vadd.f32 %v8790_v63, %v3604_v2  ;;  %v6813_v28 = vld [vmem:[%s9897_s1 + $0x118] sm:$0xff] }
 0x71f   : > { %4187 = vmatpush.bf16.msra.mxu2 %v6813_v28 }
 0x720   : > { %v3669_v20 = vpack.c.bf16 %v8843_v4, %v8840_v11  ;;  %6493 = vmatmul.msk.bf16.gmra.mxu3 %vm471_vm2, %v3432_v58 }
 0x721   : > { %v3365_v48 = vpop.f32.mrf.mxu2 }
 0x722   : > { %6504 = vmatmul.msk.bf16.gmra.mxu0 %vm1847_vm9, %v3669_v20  ;;  %v3366_v44 = vadd.f32 %v8726_v7, %v3365_v48 }
 0x723   : > { %v3537_v17 = vpop.f32.mrf.mxu3 }
 0x724   : > { %v3605_v9 = vadd.f32 %v3537_v17, %v8486_v38  ;;  %v3406_v10 = vmax.f32 %v3366_v44, 0.0 }
 0x726   : > { %v8857_v12 = vadd.f32 %v8790_v63, %v3605_v9 }
 0x729   : > { %v3367_v43 = vpop.f32.mrf.mxu2 }
 0x72a   : > { %v3368_v32 = vadd.f32 %v8726_v7, %v3367_v43 }
 0x72b   : > { %v3539_v22 = vpop.f32.mrf.mxu3 }
 0x72c   : > { %v3407_v51 = vmax.f32 %v3368_v32, 0.0  ;;  %v3606_v42 = vadd.f32 %v3539_v22, %v8489_v55 }
 0x72e   : > { %v3433_v8 = vpack.c.bf16 %v3407_v51, %v3406_v10  ;;  %v8860_v31 = vadd.f32 %v8790_v63, %v3606_v42 }
 0x730   : > { %v3670_v38 = vpack.c.bf16 %v8860_v31, %v8857_v12  ;;  %6494 = vmatmul.msk.bf16.gmra.mxu3 %vm471_vm2, %v3433_v8 }
 0x731   : > { %v3370_v3 = vpop.f32.mrf.mxu2 }
 0x732   : > { %6505 = vmatmul.msk.bf16.gmra.mxu0 %vm1847_vm9, %v3670_v38  ;;  %v3371_v2 = vadd.f32 %v8726_v7, %v3370_v3 }
 0x733   : > { %v3542_v55 = vpop.f32.mrf.mxu3 }
 0x734   : > { %v3607_v20 = vadd.f32 %v3542_v55, %v8503_v49  ;;  %v3408_v17 = vmax.f32 %v3371_v2, 0.0 }
 0x736   : > { %v8874_v9 = vadd.f32 %v8790_v63, %v3607_v20 }
 0x739   : > { %v3372_v58 = vpop.f32.mrf.mxu2 }
 0x73a   : > { %v3373_v45 = vadd.f32 %v8726_v7, %v3372_v58 }
 0x73b   : > { %v3544_v48 = vpop.f32.mrf.mxu3 }
 0x73c   : > { %v3409_v44 = vmax.f32 %v3373_v45, 0.0  ;;  %v3608_v43 = vadd.f32 %v3544_v48, %v8506_v61 }
 0x73e   : > { %v3434_v32 = vpack.c.bf16 %v3409_v44, %v3408_v17  ;;  %v8877_v22 = vadd.f32 %v8790_v63, %v3608_v43 }
 0x740   : > { %v3671_v10 = vpack.c.bf16 %v8877_v22, %v8874_v9  ;;  %6495 = vmatmul.msk.bf16.gmra.mxu3 %vm471_vm2, %v3434_v32 }
 0x741   : > { %v3375_v49 = vpop.f32.mrf.mxu2 }
 0x742   : > { %6506 = vmatmul.msk.bf16.gmra.mxu0 %vm1847_vm9, %v3671_v10  ;;  %v3376_v42 = vadd.f32 %v8726_v7, %v3375_v49 }
 0x743   : > { %v3547_v51 = vpop.f32.mrf.mxu3 }
 0x744   : > { %v3609_v61 = vadd.f32 %v3547_v51, %v8517_v5  ;;  %v3410_v3 = vmax.f32 %v3376_v42, 0.0 }
 0x746   : > { %v8888_v58 = vadd.f32 %v8790_v63, %v3609_v61 }
 0x749   : > { %v3377_v8 = vpop.f32.mrf.mxu2 }
 0x74a   : > { %v3378_v28 = vadd.f32 %v8726_v7, %v3377_v8 }
 0x74b   : > { %v3549_v38 = vpop.f32.mrf.mxu3 }
 0x74c   : > { %v3411_v55 = vmax.f32 %v3378_v28, 0.0  ;;  %v3610_v2 = vadd.f32 %v3549_v38, %v8520_v23  ;;  %v8921_v38 = vld [vmem:[#allocation2 + $0xe] ss:$0 sm:$0xff] }
 0x74e   : > { %v3435_v20 = vpack.c.bf16 %v3411_v55, %v3410_v3  ;;  %v8891_v45 = vadd.f32 %v8790_v63, %v3610_v2 }
 0x750   : > { %v3672_v48 = vpack.c.bf16 %v8891_v45, %v8888_v58  ;;  %6496 = vmatmul.msk.bf16.gmra.mxu3 %vm471_vm2, %v3435_v20 }
 0x752   : > { %6507 = vmatmul.msk.bf16.gmra.mxu0 %vm1847_vm9, %v3672_v48 }
 0x753   : > { %v3552_v5 = vpop.f32.mrf.mxu3 }
 0x754   : > { %v3611_v7 = vadd.f32 %v3552_v5, %v8529_v21 }
 0x756   : > { %v8900_v44 = vadd.f32 %v8790_v63, %v3611_v7 }
 0x75b   : > { %v3554_v17 = vpop.f32.mrf.mxu3 }
 0x75c   : > { %v3612_v23 = vadd.f32 %v3554_v17, %v8532_v18  ;;  %v6812_v18 = vld [vmem:[%s9897_s1 + $0x110] sm:$0xff] }
 0x75d   : > { %4188 = vmatpush.bf16.msra.mxu2 %v6812_v18 }
 0x75e   : > { %v8903_v43 = vadd.f32 %v8790_v63, %v3612_v23 }
 0x760   : > { %v3673_v32 = vpack.c.bf16 %v8903_v43, %v8900_v44 }
 0x762   : > { %6508 = vmatmul.msk.bf16.gmra.mxu0 %vm1847_vm9, %v3673_v32 }
 0x763   : > { %v3557_v10 = vpop.f32.mrf.mxu3 }
 0x764   : > { %v3613_v49 = vadd.f32 %v3557_v10, %v8543_v35 }
 0x766   : > { %v8914_v42 = vadd.f32 %v8790_v63, %v3613_v49 }
 0x76b   : > { %v3559_v51 = vpop.f32.mrf.mxu3 }
 0x76c   : > { %v3614_v21 = vadd.f32 %v3559_v51, %v8546_v25 }
 0x76e   : > { %v8917_v8 = vadd.f32 %v8790_v63, %v3614_v21 }
 0x76f   : > { %v3753_v61 = vpop.f32.mrf.mxu0 }
 0x770   : > { %v3674_v28 = vpack.c.bf16 %v8917_v8, %v8914_v42  ;;  %v3754_v25 = vadd.f32 %v8921_v38, %v3753_v61 }
 0x772   : > { %6509 = vmatmul.msk.bf16.gmra.mxu0 %vm1847_vm9, %v3674_v28  ;;  %v3833_v2 = vmax.f32 %v3754_v25, 0.0 }
 0x773   : > { %v3562_v35 = vpop.f32.mrf.mxu3 }
 0x774   : > { %v3615_v20 = vadd.f32 %v3562_v35, %v8558_v24  ;;  %v6818_v24 = vld [vmem:[%s9897_s1 + $0x200] sm:$0xff] }
 0x775   : > { %4403 = vmatpush.bf16.msra.mxu3 %v6818_v24 }
 0x776   : > { %v8929_v23 = vadd.f32 %v8790_v63, %v3615_v20 }
 0x777   : > { %v3755_v3 = vpop.f32.mrf.mxu0 }
 0x778   : > { %v3756_v55 = vadd.f32 %v8921_v38, %v3755_v3 }
 0x77a   : > { %v3834_v48 = vmax.f32 %v3756_v55, 0.0 }
 0x77b   : > { %v3564_v5 = vpop.f32.mrf.mxu3 }
 0x77c   : > { %v3873_v7 = vpack.c.bf16 %v3834_v48, %v3833_v2  ;;  %v3616_v17 = vadd.f32 %v3564_v5, %v8561_v40 }
 0x77e   : > { %v8932_v32 = vadd.f32 %v8790_v63, %v3616_v17  ;;  %6533 = vmatmul.msk.bf16.vlgmr.msra.gmra.mxu1 %vm471_vm2, %v3873_v7 }
 0x77f   : > { %v3758_v10 = vpop.f32.mrf.mxu0 }
 0x780   : > { %v3675_v49 = vpack.c.bf16 %v8932_v32, %v8929_v23  ;;  %v3759_v51 = vadd.f32 %v8921_v38, %v3758_v10 }
 0x782   : > { %6510 = vmatmul.msk.bf16.gmra.mxu0 %vm1847_vm9, %v3675_v49  ;;  %v3835_v61 = vmax.f32 %v3759_v51, 0.0 }
 0x783   : > { %v3567_v40 = vpop.f32.mrf.mxu3 }
 0x784   : > { %v3617_v28 = vadd.f32 %v3567_v40, %v8575_v60 }
 0x786   : > { %v8946_v2 = vadd.f32 %v8790_v63, %v3617_v28 }
 0x787   : > { %v3760_v21 = vpop.f32.mrf.mxu0 }
 0x788   : > { %v3761_v18 = vadd.f32 %v8921_v38, %v3760_v21 }
 0x78a   : > { %v3836_v35 = vmax.f32 %v3761_v18, 0.0 }
 0x78b   : > { %v3569_v25 = vpop.f32.mrf.mxu3 }
 0x78c   : > { %v3874_v3 = vpack.c.bf16 %v3836_v35, %v3835_v61  ;;  %v3618_v55 = vadd.f32 %v3569_v25, %v8578_v15 }
 0x78e   : > { %v8949_v20 = vadd.f32 %v8790_v63, %v3618_v55  ;;  %6534 = vmatmul.msk.bf16.gmra.mxu1 %vm471_vm2, %v3874_v3 }
 0x78f   : > { %v3763_v48 = vpop.f32.mrf.mxu0 }
 0x790   : > { %v3676_v5 = vpack.c.bf16 %v8949_v20, %v8946_v2  ;;  %v3764_v7 = vadd.f32 %v8921_v38, %v3763_v48 }
 0x792   : > { %6511 = vmatmul.msk.bf16.gmra.mxu0 %vm1847_vm9, %v3676_v5  ;;  %v3837_v10 = vmax.f32 %v3764_v7, 0.0 }
 0x793   : > { %v3572_v60 = vpop.f32.mrf.mxu3 }
 0x794   : > { %v3619_v49 = vadd.f32 %v3572_v60, %v8589_v14 }
 0x796   : > { %v8960_v18 = vadd.f32 %v8790_v63, %v3619_v49 }
 0x797   : > { %v3765_v17 = vpop.f32.mrf.mxu0 }
 0x798   : > { %v3766_v15 = vadd.f32 %v8921_v38, %v3765_v17 }
 0x79a   : > { %v3838_v24 = vmax.f32 %v3766_v15, 0.0  ;;  %v6811_v15 = vld [vmem:[%s9897_s1 + $0x108] sm:$0xff] }
 0x79b   : > { %v3574_v40 = vpop.f32.mrf.mxu3  ;;  %4189 = vmatpush.bf16.msra.mxu2 %v6811_v15 }
 0x79c   : > { %v3875_v51 = vpack.c.bf16 %v3838_v24, %v3837_v10  ;;  %v3620_v21 = vadd.f32 %v3574_v40, %v8592_v6 }
 0x79e   : > { %v8963_v61 = vadd.f32 %v8790_v63, %v3620_v21  ;;  %6535 = vmatmul.msk.bf16.gmra.mxu1 %vm471_vm2, %v3875_v51 }
 0x79f   : > { %v3768_v28 = vpop.f32.mrf.mxu0 }
 0x7a0   : > { %v3677_v35 = vpack.c.bf16 %v8963_v61, %v8960_v18  ;;  %v3769_v25 = vadd.f32 %v8921_v38, %v3768_v28 }
 0x7a2   : > { %6512 = vmatmul.msk.bf16.gmra.mxu0 %vm1847_vm9, %v3677_v35  ;;  %v3839_v55 = vmax.f32 %v3769_v25, 0.0 }
 0x7a3   : > { %v3577_v14 = vpop.f32.mrf.mxu3 }
 0x7a4   : > { %v3621_v48 = vadd.f32 %v3577_v14, %v8606_v16 }
 0x7a6   : > { %v8977_v10 = vadd.f32 %v8790_v63, %v3621_v48 }
 0x7a7   : > { %v3770_v3 = vpop.f32.mrf.mxu0 }
 0x7a8   : > { %v3771_v6 = vadd.f32 %v8921_v38, %v3770_v3 }
 0x7aa   : > { %v3840_v5 = vmax.f32 %v3771_v6, 0.0 }
 0x7ab   : > { %v3579_v60 = vpop.f32.mrf.mxu3 }
 0x7ac   : > { %v3876_v7 = vpack.c.bf16 %v3840_v5, %v3839_v55  ;;  %v3622_v17 = vadd.f32 %v3579_v60, %v8609_v62 }
 0x7ae   : > { %v8980_v49 = vadd.f32 %v8790_v63, %v3622_v17  ;;  %6536 = vmatmul.msk.bf16.gmra.mxu1 %vm471_vm2, %v3876_v7 }
 0x7af   : > { %v3773_v24 = vpop.f32.mrf.mxu0 }
 0x7b0   : > { %v3678_v16 = vpack.c.bf16 %v8980_v49, %v8977_v10  ;;  %v3774_v40 = vadd.f32 %v8921_v38, %v3773_v24 }
 0x7b2   : > { %6513 = vmatmul.msk.bf16.gmra.mxu0 %vm1847_vm9, %v3678_v16  ;;  %v3841_v28 = vmax.f32 %v3774_v40, 0.0 }
 0x7b3   : > { %v3582_v62 = vpop.f32.mrf.mxu3 }
 0x7b4   : > { %v3623_v35 = vadd.f32 %v3582_v62, %v8620_v53  ;;  %v6817_v53 = vld [vmem:[%s9897_s1 + $0x1f8] sm:$0xff] }
 0x7b5   : > { %4404 = vmatpush.bf16.msra.mxu3 %v6817_v53 }
 0x7b6   : > { %v8991_v55 = vadd.f32 %v8790_v63, %v3623_v35 }
 0x7b7   : > { %v3775_v51 = vpop.f32.mrf.mxu0 }
 0x7b8   : > { %v3776_v21 = vadd.f32 %v8921_v38, %v3775_v51 }
 0x7ba   : > { %v3842_v14 = vmax.f32 %v3776_v21, 0.0 }
 0x7bb   : > { %v3584_v25 = vpop.f32.mrf.mxu3 }
 0x7bc   : > { %v3877_v3 = vpack.c.bf16 %v3842_v14, %v3841_v28  ;;  %v3624_v6 = vadd.f32 %v3584_v25, %v8623_v46 }
 0x7be   : > { %v8994_v48 = vadd.f32 %v8790_v63, %v3624_v6  ;;  %6537 = vmatmul.msk.bf16.gmra.mxu1 %vm471_vm2, %v3877_v3 }
 0x7bf   : > { %v3778_v5 = vpop.f32.mrf.mxu0 }
 0x7c0   : > { %v3679_v60 = vpack.c.bf16 %v8994_v48, %v8991_v55  ;;  %v3779_v7 = vadd.f32 %v8921_v38, %v3778_v5 }
 0x7c2   : > { %6514 = vmatmul.msk.bf16.gmra.mxu0 %vm1847_vm9, %v3679_v60  ;;  %v3843_v24 = vmax.f32 %v3779_v7, 0.0 }
 0x7c3   : > { %v3587_v46 = vpop.f32.mrf.mxu3 }
 0x7c4   : > { %v3625_v16 = vadd.f32 %v3587_v46, %v8637_v54 }
 0x7c6   : > { %v9008_v28 = vadd.f32 %v8790_v63, %v3625_v16 }
 0x7c7   : > { %v3780_v17 = vpop.f32.mrf.mxu0 }
 0x7c8   : > { %v3781_v15 = vadd.f32 %v8921_v38, %v3780_v17 }
 0x7ca   : > { %v3844_v62 = vmax.f32 %v3781_v15, 0.0 }
 0x7cb   : > { %v3589_v40 = vpop.f32.mrf.mxu3 }
 0x7cc   : > { %v3878_v51 = vpack.c.bf16 %v3844_v62, %v3843_v24  ;;  %v3626_v21 = vadd.f32 %v3589_v40, %v8640_v27 }
 0x7ce   : > { %v9011_v35 = vadd.f32 %v8790_v63, %v3626_v21  ;;  %6538 = vmatmul.msk.bf16.gmra.mxu1 %vm471_vm2, %v3878_v51 }
 0x7cf   : > { %v3783_v14 = vpop.f32.mrf.mxu0 }
 0x7d0   : > { %v3680_v25 = vpack.c.bf16 %v9011_v35, %v9008_v28  ;;  %v3784_v3 = vadd.f32 %v8921_v38, %v3783_v14 }
 0x7d2   : > { %6515 = vmatmul.msk.bf16.gmra.mxu0 %vm1847_vm9, %v3680_v25  ;;  %v3845_v5 = vmax.f32 %v3784_v3, 0.0 }
 0x7d3   : > { %v3592_v54 = vpop.f32.mrf.mxu3 }
 0x7d4   : > { %v3627_v60 = vadd.f32 %v3592_v54, %v8651_v41 }
 0x7d6   : > { %v9022_v15 = vadd.f32 %v8790_v63, %v3627_v60 }
 0x7d7   : > { %v3785_v6 = vpop.f32.mrf.mxu0 }
 0x7d8   : > { %v3786_v27 = vadd.f32 %v8921_v38, %v3785_v6 }
 0x7da   : > { %v3846_v53 = vmax.f32 %v3786_v27, 0.0 }
 0x7db   : > { %v3594_v46 = vpop.f32.mrf.mxu3 }
 0x7dc   : > { %v3879_v7 = vpack.c.bf16 %v3846_v53, %v3845_v5  ;;  %v3628_v17 = vadd.f32 %v3594_v46, %v8654_v26  ;;  %v9036_v53 = vld [vmem:[#allocation2 + $0x8] ss:$0 sm:$0xff]  ;;  %v6816_v46 = vld [vmem:[%s9897_s1 + $0x1f0] sm:$0xff] }
 0x7dd   : > { %4405 = vmatpush.bf16.msra.mxu3 %v6816_v46 }
 0x7de   : > { %v9025_v24 = vadd.f32 %v8790_v63, %v3628_v17  ;;  %6539 = vmatmul.msk.bf16.gmra.mxu1 %vm471_vm2, %v3879_v7 }
 0x7df   : > { %v3788_v16 = vpop.f32.mrf.mxu0 }
 0x7e0   : > { %v3681_v62 = vpack.c.bf16 %v9025_v24, %v9022_v15  ;;  %v3789_v41 = vadd.f32 %v8921_v38, %v3788_v16 }
 0x7e2   : > { %6516 = vmatmul.msk.bf16.gmra.mxu0 %vm1847_vm9, %v3681_v62  ;;  %v3847_v26 = vmax.f32 %v3789_v41, 0.0 }
 0x7e7   : > { %v3790_v40 = vpop.f32.mrf.mxu0 }
 0x7e8   : > { %v3791_v51 = vadd.f32 %v8921_v38, %v3790_v40 }
 0x7ea   : > { %v3848_v21 = vmax.f32 %v3791_v51, 0.0 }
 0x7ec   : > { %v3880_v14 = vpack.c.bf16 %v3848_v21, %v3847_v26 }
 0x7ee   : > { %6540 = vmatmul.msk.bf16.gmra.mxu1 %vm471_vm2, %v3880_v14 }
 0x7ef   : > { %v3793_v63 = vpop.f32.mrf.mxu0 }
 0x7f0   : > { %v3794_v25 = vadd.f32 %v8921_v38, %v3793_v63 }
 0x7f2   : > { %v3849_v6 = vmax.f32 %v3794_v25, 0.0 }
 0x7f7   : > { %v3795_v54 = vpop.f32.mrf.mxu0 }
 0x7f8   : > { %v3796_v3 = vadd.f32 %v8921_v38, %v3795_v54 }
 0x7fa   : > { %v3850_v27 = vmax.f32 %v3796_v3, 0.0 }
 0x7fb   : > { %v3972_v5 = vpop.f32.mrf.mxu1 }
 0x7fc   : > { %v3881_v60 = vpack.c.bf16 %v3850_v27, %v3849_v6  ;;  %v3973_v17 = vadd.f32 %v9036_v53, %v3972_v5  ;;  %v4556_v6 = vld [vmem:[%s9897_s1 + $0x1a0] sm:$0x3] }
 0x7fd   : > { %v4580_v5 = vunpack.c.l.b16 %v4556_v6 }
 0x7fe   : > { %6541 = vmatmul.msk.bf16.gmra.mxu1 %vm471_vm2, %v3881_v60  ;;  %v4052_v41 = vmax.f32 %v3973_v17, 0.0 }
 0x7ff   : > { %v3798_v7 = vpop.f32.mrf.mxu0  ;;  %v4582_v60 = vpack.c.b16 %v4580_v5, %v4580_v5 }
 0x800   : > { %v3799_v40 = vadd.f32 %v8921_v38, %v3798_v7 }
 0x801   : > { %v4633_v17 = vsel %vm1958_vm3, %v4582_v60, 0  ;;  %vm5449_vm3 = vcmask 244736  }
 0x802   : > { %v3851_v63 = vmax.f32 %v3799_v40, 0.0  ;;  %4641 = vmatpush.bf16.msra.mxu0 %v4633_v17 }
 0x803   : > { %v3974_v16 = vpop.f32.mrf.mxu1 }
 0x804   : > { %v3975_v62 = vadd.f32 %v9036_v53, %v3974_v16 }
 0x806   : > { %v4053_v51 = vmax.f32 %v3975_v62, 0.0 }
 0x807   : > { %v3800_v26 = vpop.f32.mrf.mxu0 }
 0x808   : > { %v4092_v21 = vpack.c.bf16 %v4053_v51, %v4052_v41  ;;  %v3801_v14 = vadd.f32 %v8921_v38, %v3800_v26 }
 0x80a   : > { %v3852_v25 = vmax.f32 %v3801_v14, 0.0  ;;  %6565 = vmatmul.msk.bf16.vlgmr.msra.gmra.mxu2 %vm471_vm2, %v4092_v21 }
 0x80b   : > { %v3977_v54 = vpop.f32.mrf.mxu1 }
 0x80c   : > { %v3882_v3 = vpack.c.bf16 %v3852_v25, %v3851_v63  ;;  %v3978_v46 = vadd.f32 %v9036_v53, %v3977_v54 }
 0x80e   : > { %6542 = vmatmul.msk.bf16.gmra.mxu1 %vm471_vm2, %v3882_v3  ;;  %v4054_v62 = vmax.f32 %v3978_v46, 0.0 }
 0x80f   : > { %v3803_v27 = vpop.f32.mrf.mxu0 }
 0x810   : > { %v3804_v41 = vadd.f32 %v8921_v38, %v3803_v27 }
 0x812   : > { %v3853_v14 = vmax.f32 %v3804_v41, 0.0 }
 0x813   : > { %v3979_v7 = vpop.f32.mrf.mxu1 }
 0x814   : > { %v3980_v16 = vadd.f32 %v9036_v53, %v3979_v7 }
 0x816   : > { %v4055_v40 = vmax.f32 %v3980_v16, 0.0 }
 0x817   : > { %v3805_v51 = vpop.f32.mrf.mxu0 }
 0x818   : > { %v4093_v26 = vpack.c.bf16 %v4055_v40, %v4054_v62  ;;  %v3806_v21 = vadd.f32 %v8921_v38, %v3805_v51 }
 0x81a   : > { %v3854_v63 = vmax.f32 %v3806_v21, 0.0  ;;  %6566 = vmatmul.msk.bf16.gmra.mxu2 %vm471_vm2, %v4093_v26 }
 0x81b   : > { %v3982_v25 = vpop.f32.mrf.mxu1 }
 0x81c   : > { %v3883_v54 = vpack.c.bf16 %v3854_v63, %v3853_v14  ;;  %v3983_v6 = vadd.f32 %v9036_v53, %v3982_v25 }
 0x81e   : > { %6543 = vmatmul.msk.bf16.gmra.mxu1 %vm471_vm2, %v3883_v54  ;;  %v4056_v27 = vmax.f32 %v3983_v6, 0.0 }
 0x81f   : > { %v3808_v3 = vpop.f32.mrf.mxu0 }
 0x820   : > { %v3809_v46 = vadd.f32 %v8921_v38, %v3808_v3 }
 0x822   : > { %v3855_v41 = vmax.f32 %v3809_v46, 0.0 }
 0x823   : > { %v3984_v5 = vpop.f32.mrf.mxu1 }
 0x824   : > { %v3985_v60 = vadd.f32 %v9036_v53, %v3984_v5 }
 0x826   : > { %v4057_v7 = vmax.f32 %v3985_v60, 0.0 }
 0x827   : > { %v3810_v17 = vpop.f32.mrf.mxu0 }
 0x828   : > { %v4094_v16 = vpack.c.bf16 %v4057_v7, %v4056_v27  ;;  %v3811_v62 = vadd.f32 %v8921_v38, %v3810_v17 }
 0x82a   : > { %v3856_v40 = vmax.f32 %v3811_v62, 0.0  ;;  %6567 = vmatmul.msk.bf16.gmra.mxu2 %vm471_vm2, %v4094_v16  ;;  %v6815_v62 = vld [vmem:[%s9897_s1 + $0x1e8] sm:$0xff] }
 0x82b   : > { %v3987_v51 = vpop.f32.mrf.mxu1  ;;  %4406 = vmatpush.bf16.msra.mxu3 %v6815_v62 }
 0x82c   : > { %v3884_v26 = vpack.c.bf16 %v3856_v40, %v3855_v41  ;;  %v3988_v14 = vadd.f32 %v9036_v53, %v3987_v51 }
 0x82e   : > { %6544 = vmatmul.msk.bf16.gmra.mxu1 %vm471_vm2, %v3884_v26  ;;  %v4058_v54 = vmax.f32 %v3988_v14, 0.0 }
 0x82f   : > { %v3813_v21 = vpop.f32.mrf.mxu0 }
 0x830   : > { %v3814_v3 = vadd.f32 %v8921_v38, %v3813_v21 }
 0x832   : > { %v3857_v46 = vmax.f32 %v3814_v3, 0.0 }
 0x833   : > { %v3989_v63 = vpop.f32.mrf.mxu1 }
 0x834   : > { %v3990_v25 = vadd.f32 %v9036_v53, %v3989_v63 }
 0x836   : > { %v4059_v6 = vmax.f32 %v3990_v25, 0.0 }
 0x837   : > { %v3815_v5 = vpop.f32.mrf.mxu0 }
 0x838   : > { %v4095_v60 = vpack.c.bf16 %v4059_v6, %v4058_v54  ;;  %v3816_v27 = vadd.f32 %v8921_v38, %v3815_v5 }
 0x83a   : > { %v3858_v7 = vmax.f32 %v3816_v27, 0.0  ;;  %6568 = vmatmul.msk.bf16.gmra.mxu2 %vm471_vm2, %v4095_v60 }
 0x83b   : > { %v3992_v17 = vpop.f32.mrf.mxu1 }
 0x83c   : > { %v3885_v16 = vpack.c.bf16 %v3858_v7, %v3857_v46  ;;  %v3993_v40 = vadd.f32 %v9036_v53, %v3992_v17 }
 0x83e   : > { %6545 = vmatmul.msk.bf16.gmra.mxu1 %vm471_vm2, %v3885_v16  ;;  %v4060_v21 = vmax.f32 %v3993_v40, 0.0 }
 0x83f   : > { %v3818_v41 = vpop.f32.mrf.mxu0 }
 0x840   : > { %v3819_v14 = vadd.f32 %v8921_v38, %v3818_v41 }
 0x842   : > { %v3859_v6 = vmax.f32 %v3819_v14, 0.0 }
 0x843   : > { %v3994_v51 = vpop.f32.mrf.mxu1 }
 0x844   : > { %v3995_v26 = vadd.f32 %v9036_v53, %v3994_v51 }
 0x846   : > { %v4061_v63 = vmax.f32 %v3995_v26, 0.0 }
 0x847   : > { %v3820_v25 = vpop.f32.mrf.mxu0 }
 0x848   : > { %v4096_v54 = vpack.c.bf16 %v4061_v63, %v4060_v21  ;;  %v3821_v3 = vadd.f32 %v8921_v38, %v3820_v25 }
 0x84a   : > { %v3860_v5 = vmax.f32 %v3821_v3, 0.0  ;;  %6569 = vmatmul.msk.bf16.gmra.mxu2 %vm471_vm2, %v4096_v54 }
 0x84b   : > { %v3997_v60 = vpop.f32.mrf.mxu1 }
 0x84c   : > { %v3886_v27 = vpack.c.bf16 %v3860_v5, %v3859_v6  ;;  %v3998_v7 = vadd.f32 %v9036_v53, %v3997_v60 }
 0x84e   : > { %6546 = vmatmul.msk.bf16.gmra.mxu1 %vm471_vm2, %v3886_v27  ;;  %v4062_v62 = vmax.f32 %v3998_v7, 0.0 }
 0x84f   : > { %v3823_v46 = vpop.f32.mrf.mxu0 }
 0x850   : > { %v3824_v41 = vadd.f32 %v8921_v38, %v3823_v46 }
 0x852   : > { %v3861_v14 = vmax.f32 %v3824_v41, 0.0 }
 0x853   : > { %v3999_v17 = vpop.f32.mrf.mxu1 }
 0x854   : > { %v4000_v16 = vadd.f32 %v9036_v53, %v3999_v17 }
 0x856   : > { %v4063_v40 = vmax.f32 %v4000_v16, 0.0 }
 0x857   : > { %v3825_v51 = vpop.f32.mrf.mxu0 }
 0x858   : > { %v4097_v26 = vpack.c.bf16 %v4063_v40, %v4062_v62  ;;  %v3826_v21 = vadd.f32 %v8921_v38, %v3825_v51 }
 0x85a   : > { %v3862_v63 = vmax.f32 %v3826_v21, 0.0  ;;  %6570 = vmatmul.msk.bf16.gmra.mxu2 %vm471_vm2, %v4097_v26 }
 0x85b   : > { %v4002_v25 = vpop.f32.mrf.mxu1 }
 0x85c   : > { %v3887_v54 = vpack.c.bf16 %v3862_v63, %v3861_v14  ;;  %v4003_v6 = vadd.f32 %v9036_v53, %v4002_v25 }
 0x85e   : > { %6547 = vmatmul.msk.bf16.gmra.mxu1 %vm471_vm2, %v3887_v54  ;;  %v4064_v27 = vmax.f32 %v4003_v6, 0.0 }
 0x85f   : > { %v3828_v3 = vpop.f32.mrf.mxu0 }
 0x860   : > { %v3829_v46 = vadd.f32 %v8921_v38, %v3828_v3 }
 0x862   : > { %v3863_v41 = vmax.f32 %v3829_v46, 0.0 }
 0x863   : > { %v4004_v5 = vpop.f32.mrf.mxu1 }
 0x864   : > { %v4005_v60 = vadd.f32 %v9036_v53, %v4004_v5 }
 0x866   : > { %v4065_v7 = vmax.f32 %v4005_v60, 0.0 }
 0x867   : > { %v3830_v17 = vpop.f32.mrf.mxu0 }
 0x868   : > { %v4098_v16 = vpack.c.bf16 %v4065_v7, %v4064_v27  ;;  %v3831_v62 = vadd.f32 %v8921_v38, %v3830_v17 }
 0x86a   : > { %v3864_v40 = vmax.f32 %v3831_v62, 0.0  ;;  %6571 = vmatmul.msk.bf16.gmra.mxu2 %vm471_vm2, %v4098_v16  ;;  %v9097_v62 = vld [vmem:[#allocation2 + $0x9] ss:$0 sm:$0xff] }
 0x86b   : > { %v4007_v51 = vpop.f32.mrf.mxu1 }
 0x86c   : > { %v3888_v26 = vpack.c.bf16 %v3864_v40, %v3863_v41  ;;  %v4008_v21 = vadd.f32 %v9036_v53, %v4007_v51  ;;  %v6819_v41 = vld [vmem:[%s9897_s1 + $0x198] sm:$0xff] }
 0x86d   : > { %4642 = vmatpush.bf16.msra.mxu0 %v6819_v41 }
 0x86e   : > { %6548 = vmatmul.msk.bf16.gmra.mxu1 %vm471_vm2, %v3888_v26  ;;  %v4066_v25 = vmax.f32 %v4008_v21, 0.0 }
 0x873   : > { %v4009_v14 = vpop.f32.mrf.mxu1 }
 0x874   : > { %v4010_v63 = vadd.f32 %v9036_v53, %v4009_v14 }
 0x876   : > { %v4067_v54 = vmax.f32 %v4010_v63, 0.0 }
 0x878   : > { %v4099_v3 = vpack.c.bf16 %v4067_v54, %v4066_v25 }
 0x87a   : > { %6572 = vmatmul.msk.bf16.gmra.mxu2 %vm471_vm2, %v4099_v3 }
 0x87b   : > { %v4012_v6 = vpop.f32.mrf.mxu1 }
 0x87c   : > { %v4013_v38 = vadd.f32 %v9036_v53, %v4012_v6 }
 0x87e   : > { %v4068_v27 = vmax.f32 %v4013_v38, 0.0 }
 0x883   : > { %v4014_v5 = vpop.f32.mrf.mxu1 }
 0x884   : > { %v4015_v60 = vadd.f32 %v9036_v53, %v4014_v5 }
 0x886   : > { %v4069_v46 = vmax.f32 %v4015_v60, 0.0  ;;  %v6823_v60 = vld [vmem:[%s9897_s1 + $0x140] sm:$0xff] }
 0x887   : > { %4858 = vmatpush.bf16.msrb.mxu1 %v6823_v60 }
 0x888   : > { %v4100_v7 = vpack.c.bf16 %v4069_v46, %v4068_v27 }
 0x88a   : > { %6573 = vmatmul.msk.bf16.gmra.mxu2 %vm471_vm2, %v4100_v7 }
 0x88b   : > { %v4017_v17 = vpop.f32.mrf.mxu1 }
 0x88c   : > { %v4018_v40 = vadd.f32 %v9036_v53, %v4017_v17 }
 0x88d   : > { %v4191_v16 = vpop.f32.mrf.mxu2 }
 0x88e   : > { %v4192_v26 = vadd.f32 %v9097_v62, %v4191_v16  ;;  %v4070_v63 = vmax.f32 %v4018_v40, 0.0 }
 0x890   : > { %v4271_v3 = vmax.f32 %v4192_v26, 0.0 }
 0x893   : > { %v4019_v51 = vpop.f32.mrf.mxu1 }
 0x894   : > { %v4020_v21 = vadd.f32 %v9036_v53, %v4019_v51 }
 0x895   : > { %v4193_v14 = vpop.f32.mrf.mxu2 }
 0x896   : > { %v4071_v25 = vmax.f32 %v4020_v21, 0.0  ;;  %v4194_v54 = vadd.f32 %v9097_v62, %v4193_v14 }
 0x898   : > { %v4101_v6 = vpack.c.bf16 %v4071_v25, %v4070_v63  ;;  %v4272_v38 = vmax.f32 %v4194_v54, 0.0 }
 0x89a   : > { %v4311_v5 = vpack.c.bf16 %v4272_v38, %v4271_v3  ;;  %6574 = vmatmul.msk.bf16.gmra.mxu2 %vm471_vm2, %v4101_v6 }
 0x89b   : > { %v4022_v27 = vpop.f32.mrf.mxu1 }
 0x89c   : > { %6597 = vmatmul.msk.bf16.vlgmr.msra.gmra.mxu3 %vm471_vm2, %v4311_v5  ;;  %v4023_v7 = vadd.f32 %v9036_v53, %v4022_v27 }
 0x89d   : > { %v4196_v46 = vpop.f32.mrf.mxu2 }
 0x89e   : > { %v4197_v16 = vadd.f32 %v9097_v62, %v4196_v46  ;;  %v4072_v51 = vmax.f32 %v4023_v7, 0.0 }
 0x8a0   : > { %v4273_v14 = vmax.f32 %v4197_v16, 0.0 }
 0x8a3   : > { %v4024_v17 = vpop.f32.mrf.mxu1 }
 0x8a4   : > { %v4025_v41 = vadd.f32 %v9036_v53, %v4024_v17 }
 0x8a5   : > { %v4198_v40 = vpop.f32.mrf.mxu2 }
 0x8a6   : > { %v4073_v26 = vmax.f32 %v4025_v41, 0.0  ;;  %v4199_v21 = vadd.f32 %v9097_v62, %v4198_v40 }
 0x8a8   : > { %v4102_v63 = vpack.c.bf16 %v4073_v26, %v4072_v51  ;;  %v4274_v25 = vmax.f32 %v4199_v21, 0.0 }
 0x8aa   : > { %v4312_v54 = vpack.c.bf16 %v4274_v25, %v4273_v14  ;;  %6575 = vmatmul.msk.bf16.gmra.mxu2 %vm471_vm2, %v4102_v63 }
 0x8ab   : > { %v4027_v3 = vpop.f32.mrf.mxu1 }
 0x8ac   : > { %6598 = vmatmul.msk.bf16.gmra.mxu3 %vm471_vm2, %v4312_v54  ;;  %v4028_v38 = vadd.f32 %v9036_v53, %v4027_v3 }
 0x8ad   : > { %v4201_v6 = vpop.f32.mrf.mxu2 }
 0x8ae   : > { %v4202_v60 = vadd.f32 %v9097_v62, %v4201_v6  ;;  %v4074_v7 = vmax.f32 %v4028_v38, 0.0 }
 0x8b0   : > { %v4275_v41 = vmax.f32 %v4202_v60, 0.0 }
 0x8b3   : > { %v4029_v5 = vpop.f32.mrf.mxu1 }
 0x8b4   : > { %v4030_v27 = vadd.f32 %v9036_v53, %v4029_v5 }
 0x8b5   : > { %v4203_v46 = vpop.f32.mrf.mxu2 }
 0x8b6   : > { %v4075_v17 = vmax.f32 %v4030_v27, 0.0  ;;  %v4204_v16 = vadd.f32 %v9097_v62, %v4203_v46 }
 0x8b8   : > { %v4103_v40 = vpack.c.bf16 %v4075_v17, %v4074_v7  ;;  %v4276_v51 = vmax.f32 %v4204_v16, 0.0 }
 0x8ba   : > { %v4313_v26 = vpack.c.bf16 %v4276_v51, %v4275_v41  ;;  %6576 = vmatmul.msk.bf16.gmra.mxu2 %vm471_vm2, %v4103_v40 }
 0x8bb   : > { %v4032_v21 = vpop.f32.mrf.mxu1 }
 0x8bc   : > { %6599 = vmatmul.msk.bf16.gmra.mxu3 %vm471_vm2, %v4313_v26  ;;  %v4033_v63 = vadd.f32 %v9036_v53, %v4032_v21 }
 0x8bd   : > { %v4206_v14 = vpop.f32.mrf.mxu2 }
 0x8be   : > { %v4207_v54 = vadd.f32 %v9097_v62, %v4206_v14  ;;  %v4076_v38 = vmax.f32 %v4033_v63, 0.0 }
 0x8c0   : > { %v4277_v27 = vmax.f32 %v4207_v54, 0.0 }
 0x8c3   : > { %v4034_v25 = vpop.f32.mrf.mxu1 }
 0x8c4   : > { %v4035_v3 = vadd.f32 %v9036_v53, %v4034_v25 }
 0x8c5   : > { %v4208_v6 = vpop.f32.mrf.mxu2 }
 0x8c6   : > { %v4077_v5 = vmax.f32 %v4035_v3, 0.0  ;;  %v4209_v60 = vadd.f32 %v9097_v62, %v4208_v6 }
 0x8c8   : > { %v4104_v46 = vpack.c.bf16 %v4077_v5, %v4076_v38  ;;  %v4278_v7 = vmax.f32 %v4209_v60, 0.0  ;;  %v6822_v60 = vld [vmem:[%s9897_s1 + $0x138] sm:$0xff] }
 0x8c9   : > { %4859 = vmatpush.bf16.msrb.mxu1 %v6822_v60 }
 0x8ca   : > { %v4314_v17 = vpack.c.bf16 %v4278_v7, %v4277_v27  ;;  %6577 = vmatmul.msk.bf16.gmra.mxu2 %vm471_vm2, %v4104_v46 }
 0x8cb   : > { %v4037_v16 = vpop.f32.mrf.mxu1 }
 0x8cc   : > { %6600 = vmatmul.msk.bf16.gmra.mxu3 %vm471_vm2, %v4314_v17  ;;  %v4038_v40 = vadd.f32 %v9036_v53, %v4037_v16 }
 0x8cd   : > { %v4211_v41 = vpop.f32.mrf.mxu2 }
 0x8ce   : > { %v4212_v26 = vadd.f32 %v9097_v62, %v4211_v41  ;;  %v4078_v63 = vmax.f32 %v4038_v40, 0.0 }
 0x8d0   : > { %v4279_v3 = vmax.f32 %v4212_v26, 0.0 }
 0x8d3   : > { %v4039_v51 = vpop.f32.mrf.mxu1 }
 0x8d4   : > { %v4040_v21 = vadd.f32 %v9036_v53, %v4039_v51 }
 0x8d5   : > { %v4213_v14 = vpop.f32.mrf.mxu2 }
 0x8d6   : > { %v4079_v25 = vmax.f32 %v4040_v21, 0.0  ;;  %v4214_v54 = vadd.f32 %v9097_v62, %v4213_v14 }
 0x8d8   : > { %v4105_v6 = vpack.c.bf16 %v4079_v25, %v4078_v63  ;;  %v4280_v38 = vmax.f32 %v4214_v54, 0.0 }
 0x8da   : > { %v4315_v5 = vpack.c.bf16 %v4280_v38, %v4279_v3  ;;  %6578 = vmatmul.msk.bf16.gmra.mxu2 %vm471_vm2, %v4105_v6 }
 0x8db   : > { %v4042_v27 = vpop.f32.mrf.mxu1 }
 0x8dc   : > { %6601 = vmatmul.msk.bf16.gmra.mxu3 %vm471_vm2, %v4315_v5  ;;  %v4043_v7 = vadd.f32 %v9036_v53, %v4042_v27 }
 0x8dd   : > { %v4216_v46 = vpop.f32.mrf.mxu2 }
 0x8de   : > { %v4217_v16 = vadd.f32 %v9097_v62, %v4216_v46  ;;  %v4080_v51 = vmax.f32 %v4043_v7, 0.0 }
 0x8e0   : > { %v4281_v14 = vmax.f32 %v4217_v16, 0.0 }
 0x8e3   : > { %v4044_v17 = vpop.f32.mrf.mxu1 }
 0x8e4   : > { %v4045_v41 = vadd.f32 %v9036_v53, %v4044_v17 }
 0x8e5   : > { %v4218_v40 = vpop.f32.mrf.mxu2 }
 0x8e6   : > { %v4081_v26 = vmax.f32 %v4045_v41, 0.0  ;;  %v4219_v21 = vadd.f32 %v9097_v62, %v4218_v40 }
 0x8e8   : > { %v4106_v63 = vpack.c.bf16 %v4081_v26, %v4080_v51  ;;  %v4282_v25 = vmax.f32 %v4219_v21, 0.0 }
 0x8ea   : > { %v4316_v54 = vpack.c.bf16 %v4282_v25, %v4281_v14  ;;  %6579 = vmatmul.msk.bf16.gmra.mxu2 %vm471_vm2, %v4106_v63 }
 0x8eb   : > { %v4047_v3 = vpop.f32.mrf.mxu1 }
 0x8ec   : > { %6602 = vmatmul.msk.bf16.gmra.mxu3 %vm471_vm2, %v4316_v54  ;;  %v4048_v38 = vadd.f32 %v9036_v53, %v4047_v3 }
 0x8ed   : > { %v4221_v6 = vpop.f32.mrf.mxu2 }
 0x8ee   : > { %v4222_v60 = vadd.f32 %v9097_v62, %v4221_v6  ;;  %v4082_v7 = vmax.f32 %v4048_v38, 0.0 }
 0x8f0   : > { %v4283_v41 = vmax.f32 %v4222_v60, 0.0 }
 0x8f3   : > { %v4049_v5 = vpop.f32.mrf.mxu1 }
 0x8f4   : > { %v4050_v27 = vadd.f32 %v9036_v53, %v4049_v5 }
 0x8f5   : > { %v4223_v46 = vpop.f32.mrf.mxu2 }
 0x8f6   : > { %v4083_v17 = vmax.f32 %v4050_v27, 0.0  ;;  %v4224_v16 = vadd.f32 %v9097_v62, %v4223_v46 }
 0x8f8   : > { %v4107_v40 = vpack.c.bf16 %v4083_v17, %v4082_v7  ;;  %v4284_v51 = vmax.f32 %v4224_v16, 0.0  ;;  %v6821_v17 = vld [vmem:[%s9897_s1 + $0x130] sm:$0xff] }
 0x8f9   : > { %4860 = vmatpush.bf16.msrb.mxu1 %v6821_v17 }
 0x8fa   : > { %v4317_v26 = vpack.c.bf16 %v4284_v51, %v4283_v41  ;;  %6580 = vmatmul.msk.bf16.gmra.mxu2 %vm471_vm2, %v4107_v40 }
 0x8fc   : > { %6603 = vmatmul.msk.bf16.gmra.mxu3 %vm471_vm2, %v4317_v26 }
 0x8fd   : > { %v4226_v21 = vpop.f32.mrf.mxu2 }
 0x8fe   : > { %v4227_v14 = vadd.f32 %v9097_v62, %v4226_v21  ;;  %v9161_v21 = vld [vmem:[#allocation2 + $0x12] ss:$0 sm:$0xff] }
 0x900   : > { %v4285_v53 = vmax.f32 %v4227_v14, 0.0 }
 0x905   : > { %v4228_v63 = vpop.f32.mrf.mxu2 }
 0x906   : > { %v4229_v25 = vadd.f32 %v9097_v62, %v4228_v63 }
 0x908   : > { %v4286_v54 = vmax.f32 %v4229_v25, 0.0 }
 0x90a   : > { %v4318_v3 = vpack.c.bf16 %v4286_v54, %v4285_v53 }
 0x90c   : > { %6604 = vmatmul.msk.bf16.gmra.mxu3 %vm471_vm2, %v4318_v3 }
 0x90d   : > { %v4231_v6 = vpop.f32.mrf.mxu2 }
 0x90e   : > { %v4232_v38 = vadd.f32 %v9097_v62, %v4231_v6 }
 0x910   : > { %v4287_v27 = vmax.f32 %v4232_v38, 0.0 }
 0x915   : > { %v4233_v5 = vpop.f32.mrf.mxu2 }
 0x916   : > { %v4234_v60 = vadd.f32 %v9097_v62, %v4233_v5 }
 0x918   : > { %v4288_v46 = vmax.f32 %v4234_v60, 0.0 }
 0x91a   : > { %v4319_v7 = vpack.c.bf16 %v4288_v46, %v4287_v27 }
 0x91c   : > { %6605 = vmatmul.msk.bf16.gmra.mxu3 %vm471_vm2, %v4319_v7 }
 0x91d   : > { %v4236_v16 = vpop.f32.mrf.mxu2 }
 0x91e   : > { %v4237_v40 = vadd.f32 %v9097_v62, %v4236_v16 }
 0x91f   : > { %v4408_v41 = vpop.f32.mrf.mxu3 }
 0x920   : > { %v4488_v26 = vadd.f32 %v4408_v41, %v8795_v34  ;;  %v4289_v25 = vmax.f32 %v4237_v40, 0.0  ;;  %v6827_v34 = vld [vmem:[%s9897_s1 + $0x160] sm:$0xff] }
 0x921   : > { %5077 = vmatpush.bf16.msrb.mxu2 %v6827_v34 }
 0x922   : > { %v9166_v3 = vadd.f32 %v9161_v21, %v4488_v26 }
 0x925   : > { %v4238_v51 = vpop.f32.mrf.mxu2 }
 0x926   : > { %v4239_v14 = vadd.f32 %v9097_v62, %v4238_v51 }
 0x927   : > { %v4410_v63 = vpop.f32.mrf.mxu3 }
 0x928   : > { %v4290_v53 = vmax.f32 %v4239_v14, 0.0  ;;  %v4489_v54 = vadd.f32 %v4410_v63, %v8798_v39 }
 0x92a   : > { %v4320_v6 = vpack.c.bf16 %v4290_v53, %v4289_v25  ;;  %v9169_v38 = vadd.f32 %v9161_v21, %v4489_v54 }
 0x92c   : > { %v4557_v5 = vpack.c.bf16 %v9169_v38, %v9166_v3  ;;  %6606 = vmatmul.msk.bf16.gmra.mxu3 %vm471_vm2, %v4320_v6 }
 0x92d   : > { %v4241_v60 = vpop.f32.mrf.mxu2 }
 0x92e   : > { %6617 = vmatmul.msk.bf16.vlgmr.msra.gmra.mxu0 %vm1847_vm9, %v4557_v5  ;;  %v4242_v27 = vadd.f32 %v9097_v62, %v4241_v60 }
 0x92f   : > { %v4413_v39 = vpop.f32.mrf.mxu3 }
 0x930   : > { %v4490_v7 = vadd.f32 %v4413_v39, %v8812_v37  ;;  %v4291_v41 = vmax.f32 %v4242_v27, 0.0 }
 0x932   : > { %v9183_v26 = vadd.f32 %v9161_v21, %v4490_v7 }
 0x935   : > { %v4243_v46 = vpop.f32.mrf.mxu2 }
 0x936   : > { %v4244_v17 = vadd.f32 %v9097_v62, %v4243_v46 }
 0x937   : > { %v4415_v16 = vpop.f32.mrf.mxu3 }
 0x938   : > { %v4292_v40 = vmax.f32 %v4244_v17, 0.0  ;;  %v4491_v51 = vadd.f32 %v4415_v16, %v8815_v50 }
 0x93a   : > { %v4321_v14 = vpack.c.bf16 %v4292_v40, %v4291_v41  ;;  %v9186_v63 = vadd.f32 %v9161_v21, %v4491_v51 }
 0x93c   : > { %v4558_v25 = vpack.c.bf16 %v9186_v63, %v9183_v26  ;;  %6607 = vmatmul.msk.bf16.gmra.mxu3 %vm471_vm2, %v4321_v14 }
 0x93d   : > { %v4246_v37 = vpop.f32.mrf.mxu2 }
 0x93e   : > { %6618 = vmatmul.msk.bf16.gmra.mxu0 %vm1847_vm9, %v4558_v25  ;;  %v4247_v54 = vadd.f32 %v9097_v62, %v4246_v37 }
 0x93f   : > { %v4418_v53 = vpop.f32.mrf.mxu3 }
 0x940   : > { %v4492_v50 = vadd.f32 %v4418_v53, %v8826_v19  ;;  %v4293_v60 = vmax.f32 %v4247_v54, 0.0 }
 0x942   : > { %v9197_v46 = vadd.f32 %v9161_v21, %v4492_v50 }
 0x945   : > { %v4248_v6 = vpop.f32.mrf.mxu2 }
 0x946   : > { %v4249_v34 = vadd.f32 %v9097_v62, %v4248_v6 }
 0x947   : > { %v4420_v5 = vpop.f32.mrf.mxu3 }
 0x948   : > { %v4294_v39 = vmax.f32 %v4249_v34, 0.0  ;;  %v4493_v27 = vadd.f32 %v4420_v5, %v8829_v36 }
 0x94a   : > { %v4322_v7 = vpack.c.bf16 %v4294_v39, %v4293_v60  ;;  %v9200_v17 = vadd.f32 %v9161_v21, %v4493_v27 }
 0x94c   : > { %v4559_v16 = vpack.c.bf16 %v9200_v17, %v9197_v46  ;;  %6608 = vmatmul.msk.bf16.gmra.mxu3 %vm471_vm2, %v4322_v7 }
 0x94d   : > { %v4251_v19 = vpop.f32.mrf.mxu2 }
 0x94e   : > { %6619 = vmatmul.msk.bf16.gmra.mxu0 %vm1847_vm9, %v4559_v16  ;;  %v4252_v40 = vadd.f32 %v9097_v62, %v4251_v19 }
 0x94f   : > { %v4423_v41 = vpop.f32.mrf.mxu3 }
 0x950   : > { %v4494_v36 = vadd.f32 %v4423_v41, %v8840_v11  ;;  %v4295_v37 = vmax.f32 %v4252_v40, 0.0  ;;  %v6820_v11 = vld [vmem:[%s9897_s1 + $0x128] sm:$0xff] }
 0x951   : > { %4861 = vmatpush.bf16.msrb.mxu1 %v6820_v11 }
 0x952   : > { %v9211_v6 = vadd.f32 %v9161_v21, %v4494_v36 }
 0x955   : > { %v4253_v51 = vpop.f32.mrf.mxu2 }
 0x956   : > { %v4254_v14 = vadd.f32 %v9097_v62, %v4253_v51 }
 0x957   : > { %v4425_v25 = vpop.f32.mrf.mxu3 }
 0x958   : > { %v4296_v53 = vmax.f32 %v4254_v14, 0.0  ;;  %v4495_v54 = vadd.f32 %v4425_v25, %v8843_v4 }
 0x95a   : > { %v4323_v50 = vpack.c.bf16 %v4296_v53, %v4295_v37  ;;  %v9214_v34 = vadd.f32 %v9161_v21, %v4495_v54  ;;  %v6826_v37 = vld [vmem:[%s9897_s1 + $0x158] sm:$0xff] }
 0x95b   : > { %5078 = vmatpush.bf16.msrb.mxu2 %v6826_v37 }
 0x95c   : > { %v4560_v5 = vpack.c.bf16 %v9214_v34, %v9211_v6  ;;  %6609 = vmatmul.msk.bf16.gmra.mxu3 %vm471_vm2, %v4323_v50 }
 0x95d   : > { %v4256_v60 = vpop.f32.mrf.mxu2 }
 0x95e   : > { %6620 = vmatmul.msk.bf16.gmra.mxu0 %vm1847_vm9, %v4560_v5  ;;  %v4257_v39 = vadd.f32 %v9097_v62, %v4256_v60 }
 0x95f   : > { %v4428_v4 = vpop.f32.mrf.mxu3 }
 0x960   : > { %v4496_v7 = vadd.f32 %v4428_v4, %v8857_v12  ;;  %v4297_v41 = vmax.f32 %v4257_v39, 0.0 }
 0x962   : > { %v9228_v36 = vadd.f32 %v9161_v21, %v4496_v7 }
 0x965   : > { %v4258_v27 = vpop.f32.mrf.mxu2 }
 0x966   : > { %v4259_v16 = vadd.f32 %v9097_v62, %v4258_v27 }
 0x967   : > { %v4430_v19 = vpop.f32.mrf.mxu3 }
 0x968   : > { %v4298_v40 = vmax.f32 %v4259_v16, 0.0  ;;  %v4497_v51 = vadd.f32 %v4430_v19, %v8860_v31 }
 0x96a   : > { %v4324_v14 = vpack.c.bf16 %v4298_v40, %v4297_v41  ;;  %v9231_v25 = vadd.f32 %v9161_v21, %v4497_v51 }
 0x96c   : > { %v4561_v12 = vpack.c.bf16 %v9231_v25, %v9228_v36  ;;  %6610 = vmatmul.msk.bf16.gmra.mxu3 %vm471_vm2, %v4324_v14 }
 0x96d   : > { %v4261_v53 = vpop.f32.mrf.mxu2 }
 0x96e   : > { %6621 = vmatmul.msk.bf16.gmra.mxu0 %vm1847_vm9, %v4561_v12  ;;  %v4262_v54 = vadd.f32 %v9097_v62, %v4261_v53 }
 0x96f   : > { %v4433_v31 = vpop.f32.mrf.mxu3 }
 0x970   : > { %v4498_v5 = vadd.f32 %v4433_v31, %v8874_v9  ;;  %v4299_v4 = vmax.f32 %v4262_v54, 0.0 }
 0x972   : > { %v9245_v7 = vadd.f32 %v9161_v21, %v4498_v5 }
 0x975   : > { %v4263_v50 = vpop.f32.mrf.mxu2 }
 0x976   : > { %v4264_v11 = vadd.f32 %v9097_v62, %v4263_v50 }
 0x977   : > { %v4435_v60 = vpop.f32.mrf.mxu3 }
 0x978   : > { %v4300_v39 = vmax.f32 %v4264_v11, 0.0  ;;  %v4499_v27 = vadd.f32 %v4435_v60, %v8877_v22 }
 0x97a   : > { %v4325_v16 = vpack.c.bf16 %v4300_v39, %v4299_v4  ;;  %v9248_v19 = vadd.f32 %v9161_v21, %v4499_v27 }
 0x97c   : > { %v4562_v41 = vpack.c.bf16 %v9248_v19, %v9245_v7  ;;  %6611 = vmatmul.msk.bf16.gmra.mxu3 %vm471_vm2, %v4325_v16 }
 0x97d   : > { %v4266_v9 = vpop.f32.mrf.mxu2 }
 0x97e   : > { %6622 = vmatmul.msk.bf16.gmra.mxu0 %vm1847_vm9, %v4562_v41  ;;  %v4267_v51 = vadd.f32 %v9097_v62, %v4266_v9 }
 0x97f   : > { %v4438_v40 = vpop.f32.mrf.mxu3 }
 0x980   : > { %v4500_v22 = vadd.f32 %v4438_v40, %v8888_v58  ;;  %v4301_v53 = vmax.f32 %v4267_v51, 0.0 }
 0x982   : > { %v9259_v50 = vadd.f32 %v9161_v21, %v4500_v22 }
 0x985   : > { %v4268_v14 = vpop.f32.mrf.mxu2 }
 0x986   : > { %v4269_v37 = vadd.f32 %v9097_v62, %v4268_v14 }
 0x987   : > { %v4440_v12 = vpop.f32.mrf.mxu3 }
 0x988   : > { %v4302_v31 = vmax.f32 %v4269_v37, 0.0  ;;  %v4501_v54 = vadd.f32 %v4440_v12, %v8891_v45  ;;  %v9292_v12 = vld [vmem:[#allocation2 + $0xf] ss:$0 sm:$0xff] }
 0x98a   : > { %v4326_v5 = vpack.c.bf16 %v4302_v31, %v4301_v53  ;;  %v9262_v11 = vadd.f32 %v9161_v21, %v4501_v54 }
 0x98c   : > { %v4563_v60 = vpack.c.bf16 %v9262_v11, %v9259_v50  ;;  %6612 = vmatmul.msk.bf16.gmra.mxu3 %vm471_vm2, %v4326_v5 }
 0x98e   : > { %6623 = vmatmul.msk.bf16.gmra.mxu0 %vm1847_vm9, %v4563_v60 }
 0x98f   : > { %v4443_v58 = vpop.f32.mrf.mxu3 }
 0x990   : > { %v4502_v62 = vadd.f32 %v4443_v58, %v8900_v44 }
 0x992   : > { %v9271_v39 = vadd.f32 %v9161_v21, %v4502_v62 }
 0x997   : > { %v4445_v4 = vpop.f32.mrf.mxu3 }
 0x998   : > { %v4503_v45 = vadd.f32 %v4445_v4, %v8903_v43  ;;  %v6825_v43 = vld [vmem:[%s9897_s1 + $0x150] sm:$0xff] }
 0x999   : > { %5079 = vmatpush.bf16.msrb.mxu2 %v6825_v43 }
 0x99a   : > { %v9274_v27 = vadd.f32 %v9161_v21, %v4503_v45 }
 0x99c   : > { %v4564_v16 = vpack.c.bf16 %v9274_v27, %v9271_v39 }
 0x99e   : > { %6624 = vmatmul.msk.bf16.gmra.mxu0 %vm1847_vm9, %v4564_v16 }
 0x99f   : > { %v4448_v41 = vpop.f32.mrf.mxu3 }
 0x9a0   : > { %v4504_v9 = vadd.f32 %v4448_v41, %v8914_v42 }
 0x9a2   : > { %v9285_v51 = vadd.f32 %v9161_v21, %v4504_v9 }
 0x9a7   : > { %v4450_v40 = vpop.f32.mrf.mxu3 }
 0x9a8   : > { %v4505_v44 = vadd.f32 %v4450_v40, %v8917_v8 }
 0x9aa   : > { %v9288_v14 = vadd.f32 %v9161_v21, %v4505_v44 }
 0x9ab   : > { %v4644_v22 = vpop.f32.mrf.mxu0 }
 0x9ac   : > { %v4565_v37 = vpack.c.bf16 %v9288_v14, %v9285_v51  ;;  %v4645_v8 = vadd.f32 %v9292_v12, %v4644_v22 }
 0x9ae   : > { %6625 = vmatmul.msk.bf16.gmra.mxu0 %vm1847_vm9, %v4565_v37  ;;  %v4724_v54 = vmax.f32 %v4645_v8, 0.0 }
 0x9af   : > { %v4453_v42 = vpop.f32.mrf.mxu3 }
 0x9b0   : > { %v4506_v5 = vadd.f32 %v4453_v42, %v8929_v23  ;;  %v6831_v23 = vld [vmem:[%s9897_s1 + $0x220] sm:$0xff] }
 0x9b1   : > { %5294 = vmatpush.bf16.msrb.mxu3 %v6831_v23 }
 0x9b2   : > { %v9300_v45 = vadd.f32 %v9161_v21, %v4506_v5 }
 0x9b3   : > { %v4646_v53 = vpop.f32.mrf.mxu0 }
 0x9b4   : > { %v4647_v31 = vadd.f32 %v9292_v12, %v4646_v53 }
 0x9b6   : > { %v4725_v60 = vmax.f32 %v4647_v31, 0.0 }
 0x9b7   : > { %v4455_v58 = vpop.f32.mrf.mxu3 }
 0x9b8   : > { %v4764_v62 = vpack.c.bf16 %v4725_v60, %v4724_v54  ;;  %v4507_v4 = vadd.f32 %v4455_v58, %v8932_v32 }
 0x9ba   : > { %v9303_v16 = vadd.f32 %v9161_v21, %v4507_v4  ;;  %6649 = vmatmul.msk.bf16.vlgmr.msrb.gmra.mxu1 %vm471_vm2, %v4764_v62 }
 0x9bb   : > { %v4649_v41 = vpop.f32.mrf.mxu0 }
 0x9bc   : > { %v4566_v9 = vpack.c.bf16 %v9303_v16, %v9300_v45  ;;  %v4650_v40 = vadd.f32 %v9292_v12, %v4649_v41 }
 0x9be   : > { %6626 = vmatmul.msk.bf16.gmra.mxu0 %vm1847_vm9, %v4566_v9  ;;  %v4726_v22 = vmax.f32 %v4650_v40, 0.0 }
 0x9bf   : > { %v4458_v32 = vpop.f32.mrf.mxu3 }
 0x9c0   : > { %v4508_v37 = vadd.f32 %v4458_v32, %v8946_v2 }
 0x9c2   : > { %v9317_v54 = vadd.f32 %v9161_v21, %v4508_v37 }
 0x9c3   : > { %v4651_v44 = vpop.f32.mrf.mxu0 }
 0x9c4   : > { %v4652_v43 = vadd.f32 %v9292_v12, %v4651_v44 }
 0x9c6   : > { %v4727_v42 = vmax.f32 %v4652_v43, 0.0 }
 0x9c7   : > { %v4460_v8 = vpop.f32.mrf.mxu3 }
 0x9c8   : > { %v4765_v53 = vpack.c.bf16 %v4727_v42, %v4726_v22  ;;  %v4509_v31 = vadd.f32 %v4460_v8, %v8949_v20 }
 0x9ca   : > { %v9320_v5 = vadd.f32 %v9161_v21, %v4509_v31  ;;  %6650 = vmatmul.msk.bf16.gmra.mxu1 %vm471_vm2, %v4765_v53 }
 0x9cb   : > { %v4654_v60 = vpop.f32.mrf.mxu0 }
 0x9cc   : > { %v4567_v58 = vpack.c.bf16 %v9320_v5, %v9317_v54  ;;  %v4655_v62 = vadd.f32 %v9292_v12, %v4654_v60 }
 0x9ce   : > { %6627 = vmatmul.msk.bf16.gmra.mxu0 %vm1847_vm9, %v4567_v58  ;;  %v4728_v41 = vmax.f32 %v4655_v62, 0.0 }
 0x9cf   : > { %v4463_v2 = vpop.f32.mrf.mxu3 }
 0x9d0   : > { %v4510_v9 = vadd.f32 %v4463_v2, %v8960_v18 }
 0x9d2   : > { %v9331_v43 = vadd.f32 %v9161_v21, %v4510_v9 }
 0x9d3   : > { %v4656_v4 = vpop.f32.mrf.mxu0 }
 0x9d4   : > { %v4657_v20 = vadd.f32 %v9292_v12, %v4656_v4 }
 0x9d6   : > { %v4729_v23 = vmax.f32 %v4657_v20, 0.0  ;;  %v6824_v20 = vld [vmem:[%s9897_s1 + $0x148] sm:$0xff] }
 0x9d7   : > { %v4465_v32 = vpop.f32.mrf.mxu3  ;;  %5080 = vmatpush.bf16.msrb.mxu2 %v6824_v20 }
 0x9d8   : > { %v4766_v40 = vpack.c.bf16 %v4729_v23, %v4728_v41  ;;  %v4511_v44 = vadd.f32 %v4465_v32, %v8963_v61 }
 0x9da   : > { %v9334_v22 = vadd.f32 %v9161_v21, %v4511_v44  ;;  %6651 = vmatmul.msk.bf16.gmra.mxu1 %vm471_vm2, %v4766_v40 }
 0x9db   : > { %v4659_v37 = vpop.f32.mrf.mxu0 }
 0x9dc   : > { %v4568_v42 = vpack.c.bf16 %v9334_v22, %v9331_v43  ;;  %v4660_v8 = vadd.f32 %v9292_v12, %v4659_v37 }
 0x9de   : > { %6628 = vmatmul.msk.bf16.gmra.mxu0 %vm1847_vm9, %v4568_v42  ;;  %v4730_v31 = vmax.f32 %v4660_v8, 0.0 }
 0x9df   : > { %v4468_v18 = vpop.f32.mrf.mxu3 }
 0x9e0   : > { %v4512_v60 = vadd.f32 %v4468_v18, %v8977_v10 }
 0x9e2   : > { %v9348_v41 = vadd.f32 %v9161_v21, %v4512_v60 }
 0x9e3   : > { %v4661_v53 = vpop.f32.mrf.mxu0 }
 0x9e4   : > { %v4662_v61 = vadd.f32 %v9292_v12, %v4661_v53 }
 0x9e6   : > { %v4731_v58 = vmax.f32 %v4662_v61, 0.0 }
 0x9e7   : > { %v4470_v2 = vpop.f32.mrf.mxu3 }
 0x9e8   : > { %v4767_v62 = vpack.c.bf16 %v4731_v58, %v4730_v31  ;;  %v4513_v4 = vadd.f32 %v4470_v2, %v8980_v49 }
 0x9ea   : > { %v9351_v9 = vadd.f32 %v9161_v21, %v4513_v4  ;;  %6652 = vmatmul.msk.bf16.gmra.mxu1 %vm471_vm2, %v4767_v62 }
 0x9eb   : > { %v4664_v23 = vpop.f32.mrf.mxu0 }
 0x9ec   : > { %v4569_v10 = vpack.c.bf16 %v9351_v9, %v9348_v41  ;;  %v4665_v32 = vadd.f32 %v9292_v12, %v4664_v23 }
 0x9ee   : > { %6629 = vmatmul.msk.bf16.gmra.mxu0 %vm1847_vm9, %v4569_v10  ;;  %v4732_v37 = vmax.f32 %v4665_v32, 0.0 }
 0x9ef   : > { %v4473_v49 = vpop.f32.mrf.mxu3 }
 0x9f0   : > { %v4514_v42 = vadd.f32 %v4473_v49, %v8991_v55  ;;  %v6830_v55 = vld [vmem:[%s9897_s1 + $0x218] sm:$0xff] }
 0x9f1   : > { %5295 = vmatpush.bf16.msrb.mxu3 %v6830_v55 }
 0x9f2   : > { %v9362_v31 = vadd.f32 %v9161_v21, %v4514_v42 }
 0x9f3   : > { %v4666_v40 = vpop.f32.mrf.mxu0 }
 0x9f4   : > { %v4667_v44 = vadd.f32 %v9292_v12, %v4666_v40 }
 0x9f6   : > { %v4733_v18 = vmax.f32 %v4667_v44, 0.0 }
 0x9f7   : > { %v4475_v8 = vpop.f32.mrf.mxu3 }
 0x9f8   : > { %v4768_v53 = vpack.c.bf16 %v4733_v18, %v4732_v37  ;;  %v4515_v61 = vadd.f32 %v4475_v8, %v8994_v48 }
 0x9fa   : > { %v9365_v60 = vadd.f32 %v9161_v21, %v4515_v61  ;;  %6653 = vmatmul.msk.bf16.gmra.mxu1 %vm471_vm2, %v4768_v53 }
 0x9fb   : > { %v4669_v58 = vpop.f32.mrf.mxu0 }
 0x9fc   : > { %v4570_v2 = vpack.c.bf16 %v9365_v60, %v9362_v31  ;;  %v4670_v62 = vadd.f32 %v9292_v12, %v4669_v58 }
 0x9fe   : > { %6630 = vmatmul.msk.bf16.gmra.mxu0 %vm1847_vm9, %v4570_v2  ;;  %v4734_v23 = vmax.f32 %v4670_v62, 0.0 }
 0x9ff   : > { %v4478_v48 = vpop.f32.mrf.mxu3 }
 0xa00   : > { %v4516_v10 = vadd.f32 %v4478_v48, %v9008_v28 }
 0xa02   : > { %v9379_v37 = vadd.f32 %v9161_v21, %v4516_v10 }
 0xa03   : > { %v4671_v4 = vpop.f32.mrf.mxu0 }
 0xa04   : > { %v4672_v20 = vadd.f32 %v9292_v12, %v4671_v4 }
 0xa06   : > { %v4735_v49 = vmax.f32 %v4672_v20, 0.0 }
 0xa07   : > { %v4480_v32 = vpop.f32.mrf.mxu3 }
 0xa08   : > { %v4769_v40 = vpack.c.bf16 %v4735_v49, %v4734_v23  ;;  %v4517_v44 = vadd.f32 %v4480_v32, %v9011_v35 }
 0xa0a   : > { %v9382_v42 = vadd.f32 %v9161_v21, %v4517_v44  ;;  %6654 = vmatmul.msk.bf16.gmra.mxu1 %vm471_vm2, %v4769_v40 }
 0xa0b   : > { %v4674_v18 = vpop.f32.mrf.mxu0 }
 0xa0c   : > { %v4571_v8 = vpack.c.bf16 %v9382_v42, %v9379_v37  ;;  %v4675_v53 = vadd.f32 %v9292_v12, %v4674_v18 }
 0xa0e   : > { %6631 = vmatmul.msk.bf16.gmra.mxu0 %vm1847_vm9, %v4571_v8  ;;  %v4736_v58 = vmax.f32 %v4675_v53, 0.0 }
 0xa0f   : > { %v4483_v28 = vpop.f32.mrf.mxu3 }
 0xa10   : > { %v4518_v2 = vadd.f32 %v4483_v28, %v9022_v15 }
 0xa12   : > { %v9393_v20 = vadd.f32 %v9161_v21, %v4518_v2 }
 0xa13   : > { %v4676_v61 = vpop.f32.mrf.mxu0 }
 0xa14   : > { %v4677_v35 = vadd.f32 %v9292_v12, %v4676_v61 }
 0xa16   : > { %v4737_v55 = vmax.f32 %v4677_v35, 0.0 }
 0xa17   : > { %v4485_v48 = vpop.f32.mrf.mxu3 }
 0xa18   : > { %v4770_v62 = vpack.c.bf16 %v4737_v55, %v4736_v58  ;;  %v4519_v4 = vadd.f32 %v4485_v48, %v9025_v24  ;;  %v9407_v55 = vld [vmem:[#allocation2 + $0xa] ss:$0 sm:$0xff]  ;;  %v6829_v48 = vld [vmem:[%s9897_s1 + $0x210] sm:$0xff] }
 0xa19   : > { %5296 = vmatpush.bf16.msrb.mxu3 %v6829_v48 }
 0xa1a   : > { %v9396_v23 = vadd.f32 %v9161_v21, %v4519_v4  ;;  %6655 = vmatmul.msk.bf16.gmra.mxu1 %vm471_vm2, %v4770_v62 }
 0xa1b   : > { %v4679_v10 = vpop.f32.mrf.mxu0 }
 0xa1c   : > { %v4572_v49 = vpack.c.bf16 %v9396_v23, %v9393_v20  ;;  %v4680_v15 = vadd.f32 %v9292_v12, %v4679_v10 }
 0xa1e   : > { %6632 = vmatmul.msk.bf16.gmra.mxu0 %vm1847_vm9, %v4572_v49  ;;  %v4738_v24 = vmax.f32 %v4680_v15, 0.0  ;;  %vm5952_vm9 = vcmask 285696  }
 0xa23   : > { %v4681_v32 = vpop.f32.mrf.mxu0 }
 0xa24   : > { %v4682_v40 = vadd.f32 %v9292_v12, %v4681_v32 }
 0xa26   : > { %v4739_v44 = vmax.f32 %v4682_v40, 0.0 }
 0xa28   : > { %v4771_v18 = vpack.c.bf16 %v4739_v44, %v4738_v24 }
 0xa2a   : > { %6656 = vmatmul.msk.bf16.gmra.mxu1 %vm471_vm2, %v4771_v18 }
 0xa2b   : > { %v4684_v21 = vpop.f32.mrf.mxu0 }
 0xa2c   : > { %v4685_v8 = vadd.f32 %v9292_v12, %v4684_v21  ;;  %v5448_v21 = vld [vmem:[#allocation2 + $0x30] sm:$0x3f] }
 0xa2d   : > { %6729 = vmatpush.msk.msrb.mxu0 %vm5546_vm1, %v5448_v21 }
 0xa2e   : > { %v4740_v61 = vmax.f32 %v4685_v8, 0.0 }
 0xa33   : > { %v4686_v28 = vpop.f32.mrf.mxu0 }
 0xa34   : > { %v4687_v53 = vadd.f32 %v9292_v12, %v4686_v28 }
 0xa36   : > { %v4741_v35 = vmax.f32 %v4687_v53, 0.0 }
 0xa37   : > { %v4863_v58 = vpop.f32.mrf.mxu1 }
 0xa38   : > { %v4772_v2 = vpack.c.bf16 %v4741_v35, %v4740_v61  ;;  %v4864_v4 = vadd.f32 %v9407_v55, %v4863_v58 }
 0xa3a   : > { %6657 = vmatmul.msk.bf16.gmra.mxu1 %vm471_vm2, %v4772_v2  ;;  %v4943_v15 = vmax.f32 %v4864_v4, 0.0 }
 0xa3b   : > { %v4689_v62 = vpop.f32.mrf.mxu0 }
 0xa3c   : > { %v4690_v32 = vadd.f32 %v9292_v12, %v4689_v62 }
 0xa3e   : > { %v4742_v8 = vmax.f32 %v4690_v32, 0.0 }
 0xa3f   : > { %v4865_v10 = vpop.f32.mrf.mxu1 }
 0xa40   : > { %v4866_v49 = vadd.f32 %v9407_v55, %v4865_v10 }
 0xa42   : > { %v4944_v40 = vmax.f32 %v4866_v49, 0.0 }
 0xa43   : > { %v4691_v24 = vpop.f32.mrf.mxu0 }
 0xa44   : > { %v4983_v44 = vpack.c.bf16 %v4944_v40, %v4943_v15  ;;  %v4692_v18 = vadd.f32 %v9292_v12, %v4691_v24 }
 0xa46   : > { %v4743_v28 = vmax.f32 %v4692_v18, 0.0  ;;  %6681 = vmatmul.msk.bf16.vlgmr.msrb.gmra.mxu2 %vm471_vm2, %v4983_v44 }
 0xa47   : > { %v4868_v53 = vpop.f32.mrf.mxu1 }
 0xa48   : > { %v4773_v61 = vpack.c.bf16 %v4743_v28, %v4742_v8  ;;  %v4869_v58 = vadd.f32 %v9407_v55, %v4868_v53 }
 0xa4a   : > { %6658 = vmatmul.msk.bf16.gmra.mxu1 %vm471_vm2, %v4773_v61  ;;  %v4945_v62 = vmax.f32 %v4869_v58, 0.0 }
 0xa4b   : > { %v4694_v35 = vpop.f32.mrf.mxu0 }
 0xa4c   : > { %v4695_v4 = vadd.f32 %v9292_v12, %v4694_v35 }
 0xa4e   : > { %v4744_v40 = vmax.f32 %v4695_v4, 0.0 }
 0xa4f   : > { %v4870_v2 = vpop.f32.mrf.mxu1 }
 0xa50   : > { %v4871_v48 = vadd.f32 %v9407_v55, %v4870_v2 }
 0xa52   : > { %v4946_v10 = vmax.f32 %v4871_v48, 0.0 }
 0xa53   : > { %v4696_v49 = vpop.f32.mrf.mxu0 }
 0xa54   : > { %v4984_v15 = vpack.c.bf16 %v4946_v10, %v4945_v62  ;;  %v4697_v32 = vadd.f32 %v9292_v12, %v4696_v49 }
 0xa56   : > { %v4745_v24 = vmax.f32 %v4697_v32, 0.0  ;;  %6682 = vmatmul.msk.bf16.gmra.mxu2 %vm471_vm2, %v4984_v15 }
 0xa57   : > { %v4873_v44 = vpop.f32.mrf.mxu1 }
 0xa58   : > { %v4774_v18 = vpack.c.bf16 %v4745_v24, %v4744_v40  ;;  %v4874_v8 = vadd.f32 %v9407_v55, %v4873_v44 }
 0xa5a   : > { %6659 = vmatmul.msk.bf16.gmra.mxu1 %vm471_vm2, %v4774_v18  ;;  %v4947_v61 = vmax.f32 %v4874_v8, 0.0 }
 0xa5b   : > { %v4699_v21 = vpop.f32.mrf.mxu0 }
 0xa5c   : > { %v4700_v35 = vadd.f32 %v9292_v12, %v4699_v21 }
 0xa5e   : > { %v4746_v4 = vmax.f32 %v4700_v35, 0.0 }
 0xa5f   : > { %v4875_v28 = vpop.f32.mrf.mxu1 }
 0xa60   : > { %v4876_v53 = vadd.f32 %v9407_v55, %v4875_v28 }
 0xa62   : > { %v4948_v58 = vmax.f32 %v4876_v53, 0.0 }
 0xa63   : > { %v4701_v2 = vpop.f32.mrf.mxu0 }
 0xa64   : > { %v4985_v48 = vpack.c.bf16 %v4948_v58, %v4947_v61  ;;  %v4702_v62 = vadd.f32 %v9292_v12, %v4701_v2 }
 0xa66   : > { %v4747_v10 = vmax.f32 %v4702_v62, 0.0  ;;  %6683 = vmatmul.msk.bf16.gmra.mxu2 %vm471_vm2, %v4985_v48  ;;  %v6828_v62 = vld [vmem:[%s9897_s1 + $0x208] sm:$0xff] }
 0xa67   : > { %v4878_v49 = vpop.f32.mrf.mxu1  ;;  %5297 = vmatpush.bf16.msrb.mxu3 %v6828_v62 }
 0xa68   : > { %v4775_v15 = vpack.c.bf16 %v4747_v10, %v4746_v4  ;;  %v4879_v40 = vadd.f32 %v9407_v55, %v4878_v49 }
 0xa6a   : > { %6660 = vmatmul.msk.bf16.gmra.mxu1 %vm471_vm2, %v4775_v15  ;;  %v4949_v18 = vmax.f32 %v4879_v40, 0.0 }
 0xa6b   : > { %v4704_v32 = vpop.f32.mrf.mxu0 }
 0xa6c   : > { %v4705_v21 = vadd.f32 %v9292_v12, %v4704_v32 }
 0xa6e   : > { %v4748_v35 = vmax.f32 %v4705_v21, 0.0 }
 0xa6f   : > { %v4880_v24 = vpop.f32.mrf.mxu1 }
 0xa70   : > { %v4881_v44 = vadd.f32 %v9407_v55, %v4880_v24 }
 0xa72   : > { %v4950_v8 = vmax.f32 %v4881_v44, 0.0 }
 0xa73   : > { %v4706_v28 = vpop.f32.mrf.mxu0 }
 0xa74   : > { %v4986_v53 = vpack.c.bf16 %v4950_v8, %v4949_v18  ;;  %v4707_v61 = vadd.f32 %v9292_v12, %v4706_v28  ;;  %v5447_v8 = vld [vmem:[#allocation2 + $0x28] sm:$0xff] }
 0xa75   : > { %5563 = vmatpush.msrb.mxu0 %v5447_v8 }
 0xa76   : > { %v4749_v58 = vmax.f32 %v4707_v61, 0.0  ;;  %6684 = vmatmul.msk.bf16.gmra.mxu2 %vm471_vm2, %v4986_v53 }
 0xa77   : > { %v4883_v2 = vpop.f32.mrf.mxu1 }
 0xa78   : > { %v4776_v48 = vpack.c.bf16 %v4749_v58, %v4748_v35  ;;  %v4884_v10 = vadd.f32 %v9407_v55, %v4883_v2 }
 0xa7a   : > { %6661 = vmatmul.msk.bf16.gmra.mxu1 %vm471_vm2, %v4776_v48  ;;  %v4951_v32 = vmax.f32 %v4884_v10, 0.0 }
 0xa7b   : > { %v4709_v4 = vpop.f32.mrf.mxu0 }
 0xa7c   : > { %v4710_v40 = vadd.f32 %v9292_v12, %v4709_v4 }
 0xa7e   : > { %v4750_v28 = vmax.f32 %v4710_v40, 0.0 }
 0xa7f   : > { %v4885_v49 = vpop.f32.mrf.mxu1 }
 0xa80   : > { %v4886_v15 = vadd.f32 %v9407_v55, %v4885_v49 }
 0xa82   : > { %v4952_v24 = vmax.f32 %v4886_v15, 0.0 }
 0xa83   : > { %v4711_v44 = vpop.f32.mrf.mxu0 }
 0xa84   : > { %v4987_v18 = vpack.c.bf16 %v4952_v24, %v4951_v32  ;;  %v4712_v21 = vadd.f32 %v9292_v12, %v4711_v44 }
 0xa86   : > { %v4751_v53 = vmax.f32 %v4712_v21, 0.0  ;;  %6685 = vmatmul.msk.bf16.gmra.mxu2 %vm471_vm2, %v4987_v18 }
 0xa87   : > { %v4888_v61 = vpop.f32.mrf.mxu1 }
 0xa88   : > { %v4777_v35 = vpack.c.bf16 %v4751_v53, %v4750_v28  ;;  %v4889_v2 = vadd.f32 %v9407_v55, %v4888_v61 }
 0xa8a   : > { %6662 = vmatmul.msk.bf16.gmra.mxu1 %vm471_vm2, %v4777_v35  ;;  %v4953_v4 = vmax.f32 %v4889_v2, 0.0 }
 0xa8b   : > { %v4714_v58 = vpop.f32.mrf.mxu0 }
 0xa8c   : > { %v4715_v10 = vadd.f32 %v9292_v12, %v4714_v58 }
 0xa8e   : > { %v4752_v24 = vmax.f32 %v4715_v10, 0.0 }
 0xa8f   : > { %v4890_v48 = vpop.f32.mrf.mxu1 }
 0xa90   : > { %v4891_v62 = vadd.f32 %v9407_v55, %v4890_v48 }
 0xa92   : > { %v4954_v49 = vmax.f32 %v4891_v62, 0.0 }
 0xa93   : > { %v4716_v15 = vpop.f32.mrf.mxu0 }
 0xa94   : > { %v4988_v32 = vpack.c.bf16 %v4954_v49, %v4953_v4  ;;  %v4717_v40 = vadd.f32 %v9292_v12, %v4716_v15 }
 0xa96   : > { %v4753_v44 = vmax.f32 %v4717_v40, 0.0  ;;  %6686 = vmatmul.msk.bf16.gmra.mxu2 %vm471_vm2, %v4988_v32 }
 0xa97   : > { %v4893_v18 = vpop.f32.mrf.mxu1 }
 0xa98   : > { %v4778_v21 = vpack.c.bf16 %v4753_v44, %v4752_v24  ;;  %v4894_v28 = vadd.f32 %v9407_v55, %v4893_v18 }
 0xa9a   : > { %6663 = vmatmul.msk.bf16.gmra.mxu1 %vm471_vm2, %v4778_v21  ;;  %v4955_v35 = vmax.f32 %v4894_v28, 0.0 }
 0xa9b   : > { %v4719_v8 = vpop.f32.mrf.mxu0 }
 0xa9c   : > { %v4720_v58 = vadd.f32 %v9292_v12, %v4719_v8 }
 0xa9e   : > { %v4754_v10 = vmax.f32 %v4720_v58, 0.0 }
 0xa9f   : > { %v4895_v53 = vpop.f32.mrf.mxu1 }
 0xaa0   : > { %v4896_v61 = vadd.f32 %v9407_v55, %v4895_v53 }
 0xaa2   : > { %v4956_v2 = vmax.f32 %v4896_v61, 0.0 }
 0xaa3   : > { %v4721_v48 = vpop.f32.mrf.mxu0 }
 0xaa4   : > { %v4989_v62 = vpack.c.bf16 %v4956_v2, %v4955_v35  ;;  %v4722_v4 = vadd.f32 %v9292_v12, %v4721_v48  ;;  %v5446_v48 = vld [vmem:[#allocation2 + $0x20] sm:$0xff] }
 0xaa5   : > { %5564 = vmatpush.msrb.mxu0 %v5446_v48 }
 0xaa6   : > { %v4755_v49 = vmax.f32 %v4722_v4, 0.0  ;;  %6687 = vmatmul.msk.bf16.gmra.mxu2 %vm471_vm2, %v4989_v62 }
 0xaa7   : > { %v4898_v15 = vpop.f32.mrf.mxu1 }
 0xaa8   : > { %v4779_v32 = vpack.c.bf16 %v4755_v49, %v4754_v10  ;;  %v4899_v40 = vadd.f32 %v9407_v55, %v4898_v15  ;;  %v9464_v10 = vld [vmem:[#allocation2 + $0xb] ss:$0 sm:$0xff] }
 0xaaa   : > { %6664 = vmatmul.msk.bf16.gmra.mxu1 %vm471_vm2, %v4779_v32  ;;  %v4957_v18 = vmax.f32 %v4899_v40, 0.0 }
 0xaaf   : > { %v4900_v24 = vpop.f32.mrf.mxu1 }
 0xab0   : > { %v4901_v44 = vadd.f32 %v9407_v55, %v4900_v24 }
 0xab2   : > { %v4958_v21 = vmax.f32 %v4901_v44, 0.0 }
 0xab4   : > { %v4990_v8 = vpack.c.bf16 %v4958_v21, %v4957_v18 }
 0xab6   : > { %6688 = vmatmul.msk.bf16.gmra.mxu2 %vm471_vm2, %v4990_v8 }
 0xab7   : > { %v4903_v28 = vpop.f32.mrf.mxu1 }
 0xab8   : > { %v4904_v12 = vadd.f32 %v9407_v55, %v4903_v28 }
 0xaba   : > { %v4959_v35 = vmax.f32 %v4904_v12, 0.0 }
 0xabf   : > { %v4905_v53 = vpop.f32.mrf.mxu1 }
 0xac0   : > { %v4906_v61 = vadd.f32 %v9407_v55, %v4905_v53 }
 0xac2   : > { %v4960_v58 = vmax.f32 %v4906_v61, 0.0 }
 0xac4   : > { %v4991_v2 = vpack.c.bf16 %v4960_v58, %v4959_v35 }
 0xac6   : > { %6689 = vmatmul.msk.bf16.gmra.mxu2 %vm471_vm2, %v4991_v2 }
 0xac7   : > { %v4908_v62 = vpop.f32.mrf.mxu1 }
 0xac8   : > { %v4909_v49 = vadd.f32 %v9407_v55, %v4908_v62 }
 0xac9   : > { %v5082_v4 = vpop.f32.mrf.mxu2 }
 0xaca   : > { %v5083_v32 = vadd.f32 %v9464_v10, %v5082_v4  ;;  %v4961_v44 = vmax.f32 %v4909_v49, 0.0 }
 0xacc   : > { %v5162_v8 = vmax.f32 %v5083_v32, 0.0 }
 0xacf   : > { %v4910_v15 = vpop.f32.mrf.mxu1 }
 0xad0   : > { %v4911_v40 = vadd.f32 %v9407_v55, %v4910_v15 }
 0xad1   : > { %v5084_v24 = vpop.f32.mrf.mxu2 }
 0xad2   : > { %v4962_v18 = vmax.f32 %v4911_v40, 0.0  ;;  %v5085_v21 = vadd.f32 %v9464_v10, %v5084_v24 }
 0xad4   : > { %v4992_v28 = vpack.c.bf16 %v4962_v18, %v4961_v44  ;;  %v5163_v12 = vmax.f32 %v5085_v21, 0.0 }
 0xad6   : > { %v5202_v53 = vpack.c.bf16 %v5163_v12, %v5162_v8  ;;  %6690 = vmatmul.msk.bf16.gmra.mxu2 %vm471_vm2, %v4992_v28 }
 0xad7   : > { %v4913_v61 = vpop.f32.mrf.mxu1 }
 0xad8   : > { %6713 = vmatmul.msk.bf16.vlgmr.msrb.gmra.mxu3 %vm471_vm2, %v5202_v53  ;;  %v4914_v58 = vadd.f32 %v9407_v55, %v4913_v61 }
 0xad9   : > { %v5087_v35 = vpop.f32.mrf.mxu2 }
 0xada   : > { %v5088_v48 = vadd.f32 %v9464_v10, %v5087_v35  ;;  %v4963_v49 = vmax.f32 %v4914_v58, 0.0 }
 0xadc   : > { %v5164_v40 = vmax.f32 %v5088_v48, 0.0 }
 0xadf   : > { %v4915_v2 = vpop.f32.mrf.mxu1 }
 0xae0   : > { %v4916_v62 = vadd.f32 %v9407_v55, %v4915_v2 }
 0xae1   : > { %v5089_v4 = vpop.f32.mrf.mxu2 }
 0xae2   : > { %v4964_v15 = vmax.f32 %v4916_v62, 0.0  ;;  %v5090_v32 = vadd.f32 %v9464_v10, %v5089_v4 }
 0xae4   : > { %v4993_v24 = vpack.c.bf16 %v4964_v15, %v4963_v49  ;;  %v5165_v44 = vmax.f32 %v5090_v32, 0.0 }
 0xae6   : > { %v5203_v18 = vpack.c.bf16 %v5165_v44, %v5164_v40  ;;  %6691 = vmatmul.msk.bf16.gmra.mxu2 %vm471_vm2, %v4993_v24 }
 0xae7   : > { %v4918_v21 = vpop.f32.mrf.mxu1 }
 0xae8   : > { %6714 = vmatmul.msk.bf16.gmra.mxu3 %vm471_vm2, %v5203_v18  ;;  %v4919_v28 = vadd.f32 %v9407_v55, %v4918_v21 }
 0xae9   : > { %v5092_v8 = vpop.f32.mrf.mxu2 }
 0xaea   : > { %v5093_v53 = vadd.f32 %v9464_v10, %v5092_v8  ;;  %v4965_v58 = vmax.f32 %v4919_v28, 0.0 }
 0xaec   : > { %v5166_v62 = vmax.f32 %v5093_v53, 0.0 }
 0xaef   : > { %v4920_v12 = vpop.f32.mrf.mxu1 }
 0xaf0   : > { %v4921_v61 = vadd.f32 %v9407_v55, %v4920_v12 }
 0xaf1   : > { %v5094_v35 = vpop.f32.mrf.mxu2 }
 0xaf2   : > { %v4966_v2 = vmax.f32 %v4921_v61, 0.0  ;;  %v5095_v48 = vadd.f32 %v9464_v10, %v5094_v35 }
 0xaf4   : > { %v4994_v4 = vpack.c.bf16 %v4966_v2, %v4965_v58  ;;  %v5167_v49 = vmax.f32 %v5095_v48, 0.0  ;;  %v5445_v2 = vld [vmem:[#allocation2 + $0x18] sm:$0xff] }
 0xaf5   : > { %5565 = vmatpush.msrb.mxu0 %v5445_v2 }
 0xaf6   : > { %v5204_v15 = vpack.c.bf16 %v5167_v49, %v5166_v62  ;;  %6692 = vmatmul.msk.bf16.gmra.mxu2 %vm471_vm2, %v4994_v4 }
 0xaf7   : > { %v4923_v32 = vpop.f32.mrf.mxu1 }
 0xaf8   : > { %6715 = vmatmul.msk.bf16.gmra.mxu3 %vm471_vm2, %v5204_v15  ;;  %v4924_v24 = vadd.f32 %v9407_v55, %v4923_v32 }
 0xaf9   : > { %v5097_v40 = vpop.f32.mrf.mxu2 }
 0xafa   : > { %v5098_v18 = vadd.f32 %v9464_v10, %v5097_v40  ;;  %v4967_v28 = vmax.f32 %v4924_v24, 0.0 }
 0xafc   : > { %v5168_v61 = vmax.f32 %v5098_v18, 0.0 }
 0xaff   : > { %v4925_v44 = vpop.f32.mrf.mxu1 }
 0xb00   : > { %v4926_v21 = vadd.f32 %v9407_v55, %v4925_v44 }
 0xb01   : > { %v5099_v8 = vpop.f32.mrf.mxu2 }
 0xb02   : > { %v4968_v12 = vmax.f32 %v4926_v21, 0.0  ;;  %v5100_v53 = vadd.f32 %v9464_v10, %v5099_v8 }
 0xb04   : > { %v4995_v35 = vpack.c.bf16 %v4968_v12, %v4967_v28  ;;  %v5169_v58 = vmax.f32 %v5100_v53, 0.0 }
 0xb06   : > { %v5205_v48 = vpack.c.bf16 %v5169_v58, %v5168_v61  ;;  %6693 = vmatmul.msk.bf16.gmra.mxu2 %vm471_vm2, %v4995_v35 }
 0xb07   : > { %v4928_v62 = vpop.f32.mrf.mxu1 }
 0xb08   : > { %6716 = vmatmul.msk.bf16.gmra.mxu3 %vm471_vm2, %v5205_v48  ;;  %v4929_v49 = vadd.f32 %v9407_v55, %v4928_v62 }
 0xb09   : > { %v5102_v4 = vpop.f32.mrf.mxu2 }
 0xb0a   : > { %v5103_v32 = vadd.f32 %v9464_v10, %v5102_v4  ;;  %v4969_v44 = vmax.f32 %v4929_v49, 0.0 }
 0xb0c   : > { %v5170_v8 = vmax.f32 %v5103_v32, 0.0 }
 0xb0f   : > { %v4930_v15 = vpop.f32.mrf.mxu1 }
 0xb10   : > { %v4931_v40 = vadd.f32 %v9407_v55, %v4930_v15 }
 0xb11   : > { %v5104_v24 = vpop.f32.mrf.mxu2 }
 0xb12   : > { %v4970_v18 = vmax.f32 %v4931_v40, 0.0  ;;  %v5105_v21 = vadd.f32 %v9464_v10, %v5104_v24 }
 0xb14   : > { %v4996_v28 = vpack.c.bf16 %v4970_v18, %v4969_v44  ;;  %v5171_v12 = vmax.f32 %v5105_v21, 0.0 }
 0xb16   : > { %v5206_v53 = vpack.c.bf16 %v5171_v12, %v5170_v8  ;;  %6694 = vmatmul.msk.bf16.gmra.mxu2 %vm471_vm2, %v4996_v28 }
 0xb17   : > { %v4933_v61 = vpop.f32.mrf.mxu1 }
 0xb18   : > { %6717 = vmatmul.msk.bf16.gmra.mxu3 %vm471_vm2, %v5206_v53  ;;  %v4934_v58 = vadd.f32 %v9407_v55, %v4933_v61 }
 0xb19   : > { %v5107_v35 = vpop.f32.mrf.mxu2 }
 0xb1a   : > { %v5108_v48 = vadd.f32 %v9464_v10, %v5107_v35  ;;  %v4971_v49 = vmax.f32 %v4934_v58, 0.0 }
 0xb1c   : > { %v5172_v40 = vmax.f32 %v5108_v48, 0.0 }
 0xb1f   : > { %v4935_v2 = vpop.f32.mrf.mxu1 }
 0xb20   : > { %v4936_v62 = vadd.f32 %v9407_v55, %v4935_v2 }
 0xb21   : > { %v5109_v4 = vpop.f32.mrf.mxu2 }
 0xb22   : > { %v4972_v15 = vmax.f32 %v4936_v62, 0.0  ;;  %v5110_v32 = vadd.f32 %v9464_v10, %v5109_v4 }
 0xb24   : > { %v4997_v24 = vpack.c.bf16 %v4972_v15, %v4971_v49  ;;  %v5173_v44 = vmax.f32 %v5110_v32, 0.0 }
 0xb26   : > { %v5207_v18 = vpack.c.bf16 %v5173_v44, %v5172_v40  ;;  %6695 = vmatmul.msk.bf16.gmra.mxu2 %vm471_vm2, %v4997_v24 }
 0xb27   : > { %v4938_v21 = vpop.f32.mrf.mxu1 }
 0xb28   : > { %6718 = vmatmul.msk.bf16.gmra.mxu3 %vm471_vm2, %v5207_v18  ;;  %v4939_v28 = vadd.f32 %v9407_v55, %v4938_v21 }
 0xb29   : > { %v5112_v8 = vpop.f32.mrf.mxu2 }
 0xb2a   : > { %v5113_v53 = vadd.f32 %v9464_v10, %v5112_v8  ;;  %v4973_v58 = vmax.f32 %v4939_v28, 0.0 }
 0xb2c   : > { %v5174_v62 = vmax.f32 %v5113_v53, 0.0 }
 0xb2f   : > { %v4940_v12 = vpop.f32.mrf.mxu1 }
 0xb30   : > { %v4941_v61 = vadd.f32 %v9407_v55, %v4940_v12 }
 0xb31   : > { %v5114_v35 = vpop.f32.mrf.mxu2 }
 0xb32   : > { %v4974_v2 = vmax.f32 %v4941_v61, 0.0  ;;  %v5115_v48 = vadd.f32 %v9464_v10, %v5114_v35 }
 0xb34   : > { %v4998_v4 = vpack.c.bf16 %v4974_v2, %v4973_v58  ;;  %v5175_v49 = vmax.f32 %v5115_v48, 0.0  ;;  %v9514_v48 = vld [vmem:[#allocation2 + $0x13] ss:$0 sm:$0xff] }
 0xb36   : > { %v5208_v15 = vpack.c.bf16 %v5175_v49, %v5174_v62  ;;  %6696 = vmatmul.msk.bf16.gmra.mxu2 %vm471_vm2, %v4998_v4 }
 0xb38   : > { %6719 = vmatmul.msk.bf16.gmra.mxu3 %vm471_vm2, %v5208_v15 }
 0xb39   : > { %v5117_v32 = vpop.f32.mrf.mxu2 }
 0xb3a   : > { %v5118_v40 = vadd.f32 %v9464_v10, %v5117_v32 }
 0xb3c   : > { %v5176_v55 = vmax.f32 %v5118_v40, 0.0 }
 0xb41   : > { %v5119_v24 = vpop.f32.mrf.mxu2 }
 0xb42   : > { %v5120_v44 = vadd.f32 %v9464_v10, %v5119_v24 }
 0xb44   : > { %v5177_v18 = vmax.f32 %v5120_v44, 0.0 }
 0xb46   : > { %v5209_v21 = vpack.c.bf16 %v5177_v18, %v5176_v55 }
 0xb48   : > { %6720 = vmatmul.msk.bf16.gmra.mxu3 %vm471_vm2, %v5209_v21 }
 0xb49   : > { %v5122_v8 = vpop.f32.mrf.mxu2 }
 0xb4a   : > { %v5123_v28 = vadd.f32 %v9464_v10, %v5122_v8 }
 0xb4c   : > { %v5178_v61 = vmax.f32 %v5123_v28, 0.0 }
 0xb51   : > { %v5124_v12 = vpop.f32.mrf.mxu2 }
 0xb52   : > { %v5125_v53 = vadd.f32 %v9464_v10, %v5124_v12 }
 0xb54   : > { %v5179_v35 = vmax.f32 %v5125_v53, 0.0 }
 0xb56   : > { %v5210_v58 = vpack.c.bf16 %v5179_v35, %v5178_v61 }
 0xb58   : > { %6721 = vmatmul.msk.bf16.gmra.mxu3 %vm471_vm2, %v5210_v58 }
 0xb59   : > { %v5127_v2 = vpop.f32.mrf.mxu2 }
 0xb5a   : > { %v5128_v15 = vadd.f32 %v9464_v10, %v5127_v2 }
 0xb5b   : > { %v5299_v62 = vpop.f32.mrf.mxu3 }
 0xb5c   : > { %v5379_v4 = vadd.f32 %v5299_v62, %v9166_v3  ;;  %v5180_v55 = vmax.f32 %v5128_v15, 0.0 }
 0xb5e   : > { %v5413_v49 = vadd.f32 %v9514_v48, %v5379_v4 }
 0xb60   : > { %5823 = vrot.lane.b32.xlu1 %v5413_v49, %s7176_s9  ;;  %6730 = vmatmul.msk.f32.vlgmr.msrb.gmra.mxu0 %vm5449_vm3, %v5413_v49  ;;  %v5663_v32 = vsub.f32 %v7678_v0, %v5413_v49 }
 0xb61   : > { %v5129_v40 = vpop.f32.mrf.mxu2 }
 0xb62   : > { %v5130_v24 = vadd.f32 %v9464_v10, %v5129_v40  ;;  %5727 = vrot.lane.b32.xlu2 %v5663_v32, %s7176_s9 }
 0xb63   : > { %v5301_v44 = vpop.f32.mrf.mxu3 }
 0xb64   : > { %v5181_v3 = vmax.f32 %v5130_v24, 0.0  ;;  %v5380_v18 = vadd.f32 %v5301_v44, %v9169_v38 }
 0xb66   : > { %v5211_v21 = vpack.c.bf16 %v5181_v3, %v5180_v55  ;;  %v5414_v8 = vadd.f32 %v9514_v48, %v5380_v18 }
 0xb68   : > { %6722 = vmatmul.msk.bf16.gmra.mxu3 %vm471_vm2, %v5211_v21  ;;  %6731 = vmatmul.msk.f32.gmra.mxu0 %vm5449_vm3, %v5414_v8  ;;  %v5664_v28 = vsub.f32 %v7686_v13, %v5414_v8 }
 0xb69   : > { %v5132_v0 = vpop.f32.mrf.mxu2 }
 0xb6a   : > { %5825 = vrot.lane.b32.xlu2 %v5414_v8, %s7176_s9  ;;  %5729 = vrot.lane.b32.xlu0 %v5664_v28, %s7176_s9  ;;  %v5133_v38 = vadd.f32 %v9464_v10, %v5132_v0 }
 0xb6b   : > { %v5304_v12 = vpop.f32.mrf.mxu3 }
 0xb6c   : > { %v5381_v53 = vadd.f32 %v5304_v12, %v9183_v26  ;;  %v5182_v62 = vmax.f32 %v5133_v38, 0.0 }
 0xb6e   : > { %v5415_v61 = vadd.f32 %v9514_v48, %v5381_v53 }
 0xb70   : > { %6732 = vmatmul.msk.f32.gmra.mxu0 %vm5449_vm3, %v5415_v61  ;;  %v5665_v35 = vsub.f32 %v7728_v30, %v5415_v61 }
 0xb71   : > { %v5134_v58 = vpop.f32.mrf.mxu2 }
 0xb72   : > { %v5135_v2 = vadd.f32 %v9464_v10, %v5134_v58  ;;  %5827 = vrot.lane.b32.xlu0 %v5415_v61, %s7176_s9  ;;  %5731 = vrot.lane.b32.xlu1 %v5665_v35, %s7176_s9 }
 0xb73   : > { %v5306_v13 = vpop.f32.mrf.mxu3 }
 0xb74   : > { %v5183_v4 = vmax.f32 %v5135_v2, 0.0  ;;  %v5382_v26 = vadd.f32 %v5306_v13, %v9186_v63 }
 0xb76   : > { %v5212_v49 = vpack.c.bf16 %v5183_v4, %v5182_v62  ;;  %v5416_v15 = vadd.f32 %v9514_v48, %v5382_v26 }
 0xb78   : > { %6723 = vmatmul.msk.bf16.gmra.mxu3 %vm471_vm2, %v5212_v49  ;;  %6733 = vmatmul.msk.f32.gmra.mxu0 %vm5449_vm3, %v5416_v15  ;;  %v5666_v30 = vsub.f32 %v7733_v1, %v5416_v15 }
 0xb79   : > { %v5137_v32 = vpop.f32.mrf.mxu2 }
 0xb7a   : > { %5829 = vrot.lane.b32.xlu1 %v5416_v15, %s7176_s9  ;;  %5733 = vrot.lane.b32.xlu2 %v5666_v30, %s7176_s9  ;;  %v5138_v63 = vadd.f32 %v9464_v10, %v5137_v32 }
 0xb7b   : > { %v5309_v40 = vpop.f32.mrf.mxu3 }
 0xb7c   : > { %v5383_v24 = vadd.f32 %v5309_v40, %v9197_v46  ;;  %v5184_v21 = vmax.f32 %v5138_v63, 0.0 }
 0xb7e   : > { %v5417_v44 = vadd.f32 %v9514_v48, %v5383_v24 }
 0xb80   : > { %6734 = vmatmul.msk.f32.gmra.mxu0 %vm5449_vm3, %v5417_v44  ;;  %v5667_v55 = vsub.f32 %v7766_v56, %v5417_v44 }
 0xb81   : > { %v5139_v3 = vpop.f32.mrf.mxu2 }
 0xb82   : > { %v5140_v18 = vadd.f32 %v9464_v10, %v5139_v3  ;;  %5831 = vrot.lane.b32.xlu2 %v5417_v44, %s7176_s9  ;;  %5735 = vrot.lane.b32.xlu0 %v5667_v55, %s7176_s9 }
 0xb83   : > { %v5311_v1 = vpop.f32.mrf.mxu3 }
 0xb84   : > { %v5185_v8 = vmax.f32 %v5140_v18, 0.0  ;;  %v5384_v46 = vadd.f32 %v5311_v1, %v9200_v17 }
 0xb86   : > { %v5213_v28 = vpack.c.bf16 %v5185_v8, %v5184_v21  ;;  %v5418_v0 = vadd.f32 %v9514_v48, %v5384_v46 }
 0xb88   : > { %6724 = vmatmul.msk.bf16.gmra.mxu3 %vm471_vm2, %v5213_v28  ;;  %6735 = vmatmul.msk.f32.gmra.mxu0 %vm5449_vm3, %v5418_v0  ;;  %v5668_v56 = vsub.f32 %v7771_v33, %v5418_v0 }
 0xb89   : > { %v5142_v12 = vpop.f32.mrf.mxu2 }
 0xb8a   : > { %5833 = vrot.lane.b32.xlu0 %v5418_v0, %s7176_s9  ;;  %5737 = vrot.lane.b32.xlu1 %v5668_v56, %s7176_s9  ;;  %v5143_v17 = vadd.f32 %v9464_v10, %v5142_v12  ;;  %v9959_v0 = vld [vmem:[#allocation9_spill] sm:$0xff] }
 0xb8b   : > { %v5314_v53 = vpop.f32.mrf.mxu3 }
 0xb8c   : > { %v5385_v61 = vadd.f32 %v5314_v53, %v9211_v6  ;;  %v5186_v13 = vmax.f32 %v5143_v17, 0.0 }
 0xb8e   : > { %v5419_v38 = vadd.f32 %v9514_v48, %v5385_v61 }
 0xb90   : > { %6736 = vmatmul.msk.f32.gmra.mxu0 %vm5449_vm3, %v5419_v38  ;;  %v5669_v35 = vsub.f32 %v7804_v59, %v5419_v38 }
 0xb91   : > { %v5144_v58 = vpop.f32.mrf.mxu2 }
 0xb92   : > { %v5145_v2 = vadd.f32 %v9464_v10, %v5144_v58  ;;  %5835 = vrot.lane.b32.xlu1 %v5419_v38, %s7176_s9  ;;  %5739 = vrot.lane.b32.xlu2 %v5669_v35, %s7176_s9 }
 0xb93   : > { %v5316_v33 = vpop.f32.mrf.mxu3 }
 0xb94   : > { %v5187_v62 = vmax.f32 %v5145_v2, 0.0  ;;  %v5386_v6 = vadd.f32 %v5316_v33, %v9214_v34  ;;  %v9960_v2 = vld [vmem:[#allocation10_spill] sm:$0xff] }
 0xb96   : > { %v5214_v4 = vpack.c.bf16 %v5187_v62, %v5186_v13  ;;  %v5420_v26 = vadd.f32 %v9514_v48, %v5386_v6 }
 0xb98   : > { %6725 = vmatmul.msk.bf16.gmra.mxu3 %vm471_vm2, %v5214_v4  ;;  %6737 = vmatmul.msk.f32.gmra.mxu0 %vm5449_vm3, %v5420_v26  ;;  %v5670_v59 = vsub.f32 %v7809_v29, %v5420_v26 }
 0xb99   : > { %v5147_v49 = vpop.f32.mrf.mxu2 }
 0xb9a   : > { %5837 = vrot.lane.b32.xlu2 %v5420_v26, %s7176_s9  ;;  %5741 = vrot.lane.b32.xlu0 %v5670_v59, %s7176_s9  ;;  %v5148_v34 = vadd.f32 %v9464_v10, %v5147_v49  ;;  %v9961_v26 = vld [vmem:[#allocation11_spill] sm:$0xff] }
 0xb9b   : > { %v5319_v15 = vpop.f32.mrf.mxu3 }
 0xb9c   : > { %v5387_v30 = vadd.f32 %v5319_v15, %v9228_v36  ;;  %v5188_v63 = vmax.f32 %v5148_v34, 0.0 }
 0xb9e   : > { %v5421_v32 = vadd.f32 %v9514_v48, %v5387_v30 }
 0xba0   : > { %6738 = vmatmul.msk.f32.gmra.mxu0 %vm5449_vm3, %v5421_v32  ;;  %v5671_v40 = vsub.f32 %v7842_v52, %v5421_v32  ;;  %v9958_v52 = vld [vmem:[#allocation8_spill] sm:$0xff] }
 0xba1   : > { %v5149_v24 = vpop.f32.mrf.mxu2 }
 0xba2   : > { %v5150_v44 = vadd.f32 %v9464_v10, %v5149_v24  ;;  %5839 = vrot.lane.b32.xlu0 %v5421_v32, %s7176_s9  ;;  %5743 = vrot.lane.b32.xlu1 %v5671_v40, %s7176_s9 }
 0xba3   : > { %v5321_v29 = vpop.f32.mrf.mxu3 }
 0xba4   : > { %v5189_v55 = vmax.f32 %v5150_v44, 0.0  ;;  %v5388_v36 = vadd.f32 %v5321_v29, %v9231_v25  ;;  %v9962_v44 = vld [vmem:[#allocation12_spill] sm:$0xff] }
 0xba6   : > { %v5215_v3 = vpack.c.bf16 %v5189_v55, %v5188_v63  ;;  %v5422_v18 = vadd.f32 %v9514_v48, %v5388_v36  ;;  %v9963_v55 = vld [vmem:[#allocation13_spill] sm:$0xff] }
 0xba8   : > { %6726 = vmatmul.msk.bf16.gmra.mxu3 %vm471_vm2, %v5215_v3  ;;  %6739 = vmatmul.msk.f32.gmra.mxu0 %vm5449_vm3, %v5422_v18  ;;  %v5672_v1 = vsub.f32 %v9958_v52, %v5422_v18 }
 0xba9   : > { %v5152_v21 = vpop.f32.mrf.mxu2 }
 0xbaa   : > { %5841 = vrot.lane.b32.xlu1 %v5422_v18, %s7176_s9  ;;  %5745 = vrot.lane.b32.xlu2 %v5672_v1, %s7176_s9  ;;  %v5153_v25 = vadd.f32 %v9464_v10, %v5152_v21  ;;  %v9964_v1 = vld [vmem:[#allocation14_spill] sm:$0xff] }
 0xbab   : > { %v5324_v8 = vpop.f32.mrf.mxu3 }
 0xbac   : > { %v5389_v46 = vadd.f32 %v5324_v8, %v9245_v7  ;;  %v5190_v38 = vmax.f32 %v5153_v25, 0.0 }
 0xbae   : > { %v5423_v28 = vadd.f32 %v9514_v48, %v5389_v46 }
 0xbb0   : > { %6740 = vmatmul.msk.f32.gmra.mxu0 %vm5449_vm3, %v5423_v28  ;;  %v5673_v56 = vsub.f32 %v9959_v0, %v5423_v28 }
 0xbb1   : > { %v5154_v12 = vpop.f32.mrf.mxu2 }
 0xbb2   : > { %v5155_v53 = vadd.f32 %v9464_v10, %v5154_v12  ;;  %5843 = vrot.lane.b32.xlu2 %v5423_v28, %s7176_s9  ;;  %5747 = vrot.lane.b32.xlu0 %v5673_v56, %s7176_s9 }
 0xbb3   : > { %v5326_v61 = vpop.f32.mrf.mxu3 }
 0xbb4   : > { %v5191_v17 = vmax.f32 %v5155_v53, 0.0  ;;  %v5390_v7 = vadd.f32 %v5326_v61, %v9248_v19  ;;  %v9965_v53 = vld [vmem:[#allocation15_spill] sm:$0xff] }
 0xbb6   : > { %v5216_v35 = vpack.c.bf16 %v5191_v17, %v5190_v38  ;;  %v5424_v58 = vadd.f32 %v9514_v48, %v5390_v7 }
 0xbb8   : > { %6727 = vmatmul.msk.bf16.gmra.mxu3 %vm471_vm2, %v5216_v35  ;;  %6741 = vmatmul.msk.f32.gmra.mxu0 %vm5449_vm3, %v5424_v58  ;;  %v5674_v33 = vsub.f32 %v9960_v2, %v5424_v58 }
 0xbb9   : > { %v5157_v13 = vpop.f32.mrf.mxu2 }
 0xbba   : > { %5845 = vrot.lane.b32.xlu0 %v5424_v58, %s7176_s9  ;;  %5749 = vrot.lane.b32.xlu1 %v5674_v33, %s7176_s9  ;;  %v5158_v19 = vadd.f32 %v9464_v10, %v5157_v13 }
 0xbbb   : > { %v5329_v62 = vpop.f32.mrf.mxu3 }
 0xbbc   : > { %v5391_v6 = vadd.f32 %v5329_v62, %v9259_v50  ;;  %v5192_v32 = vmax.f32 %v5158_v19, 0.0  ;;  %v5728_v8 = vpop.permute.xlu2 %5727  ;;  %v9966_v62 = vld [vmem:[#allocation16_spill] sm:$0xff] }
 0xbbe   : > { %v5425_v4 = vadd.f32 %v9514_v48, %v5391_v6 }
 0xbc0   : > { %6742 = vmatmul.msk.f32.gmra.mxu0 %vm5449_vm3, %v5425_v4  ;;  %v5675_v59 = vsub.f32 %v9961_v26, %v5425_v4 }
 0xbc1   : > { %v5159_v49 = vpop.f32.mrf.mxu2 }
 0xbc2   : > { %v5160_v15 = vadd.f32 %v9464_v10, %v5159_v49  ;;  %5847 = vrot.lane.b32.xlu1 %v5425_v4, %s7176_s9  ;;  %5751 = vrot.lane.b32.xlu2 %v5675_v59, %s7176_s9 }
 0xbc3   : > { %v5331_v30 = vpop.f32.mrf.mxu3 }
 0xbc4   : > { %v5193_v34 = vmax.f32 %v5160_v15, 0.0  ;;  %v5392_v50 = vadd.f32 %v5331_v30, %v9262_v11  ;;  %v5826_v35 = vpop.permute.xlu2 %5825 }
 0xbc6   : > { %v5217_v40 = vpack.c.bf16 %v5193_v34, %v5192_v32  ;;  %v5426_v24 = vadd.f32 %v9514_v48, %v5392_v50  ;;  %v9967_v34 = vld [vmem:[#allocation17_spill] sm:$0xff] }
 0xbc8   : > { %6728 = vmatmul.msk.bf16.gmra.mxu3 %vm471_vm2, %v5217_v40  ;;  %6743 = vmatmul.msk.f32.gmra.mxu0 %vm5449_vm3, %v5426_v24  ;;  %v5676_v29 = vsub.f32 %v9962_v44, %v5426_v24  ;;  %vm5919_vm2 = vcmask 121856  }
 0xbca   : > { %5849 = vrot.lane.b32.xlu2 %v5426_v24, %s7176_s9  ;;  %5753 = vrot.lane.b32.xlu0 %v5676_v29, %s7176_s9 }
 0xbcb   : > { %v5334_v10 = vpop.f32.mrf.mxu3 }
 0xbcc   : > { %v5393_v63 = vadd.f32 %v5334_v10, %v9271_v39 }
 0xbce   : > { %v5427_v11 = vadd.f32 %v9514_v48, %v5393_v63 }
 0xbd0   : > { %6744 = vmatmul.msk.f32.gmra.mxu0 %vm5449_vm3, %v5427_v11  ;;  %v5677_v36 = vsub.f32 %v9963_v55, %v5427_v11 }
 0xbd2   : > { %5851 = vrot.lane.b32.xlu0 %v5427_v11, %s7176_s9  ;;  %5755 = vrot.lane.b32.xlu1 %v5677_v36, %s7176_s9  ;;  %v5824_v28 = vpop.permute.xlu1 %5823  ;;  %v9968_v36 = vld [vmem:[#allocation18_spill] sm:$0xff] }
 0xbd3   : > { %v5336_v3 = vpop.f32.mrf.mxu3 }
 0xbd4   : > { %v5394_v18 = vadd.f32 %v5336_v3, %v9274_v27  ;;  %v5734_v40 = vpop.permute.xlu2 %5733 }
 0xbd6   : > { %v5428_v52 = vadd.f32 %v9514_v48, %v5394_v18 }
 0xbd8   : > { %6745 = vmatmul.msk.f32.gmra.mxu0 %vm5449_vm3, %v5428_v52  ;;  %v5678_v21 = vsub.f32 %v9964_v1, %v5428_v52 }
 0xbda   : > { %5853 = vrot.lane.b32.xlu1 %v5428_v52, %s7176_s9  ;;  %5757 = vrot.lane.b32.xlu2 %v5678_v21, %s7176_s9 }
 0xbdb   : > { %v5339_v39 = vpop.f32.mrf.mxu3 }
 0xbdc   : > { %v5395_v46 = vadd.f32 %v5339_v39, %v9285_v51  ;;  %v5730_v38 = vpop.permute.xlu0 %5729  ;;  %v5832_v21 = vpop.permute.xlu2 %5831 }
 0xbdd   : > { %v5567_v27 = vpop.f32.mrf.mxu0 }
 0xbde   : > { %v5429_v25 = vadd.f32 %v9514_v48, %v5395_v46  ;;  %v5920_v0 = vsel %vm5919_vm2, %v5567_v27, %v5728_v8 }
 0xbdf   : > { %v5953_v56 = vsel %vm5952_vm9, %v5920_v0, %v5824_v28  ;;  %v9969_v28 = vld [vmem:[#allocation19_spill] sm:$0xff] }
 0xbe0   : > { %v5986_v12 = vsel %vm5985_vm13, %v5953_v56, 0.0  ;;  %6746 = vmatmul.msk.f32.gmra.mxu0 %vm5449_vm3, %v5429_v25  ;;  %v5679_v61 = vsub.f32 %v9965_v53, %v5429_v25 }
 0xbe1   : > { %6018 = vst [vmem:[%s9643_s11] sm:$0xff] %v5986_v12 }
 0xbe2   : > { %5855 = vrot.lane.b32.xlu2 %v5429_v25, %s7176_s9  ;;  %5759 = vrot.lane.b32.xlu0 %v5679_v61, %s7176_s9 }
 0xbe3   : > { %v5341_v51 = vpop.f32.mrf.mxu3 }
 0xbe4   : > { %v5396_v17 = vadd.f32 %v5341_v51, %v9288_v14  ;;  %v5732_v4 = vpop.permute.xlu1 %5731  ;;  %v5828_v59 = vpop.permute.xlu0 %5827 }
 0xbe5   : > { %v5570_v7 = vpop.f32.mrf.mxu0 }
 0xbe6   : > { %v5430_v58 = vadd.f32 %v9514_v48, %v5396_v17  ;;  %v5921_v2 = vsel %vm5919_vm2, %v5570_v7, %v5730_v38  ;;  %v9970_v7 = vld [vmem:[#allocation20_spill] sm:$0xff] }
 0xbe7   : > { %v5954_v33 = vsel %vm5952_vm9, %v5921_v2, %v5826_v35 }
 0xbe8   : > { %v5987_v13 = vsel %vm5985_vm13, %v5954_v33, 0.0  ;;  %6747 = vmatmul.msk.f32.gmra.mxu0 %vm5449_vm3, %v5430_v58  ;;  %v5680_v6 = vsub.f32 %v9966_v62, %v5430_v58 }
 0xbe9   : > { %6019 = vst [vmem:[%s9643_s11 + $0x8] sm:$0xff] %v5987_v13 }
 0xbea   : > { %5857 = vrot.lane.b32.xlu0 %v5430_v58, %s7176_s9  ;;  %5761 = vrot.lane.b32.xlu1 %v5680_v6, %s7176_s9 }
 0xbeb   : > { %v5344_v14 = vpop.f32.mrf.mxu3 }
 0xbec   : > { %v5397_v19 = vadd.f32 %v5344_v14, %v9300_v45  ;;  %v5830_v29 = vpop.permute.xlu1 %5829  ;;  %v5740_v58 = vpop.permute.xlu2 %5739 }
 0xbed   : > { %v5573_v26 = vpop.f32.mrf.mxu0 }
 0xbee   : > { %v5431_v49 = vadd.f32 %v9514_v48, %v5397_v19  ;;  %v5922_v15 = vsel %vm5919_vm2, %v5573_v26, %v5732_v4  ;;  %v9971_v19 = vld [vmem:[#allocation21_spill] sm:$0xff] }
 0xbef   : > { %v5955_v30 = vsel %vm5952_vm9, %v5922_v15, %v5828_v59 }
 0xbf0   : > { %v5988_v32 = vsel %vm5985_vm13, %v5955_v30, 0.0  ;;  %6748 = vmatmul.msk.f32.gmra.mxu0 %vm5449_vm3, %v5431_v49  ;;  %v5681_v50 = vsub.f32 %v9967_v34, %v5431_v49 }
 0xbf1   : > { %6020 = vst [vmem:[%s9643_s11 + $0x10] sm:$0xff] %v5988_v32 }
 0xbf2   : > { %5859 = vrot.lane.b32.xlu1 %v5431_v49, %s7176_s9  ;;  %5763 = vrot.lane.b32.xlu2 %v5681_v50, %s7176_s9 }
 0xbf3   : > { %v5346_v45 = vpop.f32.mrf.mxu3 }
 0xbf4   : > { %v5398_v24 = vadd.f32 %v5346_v45, %v9303_v16  ;;  %v5736_v18 = vpop.permute.xlu0 %5735  ;;  %v5838_v30 = vpop.permute.xlu2 %5837 }
 0xbf5   : > { %v5576_v44 = vpop.f32.mrf.mxu0 }
 0xbf6   : > { %v5432_v10 = vadd.f32 %v9514_v48, %v5398_v24  ;;  %v5923_v63 = vsel %vm5919_vm2, %v5576_v44, %v5734_v40  ;;  %v9972_v40 = vld [vmem:[#allocation22_spill] sm:$0xff] }
 0xbf7   : > { %v5956_v11 = vsel %vm5952_vm9, %v5923_v63, %v5830_v29 }
 0xbf8   : > { %v5989_v55 = vsel %vm5985_vm13, %v5956_v11, 0.0  ;;  %6749 = vmatmul.msk.f32.gmra.mxu0 %vm5449_vm3, %v5432_v10  ;;  %v5682_v3 = vsub.f32 %v9968_v36, %v5432_v10 }
 0xbf9   : > { %6021 = vst [vmem:[%s9643_s11 + $0x18] sm:$0xff] %v5989_v55 }
 0xbfa   : > { %5861 = vrot.lane.b32.xlu2 %v5432_v10, %s7176_s9  ;;  %5765 = vrot.lane.b32.xlu0 %v5682_v3, %s7176_s9 }
 0xbfb   : > { %v5349_v16 = vpop.f32.mrf.mxu3 }
 0xbfc   : > { %v5399_v52 = vadd.f32 %v5349_v16, %v9317_v54  ;;  %v5738_v0 = vpop.permute.xlu1 %5737  ;;  %v5834_v53 = vpop.permute.xlu0 %5833  ;;  %v9973_v16 = vld [vmem:[#allocation23_spill] sm:$0xff] }
 0xbfd   : > { %v5579_v1 = vpop.f32.mrf.mxu0 }
 0xbfe   : > { %v5433_v39 = vadd.f32 %v9514_v48, %v5399_v52  ;;  %v5924_v8 = vsel %vm5919_vm2, %v5579_v1, %v5736_v18 }
 0xbff   : > { %v5957_v46 = vsel %vm5952_vm9, %v5924_v8, %v5832_v21 }
 0xc00   : > { %v5990_v27 = vsel %vm5985_vm13, %v5957_v46, 0.0  ;;  %6750 = vmatmul.msk.f32.gmra.mxu0 %vm5449_vm3, %v5433_v39  ;;  %v5683_v25 = vsub.f32 %v9969_v28, %v5433_v39 }
 0xc01   : > { %6022 = vst [vmem:[%s9643_s11 + $0x20] sm:$0xff] %v5990_v27 }
 0xc02   : > { %5863 = vrot.lane.b32.xlu0 %v5433_v39, %s7176_s9  ;;  %5767 = vrot.lane.b32.xlu1 %v5683_v25, %s7176_s9  ;;  %v9974_v25 = vld [vmem:[#allocation24_spill] sm:$0xff] }
 0xc03   : > { %v5351_v54 = vpop.f32.mrf.mxu3 }
 0xc04   : > { %v5400_v56 = vadd.f32 %v5351_v54, %v9320_v5  ;;  %v5836_v13 = vpop.permute.xlu1 %5835  ;;  %v5746_v52 = vpop.permute.xlu2 %5745 }
 0xc05   : > { %v5582_v12 = vpop.f32.mrf.mxu0 }
 0xc06   : > { %v5434_v61 = vadd.f32 %v9514_v48, %v5400_v56  ;;  %v5925_v51 = vsel %vm5919_vm2, %v5582_v12, %v5738_v0 }
 0xc07   : > { %v5958_v38 = vsel %vm5952_vm9, %v5925_v51, %v5834_v53 }
 0xc08   : > { %v5991_v17 = vsel %vm5985_vm13, %v5958_v38, 0.0  ;;  %6751 = vmatmul.msk.f32.gmra.mxu0 %vm5449_vm3, %v5434_v61  ;;  %v5684_v35 = vsub.f32 %v9970_v7, %v5434_v61  ;;  %v9975_v7 = vld [vmem:[#allocation25_spill] sm:$0xff] }
 0xc09   : > { %6023 = vst [vmem:[%s9643_s11 + $0x28] sm:$0xff] %v5991_v17 }
 0xc0a   : > { %5865 = vrot.lane.b32.xlu1 %v5434_v61, %s7176_s9  ;;  %5769 = vrot.lane.b32.xlu2 %v5684_v35, %s7176_s9 }
 0xc0b   : > { %v5354_v5 = vpop.f32.mrf.mxu3 }
 0xc0c   : > { %v5401_v2 = vadd.f32 %v5354_v5, %v9331_v43  ;;  %v5742_v59 = vpop.permute.xlu0 %5741  ;;  %v5844_v53 = vpop.permute.xlu2 %5843 }
 0xc0d   : > { %v5585_v33 = vpop.f32.mrf.mxu0 }
 0xc0e   : > { %v5435_v62 = vadd.f32 %v9514_v48, %v5401_v2  ;;  %v5926_v6 = vsel %vm5919_vm2, %v5585_v33, %v5740_v58 }
 0xc0f   : > { %v5959_v14 = vsel %vm5952_vm9, %v5926_v6, %v5836_v13 }
 0xc10   : > { %v5992_v4 = vsel %vm5985_vm13, %v5959_v14, 0.0  ;;  %6752 = vmatmul.msk.f32.gmra.mxu0 %vm5449_vm3, %v5435_v62  ;;  %v5685_v26 = vsub.f32 %v9971_v19, %v5435_v62 }
 0xc11   : > { %6024 = vst [vmem:[%s9643_s11 + $0x30] sm:$0xff] %v5992_v4  ;;  %v9976_v4 = vld [vmem:[#allocation26_spill] sm:$0xff] }
 0xc12   : > { %5867 = vrot.lane.b32.xlu2 %v5435_v62, %s7176_s9  ;;  %5771 = vrot.lane.b32.xlu0 %v5685_v26, %s7176_s9 }
 0xc13   : > { %v5356_v43 = vpop.f32.mrf.mxu3 }
 0xc14   : > { %v5402_v49 = vadd.f32 %v5356_v43, %v9334_v22  ;;  %v5744_v44 = vpop.permute.xlu1 %5743  ;;  %v5840_v63 = vpop.permute.xlu0 %5839 }
 0xc15   : > { %v5588_v15 = vpop.f32.mrf.mxu0 }
 0xc16   : > { %v5436_v32 = vadd.f32 %v9514_v48, %v5402_v49  ;;  %v5927_v34 = vsel %vm5919_vm2, %v5588_v15, %v5742_v59 }
 0xc17   : > { %v5960_v50 = vsel %vm5952_vm9, %v5927_v34, %v5838_v30 }
 0xc18   : > { %v5993_v45 = vsel %vm5985_vm13, %v5960_v50, 0.0  ;;  %6753 = vmatmul.msk.f32.gmra.mxu0 %vm5449_vm3, %v5436_v32  ;;  %v5686_v24 = vsub.f32 %v9972_v40, %v5436_v32  ;;  %v9977_v50 = vld [vmem:[#allocation27_spill] sm:$0xff] }
 0xc19   : > { %6025 = vst [vmem:[%s9643_s11 + $0x38] sm:$0xff] %v5993_v45 }
 0xc1a   : > { %5869 = vrot.lane.b32.xlu0 %v5436_v32, %s7176_s9  ;;  %5773 = vrot.lane.b32.xlu1 %v5686_v24, %s7176_s9 }
 0xc1b   : > { %v5359_v22 = vpop.f32.mrf.mxu3 }
 0xc1c   : > { %v5403_v29 = vadd.f32 %v5359_v22, %v9348_v41  ;;  %v5842_v39 = vpop.permute.xlu1 %5841  ;;  %v5752_v26 = vpop.permute.xlu2 %5751 }
 0xc1d   : > { %v5591_v10 = vpop.f32.mrf.mxu0 }
 0xc1e   : > { %v5437_v11 = vadd.f32 %v9514_v48, %v5403_v29  ;;  %v5928_v55 = vsel %vm5919_vm2, %v5591_v10, %v5744_v44 }
 0xc1f   : > { %v5961_v36 = vsel %vm5952_vm9, %v5928_v55, %v5840_v63  ;;  %v9978_v55 = vld [vmem:[#allocation28_spill] sm:$0xff] }
 0xc20   : > { %v5994_v3 = vsel %vm5985_vm13, %v5961_v36, 0.0  ;;  %6754 = vmatmul.msk.f32.gmra.mxu0 %vm5449_vm3, %v5437_v11  ;;  %v5687_v18 = vsub.f32 %v9973_v16, %v5437_v11 }
 0xc21   : > { %6026 = vst [vmem:[%s9643_s11 + $0x40] sm:$0xff] %v5994_v3 }
 0xc22   : > { %5871 = vrot.lane.b32.xlu1 %v5437_v11, %s7176_s9  ;;  %5775 = vrot.lane.b32.xlu2 %v5687_v18, %s7176_s9 }
 0xc23   : > { %v5361_v41 = vpop.f32.mrf.mxu3 }
 0xc24   : > { %v5404_v1 = vadd.f32 %v5361_v41, %v9351_v9  ;;  %v5748_v0 = vpop.permute.xlu0 %5747  ;;  %v5850_v44 = vpop.permute.xlu2 %5849 }
 0xc25   : > { %v5594_v21 = vpop.f32.mrf.mxu0 }
 0xc26   : > { %v5438_v8 = vadd.f32 %v9514_v48, %v5404_v1  ;;  %v5929_v46 = vsel %vm5919_vm2, %v5594_v21, %v5746_v52 }
 0xc27   : > { %v5962_v27 = vsel %vm5952_vm9, %v5929_v46, %v5842_v39 }
 0xc28   : > { %v5995_v28 = vsel %vm5985_vm13, %v5962_v27, 0.0  ;;  %6755 = vmatmul.msk.f32.gmra.mxu0 %vm5449_vm3, %v5438_v8  ;;  %v5688_v54 = vsub.f32 %v9974_v25, %v5438_v8 }
 0xc29   : > { %6027 = vst [vmem:[%s9643_s11 + $0x48] sm:$0xff] %v5995_v28 }
 0xc2a   : > { %5873 = vrot.lane.b32.xlu2 %v5438_v8, %s7176_s9  ;;  %5777 = vrot.lane.b32.xlu0 %v5688_v54, %s7176_s9 }
 0xc2b   : > { %v5364_v9 = vpop.f32.mrf.mxu3 }
 0xc2c   : > { %v5405_v56 = vadd.f32 %v5364_v9, %v9362_v31  ;;  %v5750_v5 = vpop.permute.xlu1 %5749  ;;  %v5846_v33 = vpop.permute.xlu0 %5845 }
 0xc2d   : > { %v5597_v12 = vpop.f32.mrf.mxu0 }
 0xc2e   : > { %v5439_v61 = vadd.f32 %v9514_v48, %v5405_v56  ;;  %v5930_v51 = vsel %vm5919_vm2, %v5597_v12, %v5748_v0 }
 0xc2f   : > { %v5963_v38 = vsel %vm5952_vm9, %v5930_v51, %v5844_v53 }
 0xc30   : > { %v5996_v17 = vsel %vm5985_vm13, %v5963_v38, 0.0  ;;  %6756 = vmatmul.msk.f32.gmra.mxu0 %vm5449_vm3, %v5439_v61  ;;  %v5689_v35 = vsub.f32 %v9975_v7, %v5439_v61 }
 0xc31   : > { %6028 = vst [vmem:[%s9643_s11 + $0x50] sm:$0xff] %v5996_v17 }
 0xc32   : > { %5875 = vrot.lane.b32.xlu0 %v5439_v61, %s7176_s9  ;;  %5779 = vrot.lane.b32.xlu1 %v5689_v35, %s7176_s9 }
 0xc33   : > { %v5366_v31 = vpop.f32.mrf.mxu3 }
 0xc34   : > { %v5406_v58 = vadd.f32 %v5366_v31, %v9365_v60  ;;  %v5848_v49 = vpop.permute.xlu1 %5847  ;;  %v5758_v46 = vpop.permute.xlu2 %5757 }
 0xc35   : > { %v5600_v2 = vpop.f32.mrf.mxu0 }
 0xc36   : > { %v5440_v13 = vadd.f32 %v9514_v48, %v5406_v58  ;;  %v5931_v62 = vsel %vm5919_vm2, %v5600_v2, %v5750_v5 }
 0xc37   : > { %v5964_v6 = vsel %vm5952_vm9, %v5931_v62, %v5846_v33 }
 0xc38   : > { %v5997_v14 = vsel %vm5985_vm13, %v5964_v6, 0.0  ;;  %6757 = vmatmul.msk.f32.gmra.mxu0 %vm5449_vm3, %v5440_v13  ;;  %v5690_v19 = vsub.f32 %v9976_v4, %v5440_v13 }
 0xc39   : > { %6029 = vst [vmem:[%s9643_s11 + $0x58] sm:$0xff] %v5997_v14 }
 0xc3a   : > { %5877 = vrot.lane.b32.xlu1 %v5440_v13, %s7176_s9  ;;  %5781 = vrot.lane.b32.xlu2 %v5690_v19, %s7176_s9 }
 0xc3b   : > { %v5369_v60 = vpop.f32.mrf.mxu3 }
 0xc3c   : > { %v5407_v43 = vadd.f32 %v5369_v60, %v9379_v37  ;;  %v5754_v40 = vpop.permute.xlu0 %5753  ;;  %v5856_v53 = vpop.permute.xlu2 %5855 }
 0xc3d   : > { %v5603_v59 = vpop.f32.mrf.mxu0 }
 0xc3e   : > { %v5441_v15 = vadd.f32 %v9514_v48, %v5407_v43  ;;  %v5932_v30 = vsel %vm5919_vm2, %v5603_v59, %v5752_v26 }
 0xc3f   : > { %v5965_v32 = vsel %vm5952_vm9, %v5932_v30, %v5848_v49 }
 0xc40   : > { %v5998_v34 = vsel %vm5985_vm13, %v5965_v32, 0.0  ;;  %6758 = vmatmul.msk.f32.gmra.mxu0 %vm5449_vm3, %v5441_v15  ;;  %v5691_v45 = vsub.f32 %v9977_v50, %v5441_v15 }
 0xc41   : > { %6030 = vst [vmem:[%s9643_s11 + $0x60] sm:$0xff] %v5998_v34 }
 0xc42   : > { %5879 = vrot.lane.b32.xlu2 %v5441_v15, %s7176_s9  ;;  %5783 = vrot.lane.b32.xlu0 %v5691_v45, %s7176_s9 }
 0xc43   : > { %v5371_v37 = vpop.f32.mrf.mxu3 }
 0xc44   : > { %v5408_v24 = vadd.f32 %v5371_v37, %v9382_v42  ;;  %v5756_v42 = vpop.permute.xlu1 %5755  ;;  %v5852_v41 = vpop.permute.xlu0 %5851 }
 0xc45   : > { %v5606_v22 = vpop.f32.mrf.mxu0 }
 0xc46   : > { %v5442_v29 = vadd.f32 %v9514_v48, %v5408_v24  ;;  %v5933_v10 = vsel %vm5919_vm2, %v5606_v22, %v5754_v40 }
 0xc47   : > { %v5966_v63 = vsel %vm5952_vm9, %v5933_v10, %v5850_v44 }
 0xc48   : > { %v5999_v11 = vsel %vm5985_vm13, %v5966_v63, 0.0  ;;  %6759 = vmatmul.msk.f32.gmra.mxu0 %vm5449_vm3, %v5442_v29  ;;  %v5692_v36 = vsub.f32 %v9978_v55, %v5442_v29 }
 0xc49   : > { %6031 = vst [vmem:[%s9643_s11 + $0x68] sm:$0xff] %v5999_v11 }
 0xc4a   : > { %5785 = vrot.lane.b32.xlu1 %v5692_v36, %s7176_s9 }
 0xc4b   : > { %v5374_v3 = vpop.f32.mrf.mxu3 }
 0xc4c   : > { %v5409_v16 = vadd.f32 %v5374_v3, %v9393_v20  ;;  %v5854_v25 = vpop.permute.xlu1 %5853  ;;  %v5764_v5 = vpop.permute.xlu2 %5763 }
 0xc4d   : > { %v5609_v18 = vpop.f32.mrf.mxu0 }
 0xc4e   : > { %v5443_v52 = vadd.f32 %v9514_v48, %v5409_v16  ;;  %v5934_v1 = vsel %vm5919_vm2, %v5609_v18, %v5756_v42 }
 0xc4f   : > { %v5967_v21 = vsel %vm5952_vm9, %v5934_v1, %v5852_v41 }
 0xc50   : > { %v6000_v39 = vsel %vm5985_vm13, %v5967_v21, 0.0  ;;  %6760 = vmatmul.msk.f32.gmra.mxu0 %vm5449_vm3, %v5443_v52  ;;  %v5693_v8 = vsub.f32 %v8277_v57, %v5443_v52 }
 0xc51   : > { %6032 = vst [vmem:[%s9643_s11 + $0x70] sm:$0xff] %v6000_v39 }
 0xc52   : > { %5883 = vrot.lane.b32.xlu1 %v5443_v52, %s7176_s9  ;;  %5787 = vrot.lane.b32.xlu2 %v5693_v8, %s7176_s9 }
 0xc53   : > { %v5376_v20 = vpop.f32.mrf.mxu3 }
 0xc54   : > { %v5410_v27 = vadd.f32 %v5376_v20, %v9396_v23  ;;  %v5760_v23 = vpop.permute.xlu0 %5759  ;;  %v5862_v4 = vpop.permute.xlu2 %5861 }
 0xc55   : > { %v5612_v28 = vpop.f32.mrf.mxu0 }
 0xc56   : > { %v5444_v54 = vadd.f32 %v9514_v48, %v5410_v27  ;;  %v5935_v9 = vsel %vm5919_vm2, %v5612_v28, %v5758_v46 }
 0xc57   : > { %v5968_v0 = vsel %vm5952_vm9, %v5935_v9, %v5854_v25 }
 0xc58   : > { %v6001_v57 = vsel %vm5985_vm13, %v5968_v0, 0.0  ;;  %6761 = vmatmul.msk.f32.gmra.mxu0 %vm5449_vm3, %v5444_v54  ;;  %v5694_v56 = vsub.f32 %v8279_v47, %v5444_v54 }
 0xc59   : > { %6033 = vst [vmem:[%s9643_s11 + $0x78] sm:$0xff] %v6001_v57 }
 0xc5a   : > { %5885 = vrot.lane.b32.xlu2 %v5444_v54, %s7176_s9  ;;  %5789 = vrot.lane.b32.xlu0 %v5694_v56, %s7176_s9 }
 0xc5c   : > { %v5762_v47 = vpop.permute.xlu1 %5761  ;;  %v5858_v17 = vpop.permute.xlu0 %5857 }
 0xc5d   : > { %v5615_v12 = vpop.f32.mrf.mxu0 }
 0xc5e   : > { %v5936_v48 = vsel %vm5919_vm2, %v5615_v12, %v5760_v23 }
 0xc5f   : > { %v5969_v61 = vsel %vm5952_vm9, %v5936_v48, %v5856_v53 }
 0xc60   : > { %v6002_v51 = vsel %vm5985_vm13, %v5969_v61, 0.0 }
 0xc61   : > { %6034 = vst [vmem:[%s9643_s11 + $0x80] sm:$0xff] %v6002_v51 }
 0xc62   : > { %5881 = vrot.lane.b32.xlu0 %v5442_v29, %s7176_s9 }
 0xc64   : > { %v5860_v2 = vpop.permute.xlu1 %5859  ;;  %v5770_v34 = vpop.permute.xlu2 %5769 }
 0xc65   : > { %v5618_v38 = vpop.f32.mrf.mxu0 }
 0xc66   : > { %v5937_v7 = vsel %vm5919_vm2, %v5618_v38, %v5762_v47 }
 0xc67   : > { %v5970_v35 = vsel %vm5952_vm9, %v5937_v7, %v5858_v17 }
 0xc68   : > { %v6003_v31 = vsel %vm5985_vm13, %v5970_v35, 0.0 }
 0xc69   : > { %6035 = vst [vmem:[%s9643_s11 + $0x88] sm:$0xff] %v6003_v31 }
 0xc6c   : > { %v5766_v6 = vpop.permute.xlu0 %5765  ;;  %v5868_v29 = vpop.permute.xlu2 %5867 }
 0xc6d   : > { %v5621_v58 = vpop.f32.mrf.mxu0 }
 0xc6e   : > { %v5938_v33 = vsel %vm5919_vm2, %v5621_v58, %v5764_v5 }
 0xc6f   : > { %v5971_v13 = vsel %vm5952_vm9, %v5938_v33, %v5860_v2 }
 0xc70   : > { %v6004_v62 = vsel %vm5985_vm13, %v5971_v13, 0.0 }
 0xc71   : > { %6036 = vst [vmem:[%s9643_s11 + $0x90] sm:$0xff] %v6004_v62 }
 0xc74   : > { %v5768_v43 = vpop.permute.xlu1 %5767  ;;  %v5864_v49 = vpop.permute.xlu0 %5863 }
 0xc75   : > { %v5624_v14 = vpop.f32.mrf.mxu0 }
 0xc76   : > { %v5939_v19 = vsel %vm5919_vm2, %v5624_v14, %v5766_v6 }
 0xc77   : > { %v5972_v60 = vsel %vm5952_vm9, %v5939_v19, %v5862_v4 }
 0xc78   : > { %v6005_v26 = vsel %vm5985_vm13, %v5972_v60, 0.0 }
 0xc79   : > { %6037 = vst [vmem:[%s9643_s11 + $0x98] sm:$0xff] %v6005_v26 }
 0xc7c   : > { %v5866_v45 = vpop.permute.xlu1 %5865  ;;  %v5776_v41 = vpop.permute.xlu2 %5775 }
 0xc7d   : > { %v5627_v59 = vpop.f32.mrf.mxu0 }
 0xc7e   : > { %v5940_v15 = vsel %vm5919_vm2, %v5627_v59, %v5768_v43 }
 0xc7f   : > { %v5973_v30 = vsel %vm5952_vm9, %v5940_v15, %v5864_v49 }
 0xc80   : > { %v6006_v32 = vsel %vm5985_vm13, %v5973_v30, 0.0 }
 0xc81   : > { %6038 = vst [vmem:[%s9643_s11 + $0xa0] sm:$0xff] %v6006_v32 }
 0xc84   : > { %v5772_v22 = vpop.permute.xlu0 %5771  ;;  %v5874_v27 = vpop.permute.xlu2 %5873 }
 0xc85   : > { %v5630_v50 = vpop.f32.mrf.mxu0 }
 0xc86   : > { %v5941_v37 = vsel %vm5919_vm2, %v5630_v50, %v5770_v34 }
 0xc87   : > { %v5974_v40 = vsel %vm5952_vm9, %v5941_v37, %v5866_v45 }
 0xc88   : > { %v6007_v24 = vsel %vm5985_vm13, %v5974_v40, 0.0 }
 0xc89   : > { %6039 = vst [vmem:[%s9643_s11 + $0xa8] sm:$0xff] %v6007_v24 }
 0xc8c   : > { %v5774_v55 = vpop.permute.xlu1 %5773  ;;  %v5870_v3 = vpop.permute.xlu0 %5869 }
 0xc8d   : > { %v5633_v44 = vpop.f32.mrf.mxu0 }
 0xc8e   : > { %v5942_v10 = vsel %vm5919_vm2, %v5633_v44, %v5772_v22 }
 0xc8f   : > { %v5975_v63 = vsel %vm5952_vm9, %v5942_v10, %v5868_v29 }
 0xc90   : > { %v6008_v11 = vsel %vm5985_vm13, %v5975_v63, 0.0 }
 0xc91   : > { %6040 = vst [vmem:[%s9643_s11 + $0xb0] sm:$0xff] %v6008_v11 }
 0xc94   : > { %v5872_v1 = vpop.permute.xlu1 %5871  ;;  %v5782_v53 = vpop.permute.xlu2 %5781 }
 0xc95   : > { %v5636_v36 = vpop.f32.mrf.mxu0 }
 0xc96   : > { %v5943_v42 = vsel %vm5919_vm2, %v5636_v36, %v5774_v55 }
 0xc97   : > { %v5976_v16 = vsel %vm5952_vm9, %v5943_v42, %v5870_v3 }
 0xc98   : > { %v6009_v18 = vsel %vm5985_vm13, %v5976_v16, 0.0 }
 0xc99   : > { %6041 = vst [vmem:[%s9643_s11 + $0xb8] sm:$0xff] %v6009_v18 }
 0xc9c   : > { %v5778_v20 = vpop.permute.xlu0 %5777  ;;  %v5880_v35 = vpop.permute.xlu2 %5879 }
 0xc9d   : > { %v5639_v52 = vpop.f32.mrf.mxu0 }
 0xc9e   : > { %v5944_v21 = vsel %vm5919_vm2, %v5639_v52, %v5776_v41 }
 0xc9f   : > { %v5977_v39 = vsel %vm5952_vm9, %v5944_v21, %v5872_v1 }
 0xca0   : > { %v6010_v8 = vsel %vm5985_vm13, %v5977_v39, 0.0 }
 0xca1   : > { %6042 = vst [vmem:[%s9643_s11 + $0xc0] sm:$0xff] %v6010_v8 }
 0xca4   : > { %v5780_v9 = vpop.permute.xlu1 %5779  ;;  %v5876_v57 = vpop.permute.xlu0 %5875 }
 0xca5   : > { %v5642_v46 = vpop.f32.mrf.mxu0 }
 0xca6   : > { %v5945_v28 = vsel %vm5919_vm2, %v5642_v46, %v5778_v20 }
 0xca7   : > { %v5978_v25 = vsel %vm5952_vm9, %v5945_v28, %v5874_v27 }
 0xca8   : > { %v6011_v54 = vsel %vm5985_vm13, %v5978_v25, 0.0 }
 0xca9   : > { %6043 = vst [vmem:[%s9643_s11 + $0xc8] sm:$0xff] %v6011_v54 }
 0xcac   : > { %v5878_v61 = vpop.permute.xlu1 %5877  ;;  %v5788_v13 = vpop.permute.xlu2 %5787 }
 0xcad   : > { %v5645_v0 = vpop.f32.mrf.mxu0 }
 0xcae   : > { %v5946_v56 = vsel %vm5919_vm2, %v5645_v0, %v5780_v9 }
 0xcaf   : > { %v5979_v23 = vsel %vm5952_vm9, %v5946_v56, %v5876_v57 }
 0xcb0   : > { %v6012_v12 = vsel %vm5985_vm13, %v5979_v23, 0.0 }
 0xcb1   : > { %6044 = vst [vmem:[%s9643_s11 + $0xd0] sm:$0xff] %v6012_v12 }
 0xcb4   : > { %v5784_v17 = vpop.permute.xlu0 %5783  ;;  %v5886_v15 = vpop.permute.xlu2 %5885 }
 0xcb5   : > { %v5648_v48 = vpop.f32.mrf.mxu0 }
 0xcb6   : > { %v5947_v51 = vsel %vm5919_vm2, %v5648_v48, %v5782_v53 }
 0xcb7   : > { %v5980_v47 = vsel %vm5952_vm9, %v5947_v51, %v5878_v61 }
 0xcb8   : > { %v6013_v38 = vsel %vm5985_vm13, %v5980_v47, 0.0 }
 0xcb9   : > { %6045 = vst [vmem:[%s9643_s11 + $0xd8] sm:$0xff] %v6013_v38 }
 0xcbc   : > { %v5786_v2 = vpop.permute.xlu1 %5785 }
 0xcbd   : > { %v5651_v7 = vpop.f32.mrf.mxu0 }
 0xcbe   : > { %v5948_v31 = vsel %vm5919_vm2, %v5651_v7, %v5784_v17 }
 0xcbf   : > { %v5981_v5 = vsel %vm5952_vm9, %v5948_v31, %v5880_v35 }
 0xcc0   : > { %v6014_v58 = vsel %vm5985_vm13, %v5981_v5, 0.0 }
 0xcc1   : > { %6046 = vst [vmem:[%s9643_s11 + $0xe0] sm:$0xff] %v6014_v58 }
 0xcc4   : > { %v5884_v14 = vpop.permute.xlu1 %5883 }
 0xcc5   : > { %v5654_v33 = vpop.f32.mrf.mxu0 }
 0xcc6   : > { %v5949_v26 = vsel %vm5919_vm2, %v5654_v33, %v5786_v2 }
 0xccc   : > { %v5790_v62 = vpop.permute.xlu0 %5789 }
 0xccd   : > { %v5657_v6 = vpop.f32.mrf.mxu0 }
 0xcce   : > { %v5950_v4 = vsel %vm5919_vm2, %v5657_v6, %v5788_v13 }
 0xccf   : > { %v5983_v19 = vsel %vm5952_vm9, %v5950_v4, %v5884_v14 }
 0xcd0   : > { %v6016_v60 = vsel %vm5985_vm13, %v5983_v19, 0.0 }
 0xcd1   : > { %6048 = vst [vmem:[%s9643_s11 + $0xf0] sm:$0xff] %v6016_v60 }
 0xcd4   : > { %v5882_v43 = vpop.permute.xlu0 %5881 }
 0xcd5   : > { %v5982_v59 = vsel %vm5952_vm9, %v5949_v26, %v5882_v43  ;;  %v5660_v49 = vpop.f32.mrf.mxu0 }
 0xcd6   : > { %v6015_v30 = vsel %vm5985_vm13, %v5982_v59, 0.0  ;;  %v5951_v32 = vsel %vm5919_vm2, %v5660_v49, %v5790_v62 }
 0xcd7   : > { %6047 = vst [vmem:[%s9643_s11 + $0xe8] sm:$0xff] %v6015_v30  ;;  %v5984_v34 = vsel %vm5952_vm9, %v5951_v32, %v5886_v15 }
 0xcd8   : > { %v6017_v50 = vsel %vm5985_vm13, %v5984_v34, 0.0 }
 0xcd9   : > { %6049 = vst [vmem:[%s9643_s11 + $0xf8] sm:$0xff] %v6017_v50 }
 0xcda   : > { %7131 = shalt.err (!%p7128_p8)
}
 0xcdb   : > { %s7177_s7 = smov 128   ;;  %s7178_s9 = smov 8  }
 0xcdc   : > { %6840 = dma.vmem_to_hbm [thread:$0]  (%p7237_p5), %s6064_s25, 4096, %s6066_s26, %s6051_s16, %s7177_s7, %s7177_s7, %s7178_s9  }
 0xcdd PF: > { %p6852_p9 = scmp.ge.s32.totalorder %s7170_s15, 2  ;;  %s6080_s10 = sand.u32 1, %s7158_s12  }
 0xcde   : > { %s6081_s8 = scalar_lea.sflag [#allocation4], %s6080_s10 }
 0xcdf   : > { %p6847_p10 = pnand %p6852_p9, %p7241_p6 }
 0xce1   : > { %p6848_p11 = pneg %p6847_p10 }
 0xce3   : > { %7153 = dma.done.wait (%p6848_p11), %s6081_s8, 4096  }
 0xce4   : > { %7155 = vsyncadd (%p6848_p11), %s6081_s8, 4294963200  ;;  %p14_p12 = scmp.ge.s32.totalorder %s7224_s18, 4   ;;  %s9979_s12 = smov %s7162_s13 }
 0xce5   : > { %s9980_s13 = smov %s7166_s14  ;;  %s9981_s14 = smov %s7235_s21 }
 0xce6   : > { %s9982_s15 = smov %s7224_s18  ;;  %16 = sbr.rel (!%p14_p12) target bundleno = 4 (0x4), region = 72 }
 0xceb   :  { %6087 = vsyncpa [#allocation3], 1 }
 0xcec   :  { %6089 = vsyncpa [#allocation3 + $0x1], 1 }
 0xced   :  { %6090 = vsyncpa [#allocation4], 1 }
 0xcee   :  { %6092 = vsyncpa [#allocation4 + $0x1], 1 }

</bundles_post_ra>
